<compile_context>
chip_gen: v7x
topology: tpu7x:2x2x1
jax: 0.10.0
libtpu: 0.0.40
codegen_flags: <defaults>
</compile_context>

<pallas_src>
import math
import functools

import jax
import jax.numpy as jnp
from jax import lax
from jax.experimental import pallas as pl
from jax.experimental.pallas import tpu as pltpu

_EPS = 1e-6
_NEG_INF = -1e9
# MXU operands in bf16 with fp32 accumulation; weights stored bf16 in HBM.
_MXU_DTYPE = jnp.bfloat16
_W_DTYPE = jnp.bfloat16
# Hard cap safe on v7x (64 MiB physical VMEM) with headroom.
_VMEM_CAP = 48 * 1024 * 1024


def _vmem_limit(block_bytes):
    # Double-buffered per-step working set plus slack, clamped to a safe cap.
    return int(min(_VMEM_CAP, max(16 * 1024 * 1024, 2 * block_bytes + (4 << 20))))


def _compiler_params(n_axes, vmem_bytes):
    return pltpu.CompilerParams(
        dimension_semantics=("parallel",) * n_axes,
        vmem_limit_bytes=int(vmem_bytes))


def _nbytes(a):
    return int(a.size) * a.dtype.itemsize


def _row_tile(n):
    # Prefer large (512-1024) lane/sublane-friendly row tiles that divide n.
    for t in (1024, 512, 256, 128, 64, 32, 16, 8):
        if n % t == 0:
            return t
    return n


def _layer_norm_f32(x, g, b):
    # Annotated-transformer LayerNorm: a2*(x-mean)/(std+eps)+b2 with *unbiased*
    # std (torch.std default) -- matches the PyTorch reference, kept in fp32.
    d = x.shape[-1]
    mean = jnp.mean(x, axis=-1, keepdims=True)
    xc = x - mean
    std = jnp.sqrt(jnp.sum(xc * xc, axis=-1, keepdims=True) / (d - 1))
    return g * xc / (std + _EPS) + b


def _multihead_attn(q, k, v, n_head, amask):
    # q [T, D] fp32, k/v [S, D] fp32, amask [T, S] additive or None.
    # Per-head score/context matmuls (dk contraction is inherent to the model);
    # ctx heads are concatenated so the output projection is ONE full-width
    # [T,D]@[D,D] matmul outside this helper.
    T, D = q.shape
    dk = D // n_head
    scale = 1.0 / math.sqrt(dk)
    ctx_heads = []
    for h in range(n_head):
        q_h = q[:, h * dk:(h + 1) * dk].astype(_MXU_DTYPE)
        k_h = k[:, h * dk:(h + 1) * dk].astype(_MXU_DTYPE)
        v_h = v[:, h * dk:(h + 1) * dk].astype(_MXU_DTYPE)
        s = lax.dot_general(q_h, k_h, (((1,), (1,)), ((), ())),
                            preferred_element_type=jnp.float32) * scale   # [T, S]
        if amask is not None:
            s = s + amask
        s = s - jnp.max(s, axis=-1, keepdims=True)
        e = jnp.exp(s)
        p = e * pl.reciprocal(jnp.sum(e, axis=-1, keepdims=True), approx=True)
        ctx_heads.append(jnp.dot(p.astype(_MXU_DTYPE), v_h,
                                 preferred_element_type=jnp.float32))      # [T, dk]
    return jnp.concatenate(ctx_heads, axis=-1)                            # [T, D]


# ----------------------------- Pallas kernels ------------------------------

def _decoder_layer_kernel(x_ref, mem_ref, amask_ref,
                          g0_ref, b0_ref, wqkv_ref, bqkv_ref, wo1_ref, bo1_ref,
                          g1_ref, b1_ref, wq_ref, bq_ref, wkv_ref, bkv_ref,
                          wo2_ref, bo2_ref,
                          g2_ref, b2_ref, w1_ref, bf1_ref, w2_ref, bf2_ref,
                          o_ref, *, n_head):
    # One full decoder layer for one batch item: self-attn, cross-attn, FFN,
    # each with pre-LayerNorm and residual add (SublayerConnection, eval mode).
    x = x_ref[0].astype(jnp.float32)                         # [T, D]
    mem = mem_ref[0].astype(jnp.float32)                     # [S, D]
    amask = amask_ref[0]                                     # [T, T] additive 0/-1e9
    T, D = x.shape

    # --- sublayer 0: masked self-attention -------------------------------
    nx = _layer_norm_f32(x, g0_ref[...], b0_ref[...])
    qkv = jnp.dot(nx.astype(_MXU_DTYPE), wqkv_ref[...],
                  preferred_element_type=jnp.float32) + bqkv_ref[...]    # [T, 3D]
    q, k, v = qkv[:, :D], qkv[:, D:2 * D], qkv[:, 2 * D:]
    ctx = _multihead_attn(q, k, v, n_head, amask)                        # [T, D]
    out = jnp.dot(ctx.astype(_MXU_DTYPE), wo1_ref[...],
                  preferred_element_type=jnp.float32) + bo1_ref[...]
    x = x + out

    # --- sublayer 1: cross-attention on latent memory (no mask) ----------
    nx = _layer_norm_f32(x, g1_ref[...], b1_ref[...])
    qc = jnp.dot(nx.astype(_MXU_DTYPE), wq_ref[...],
                 preferred_element_type=jnp.float32) + bq_ref[...]       # [T, D]
    kv = jnp.dot(mem.astype(_MXU_DTYPE), wkv_ref[...],
                 preferred_element_type=jnp.float32) + bkv_ref[...]      # [S, 2D]
    kc, vc = kv[:, :D], kv[:, D:]
    ctx = _multihead_attn(qc, kc, vc, n_head, None)                      # [T, D]
    out = jnp.dot(ctx.astype(_MXU_DTYPE), wo2_ref[...],
                  preferred_element_type=jnp.float32) + bo2_ref[...]
    x = x + out

    # --- sublayer 2: position-wise feed-forward ---------------------------
    nx = _layer_norm_f32(x, g2_ref[...], b2_ref[...])
    hid = jnp.dot(nx.astype(_MXU_DTYPE), w1_ref[...],
                  preferred_element_type=jnp.float32) + bf1_ref[...]
    hid = jnp.maximum(hid, 0.0)
    y = jnp.dot(hid.astype(_MXU_DTYPE), w2_ref[...],
                preferred_element_type=jnp.float32) + bf2_ref[...]
    x = x + y

    o_ref[0] = x.astype(o_ref.dtype)


def _final_generator_kernel(x_ref, g_ref, b_ref, w_ref, bg_ref, o_ref):
    # Final decoder LayerNorm fused with generator Linear + exact log_softmax,
    # row-tiled over B*T rows (generator weight resident in bf16).
    x = x_ref[...].astype(jnp.float32)                        # [TN, D]
    nx = _layer_norm_f32(x, g_ref[...], b_ref[...])
    logits = jnp.dot(nx.astype(_MXU_DTYPE), w_ref[...],
                     preferred_element_type=jnp.float32) + bg_ref[...]   # [TN, V]
    z = logits - jnp.max(logits, axis=-1, keepdims=True)
    lse = jnp.log(jnp.sum(jnp.exp(z), axis=-1, keepdims=True))
    o_ref[...] = (z - lse).astype(o_ref.dtype)


# ------------------------------ Pallas wrappers -----------------------------

def pallas_decoder_layer(lp, x, memory, add_mask, n_head):
    B, T, D = x.shape
    S = memory.shape[1]
    sa, ca, ff = lp["self_attn"], lp["src_attn"], lp["ffn"]
    d_ff = ff["w1"].shape[1]

    weights = [lp["ln0"]["g"], lp["ln0"]["b"], sa["wqkv"], sa["bqkv"], sa["wo"], sa["bo"],
               lp["ln1"]["g"], lp["ln1"]["b"], ca["wq"], ca["bq"], ca["wkv"], ca["bkv"],
               ca["wo"], ca["bo"],
               lp["ln2"]["g"], lp["ln2"]["b"], ff["w1"], ff["b1"], ff["w2"], ff["b2"]]
    block_bytes = sum(_nbytes(w) for w in weights) + (2 * T * D + S * D + T * T) * 4

    kernel = functools.partial(_decoder_layer_kernel, n_head=n_head)
    const2 = lambda i: (0, 0)
    return pl.pallas_call(
        kernel,
        out_shape=jax.ShapeDtypeStruct((B, T, D), x.dtype),
        grid=(B,),
        in_specs=[
            pl.BlockSpec((1, T, D), lambda i: (i, 0, 0)),       # x tile
            pl.BlockSpec((1, S, D), lambda i: (i, 0, 0)),       # memory tile
            pl.BlockSpec((1, T, T), lambda i: (i, 0, 0)),       # additive mask
            pl.BlockSpec((1, D), const2),                       # ln0 gamma (resident)
            pl.BlockSpec((1, D), const2),                       # ln0 beta
            pl.BlockSpec((D, 3 * D), const2),                   # fused Wqkv (bf16)
            pl.BlockSpec((1, 3 * D), const2),                   # fused bqkv
            pl.BlockSpec((D, D), const2),                       # Wo (self)
            pl.BlockSpec((1, D), const2),                       # bo (self)
            pl.BlockSpec((1, D), const2),                       # ln1 gamma
            pl.BlockSpec((1, D), const2),                       # ln1 beta
            pl.BlockSpec((D, D), const2),                       # Wq (cross)
            pl.BlockSpec((1, D), const2),                       # bq (cross)
            pl.BlockSpec((D, 2 * D), const2),                   # fused Wkv (bf16)
            pl.BlockSpec((1, 2 * D), const2),                   # fused bkv
            pl.BlockSpec((D, D), const2),                       # Wo (cross)
            pl.BlockSpec((1, D), const2),                       # bo (cross)
            pl.BlockSpec((1, D), const2),                       # ln2 gamma
            pl.BlockSpec((1, D), const2),                       # ln2 beta
            pl.BlockSpec((D, d_ff), const2),                    # W1 (bf16)
            pl.BlockSpec((1, d_ff), const2),                    # b1
            pl.BlockSpec((d_ff, D), const2),                    # W2 (bf16)
            pl.BlockSpec((1, D), const2),                       # b2
        ],
        out_specs=pl.BlockSpec((1, T, D), lambda i: (i, 0, 0)),
        compiler_params=_compiler_params(1, _vmem_limit(block_bytes)),
    )(x, memory, add_mask,
      lp["ln0"]["g"].reshape(1, D), lp["ln0"]["b"].reshape(1, D),
      sa["wqkv"], sa["bqkv"].reshape(1, 3 * D), sa["wo"], sa["bo"].reshape(1, D),
      lp["ln1"]["g"].reshape(1, D), lp["ln1"]["b"].reshape(1, D),
      ca["wq"], ca["bq"].reshape(1, D), ca["wkv"], ca["bkv"].reshape(1, 2 * D),
      ca["wo"], ca["bo"].reshape(1, D),
      lp["ln2"]["g"].reshape(1, D), lp["ln2"]["b"].reshape(1, D),
      ff["w1"], ff["b1"].reshape(1, d_ff), ff["w2"], ff["b2"].reshape(1, D))


def pallas_final_generator(norm, gen, x):
    # Fused final LayerNorm + generator Linear + log_softmax, row-tiled.
    # TODO(synk): for very large vocabularies (e.g. 32K on v7x) tile V with a
    # second grid axis and a two-pass logsumexp instead of a resident [D,V].
    B, T, D = x.shape
    N = B * T
    V = gen["w"].shape[1]
    tn = _row_tile(N)
    block_bytes = _nbytes(gen["w"]) + _nbytes(gen["b"]) + 2 * D * 4 + tn * (D + V) * 4
    y = pl.pallas_call(
        _final_generator_kernel,
        out_shape=jax.ShapeDtypeStruct((N, V), x.dtype),
        grid=(N // tn,),
        in_specs=[
            pl.BlockSpec((tn, D), lambda i: (i, 0)),            # row tile
            pl.BlockSpec((1, D), lambda i: (0, 0)),             # final LN gamma
            pl.BlockSpec((1, D), lambda i: (0, 0)),             # final LN beta
            pl.BlockSpec((D, V), lambda i: (0, 0)),             # generator W (bf16)
            pl.BlockSpec((1, V), lambda i: (0, 0)),             # generator b
        ],
        out_specs=pl.BlockSpec((tn, V), lambda i: (i, 0)),
        compiler_params=_compiler_params(1, _vmem_limit(block_bytes)),
    )(x.reshape(N, D), norm["g"].reshape(1, D), norm["b"].reshape(1, D),
      gen["w"], gen["b"].reshape(1, V))
    return y.reshape(B, T, V)


# ------------------------------- Model forward ------------------------------

def tgvae_decode(params, smi_emb, memory, smi_mask, *, n_head):
    # TGVAE.inference tail: Decoder -> generator Linear -> log_softmax.
    B, T, _ = smi_emb.shape
    # Additive mask (0 keep / -1e9 masked) built once per forward; accepts
    # [B,1,T] padding masks or full [B,T,T] (padding & subsequent) masks.
    add_mask = jnp.where(smi_mask == 0, _NEG_INF, 0.0).astype(jnp.float32)
    add_mask = jnp.broadcast_to(add_mask, (B, T, T))
    x = smi_emb
    for lp in params["layers"]:
        x = pallas_decoder_layer(lp, x, memory, add_mask, n_head)
    return pallas_final_generator(params["norm"], params["generator"], x)


# ------------------------------ Parameter init ------------------------------

def _linear_w(key, d_in, d_out):
    kw, kb = jax.random.split(key)
    w = jax.random.normal(kw, (d_in, d_out), jnp.float32) / math.sqrt(d_in)
    b = 0.01 * jax.random.normal(kb, (d_out,), jnp.float32)
    return w, b


def _ln_params(d):
    return {"g": jnp.ones((d,), jnp.float32), "b": jnp.zeros((d,), jnp.float32)}


def init_params(key, d_model, d_ff, n_layer, vocab):
    layers = []
    for _ in range(n_layer):
        key, *ks = jax.random.split(key, 11)
        wq, bq = _linear_w(ks[0], d_model, d_model)
        wk, bk = _linear_w(ks[1], d_model, d_model)
        wv, bv = _linear_w(ks[2], d_model, d_model)
        wo, bo = _linear_w(ks[3], d_model, d_model)
        cwq, cbq = _linear_w(ks[4], d_model, d_model)
        cwk, cbk = _linear_w(ks[5], d_model, d_model)
        cwv, cbv = _linear_w(ks[6], d_model, d_model)
        cwo, cbo = _linear_w(ks[7], d_model, d_model)
        w1, b1 = _linear_w(ks[8], d_model, d_ff)
        w2, b2 = _linear_w(ks[9], d_ff, d_model)
        layers.append({
            "ln0": _ln_params(d_model),
            "ln1": _ln_params(d_model),
            "ln2": _ln_params(d_model),
            # Fused weights built once at init and STORED in bf16 (halves HBM
            # weight traffic); biases / LN params remain fp32.
            "self_attn": {"wqkv": jnp.concatenate([wq, wk, wv], axis=1).astype(_W_DTYPE),
                          "bqkv": jnp.concatenate([bq, bk, bv], axis=0),
                          "wo": wo.astype(_W_DTYPE), "bo": bo},
            "src_attn": {"wq": cwq.astype(_W_DTYPE), "bq": cbq,
                         "wkv": jnp.concatenate([cwk, cwv], axis=1).astype(_W_DTYPE),
                         "bkv": jnp.concatenate([cbk, cbv], axis=0),
                         "wo": cwo.astype(_W_DTYPE), "bo": cbo},
            "ffn": {"w1": w1.astype(_W_DTYPE), "b1": b1,
                    "w2": w2.astype(_W_DTYPE), "b2": b2},
        })
    key, kg = jax.random.split(key)
    wg, bg = _linear_w(kg, d_model, vocab)
    return {"layers": layers, "norm": _ln_params(d_model),
            "generator": {"w": wg.astype(_W_DTYPE), "b": bg}}


# ----------------------------------- Main -----------------------------------
# TODO(synk): GATConv graph encoder, embedding/positional-encoding lookup and
# the latent reparameterization (torch.rand_like) are outside this kernel's
# scope; the decoder consumes an already-embedded sequence and a latent memory.

if __name__ == "__main__":
    # Small but lane-dense shapes (d_model, d_ff, vocab multiples of 128);
    # head_dim = d_model // n_head = 128 keeps per-head slices 128-lane aligned.
    B, T, S = 4, 16, 8
    d_model, d_ff, n_head, n_layer, vocab = 256, 512, 2, 2, 256

    root = jax.random.PRNGKey(0)
    kp, kx, km = jax.random.split(root, 3)

    params = init_params(kp, d_model, d_ff, n_layer, vocab)
    smi_emb = jax.random.normal(kx, (B, T, d_model), jnp.float32)   # embedded SMILES
    memory = jax.random.normal(km, (B, S, d_model), jnp.float32)    # latent memory z

    # smi_mask = padding & subsequent mask [B, T, T] (annotated-transformer
    # tgt_mask semantics): last 3 target positions are padding.
    pad = jnp.ones((B, 1, T), jnp.float32).at[:, :, T - 3:].set(0.0)
    causal = jnp.tril(jnp.ones((1, T, T), jnp.float32))
    smi_mask = pad * causal                                          # 1 keep / 0 mask

    fwd = jax.jit(functools.partial(tgvae_decode, n_head=n_head))
    out = jax.block_until_ready(fwd(params, smi_emb, memory, smi_mask))

    assert out.shape == (B, T, vocab)
    assert bool(jnp.all(jnp.isfinite(out)))
    print("KERNEL_OK")
</pallas_src>

<mosaic_0001>
module attributes {stable_mosaic.version = 11 : i64} {
  func.func @_decoder_layer_kernel(%arg0: i32, %arg1: memref<1x16x256xf32, #tpu.memory_space<vmem>>, %arg2: memref<1x8x256xf32, #tpu.memory_space<vmem>>, %arg3: memref<1x16x16xf32, #tpu.memory_space<vmem>>, %arg4: memref<1x256xf32, #tpu.memory_space<vmem>>, %arg5: memref<1x256xf32, #tpu.memory_space<vmem>>, %arg6: memref<256x768xbf16, #tpu.memory_space<vmem>>, %arg7: memref<1x768xf32, #tpu.memory_space<vmem>>, %arg8: memref<256x256xbf16, #tpu.memory_space<vmem>>, %arg9: memref<1x256xf32, #tpu.memory_space<vmem>>, %arg10: memref<1x256xf32, #tpu.memory_space<vmem>>, %arg11: memref<1x256xf32, #tpu.memory_space<vmem>>, %arg12: memref<256x256xbf16, #tpu.memory_space<vmem>>, %arg13: memref<1x256xf32, #tpu.memory_space<vmem>>, %arg14: memref<256x512xbf16, #tpu.memory_space<vmem>>, %arg15: memref<1x512xf32, #tpu.memory_space<vmem>>, %arg16: memref<256x256xbf16, #tpu.memory_space<vmem>>, %arg17: memref<1x256xf32, #tpu.memory_space<vmem>>, %arg18: memref<1x256xf32, #tpu.memory_space<vmem>>, %arg19: memref<1x256xf32, #tpu.memory_space<vmem>>, %arg20: memref<256x512xbf16, #tpu.memory_space<vmem>>, %arg21: memref<1x512xf32, #tpu.memory_space<vmem>>, %arg22: memref<512x256xbf16, #tpu.memory_space<vmem>>, %arg23: memref<1x256xf32, #tpu.memory_space<vmem>>, %arg24: memref<1x16x256xf32, #tpu.memory_space<vmem>>) attributes {dimension_semantics = [#tpu.dimension_semantics<parallel>], iteration_bounds = array<i64: 4>, scalar_prefetch = 0 : i64, scratch_operands = 0 : i64, tpu.core_type = #tpu.core_type<tc>, window_params = [{transform_indices = @transform_0, window_bounds = array<i64: 1, 16, 256>}, {transform_indices = @transform_1, window_bounds = array<i64: 1, 8, 256>}, {transform_indices = @transform_2, window_bounds = array<i64: 1, 16, 16>}, {pipeline_mode = #tpu.pipeline_mode<synchronous>, transform_indices = @transform_3, window_bounds = array<i64: 1, 256>}, {pipeline_mode = #tpu.pipeline_mode<synchronous>, transform_indices = @transform_4, window_bounds = array<i64: 1, 256>}, {pipeline_mode = #tpu.pipeline_mode<synchronous>, transform_indices = @transform_5, window_bounds = array<i64: 256, 768>}, {pipeline_mode = #tpu.pipeline_mode<synchronous>, transform_indices = @transform_6, window_bounds = array<i64: 1, 768>}, {pipeline_mode = #tpu.pipeline_mode<synchronous>, transform_indices = @transform_7, window_bounds = array<i64: 256, 256>}, {pipeline_mode = #tpu.pipeline_mode<synchronous>, transform_indices = @transform_8, window_bounds = array<i64: 1, 256>}, {pipeline_mode = #tpu.pipeline_mode<synchronous>, transform_indices = @transform_9, window_bounds = array<i64: 1, 256>}, {pipeline_mode = #tpu.pipeline_mode<synchronous>, transform_indices = @transform_10, window_bounds = array<i64: 1, 256>}, {pipeline_mode = #tpu.pipeline_mode<synchronous>, transform_indices = @transform_11, window_bounds = array<i64: 256, 256>}, {pipeline_mode = #tpu.pipeline_mode<synchronous>, transform_indices = @transform_12, window_bounds = array<i64: 1, 256>}, {pipeline_mode = #tpu.pipeline_mode<synchronous>, transform_indices = @transform_13, window_bounds = array<i64: 256, 512>}, {pipeline_mode = #tpu.pipeline_mode<synchronous>, transform_indices = @transform_14, window_bounds = array<i64: 1, 512>}, {pipeline_mode = #tpu.pipeline_mode<synchronous>, transform_indices = @transform_15, window_bounds = array<i64: 256, 256>}, {pipeline_mode = #tpu.pipeline_mode<synchronous>, transform_indices = @transform_16, window_bounds = array<i64: 1, 256>}, {pipeline_mode = #tpu.pipeline_mode<synchronous>, transform_indices = @transform_17, window_bounds = array<i64: 1, 256>}, {pipeline_mode = #tpu.pipeline_mode<synchronous>, transform_indices = @transform_18, window_bounds = array<i64: 1, 256>}, {pipeline_mode = #tpu.pipeline_mode<synchronous>, transform_indices = @transform_19, window_bounds = array<i64: 256, 512>}, {pipeline_mode = #tpu.pipeline_mode<synchronous>, transform_indices = @transform_20, window_bounds = array<i64: 1, 512>}, {pipeline_mode = #tpu.pipeline_mode<synchronous>, transform_indices = @transform_21, window_bounds = array<i64: 512, 256>}, {pipeline_mode = #tpu.pipeline_mode<synchronous>, transform_indices = @transform_22, window_bounds = array<i64: 1, 256>}, {transform_indices = @transform_23, window_bounds = array<i64: 1, 16, 256>}]} {
    %c0 = arith.constant 0 : index
    %c0_0 = arith.constant 0 : index
    %c0_1 = arith.constant 0 : index
    %0 = vector.load %arg1[%c0, %c0_0, %c0_1] : memref<1x16x256xf32, #tpu.memory_space<vmem>>, vector<1x16x256xf32>
    %1 = vector.shape_cast %0 : vector<1x16x256xf32> to vector<16x256xf32>
    %c0_2 = arith.constant 0 : index
    %c0_3 = arith.constant 0 : index
    %c0_4 = arith.constant 0 : index
    %2 = vector.load %arg2[%c0_2, %c0_3, %c0_4] : memref<1x8x256xf32, #tpu.memory_space<vmem>>, vector<1x8x256xf32>
    %3 = vector.shape_cast %2 : vector<1x8x256xf32> to vector<8x256xf32>
    %c0_5 = arith.constant 0 : index
    %c0_6 = arith.constant 0 : index
    %c0_7 = arith.constant 0 : index
    %4 = vector.load %arg3[%c0_5, %c0_6, %c0_7] : memref<1x16x16xf32, #tpu.memory_space<vmem>>, vector<1x16x16xf32>
    %5 = vector.shape_cast %4 : vector<1x16x16xf32> to vector<16x16xf32>
    %c0_8 = arith.constant 0 : index
    %c0_9 = arith.constant 0 : index
    %6 = vector.load %arg4[%c0_8, %c0_9] : memref<1x256xf32, #tpu.memory_space<vmem>>, vector<1x256xf32>
    %c0_10 = arith.constant 0 : index
    %c0_11 = arith.constant 0 : index
    %7 = vector.load %arg5[%c0_10, %c0_11] : memref<1x256xf32, #tpu.memory_space<vmem>>, vector<1x256xf32>
    %cst = arith.constant dense<0.000000e+00> : vector<16xf32>
    %8 = vector.multi_reduction <add>, %1, %cst [1] : vector<16x256xf32> to vector<16xf32>
    %9 = vector.shape_cast %8 : vector<16xf32> to vector<16x1xf32>
    %cst_12 = arith.constant 2.560000e+02 : f32
    %10 = vector.broadcast %cst_12 : f32 to vector<16x1xf32>
    %11 = arith.divf %9, %10 : vector<16x1xf32>
    %12 = vector.broadcast %11 : vector<16x1xf32> to vector<16x256xf32>
    %13 = arith.subf %1, %12 : vector<16x256xf32>
    %14 = arith.mulf %13, %13 : vector<16x256xf32>
    %cst_13 = arith.constant dense<0.000000e+00> : vector<16xf32>
    %15 = vector.multi_reduction <add>, %14, %cst_13 [1] : vector<16x256xf32> to vector<16xf32>
    %16 = vector.shape_cast %15 : vector<16xf32> to vector<16x1xf32>
    %cst_14 = arith.constant 2.550000e+02 : f32
    %17 = vector.broadcast %cst_14 : f32 to vector<16x1xf32>
    %18 = arith.divf %16, %17 : vector<16x1xf32>
    %19 = math.sqrt %18 : vector<16x1xf32>
    %20 = vector.broadcast %6 : vector<1x256xf32> to vector<16x256xf32>
    %21 = arith.mulf %20, %13 : vector<16x256xf32>
    %cst_15 = arith.constant 9.99999997E-7 : f32
    %22 = vector.broadcast %cst_15 : f32 to vector<16x1xf32>
    %23 = arith.addf %19, %22 : vector<16x1xf32>
    %24 = vector.broadcast %23 : vector<16x1xf32> to vector<16x256xf32>
    %25 = arith.divf %21, %24 : vector<16x256xf32>
    %26 = vector.broadcast %7 : vector<1x256xf32> to vector<16x256xf32>
    %27 = arith.addf %25, %26 : vector<16x256xf32>
    %28 = arith.truncf %27 : vector<16x256xf32> to vector<16x256xbf16>
    %c0_16 = arith.constant 0 : index
    %c0_17 = arith.constant 0 : index
    %29 = vector.load %arg6[%c0_16, %c0_17] : memref<256x768xbf16, #tpu.memory_space<vmem>>, vector<256x768xbf16>
    %cst_18 = arith.constant dense<0.000000e+00> : vector<16x768xf32>
    %30 = tpu.matmul %28, %29, %cst_18 {dimension_numbers = #tpu.dot_dimension_numbers<[1], [0], [0], [1], [0, 0, 1, 1], [], []>} : vector<16x256xbf16>, vector<256x768xbf16>, vector<16x768xf32> -> vector<16x768xf32>
    %c0_19 = arith.constant 0 : index
    %c0_20 = arith.constant 0 : index
    %31 = vector.load %arg7[%c0_19, %c0_20] : memref<1x768xf32, #tpu.memory_space<vmem>>, vector<1x768xf32>
    %32 = vector.broadcast %31 : vector<1x768xf32> to vector<16x768xf32>
    %33 = arith.addf %30, %32 : vector<16x768xf32>
    %34 = vector.extract_strided_slice %33 {offsets = [0, 0], sizes = [16, 256], strides = [1, 1]} : vector<16x768xf32> to vector<16x256xf32>
    %35 = vector.extract_strided_slice %33 {offsets = [0, 256], sizes = [16, 256], strides = [1, 1]} : vector<16x768xf32> to vector<16x256xf32>
    %36 = vector.extract_strided_slice %33 {offsets = [0, 512], sizes = [16, 256], strides = [1, 1]} : vector<16x768xf32> to vector<16x256xf32>
    %37 = vector.extract_strided_slice %34 {offsets = [0, 0], sizes = [16, 128], strides = [1, 1]} : vector<16x256xf32> to vector<16x128xf32>
    %38 = arith.truncf %37 : vector<16x128xf32> to vector<16x128xbf16>
    %39 = vector.extract_strided_slice %35 {offsets = [0, 0], sizes = [16, 128], strides = [1, 1]} : vector<16x256xf32> to vector<16x128xf32>
    %40 = arith.truncf %39 : vector<16x128xf32> to vector<16x128xbf16>
    %41 = vector.extract_strided_slice %36 {offsets = [0, 0], sizes = [16, 128], strides = [1, 1]} : vector<16x256xf32> to vector<16x128xf32>
    %42 = arith.truncf %41 : vector<16x128xf32> to vector<16x128xbf16>
    %cst_21 = arith.constant dense<0.000000e+00> : vector<16x16xf32>
    %43 = tpu.matmul %38, %40, %cst_21 {dimension_numbers = #tpu.dot_dimension_numbers<[1], [1], [0], [0], [0, 0, 1, 0], [], []>} : vector<16x128xbf16>, vector<16x128xbf16>, vector<16x16xf32> -> vector<16x16xf32>
    %cst_22 = arith.constant 0.0883883461 : f32
    %44 = vector.broadcast %cst_22 : f32 to vector<16x16xf32>
    %45 = arith.mulf %43, %44 : vector<16x16xf32>
    %46 = arith.addf %45, %5 : vector<16x16xf32>
    %cst_23 = arith.constant dense<0xFF800000> : vector<16xf32>
    %47 = vector.multi_reduction <maximumf>, %46, %cst_23 [1] : vector<16x16xf32> to vector<16xf32>
    %48 = vector.shape_cast %47 : vector<16xf32> to vector<16x1xf32>
    %49 = vector.broadcast %48 : vector<16x1xf32> to vector<16x16xf32>
    %50 = arith.subf %46, %49 : vector<16x16xf32>
    %51 = math.exp %50 : vector<16x16xf32>
    %cst_24 = arith.constant dense<0.000000e+00> : vector<16xf32>
    %52 = vector.multi_reduction <add>, %51, %cst_24 [1] : vector<16x16xf32> to vector<16xf32>
    %53 = vector.shape_cast %52 : vector<16xf32> to vector<16x1xf32>
    %54 = tpu.reciprocal %53 {approx = true} : vector<16x1xf32> -> vector<16x1xf32>
    %55 = vector.broadcast %54 : vector<16x1xf32> to vector<16x16xf32>
    %56 = arith.mulf %51, %55 : vector<16x16xf32>
    %57 = arith.truncf %56 : vector<16x16xf32> to vector<16x16xbf16>
    %cst_25 = arith.constant dense<0.000000e+00> : vector<16x128xf32>
    %58 = tpu.matmul %57, %42, %cst_25 {dimension_numbers = #tpu.dot_dimension_numbers<[1], [0], [0], [1], [0, 0, 1, 1], [], []>} : vector<16x16xbf16>, vector<16x128xbf16>, vector<16x128xf32> -> vector<16x128xf32>
    %59 = vector.extract_strided_slice %34 {offsets = [0, 128], sizes = [16, 128], strides = [1, 1]} : vector<16x256xf32> to vector<16x128xf32>
    %60 = arith.truncf %59 : vector<16x128xf32> to vector<16x128xbf16>
    %61 = vector.extract_strided_slice %35 {offsets = [0, 128], sizes = [16, 128], strides = [1, 1]} : vector<16x256xf32> to vector<16x128xf32>
    %62 = arith.truncf %61 : vector<16x128xf32> to vector<16x128xbf16>
    %63 = vector.extract_strided_slice %36 {offsets = [0, 128], sizes = [16, 128], strides = [1, 1]} : vector<16x256xf32> to vector<16x128xf32>
    %64 = arith.truncf %63 : vector<16x128xf32> to vector<16x128xbf16>
    %cst_26 = arith.constant dense<0.000000e+00> : vector<16x16xf32>
    %65 = tpu.matmul %60, %62, %cst_26 {dimension_numbers = #tpu.dot_dimension_numbers<[1], [1], [0], [0], [0, 0, 1, 0], [], []>} : vector<16x128xbf16>, vector<16x128xbf16>, vector<16x16xf32> -> vector<16x16xf32>
    %cst_27 = arith.constant 0.0883883461 : f32
    %66 = vector.broadcast %cst_27 : f32 to vector<16x16xf32>
    %67 = arith.mulf %65, %66 : vector<16x16xf32>
    %68 = arith.addf %67, %5 : vector<16x16xf32>
    %cst_28 = arith.constant dense<0xFF800000> : vector<16xf32>
    %69 = vector.multi_reduction <maximumf>, %68, %cst_28 [1] : vector<16x16xf32> to vector<16xf32>
    %70 = vector.shape_cast %69 : vector<16xf32> to vector<16x1xf32>
    %71 = vector.broadcast %70 : vector<16x1xf32> to vector<16x16xf32>
    %72 = arith.subf %68, %71 : vector<16x16xf32>
    %73 = math.exp %72 : vector<16x16xf32>
    %cst_29 = arith.constant dense<0.000000e+00> : vector<16xf32>
    %74 = vector.multi_reduction <add>, %73, %cst_29 [1] : vector<16x16xf32> to vector<16xf32>
    %75 = vector.shape_cast %74 : vector<16xf32> to vector<16x1xf32>
    %76 = tpu.reciprocal %75 {approx = true} : vector<16x1xf32> -> vector<16x1xf32>
    %77 = vector.broadcast %76 : vector<16x1xf32> to vector<16x16xf32>
    %78 = arith.mulf %73, %77 : vector<16x16xf32>
    %79 = arith.truncf %78 : vector<16x16xf32> to vector<16x16xbf16>
    %cst_30 = arith.constant dense<0.000000e+00> : vector<16x128xf32>
    %80 = tpu.matmul %79, %64, %cst_30 {dimension_numbers = #tpu.dot_dimension_numbers<[1], [0], [0], [1], [0, 0, 1, 1], [], []>} : vector<16x16xbf16>, vector<16x128xbf16>, vector<16x128xf32> -> vector<16x128xf32>
    %81 = tpu.concatenate %58, %80 in 1 : vector<16x128xf32>, vector<16x128xf32> -> vector<16x256xf32>
    %82 = arith.truncf %81 : vector<16x256xf32> to vector<16x256xbf16>
    %c0_31 = arith.constant 0 : index
    %c0_32 = arith.constant 0 : index
    %83 = vector.load %arg8[%c0_31, %c0_32] : memref<256x256xbf16, #tpu.memory_space<vmem>>, vector<256x256xbf16>
    %cst_33 = arith.constant dense<0.000000e+00> : vector<16x256xf32>
    %84 = tpu.matmul %82, %83, %cst_33 {dimension_numbers = #tpu.dot_dimension_numbers<[1], [0], [0], [1], [0, 0, 1, 1], [], []>} : vector<16x256xbf16>, vector<256x256xbf16>, vector<16x256xf32> -> vector<16x256xf32>
    %c0_34 = arith.constant 0 : index
    %c0_35 = arith.constant 0 : index
    %85 = vector.load %arg9[%c0_34, %c0_35] : memref<1x256xf32, #tpu.memory_space<vmem>>, vector<1x256xf32>
    %86 = vector.broadcast %85 : vector<1x256xf32> to vector<16x256xf32>
    %87 = arith.addf %84, %86 : vector<16x256xf32>
    %88 = arith.addf %1, %87 : vector<16x256xf32>
    %c0_36 = arith.constant 0 : index
    %c0_37 = arith.constant 0 : index
    %89 = vector.load %arg10[%c0_36, %c0_37] : memref<1x256xf32, #tpu.memory_space<vmem>>, vector<1x256xf32>
    %c0_38 = arith.constant 0 : index
    %c0_39 = arith.constant 0 : index
    %90 = vector.load %arg11[%c0_38, %c0_39] : memref<1x256xf32, #tpu.memory_space<vmem>>, vector<1x256xf32>
    %cst_40 = arith.constant dense<0.000000e+00> : vector<16xf32>
    %91 = vector.multi_reduction <add>, %88, %cst_40 [1] : vector<16x256xf32> to vector<16xf32>
    %92 = vector.shape_cast %91 : vector<16xf32> to vector<16x1xf32>
    %cst_41 = arith.constant 2.560000e+02 : f32
    %93 = vector.broadcast %cst_41 : f32 to vector<16x1xf32>
    %94 = arith.divf %92, %93 : vector<16x1xf32>
    %95 = vector.broadcast %94 : vector<16x1xf32> to vector<16x256xf32>
    %96 = arith.subf %88, %95 : vector<16x256xf32>
    %97 = arith.mulf %96, %96 : vector<16x256xf32>
    %cst_42 = arith.constant dense<0.000000e+00> : vector<16xf32>
    %98 = vector.multi_reduction <add>, %97, %cst_42 [1] : vector<16x256xf32> to vector<16xf32>
    %99 = vector.shape_cast %98 : vector<16xf32> to vector<16x1xf32>
    %cst_43 = arith.constant 2.550000e+02 : f32
    %100 = vector.broadcast %cst_43 : f32 to vector<16x1xf32>
    %101 = arith.divf %99, %100 : vector<16x1xf32>
    %102 = math.sqrt %101 : vector<16x1xf32>
    %103 = vector.broadcast %89 : vector<1x256xf32> to vector<16x256xf32>
    %104 = arith.mulf %103, %96 : vector<16x256xf32>
    %cst_44 = arith.constant 9.99999997E-7 : f32
    %105 = vector.broadcast %cst_44 : f32 to vector<16x1xf32>
    %106 = arith.addf %102, %105 : vector<16x1xf32>
    %107 = vector.broadcast %106 : vector<16x1xf32> to vector<16x256xf32>
    %108 = arith.divf %104, %107 : vector<16x256xf32>
    %109 = vector.broadcast %90 : vector<1x256xf32> to vector<16x256xf32>
    %110 = arith.addf %108, %109 : vector<16x256xf32>
    %111 = arith.truncf %110 : vector<16x256xf32> to vector<16x256xbf16>
    %c0_45 = arith.constant 0 : index
    %c0_46 = arith.constant 0 : index
    %112 = vector.load %arg12[%c0_45, %c0_46] : memref<256x256xbf16, #tpu.memory_space<vmem>>, vector<256x256xbf16>
    %cst_47 = arith.constant dense<0.000000e+00> : vector<16x256xf32>
    %113 = tpu.matmul %111, %112, %cst_47 {dimension_numbers = #tpu.dot_dimension_numbers<[1], [0], [0], [1], [0, 0, 1, 1], [], []>} : vector<16x256xbf16>, vector<256x256xbf16>, vector<16x256xf32> -> vector<16x256xf32>
    %c0_48 = arith.constant 0 : index
    %c0_49 = arith.constant 0 : index
    %114 = vector.load %arg13[%c0_48, %c0_49] : memref<1x256xf32, #tpu.memory_space<vmem>>, vector<1x256xf32>
    %115 = vector.broadcast %114 : vector<1x256xf32> to vector<16x256xf32>
    %116 = arith.addf %113, %115 : vector<16x256xf32>
    %117 = arith.truncf %3 : vector<8x256xf32> to vector<8x256xbf16>
    %c0_50 = arith.constant 0 : index
    %c0_51 = arith.constant 0 : index
    %118 = vector.load %arg14[%c0_50, %c0_51] : memref<256x512xbf16, #tpu.memory_space<vmem>>, vector<256x512xbf16>
    %cst_52 = arith.constant dense<0.000000e+00> : vector<8x512xf32>
    %119 = tpu.matmul %117, %118, %cst_52 {dimension_numbers = #tpu.dot_dimension_numbers<[1], [0], [0], [1], [0, 0, 1, 1], [], []>} : vector<8x256xbf16>, vector<256x512xbf16>, vector<8x512xf32> -> vector<8x512xf32>
    %c0_53 = arith.constant 0 : index
    %c0_54 = arith.constant 0 : index
    %120 = vector.load %arg15[%c0_53, %c0_54] : memref<1x512xf32, #tpu.memory_space<vmem>>, vector<1x512xf32>
    %121 = vector.broadcast %120 : vector<1x512xf32> to vector<8x512xf32>
    %122 = arith.addf %119, %121 : vector<8x512xf32>
    %123 = vector.extract_strided_slice %122 {offsets = [0, 0], sizes = [8, 256], strides = [1, 1]} : vector<8x512xf32> to vector<8x256xf32>
    %124 = vector.extract_strided_slice %122 {offsets = [0, 256], sizes = [8, 256], strides = [1, 1]} : vector<8x512xf32> to vector<8x256xf32>
    %125 = vector.extract_strided_slice %116 {offsets = [0, 0], sizes = [16, 128], strides = [1, 1]} : vector<16x256xf32> to vector<16x128xf32>
    %126 = arith.truncf %125 : vector<16x128xf32> to vector<16x128xbf16>
    %127 = vector.extract_strided_slice %123 {offsets = [0, 0], sizes = [8, 128], strides = [1, 1]} : vector<8x256xf32> to vector<8x128xf32>
    %128 = arith.truncf %127 : vector<8x128xf32> to vector<8x128xbf16>
    %129 = vector.extract_strided_slice %124 {offsets = [0, 0], sizes = [8, 128], strides = [1, 1]} : vector<8x256xf32> to vector<8x128xf32>
    %130 = arith.truncf %129 : vector<8x128xf32> to vector<8x128xbf16>
    %cst_55 = arith.constant dense<0.000000e+00> : vector<16x8xf32>
    %131 = tpu.matmul %126, %128, %cst_55 {dimension_numbers = #tpu.dot_dimension_numbers<[1], [1], [0], [0], [0, 0, 1, 0], [], []>} : vector<16x128xbf16>, vector<8x128xbf16>, vector<16x8xf32> -> vector<16x8xf32>
    %cst_56 = arith.constant 0.0883883461 : f32
    %132 = vector.broadcast %cst_56 : f32 to vector<16x8xf32>
    %133 = arith.mulf %131, %132 : vector<16x8xf32>
    %cst_57 = arith.constant dense<0xFF800000> : vector<16xf32>
    %134 = vector.multi_reduction <maximumf>, %133, %cst_57 [1] : vector<16x8xf32> to vector<16xf32>
    %135 = vector.shape_cast %134 : vector<16xf32> to vector<16x1xf32>
    %136 = vector.broadcast %135 : vector<16x1xf32> to vector<16x8xf32>
    %137 = arith.subf %133, %136 : vector<16x8xf32>
    %138 = math.exp %137 : vector<16x8xf32>
    %cst_58 = arith.constant dense<0.000000e+00> : vector<16xf32>
    %139 = vector.multi_reduction <add>, %138, %cst_58 [1] : vector<16x8xf32> to vector<16xf32>
    %140 = vector.shape_cast %139 : vector<16xf32> to vector<16x1xf32>
    %141 = tpu.reciprocal %140 {approx = true} : vector<16x1xf32> -> vector<16x1xf32>
    %142 = vector.broadcast %141 : vector<16x1xf32> to vector<16x8xf32>
    %143 = arith.mulf %138, %142 : vector<16x8xf32>
    %144 = arith.truncf %143 : vector<16x8xf32> to vector<16x8xbf16>
    %cst_59 = arith.constant dense<0.000000e+00> : vector<16x128xf32>
    %145 = tpu.matmul %144, %130, %cst_59 {dimension_numbers = #tpu.dot_dimension_numbers<[1], [0], [0], [1], [0, 0, 1, 1], [], []>} : vector<16x8xbf16>, vector<8x128xbf16>, vector<16x128xf32> -> vector<16x128xf32>
    %146 = vector.extract_strided_slice %116 {offsets = [0, 128], sizes = [16, 128], strides = [1, 1]} : vector<16x256xf32> to vector<16x128xf32>
    %147 = arith.truncf %146 : vector<16x128xf32> to vector<16x128xbf16>
    %148 = vector.extract_strided_slice %123 {offsets = [0, 128], sizes = [8, 128], strides = [1, 1]} : vector<8x256xf32> to vector<8x128xf32>
    %149 = arith.truncf %148 : vector<8x128xf32> to vector<8x128xbf16>
    %150 = vector.extract_strided_slice %124 {offsets = [0, 128], sizes = [8, 128], strides = [1, 1]} : vector<8x256xf32> to vector<8x128xf32>
    %151 = arith.truncf %150 : vector<8x128xf32> to vector<8x128xbf16>
    %cst_60 = arith.constant dense<0.000000e+00> : vector<16x8xf32>
    %152 = tpu.matmul %147, %149, %cst_60 {dimension_numbers = #tpu.dot_dimension_numbers<[1], [1], [0], [0], [0, 0, 1, 0], [], []>} : vector<16x128xbf16>, vector<8x128xbf16>, vector<16x8xf32> -> vector<16x8xf32>
    %cst_61 = arith.constant 0.0883883461 : f32
    %153 = vector.broadcast %cst_61 : f32 to vector<16x8xf32>
    %154 = arith.mulf %152, %153 : vector<16x8xf32>
    %cst_62 = arith.constant dense<0xFF800000> : vector<16xf32>
    %155 = vector.multi_reduction <maximumf>, %154, %cst_62 [1] : vector<16x8xf32> to vector<16xf32>
    %156 = vector.shape_cast %155 : vector<16xf32> to vector<16x1xf32>
    %157 = vector.broadcast %156 : vector<16x1xf32> to vector<16x8xf32>
    %158 = arith.subf %154, %157 : vector<16x8xf32>
    %159 = math.exp %158 : vector<16x8xf32>
    %cst_63 = arith.constant dense<0.000000e+00> : vector<16xf32>
    %160 = vector.multi_reduction <add>, %159, %cst_63 [1] : vector<16x8xf32> to vector<16xf32>
    %161 = vector.shape_cast %160 : vector<16xf32> to vector<16x1xf32>
    %162 = tpu.reciprocal %161 {approx = true} : vector<16x1xf32> -> vector<16x1xf32>
    %163 = vector.broadcast %162 : vector<16x1xf32> to vector<16x8xf32>
    %164 = arith.mulf %159, %163 : vector<16x8xf32>
    %165 = arith.truncf %164 : vector<16x8xf32> to vector<16x8xbf16>
    %cst_64 = arith.constant dense<0.000000e+00> : vector<16x128xf32>
    %166 = tpu.matmul %165, %151, %cst_64 {dimension_numbers = #tpu.dot_dimension_numbers<[1], [0], [0], [1], [0, 0, 1, 1], [], []>} : vector<16x8xbf16>, vector<8x128xbf16>, vector<16x128xf32> -> vector<16x128xf32>
    %167 = tpu.concatenate %145, %166 in 1 : vector<16x128xf32>, vector<16x128xf32> -> vector<16x256xf32>
    %168 = arith.truncf %167 : vector<16x256xf32> to vector<16x256xbf16>
    %c0_65 = arith.constant 0 : index
    %c0_66 = arith.constant 0 : index
    %169 = vector.load %arg16[%c0_65, %c0_66] : memref<256x256xbf16, #tpu.memory_space<vmem>>, vector<256x256xbf16>
    %cst_67 = arith.constant dense<0.000000e+00> : vector<16x256xf32>
    %170 = tpu.matmul %168, %169, %cst_67 {dimension_numbers = #tpu.dot_dimension_numbers<[1], [0], [0], [1], [0, 0, 1, 1], [], []>} : vector<16x256xbf16>, vector<256x256xbf16>, vector<16x256xf32> -> vector<16x256xf32>
    %c0_68 = arith.constant 0 : index
    %c0_69 = arith.constant 0 : index
    %171 = vector.load %arg17[%c0_68, %c0_69] : memref<1x256xf32, #tpu.memory_space<vmem>>, vector<1x256xf32>
    %172 = vector.broadcast %171 : vector<1x256xf32> to vector<16x256xf32>
    %173 = arith.addf %170, %172 : vector<16x256xf32>
    %174 = arith.addf %88, %173 : vector<16x256xf32>
    %c0_70 = arith.constant 0 : index
    %c0_71 = arith.constant 0 : index
    %175 = vector.load %arg18[%c0_70, %c0_71] : memref<1x256xf32, #tpu.memory_space<vmem>>, vector<1x256xf32>
    %c0_72 = arith.constant 0 : index
    %c0_73 = arith.constant 0 : index
    %176 = vector.load %arg19[%c0_72, %c0_73] : memref<1x256xf32, #tpu.memory_space<vmem>>, vector<1x256xf32>
    %cst_74 = arith.constant dense<0.000000e+00> : vector<16xf32>
    %177 = vector.multi_reduction <add>, %174, %cst_74 [1] : vector<16x256xf32> to vector<16xf32>
    %178 = vector.shape_cast %177 : vector<16xf32> to vector<16x1xf32>
    %cst_75 = arith.constant 2.560000e+02 : f32
    %179 = vector.broadcast %cst_75 : f32 to vector<16x1xf32>
    %180 = arith.divf %178, %179 : vector<16x1xf32>
    %181 = vector.broadcast %180 : vector<16x1xf32> to vector<16x256xf32>
    %182 = arith.subf %174, %181 : vector<16x256xf32>
    %183 = arith.mulf %182, %182 : vector<16x256xf32>
    %cst_76 = arith.constant dense<0.000000e+00> : vector<16xf32>
    %184 = vector.multi_reduction <add>, %183, %cst_76 [1] : vector<16x256xf32> to vector<16xf32>
    %185 = vector.shape_cast %184 : vector<16xf32> to vector<16x1xf32>
    %cst_77 = arith.constant 2.550000e+02 : f32
    %186 = vector.broadcast %cst_77 : f32 to vector<16x1xf32>
    %187 = arith.divf %185, %186 : vector<16x1xf32>
    %188 = math.sqrt %187 : vector<16x1xf32>
    %189 = vector.broadcast %175 : vector<1x256xf32> to vector<16x256xf32>
    %190 = arith.mulf %189, %182 : vector<16x256xf32>
    %cst_78 = arith.constant 9.99999997E-7 : f32
    %191 = vector.broadcast %cst_78 : f32 to vector<16x1xf32>
    %192 = arith.addf %188, %191 : vector<16x1xf32>
    %193 = vector.broadcast %192 : vector<16x1xf32> to vector<16x256xf32>
    %194 = arith.divf %190, %193 : vector<16x256xf32>
    %195 = vector.broadcast %176 : vector<1x256xf32> to vector<16x256xf32>
    %196 = arith.addf %194, %195 : vector<16x256xf32>
    %197 = arith.truncf %196 : vector<16x256xf32> to vector<16x256xbf16>
    %c0_79 = arith.constant 0 : index
    %c0_80 = arith.constant 0 : index
    %198 = vector.load %arg20[%c0_79, %c0_80] : memref<256x512xbf16, #tpu.memory_space<vmem>>, vector<256x512xbf16>
    %cst_81 = arith.constant dense<0.000000e+00> : vector<16x512xf32>
    %199 = tpu.matmul %197, %198, %cst_81 {dimension_numbers = #tpu.dot_dimension_numbers<[1], [0], [0], [1], [0, 0, 1, 1], [], []>} : vector<16x256xbf16>, vector<256x512xbf16>, vector<16x512xf32> -> vector<16x512xf32>
    %c0_82 = arith.constant 0 : index
    %c0_83 = arith.constant 0 : index
    %200 = vector.load %arg21[%c0_82, %c0_83] : memref<1x512xf32, #tpu.memory_space<vmem>>, vector<1x512xf32>
    %201 = vector.broadcast %200 : vector<1x512xf32> to vector<16x512xf32>
    %202 = arith.addf %199, %201 : vector<16x512xf32>
    %cst_84 = arith.constant 0.000000e+00 : f32
    %203 = vector.broadcast %cst_84 : f32 to vector<16x512xf32>
    %204 = arith.maximumf %202, %203 : vector<16x512xf32>
    %205 = arith.truncf %204 : vector<16x512xf32> to vector<16x512xbf16>
    %c0_85 = arith.constant 0 : index
    %c0_86 = arith.constant 0 : index
    %206 = vector.load %arg22[%c0_85, %c0_86] : memref<512x256xbf16, #tpu.memory_space<vmem>>, vector<512x256xbf16>
    %cst_87 = arith.constant dense<0.000000e+00> : vector<16x256xf32>
    %207 = tpu.matmul %205, %206, %cst_87 {dimension_numbers = #tpu.dot_dimension_numbers<[1], [0], [0], [1], [0, 0, 1, 1], [], []>} : vector<16x512xbf16>, vector<512x256xbf16>, vector<16x256xf32> -> vector<16x256xf32>
    %c0_88 = arith.constant 0 : index
    %c0_89 = arith.constant 0 : index
    %208 = vector.load %arg23[%c0_88, %c0_89] : memref<1x256xf32, #tpu.memory_space<vmem>>, vector<1x256xf32>
    %209 = vector.broadcast %208 : vector<1x256xf32> to vector<16x256xf32>
    %210 = arith.addf %207, %209 : vector<16x256xf32>
    %211 = arith.addf %174, %210 : vector<16x256xf32>
    %c0_90 = arith.constant 0 : index
    %c0_91 = arith.constant 0 : index
    %c0_92 = arith.constant 0 : index
    %212 = vector.load %arg24[%c0_90, %c0_91, %c0_92] : memref<1x16x256xf32, #tpu.memory_space<vmem>>, vector<1x16x256xf32>
    %213 = vector.shape_cast %212 : vector<1x16x256xf32> to vector<16x256xf32>
    %214 = vector.shape_cast %211 : vector<16x256xf32> to vector<1x16x256xf32>
    tpu.vector_store %arg24[%c0_90, %c0_91, %c0_92], %214 {strides = array<i32>} : memref<1x16x256xf32, #tpu.memory_space<vmem>>, vector<1x16x256xf32>,
    return
  }
  func.func @transform_0(%arg0: i32) -> (i32, i32, i32) {
    %c0_i32 = arith.constant 0 : i32
    %c0_i32_0 = arith.constant 0 : i32
    %c0_i32_1 = arith.constant 0 : i32
    return %arg0, %c0_i32, %c0_i32_0 : i32, i32, i32
  }
  func.func @transform_1(%arg0: i32) -> (i32, i32, i32) {
    %c0_i32 = arith.constant 0 : i32
    %c0_i32_0 = arith.constant 0 : i32
    %c0_i32_1 = arith.constant 0 : i32
    return %arg0, %c0_i32, %c0_i32_0 : i32, i32, i32
  }
  func.func @transform_2(%arg0: i32) -> (i32, i32, i32) {
    %c0_i32 = arith.constant 0 : i32
    %c0_i32_0 = arith.constant 0 : i32
    %c0_i32_1 = arith.constant 0 : i32
    return %arg0, %c0_i32, %c0_i32_0 : i32, i32, i32
  }
  func.func @transform_3(%arg0: i32) -> (i32, i32) {
    %c0_i32 = arith.constant 0 : i32
    %c0_i32_0 = arith.constant 0 : i32
    %c0_i32_1 = arith.constant 0 : i32
    return %c0_i32, %c0_i32_0 : i32, i32
  }
  func.func @transform_4(%arg0: i32) -> (i32, i32) {
    %c0_i32 = arith.constant 0 : i32
    %c0_i32_0 = arith.constant 0 : i32
    %c0_i32_1 = arith.constant 0 : i32
    return %c0_i32, %c0_i32_0 : i32, i32
  }
  func.func @transform_5(%arg0: i32) -> (i32, i32) {
    %c0_i32 = arith.constant 0 : i32
    %c0_i32_0 = arith.constant 0 : i32
    %c0_i32_1 = arith.constant 0 : i32
    return %c0_i32, %c0_i32_0 : i32, i32
  }
  func.func @transform_6(%arg0: i32) -> (i32, i32) {
    %c0_i32 = arith.constant 0 : i32
    %c0_i32_0 = arith.constant 0 : i32
    %c0_i32_1 = arith.constant 0 : i32
    return %c0_i32, %c0_i32_0 : i32, i32
  }
  func.func @transform_7(%arg0: i32) -> (i32, i32) {
    %c0_i32 = arith.constant 0 : i32
    %c0_i32_0 = arith.constant 0 : i32
    %c0_i32_1 = arith.constant 0 : i32
    return %c0_i32, %c0_i32_0 : i32, i32
  }
  func.func @transform_8(%arg0: i32) -> (i32, i32) {
    %c0_i32 = arith.constant 0 : i32
    %c0_i32_0 = arith.constant 0 : i32
    %c0_i32_1 = arith.constant 0 : i32
    return %c0_i32, %c0_i32_0 : i32, i32
  }
  func.func @transform_9(%arg0: i32) -> (i32, i32) {
    %c0_i32 = arith.constant 0 : i32
    %c0_i32_0 = arith.constant 0 : i32
    %c0_i32_1 = arith.constant 0 : i32
    return %c0_i32, %c0_i32_0 : i32, i32
  }
  func.func @transform_10(%arg0: i32) -> (i32, i32) {
    %c0_i32 = arith.constant 0 : i32
    %c0_i32_0 = arith.constant 0 : i32
    %c0_i32_1 = arith.constant 0 : i32
    return %c0_i32, %c0_i32_0 : i32, i32
  }
  func.func @transform_11(%arg0: i32) -> (i32, i32) {
    %c0_i32 = arith.constant 0 : i32
    %c0_i32_0 = arith.constant 0 : i32
    %c0_i32_1 = arith.constant 0 : i32
    return %c0_i32, %c0_i32_0 : i32, i32
  }
  func.func @transform_12(%arg0: i32) -> (i32, i32) {
    %c0_i32 = arith.constant 0 : i32
    %c0_i32_0 = arith.constant 0 : i32
    %c0_i32_1 = arith.constant 0 : i32
    return %c0_i32, %c0_i32_0 : i32, i32
  }
  func.func @transform_13(%arg0: i32) -> (i32, i32) {
    %c0_i32 = arith.constant 0 : i32
    %c0_i32_0 = arith.constant 0 : i32
    %c0_i32_1 = arith.constant 0 : i32
    return %c0_i32, %c0_i32_0 : i32, i32
  }
  func.func @transform_14(%arg0: i32) -> (i32, i32) {
    %c0_i32 = arith.constant 0 : i32
    %c0_i32_0 = arith.constant 0 : i32
    %c0_i32_1 = arith.constant 0 : i32
    return %c0_i32, %c0_i32_0 : i32, i32
  }
  func.func @transform_15(%arg0: i32) -> (i32, i32) {
    %c0_i32 = arith.constant 0 : i32
    %c0_i32_0 = arith.constant 0 : i32
    %c0_i32_1 = arith.constant 0 : i32
    return %c0_i32, %c0_i32_0 : i32, i32
  }
  func.func @transform_16(%arg0: i32) -> (i32, i32) {
    %c0_i32 = arith.constant 0 : i32
    %c0_i32_0 = arith.constant 0 : i32
    %c0_i32_1 = arith.constant 0 : i32
    return %c0_i32, %c0_i32_0 : i32, i32
  }
  func.func @transform_17(%arg0: i32) -> (i32, i32) {
    %c0_i32 = arith.constant 0 : i32
    %c0_i32_0 = arith.constant 0 : i32
    %c0_i32_1 = arith.constant 0 : i32
    return %c0_i32, %c0_i32_0 : i32, i32
  }
  func.func @transform_18(%arg0: i32) -> (i32, i32) {
    %c0_i32 = arith.constant 0 : i32
    %c0_i32_0 = arith.constant 0 : i32
    %c0_i32_1 = arith.constant 0 : i32
    return %c0_i32, %c0_i32_0 : i32, i32
  }
  func.func @transform_19(%arg0: i32) -> (i32, i32) {
    %c0_i32 = arith.constant 0 : i32
    %c0_i32_0 = arith.constant 0 : i32
    %c0_i32_1 = arith.constant 0 : i32
    return %c0_i32, %c0_i32_0 : i32, i32
  }
  func.func @transform_20(%arg0: i32) -> (i32, i32) {
    %c0_i32 = arith.constant 0 : i32
    %c0_i32_0 = arith.constant 0 : i32
    %c0_i32_1 = arith.constant 0 : i32
    return %c0_i32, %c0_i32_0 : i32, i32
  }
  func.func @transform_21(%arg0: i32) -> (i32, i32) {
    %c0_i32 = arith.constant 0 : i32
    %c0_i32_0 = arith.constant 0 : i32
    %c0_i32_1 = arith.constant 0 : i32
    return %c0_i32, %c0_i32_0 : i32, i32
  }
  func.func @transform_22(%arg0: i32) -> (i32, i32) {
    %c0_i32 = arith.constant 0 : i32
    %c0_i32_0 = arith.constant 0 : i32
    %c0_i32_1 = arith.constant 0 : i32
    return %c0_i32, %c0_i32_0 : i32, i32
  }
  func.func @transform_23(%arg0: i32) -> (i32, i32, i32) {
    %c0_i32 = arith.constant 0 : i32
    %c0_i32_0 = arith.constant 0 : i32
    %c0_i32_1 = arith.constant 0 : i32
    return %arg0, %c0_i32, %c0_i32_0 : i32, i32, i32
  }
}

module attributes {stable_mosaic.version = 11 : i64} {
  func.func @_final_generator_kernel(%arg0: i32, %arg1: memref<64x256xf32, #tpu.memory_space<vmem>>, %arg2: memref<1x256xf32, #tpu.memory_space<vmem>>, %arg3: memref<1x256xf32, #tpu.memory_space<vmem>>, %arg4: memref<256x256xbf16, #tpu.memory_space<vmem>>, %arg5: memref<1x256xf32, #tpu.memory_space<vmem>>, %arg6: memref<64x256xf32, #tpu.memory_space<vmem>>) attributes {dimension_semantics = [#tpu.dimension_semantics<parallel>], iteration_bounds = array<i64: 1>, scalar_prefetch = 0 : i64, scratch_operands = 0 : i64, tpu.core_type = #tpu.core_type<tc>, window_params = [{transform_indices = @transform_0, window_bounds = array<i64: 64, 256>}, {pipeline_mode = #tpu.pipeline_mode<synchronous>, transform_indices = @transform_1, window_bounds = array<i64: 1, 256>}, {pipeline_mode = #tpu.pipeline_mode<synchronous>, transform_indices = @transform_2, window_bounds = array<i64: 1, 256>}, {pipeline_mode = #tpu.pipeline_mode<synchronous>, transform_indices = @transform_3, window_bounds = array<i64: 256, 256>}, {pipeline_mode = #tpu.pipeline_mode<synchronous>, transform_indices = @transform_4, window_bounds = array<i64: 1, 256>}, {transform_indices = @transform_5, window_bounds = array<i64: 64, 256>}]} {
    %c0 = arith.constant 0 : index
    %c0_0 = arith.constant 0 : index
    %0 = vector.load %arg1[%c0, %c0_0] : memref<64x256xf32, #tpu.memory_space<vmem>>, vector<64x256xf32>
    %c0_1 = arith.constant 0 : index
    %c0_2 = arith.constant 0 : index
    %1 = vector.load %arg2[%c0_1, %c0_2] : memref<1x256xf32, #tpu.memory_space<vmem>>, vector<1x256xf32>
    %c0_3 = arith.constant 0 : index
    %c0_4 = arith.constant 0 : index
    %2 = vector.load %arg3[%c0_3, %c0_4] : memref<1x256xf32, #tpu.memory_space<vmem>>, vector<1x256xf32>
    %cst = arith.constant dense<0.000000e+00> : vector<64xf32>
    %3 = vector.multi_reduction <add>, %0, %cst [1] : vector<64x256xf32> to vector<64xf32>
    %4 = vector.shape_cast %3 : vector<64xf32> to vector<64x1xf32>
    %cst_5 = arith.constant 2.560000e+02 : f32
    %5 = vector.broadcast %cst_5 : f32 to vector<64x1xf32>
    %6 = arith.divf %4, %5 : vector<64x1xf32>
    %7 = vector.broadcast %6 : vector<64x1xf32> to vector<64x256xf32>
    %8 = arith.subf %0, %7 : vector<64x256xf32>
    %9 = arith.mulf %8, %8 : vector<64x256xf32>
    %cst_6 = arith.constant dense<0.000000e+00> : vector<64xf32>
    %10 = vector.multi_reduction <add>, %9, %cst_6 [1] : vector<64x256xf32> to vector<64xf32>
    %11 = vector.shape_cast %10 : vector<64xf32> to vector<64x1xf32>
    %cst_7 = arith.constant 2.550000e+02 : f32
    %12 = vector.broadcast %cst_7 : f32 to vector<64x1xf32>
    %13 = arith.divf %11, %12 : vector<64x1xf32>
    %14 = math.sqrt %13 : vector<64x1xf32>
    %15 = vector.broadcast %1 : vector<1x256xf32> to vector<64x256xf32>
    %16 = arith.mulf %15, %8 : vector<64x256xf32>
    %cst_8 = arith.constant 9.99999997E-7 : f32
    %17 = vector.broadcast %cst_8 : f32 to vector<64x1xf32>
    %18 = arith.addf %14, %17 : vector<64x1xf32>
    %19 = vector.broadcast %18 : vector<64x1xf32> to vector<64x256xf32>
    %20 = arith.divf %16, %19 : vector<64x256xf32>
    %21 = vector.broadcast %2 : vector<1x256xf32> to vector<64x256xf32>
    %22 = arith.addf %20, %21 : vector<64x256xf32>
    %23 = arith.truncf %22 : vector<64x256xf32> to vector<64x256xbf16>
    %c0_9 = arith.constant 0 : index
    %c0_10 = arith.constant 0 : index
    %24 = vector.load %arg4[%c0_9, %c0_10] : memref<256x256xbf16, #tpu.memory_space<vmem>>, vector<256x256xbf16>
    %cst_11 = arith.constant dense<0.000000e+00> : vector<64x256xf32>
    %25 = tpu.matmul %23, %24, %cst_11 {dimension_numbers = #tpu.dot_dimension_numbers<[1], [0], [0], [1], [0, 0, 1, 1], [], []>} : vector<64x256xbf16>, vector<256x256xbf16>, vector<64x256xf32> -> vector<64x256xf32>
    %c0_12 = arith.constant 0 : index
    %c0_13 = arith.constant 0 : index
    %26 = vector.load %arg5[%c0_12, %c0_13] : memref<1x256xf32, #tpu.memory_space<vmem>>, vector<1x256xf32>
    %27 = vector.broadcast %26 : vector<1x256xf32> to vector<64x256xf32>
    %28 = arith.addf %25, %27 : vector<64x256xf32>
    %cst_14 = arith.constant dense<0xFF800000> : vector<64xf32>
    %29 = vector.multi_reduction <maximumf>, %28, %cst_14 [1] : vector<64x256xf32> to vector<64xf32>
    %30 = vector.shape_cast %29 : vector<64xf32> to vector<64x1xf32>
    %31 = vector.broadcast %30 : vector<64x1xf32> to vector<64x256xf32>
    %32 = arith.subf %28, %31 : vector<64x256xf32>
    %33 = math.exp %32 : vector<64x256xf32>
    %cst_15 = arith.constant dense<0.000000e+00> : vector<64xf32>
    %34 = vector.multi_reduction <add>, %33, %cst_15 [1] : vector<64x256xf32> to vector<64xf32>
    %35 = vector.shape_cast %34 : vector<64xf32> to vector<64x1xf32>
    %36 = math.log %35 : vector<64x1xf32>
    %37 = vector.broadcast %36 : vector<64x1xf32> to vector<64x256xf32>
    %38 = arith.subf %32, %37 : vector<64x256xf32>
    %c0_16 = arith.constant 0 : index
    %c0_17 = arith.constant 0 : index
    %39 = vector.load %arg6[%c0_16, %c0_17] : memref<64x256xf32, #tpu.memory_space<vmem>>, vector<64x256xf32>
    tpu.vector_store %arg6[%c0_16, %c0_17], %38 {strides = array<i32>} : memref<64x256xf32, #tpu.memory_space<vmem>>, vector<64x256xf32>,
    return
  }
  func.func @transform_0(%arg0: i32) -> (i32, i32) {
    %c0_i32 = arith.constant 0 : i32
    %c0_i32_0 = arith.constant 0 : i32
    return %arg0, %c0_i32 : i32, i32
  }
  func.func @transform_1(%arg0: i32) -> (i32, i32) {
    %c0_i32 = arith.constant 0 : i32
    %c0_i32_0 = arith.constant 0 : i32
    %c0_i32_1 = arith.constant 0 : i32
    return %c0_i32, %c0_i32_0 : i32, i32
  }
  func.func @transform_2(%arg0: i32) -> (i32, i32) {
    %c0_i32 = arith.constant 0 : i32
    %c0_i32_0 = arith.constant 0 : i32
    %c0_i32_1 = arith.constant 0 : i32
    return %c0_i32, %c0_i32_0 : i32, i32
  }
  func.func @transform_3(%arg0: i32) -> (i32, i32) {
    %c0_i32 = arith.constant 0 : i32
    %c0_i32_0 = arith.constant 0 : i32
    %c0_i32_1 = arith.constant 0 : i32
    return %c0_i32, %c0_i32_0 : i32, i32
  }
  func.func @transform_4(%arg0: i32) -> (i32, i32) {
    %c0_i32 = arith.constant 0 : i32
    %c0_i32_0 = arith.constant 0 : i32
    %c0_i32_1 = arith.constant 0 : i32
    return %c0_i32, %c0_i32_0 : i32, i32
  }
  func.func @transform_5(%arg0: i32) -> (i32, i32) {
    %c0_i32 = arith.constant 0 : i32
    %c0_i32_0 = arith.constant 0 : i32
    return %arg0, %c0_i32 : i32, i32
  }
}

module attributes {stable_mosaic.version = 11 : i64} {
  func.func @_decoder_layer_kernel(%arg0: i32, %arg1: memref<1x16x256xf32, #tpu.memory_space<vmem>>, %arg2: memref<1x8x256xf32, #tpu.memory_space<vmem>>, %arg3: memref<1x16x16xf32, #tpu.memory_space<vmem>>, %arg4: memref<1x256xf32, #tpu.memory_space<vmem>>, %arg5: memref<1x256xf32, #tpu.memory_space<vmem>>, %arg6: memref<256x768xbf16, #tpu.memory_space<vmem>>, %arg7: memref<1x768xf32, #tpu.memory_space<vmem>>, %arg8: memref<256x256xbf16, #tpu.memory_space<vmem>>, %arg9: memref<1x256xf32, #tpu.memory_space<vmem>>, %arg10: memref<1x256xf32, #tpu.memory_space<vmem>>, %arg11: memref<1x256xf32, #tpu.memory_space<vmem>>, %arg12: memref<256x256xbf16, #tpu.memory_space<vmem>>, %arg13: memref<1x256xf32, #tpu.memory_space<vmem>>, %arg14: memref<256x512xbf16, #tpu.memory_space<vmem>>, %arg15: memref<1x512xf32, #tpu.memory_space<vmem>>, %arg16: memref<256x256xbf16, #tpu.memory_space<vmem>>, %arg17: memref<1x256xf32, #tpu.memory_space<vmem>>, %arg18: memref<1x256xf32, #tpu.memory_space<vmem>>, %arg19: memref<1x256xf32, #tpu.memory_space<vmem>>, %arg20: memref<256x512xbf16, #tpu.memory_space<vmem>>, %arg21: memref<1x512xf32, #tpu.memory_space<vmem>>, %arg22: memref<512x256xbf16, #tpu.memory_space<vmem>>, %arg23: memref<1x256xf32, #tpu.memory_space<vmem>>, %arg24: memref<1x16x256xf32, #tpu.memory_space<vmem>>) attributes {dimension_semantics = [#tpu.dimension_semantics<parallel>], iteration_bounds = array<i64: 4>, scalar_prefetch = 0 : i64, scratch_operands = 0 : i64, tpu.core_type = #tpu.core_type<tc>, window_params = [{transform_indices = @transform_0, window_bounds = array<i64: 1, 16, 256>}, {transform_indices = @transform_1, window_bounds = array<i64: 1, 8, 256>}, {transform_indices = @transform_2, window_bounds = array<i64: 1, 16, 16>}, {pipeline_mode = #tpu.pipeline_mode<synchronous>, transform_indices = @transform_3, window_bounds = array<i64: 1, 256>}, {pipeline_mode = #tpu.pipeline_mode<synchronous>, transform_indices = @transform_4, window_bounds = array<i64: 1, 256>}, {pipeline_mode = #tpu.pipeline_mode<synchronous>, transform_indices = @transform_5, window_bounds = array<i64: 256, 768>}, {pipeline_mode = #tpu.pipeline_mode<synchronous>, transform_indices = @transform_6, window_bounds = array<i64: 1, 768>}, {pipeline_mode = #tpu.pipeline_mode<synchronous>, transform_indices = @transform_7, window_bounds = array<i64: 256, 256>}, {pipeline_mode = #tpu.pipeline_mode<synchronous>, transform_indices = @transform_8, window_bounds = array<i64: 1, 256>}, {pipeline_mode = #tpu.pipeline_mode<synchronous>, transform_indices = @transform_9, window_bounds = array<i64: 1, 256>}, {pipeline_mode = #tpu.pipeline_mode<synchronous>, transform_indices = @transform_10, window_bounds = array<i64: 1, 256>}, {pipeline_mode = #tpu.pipeline_mode<synchronous>, transform_indices = @transform_11, window_bounds = array<i64: 256, 256>}, {pipeline_mode = #tpu.pipeline_mode<synchronous>, transform_indices = @transform_12, window_bounds = array<i64: 1, 256>}, {pipeline_mode = #tpu.pipeline_mode<synchronous>, transform_indices = @transform_13, window_bounds = array<i64: 256, 512>}, {pipeline_mode = #tpu.pipeline_mode<synchronous>, transform_indices = @transform_14, window_bounds = array<i64: 1, 512>}, {pipeline_mode = #tpu.pipeline_mode<synchronous>, transform_indices = @transform_15, window_bounds = array<i64: 256, 256>}, {pipeline_mode = #tpu.pipeline_mode<synchronous>, transform_indices = @transform_16, window_bounds = array<i64: 1, 256>}, {pipeline_mode = #tpu.pipeline_mode<synchronous>, transform_indices = @transform_17, window_bounds = array<i64: 1, 256>}, {pipeline_mode = #tpu.pipeline_mode<synchronous>, transform_indices = @transform_18, window_bounds = array<i64: 1, 256>}, {pipeline_mode = #tpu.pipeline_mode<synchronous>, transform_indices = @transform_19, window_bounds = array<i64: 256, 512>}, {pipeline_mode = #tpu.pipeline_mode<synchronous>, transform_indices = @transform_20, window_bounds = array<i64: 1, 512>}, {pipeline_mode = #tpu.pipeline_mode<synchronous>, transform_indices = @transform_21, window_bounds = array<i64: 512, 256>}, {pipeline_mode = #tpu.pipeline_mode<synchronous>, transform_indices = @transform_22, window_bounds = array<i64: 1, 256>}, {transform_indices = @transform_23, window_bounds = array<i64: 1, 16, 256>}]} {
    %c0 = arith.constant 0 : index
    %c0_0 = arith.constant 0 : index
    %c0_1 = arith.constant 0 : index
    %0 = vector.load %arg1[%c0, %c0_0, %c0_1] : memref<1x16x256xf32, #tpu.memory_space<vmem>>, vector<1x16x256xf32>
    %1 = vector.shape_cast %0 : vector<1x16x256xf32> to vector<16x256xf32>
    %c0_2 = arith.constant 0 : index
    %c0_3 = arith.constant 0 : index
    %c0_4 = arith.constant 0 : index
    %2 = vector.load %arg2[%c0_2, %c0_3, %c0_4] : memref<1x8x256xf32, #tpu.memory_space<vmem>>, vector<1x8x256xf32>
    %3 = vector.shape_cast %2 : vector<1x8x256xf32> to vector<8x256xf32>
    %c0_5 = arith.constant 0 : index
    %c0_6 = arith.constant 0 : index
    %c0_7 = arith.constant 0 : index
    %4 = vector.load %arg3[%c0_5, %c0_6, %c0_7] : memref<1x16x16xf32, #tpu.memory_space<vmem>>, vector<1x16x16xf32>
    %5 = vector.shape_cast %4 : vector<1x16x16xf32> to vector<16x16xf32>
    %c0_8 = arith.constant 0 : index
    %c0_9 = arith.constant 0 : index
    %6 = vector.load %arg4[%c0_8, %c0_9] : memref<1x256xf32, #tpu.memory_space<vmem>>, vector<1x256xf32>
    %c0_10 = arith.constant 0 : index
    %c0_11 = arith.constant 0 : index
    %7 = vector.load %arg5[%c0_10, %c0_11] : memref<1x256xf32, #tpu.memory_space<vmem>>, vector<1x256xf32>
    %cst = arith.constant dense<0.000000e+00> : vector<16xf32>
    %8 = vector.multi_reduction <add>, %1, %cst [1] : vector<16x256xf32> to vector<16xf32>
    %9 = vector.shape_cast %8 : vector<16xf32> to vector<16x1xf32>
    %cst_12 = arith.constant 2.560000e+02 : f32
    %10 = vector.broadcast %cst_12 : f32 to vector<16x1xf32>
    %11 = arith.divf %9, %10 : vector<16x1xf32>
    %12 = vector.broadcast %11 : vector<16x1xf32> to vector<16x256xf32>
    %13 = arith.subf %1, %12 : vector<16x256xf32>
    %14 = arith.mulf %13, %13 : vector<16x256xf32>
    %cst_13 = arith.constant dense<0.000000e+00> : vector<16xf32>
    %15 = vector.multi_reduction <add>, %14, %cst_13 [1] : vector<16x256xf32> to vector<16xf32>
    %16 = vector.shape_cast %15 : vector<16xf32> to vector<16x1xf32>
    %cst_14 = arith.constant 2.550000e+02 : f32
    %17 = vector.broadcast %cst_14 : f32 to vector<16x1xf32>
    %18 = arith.divf %16, %17 : vector<16x1xf32>
    %19 = math.sqrt %18 : vector<16x1xf32>
    %20 = vector.broadcast %6 : vector<1x256xf32> to vector<16x256xf32>
    %21 = arith.mulf %20, %13 : vector<16x256xf32>
    %cst_15 = arith.constant 9.99999997E-7 : f32
    %22 = vector.broadcast %cst_15 : f32 to vector<16x1xf32>
    %23 = arith.addf %19, %22 : vector<16x1xf32>
    %24 = vector.broadcast %23 : vector<16x1xf32> to vector<16x256xf32>
    %25 = arith.divf %21, %24 : vector<16x256xf32>
    %26 = vector.broadcast %7 : vector<1x256xf32> to vector<16x256xf32>
    %27 = arith.addf %25, %26 : vector<16x256xf32>
    %28 = arith.truncf %27 : vector<16x256xf32> to vector<16x256xbf16>
    %c0_16 = arith.constant 0 : index
    %c0_17 = arith.constant 0 : index
    %29 = vector.load %arg6[%c0_16, %c0_17] : memref<256x768xbf16, #tpu.memory_space<vmem>>, vector<256x768xbf16>
    %cst_18 = arith.constant dense<0.000000e+00> : vector<16x768xf32>
    %30 = tpu.matmul %28, %29, %cst_18 {dimension_numbers = #tpu.dot_dimension_numbers<[1], [0], [0], [1], [0, 0, 1, 1], [], []>} : vector<16x256xbf16>, vector<256x768xbf16>, vector<16x768xf32> -> vector<16x768xf32>
    %c0_19 = arith.constant 0 : index
    %c0_20 = arith.constant 0 : index
    %31 = vector.load %arg7[%c0_19, %c0_20] : memref<1x768xf32, #tpu.memory_space<vmem>>, vector<1x768xf32>
    %32 = vector.broadcast %31 : vector<1x768xf32> to vector<16x768xf32>
    %33 = arith.addf %30, %32 : vector<16x768xf32>
    %34 = vector.extract_strided_slice %33 {offsets = [0, 0], sizes = [16, 256], strides = [1, 1]} : vector<16x768xf32> to vector<16x256xf32>
    %35 = vector.extract_strided_slice %33 {offsets = [0, 256], sizes = [16, 256], strides = [1, 1]} : vector<16x768xf32> to vector<16x256xf32>
    %36 = vector.extract_strided_slice %33 {offsets = [0, 512], sizes = [16, 256], strides = [1, 1]} : vector<16x768xf32> to vector<16x256xf32>
    %37 = vector.extract_strided_slice %34 {offsets = [0, 0], sizes = [16, 128], strides = [1, 1]} : vector<16x256xf32> to vector<16x128xf32>
    %38 = arith.truncf %37 : vector<16x128xf32> to vector<16x128xbf16>
    %39 = vector.extract_strided_slice %35 {offsets = [0, 0], sizes = [16, 128], strides = [1, 1]} : vector<16x256xf32> to vector<16x128xf32>
    %40 = arith.truncf %39 : vector<16x128xf32> to vector<16x128xbf16>
    %41 = vector.extract_strided_slice %36 {offsets = [0, 0], sizes = [16, 128], strides = [1, 1]} : vector<16x256xf32> to vector<16x128xf32>
    %42 = arith.truncf %41 : vector<16x128xf32> to vector<16x128xbf16>
    %cst_21 = arith.constant dense<0.000000e+00> : vector<16x16xf32>
    %43 = tpu.matmul %38, %40, %cst_21 {dimension_numbers = #tpu.dot_dimension_numbers<[1], [1], [0], [0], [0, 0, 1, 0], [], []>} : vector<16x128xbf16>, vector<16x128xbf16>, vector<16x16xf32> -> vector<16x16xf32>
    %cst_22 = arith.constant 0.0883883461 : f32
    %44 = vector.broadcast %cst_22 : f32 to vector<16x16xf32>
    %45 = arith.mulf %43, %44 : vector<16x16xf32>
    %46 = arith.addf %45, %5 : vector<16x16xf32>
    %cst_23 = arith.constant dense<0xFF800000> : vector<16xf32>
    %47 = vector.multi_reduction <maximumf>, %46, %cst_23 [1] : vector<16x16xf32> to vector<16xf32>
    %48 = vector.shape_cast %47 : vector<16xf32> to vector<16x1xf32>
    %49 = vector.broadcast %48 : vector<16x1xf32> to vector<16x16xf32>
    %50 = arith.subf %46, %49 : vector<16x16xf32>
    %51 = math.exp %50 : vector<16x16xf32>
    %cst_24 = arith.constant dense<0.000000e+00> : vector<16xf32>
    %52 = vector.multi_reduction <add>, %51, %cst_24 [1] : vector<16x16xf32> to vector<16xf32>
    %53 = vector.shape_cast %52 : vector<16xf32> to vector<16x1xf32>
    %54 = tpu.reciprocal %53 {approx = true} : vector<16x1xf32> -> vector<16x1xf32>
    %55 = vector.broadcast %54 : vector<16x1xf32> to vector<16x16xf32>
    %56 = arith.mulf %51, %55 : vector<16x16xf32>
    %57 = arith.truncf %56 : vector<16x16xf32> to vector<16x16xbf16>
    %cst_25 = arith.constant dense<0.000000e+00> : vector<16x128xf32>
    %58 = tpu.matmul %57, %42, %cst_25 {dimension_numbers = #tpu.dot_dimension_numbers<[1], [0], [0], [1], [0, 0, 1, 1], [], []>} : vector<16x16xbf16>, vector<16x128xbf16>, vector<16x128xf32> -> vector<16x128xf32>
    %59 = vector.extract_strided_slice %34 {offsets = [0, 128], sizes = [16, 128], strides = [1, 1]} : vector<16x256xf32> to vector<16x128xf32>
    %60 = arith.truncf %59 : vector<16x128xf32> to vector<16x128xbf16>
    %61 = vector.extract_strided_slice %35 {offsets = [0, 128], sizes = [16, 128], strides = [1, 1]} : vector<16x256xf32> to vector<16x128xf32>
    %62 = arith.truncf %61 : vector<16x128xf32> to vector<16x128xbf16>
    %63 = vector.extract_strided_slice %36 {offsets = [0, 128], sizes = [16, 128], strides = [1, 1]} : vector<16x256xf32> to vector<16x128xf32>
    %64 = arith.truncf %63 : vector<16x128xf32> to vector<16x128xbf16>
    %cst_26 = arith.constant dense<0.000000e+00> : vector<16x16xf32>
    %65 = tpu.matmul %60, %62, %cst_26 {dimension_numbers = #tpu.dot_dimension_numbers<[1], [1], [0], [0], [0, 0, 1, 0], [], []>} : vector<16x128xbf16>, vector<16x128xbf16>, vector<16x16xf32> -> vector<16x16xf32>
    %cst_27 = arith.constant 0.0883883461 : f32
    %66 = vector.broadcast %cst_27 : f32 to vector<16x16xf32>
    %67 = arith.mulf %65, %66 : vector<16x16xf32>
    %68 = arith.addf %67, %5 : vector<16x16xf32>
    %cst_28 = arith.constant dense<0xFF800000> : vector<16xf32>
    %69 = vector.multi_reduction <maximumf>, %68, %cst_28 [1] : vector<16x16xf32> to vector<16xf32>
    %70 = vector.shape_cast %69 : vector<16xf32> to vector<16x1xf32>
    %71 = vector.broadcast %70 : vector<16x1xf32> to vector<16x16xf32>
    %72 = arith.subf %68, %71 : vector<16x16xf32>
    %73 = math.exp %72 : vector<16x16xf32>
    %cst_29 = arith.constant dense<0.000000e+00> : vector<16xf32>
    %74 = vector.multi_reduction <add>, %73, %cst_29 [1] : vector<16x16xf32> to vector<16xf32>
    %75 = vector.shape_cast %74 : vector<16xf32> to vector<16x1xf32>
    %76 = tpu.reciprocal %75 {approx = true} : vector<16x1xf32> -> vector<16x1xf32>
    %77 = vector.broadcast %76 : vector<16x1xf32> to vector<16x16xf32>
    %78 = arith.mulf %73, %77 : vector<16x16xf32>
    %79 = arith.truncf %78 : vector<16x16xf32> to vector<16x16xbf16>
    %cst_30 = arith.constant dense<0.000000e+00> : vector<16x128xf32>
    %80 = tpu.matmul %79, %64, %cst_30 {dimension_numbers = #tpu.dot_dimension_numbers<[1], [0], [0], [1], [0, 0, 1, 1], [], []>} : vector<16x16xbf16>, vector<16x128xbf16>, vector<16x128xf32> -> vector<16x128xf32>
    %81 = tpu.concatenate %58, %80 in 1 : vector<16x128xf32>, vector<16x128xf32> -> vector<16x256xf32>
    %82 = arith.truncf %81 : vector<16x256xf32> to vector<16x256xbf16>
    %c0_31 = arith.constant 0 : index
    %c0_32 = arith.constant 0 : index
    %83 = vector.load %arg8[%c0_31, %c0_32] : memref<256x256xbf16, #tpu.memory_space<vmem>>, vector<256x256xbf16>
    %cst_33 = arith.constant dense<0.000000e+00> : vector<16x256xf32>
    %84 = tpu.matmul %82, %83, %cst_33 {dimension_numbers = #tpu.dot_dimension_numbers<[1], [0], [0], [1], [0, 0, 1, 1], [], []>} : vector<16x256xbf16>, vector<256x256xbf16>, vector<16x256xf32> -> vector<16x256xf32>
    %c0_34 = arith.constant 0 : index
    %c0_35 = arith.constant 0 : index
    %85 = vector.load %arg9[%c0_34, %c0_35] : memref<1x256xf32, #tpu.memory_space<vmem>>, vector<1x256xf32>
    %86 = vector.broadcast %85 : vector<1x256xf32> to vector<16x256xf32>
    %87 = arith.addf %84, %86 : vector<16x256xf32>
    %88 = arith.addf %1, %87 : vector<16x256xf32>
    %c0_36 = arith.constant 0 : index
    %c0_37 = arith.constant 0 : index
    %89 = vector.load %arg10[%c0_36, %c0_37] : memref<1x256xf32, #tpu.memory_space<vmem>>, vector<1x256xf32>
    %c0_38 = arith.constant 0 : index
    %c0_39 = arith.constant 0 : index
    %90 = vector.load %arg11[%c0_38, %c0_39] : memref<1x256xf32, #tpu.memory_space<vmem>>, vector<1x256xf32>
    %cst_40 = arith.constant dense<0.000000e+00> : vector<16xf32>
    %91 = vector.multi_reduction <add>, %88, %cst_40 [1] : vector<16x256xf32> to vector<16xf32>
    %92 = vector.shape_cast %91 : vector<16xf32> to vector<16x1xf32>
    %cst_41 = arith.constant 2.560000e+02 : f32
    %93 = vector.broadcast %cst_41 : f32 to vector<16x1xf32>
    %94 = arith.divf %92, %93 : vector<16x1xf32>
    %95 = vector.broadcast %94 : vector<16x1xf32> to vector<16x256xf32>
    %96 = arith.subf %88, %95 : vector<16x256xf32>
    %97 = arith.mulf %96, %96 : vector<16x256xf32>
    %cst_42 = arith.constant dense<0.000000e+00> : vector<16xf32>
    %98 = vector.multi_reduction <add>, %97, %cst_42 [1] : vector<16x256xf32> to vector<16xf32>
    %99 = vector.shape_cast %98 : vector<16xf32> to vector<16x1xf32>
    %cst_43 = arith.constant 2.550000e+02 : f32
    %100 = vector.broadcast %cst_43 : f32 to vector<16x1xf32>
    %101 = arith.divf %99, %100 : vector<16x1xf32>
    %102 = math.sqrt %101 : vector<16x1xf32>
    %103 = vector.broadcast %89 : vector<1x256xf32> to vector<16x256xf32>
    %104 = arith.mulf %103, %96 : vector<16x256xf32>
    %cst_44 = arith.constant 9.99999997E-7 : f32
    %105 = vector.broadcast %cst_44 : f32 to vector<16x1xf32>
    %106 = arith.addf %102, %105 : vector<16x1xf32>
    %107 = vector.broadcast %106 : vector<16x1xf32> to vector<16x256xf32>
    %108 = arith.divf %104, %107 : vector<16x256xf32>
    %109 = vector.broadcast %90 : vector<1x256xf32> to vector<16x256xf32>
    %110 = arith.addf %108, %109 : vector<16x256xf32>
    %111 = arith.truncf %110 : vector<16x256xf32> to vector<16x256xbf16>
    %c0_45 = arith.constant 0 : index
    %c0_46 = arith.constant 0 : index
    %112 = vector.load %arg12[%c0_45, %c0_46] : memref<256x256xbf16, #tpu.memory_space<vmem>>, vector<256x256xbf16>
    %cst_47 = arith.constant dense<0.000000e+00> : vector<16x256xf32>
    %113 = tpu.matmul %111, %112, %cst_47 {dimension_numbers = #tpu.dot_dimension_numbers<[1], [0], [0], [1], [0, 0, 1, 1], [], []>} : vector<16x256xbf16>, vector<256x256xbf16>, vector<16x256xf32> -> vector<16x256xf32>
    %c0_48 = arith.constant 0 : index
    %c0_49 = arith.constant 0 : index
    %114 = vector.load %arg13[%c0_48, %c0_49] : memref<1x256xf32, #tpu.memory_space<vmem>>, vector<1x256xf32>
    %115 = vector.broadcast %114 : vector<1x256xf32> to vector<16x256xf32>
    %116 = arith.addf %113, %115 : vector<16x256xf32>
    %117 = arith.truncf %3 : vector<8x256xf32> to vector<8x256xbf16>
    %c0_50 = arith.constant 0 : index
    %c0_51 = arith.constant 0 : index
    %118 = vector.load %arg14[%c0_50, %c0_51] : memref<256x512xbf16, #tpu.memory_space<vmem>>, vector<256x512xbf16>
    %cst_52 = arith.constant dense<0.000000e+00> : vector<8x512xf32>
    %119 = tpu.matmul %117, %118, %cst_52 {dimension_numbers = #tpu.dot_dimension_numbers<[1], [0], [0], [1], [0, 0, 1, 1], [], []>} : vector<8x256xbf16>, vector<256x512xbf16>, vector<8x512xf32> -> vector<8x512xf32>
    %c0_53 = arith.constant 0 : index
    %c0_54 = arith.constant 0 : index
    %120 = vector.load %arg15[%c0_53, %c0_54] : memref<1x512xf32, #tpu.memory_space<vmem>>, vector<1x512xf32>
    %121 = vector.broadcast %120 : vector<1x512xf32> to vector<8x512xf32>
    %122 = arith.addf %119, %121 : vector<8x512xf32>
    %123 = vector.extract_strided_slice %122 {offsets = [0, 0], sizes = [8, 256], strides = [1, 1]} : vector<8x512xf32> to vector<8x256xf32>
    %124 = vector.extract_strided_slice %122 {offsets = [0, 256], sizes = [8, 256], strides = [1, 1]} : vector<8x512xf32> to vector<8x256xf32>
    %125 = vector.extract_strided_slice %116 {offsets = [0, 0], sizes = [16, 128], strides = [1, 1]} : vector<16x256xf32> to vector<16x128xf32>
    %126 = arith.truncf %125 : vector<16x128xf32> to vector<16x128xbf16>
    %127 = vector.extract_strided_slice %123 {offsets = [0, 0], sizes = [8, 128], strides = [1, 1]} : vector<8x256xf32> to vector<8x128xf32>
    %128 = arith.truncf %127 : vector<8x128xf32> to vector<8x128xbf16>
    %129 = vector.extract_strided_slice %124 {offsets = [0, 0], sizes = [8, 128], strides = [1, 1]} : vector<8x256xf32> to vector<8x128xf32>
    %130 = arith.truncf %129 : vector<8x128xf32> to vector<8x128xbf16>
    %cst_55 = arith.constant dense<0.000000e+00> : vector<16x8xf32>
    %131 = tpu.matmul %126, %128, %cst_55 {dimension_numbers = #tpu.dot_dimension_numbers<[1], [1], [0], [0], [0, 0, 1, 0], [], []>} : vector<16x128xbf16>, vector<8x128xbf16>, vector<16x8xf32> -> vector<16x8xf32>
    %cst_56 = arith.constant 0.0883883461 : f32
    %132 = vector.broadcast %cst_56 : f32 to vector<16x8xf32>
    %133 = arith.mulf %131, %132 : vector<16x8xf32>
    %cst_57 = arith.constant dense<0xFF800000> : vector<16xf32>
    %134 = vector.multi_reduction <maximumf>, %133, %cst_57 [1] : vector<16x8xf32> to vector<16xf32>
    %135 = vector.shape_cast %134 : vector<16xf32> to vector<16x1xf32>
    %136 = vector.broadcast %135 : vector<16x1xf32> to vector<16x8xf32>
    %137 = arith.subf %133, %136 : vector<16x8xf32>
    %138 = math.exp %137 : vector<16x8xf32>
    %cst_58 = arith.constant dense<0.000000e+00> : vector<16xf32>
    %139 = vector.multi_reduction <add>, %138, %cst_58 [1] : vector<16x8xf32> to vector<16xf32>
    %140 = vector.shape_cast %139 : vector<16xf32> to vector<16x1xf32>
    %141 = tpu.reciprocal %140 {approx = true} : vector<16x1xf32> -> vector<16x1xf32>
    %142 = vector.broadcast %141 : vector<16x1xf32> to vector<16x8xf32>
    %143 = arith.mulf %138, %142 : vector<16x8xf32>
    %144 = arith.truncf %143 : vector<16x8xf32> to vector<16x8xbf16>
    %cst_59 = arith.constant dense<0.000000e+00> : vector<16x128xf32>
    %145 = tpu.matmul %144, %130, %cst_59 {dimension_numbers = #tpu.dot_dimension_numbers<[1], [0], [0], [1], [0, 0, 1, 1], [], []>} : vector<16x8xbf16>, vector<8x128xbf16>, vector<16x128xf32> -> vector<16x128xf32>
    %146 = vector.extract_strided_slice %116 {offsets = [0, 128], sizes = [16, 128], strides = [1, 1]} : vector<16x256xf32> to vector<16x128xf32>
    %147 = arith.truncf %146 : vector<16x128xf32> to vector<16x128xbf16>
    %148 = vector.extract_strided_slice %123 {offsets = [0, 128], sizes = [8, 128], strides = [1, 1]} : vector<8x256xf32> to vector<8x128xf32>
    %149 = arith.truncf %148 : vector<8x128xf32> to vector<8x128xbf16>
    %150 = vector.extract_strided_slice %124 {offsets = [0, 128], sizes = [8, 128], strides = [1, 1]} : vector<8x256xf32> to vector<8x128xf32>
    %151 = arith.truncf %150 : vector<8x128xf32> to vector<8x128xbf16>
    %cst_60 = arith.constant dense<0.000000e+00> : vector<16x8xf32>
    %152 = tpu.matmul %147, %149, %cst_60 {dimension_numbers = #tpu.dot_dimension_numbers<[1], [1], [0], [0], [0, 0, 1, 0], [], []>} : vector<16x128xbf16>, vector<8x128xbf16>, vector<16x8xf32> -> vector<16x8xf32>
    %cst_61 = arith.constant 0.0883883461 : f32
    %153 = vector.broadcast %cst_61 : f32 to vector<16x8xf32>
    %154 = arith.mulf %152, %153 : vector<16x8xf32>
    %cst_62 = arith.constant dense<0xFF800000> : vector<16xf32>
    %155 = vector.multi_reduction <maximumf>, %154, %cst_62 [1] : vector<16x8xf32> to vector<16xf32>
    %156 = vector.shape_cast %155 : vector<16xf32> to vector<16x1xf32>
    %157 = vector.broadcast %156 : vector<16x1xf32> to vector<16x8xf32>
    %158 = arith.subf %154, %157 : vector<16x8xf32>
    %159 = math.exp %158 : vector<16x8xf32>
    %cst_63 = arith.constant dense<0.000000e+00> : vector<16xf32>
    %160 = vector.multi_reduction <add>, %159, %cst_63 [1] : vector<16x8xf32> to vector<16xf32>
    %161 = vector.shape_cast %160 : vector<16xf32> to vector<16x1xf32>
    %162 = tpu.reciprocal %161 {approx = true} : vector<16x1xf32> -> vector<16x1xf32>
    %163 = vector.broadcast %162 : vector<16x1xf32> to vector<16x8xf32>
    %164 = arith.mulf %159, %163 : vector<16x8xf32>
    %165 = arith.truncf %164 : vector<16x8xf32> to vector<16x8xbf16>
    %cst_64 = arith.constant dense<0.000000e+00> : vector<16x128xf32>
    %166 = tpu.matmul %165, %151, %cst_64 {dimension_numbers = #tpu.dot_dimension_numbers<[1], [0], [0], [1], [0, 0, 1, 1], [], []>} : vector<16x8xbf16>, vector<8x128xbf16>, vector<16x128xf32> -> vector<16x128xf32>
    %167 = tpu.concatenate %145, %166 in 1 : vector<16x128xf32>, vector<16x128xf32> -> vector<16x256xf32>
    %168 = arith.truncf %167 : vector<16x256xf32> to vector<16x256xbf16>
    %c0_65 = arith.constant 0 : index
    %c0_66 = arith.constant 0 : index
    %169 = vector.load %arg16[%c0_65, %c0_66] : memref<256x256xbf16, #tpu.memory_space<vmem>>, vector<256x256xbf16>
    %cst_67 = arith.constant dense<0.000000e+00> : vector<16x256xf32>
    %170 = tpu.matmul %168, %169, %cst_67 {dimension_numbers = #tpu.dot_dimension_numbers<[1], [0], [0], [1], [0, 0, 1, 1], [], []>} : vector<16x256xbf16>, vector<256x256xbf16>, vector<16x256xf32> -> vector<16x256xf32>
    %c0_68 = arith.constant 0 : index
    %c0_69 = arith.constant 0 : index
    %171 = vector.load %arg17[%c0_68, %c0_69] : memref<1x256xf32, #tpu.memory_space<vmem>>, vector<1x256xf32>
    %172 = vector.broadcast %171 : vector<1x256xf32> to vector<16x256xf32>
    %173 = arith.addf %170, %172 : vector<16x256xf32>
    %174 = arith.addf %88, %173 : vector<16x256xf32>
    %c0_70 = arith.constant 0 : index
    %c0_71 = arith.constant 0 : index
    %175 = vector.load %arg18[%c0_70, %c0_71] : memref<1x256xf32, #tpu.memory_space<vmem>>, vector<1x256xf32>
    %c0_72 = arith.constant 0 : index
    %c0_73 = arith.constant 0 : index
    %176 = vector.load %arg19[%c0_72, %c0_73] : memref<1x256xf32, #tpu.memory_space<vmem>>, vector<1x256xf32>
    %cst_74 = arith.constant dense<0.000000e+00> : vector<16xf32>
    %177 = vector.multi_reduction <add>, %174, %cst_74 [1] : vector<16x256xf32> to vector<16xf32>
    %178 = vector.shape_cast %177 : vector<16xf32> to vector<16x1xf32>
    %cst_75 = arith.constant 2.560000e+02 : f32
    %179 = vector.broadcast %cst_75 : f32 to vector<16x1xf32>
    %180 = arith.divf %178, %179 : vector<16x1xf32>
    %181 = vector.broadcast %180 : vector<16x1xf32> to vector<16x256xf32>
    %182 = arith.subf %174, %181 : vector<16x256xf32>
    %183 = arith.mulf %182, %182 : vector<16x256xf32>
    %cst_76 = arith.constant dense<0.000000e+00> : vector<16xf32>
    %184 = vector.multi_reduction <add>, %183, %cst_76 [1] : vector<16x256xf32> to vector<16xf32>
    %185 = vector.shape_cast %184 : vector<16xf32> to vector<16x1xf32>
    %cst_77 = arith.constant 2.550000e+02 : f32
    %186 = vector.broadcast %cst_77 : f32 to vector<16x1xf32>
    %187 = arith.divf %185, %186 : vector<16x1xf32>
    %188 = math.sqrt %187 : vector<16x1xf32>
    %189 = vector.broadcast %175 : vector<1x256xf32> to vector<16x256xf32>
    %190 = arith.mulf %189, %182 : vector<16x256xf32>
    %cst_78 = arith.constant 9.99999997E-7 : f32
    %191 = vector.broadcast %cst_78 : f32 to vector<16x1xf32>
    %192 = arith.addf %188, %191 : vector<16x1xf32>
    %193 = vector.broadcast %192 : vector<16x1xf32> to vector<16x256xf32>
    %194 = arith.divf %190, %193 : vector<16x256xf32>
    %195 = vector.broadcast %176 : vector<1x256xf32> to vector<16x256xf32>
    %196 = arith.addf %194, %195 : vector<16x256xf32>
    %197 = arith.truncf %196 : vector<16x256xf32> to vector<16x256xbf16>
    %c0_79 = arith.constant 0 : index
    %c0_80 = arith.constant 0 : index
    %198 = vector.load %arg20[%c0_79, %c0_80] : memref<256x512xbf16, #tpu.memory_space<vmem>>, vector<256x512xbf16>
    %cst_81 = arith.constant dense<0.000000e+00> : vector<16x512xf32>
    %199 = tpu.matmul %197, %198, %cst_81 {dimension_numbers = #tpu.dot_dimension_numbers<[1], [0], [0], [1], [0, 0, 1, 1], [], []>} : vector<16x256xbf16>, vector<256x512xbf16>, vector<16x512xf32> -> vector<16x512xf32>
    %c0_82 = arith.constant 0 : index
    %c0_83 = arith.constant 0 : index
    %200 = vector.load %arg21[%c0_82, %c0_83] : memref<1x512xf32, #tpu.memory_space<vmem>>, vector<1x512xf32>
    %201 = vector.broadcast %200 : vector<1x512xf32> to vector<16x512xf32>
    %202 = arith.addf %199, %201 : vector<16x512xf32>
    %cst_84 = arith.constant 0.000000e+00 : f32
    %203 = vector.broadcast %cst_84 : f32 to vector<16x512xf32>
    %204 = arith.maximumf %202, %203 : vector<16x512xf32>
    %205 = arith.truncf %204 : vector<16x512xf32> to vector<16x512xbf16>
    %c0_85 = arith.constant 0 : index
    %c0_86 = arith.constant 0 : index
    %206 = vector.load %arg22[%c0_85, %c0_86] : memref<512x256xbf16, #tpu.memory_space<vmem>>, vector<512x256xbf16>
    %cst_87 = arith.constant dense<0.000000e+00> : vector<16x256xf32>
    %207 = tpu.matmul %205, %206, %cst_87 {dimension_numbers = #tpu.dot_dimension_numbers<[1], [0], [0], [1], [0, 0, 1, 1], [], []>} : vector<16x512xbf16>, vector<512x256xbf16>, vector<16x256xf32> -> vector<16x256xf32>
    %c0_88 = arith.constant 0 : index
    %c0_89 = arith.constant 0 : index
    %208 = vector.load %arg23[%c0_88, %c0_89] : memref<1x256xf32, #tpu.memory_space<vmem>>, vector<1x256xf32>
    %209 = vector.broadcast %208 : vector<1x256xf32> to vector<16x256xf32>
    %210 = arith.addf %207, %209 : vector<16x256xf32>
    %211 = arith.addf %174, %210 : vector<16x256xf32>
    %c0_90 = arith.constant 0 : index
    %c0_91 = arith.constant 0 : index
    %c0_92 = arith.constant 0 : index
    %212 = vector.load %arg24[%c0_90, %c0_91, %c0_92] : memref<1x16x256xf32, #tpu.memory_space<vmem>>, vector<1x16x256xf32>
    %213 = vector.shape_cast %212 : vector<1x16x256xf32> to vector<16x256xf32>
    %214 = vector.shape_cast %211 : vector<16x256xf32> to vector<1x16x256xf32>
    tpu.vector_store %arg24[%c0_90, %c0_91, %c0_92], %214 {strides = array<i32>} : memref<1x16x256xf32, #tpu.memory_space<vmem>>, vector<1x16x256xf32>,
    return
  }
  func.func @transform_0(%arg0: i32) -> (i32, i32, i32) {
    %c0_i32 = arith.constant 0 : i32
    %c0_i32_0 = arith.constant 0 : i32
    %c0_i32_1 = arith.constant 0 : i32
    return %arg0, %c0_i32, %c0_i32_0 : i32, i32, i32
  }
  func.func @transform_1(%arg0: i32) -> (i32, i32, i32) {
    %c0_i32 = arith.constant 0 : i32
    %c0_i32_0 = arith.constant 0 : i32
    %c0_i32_1 = arith.constant 0 : i32
    return %arg0, %c0_i32, %c0_i32_0 : i32, i32, i32
  }
  func.func @transform_2(%arg0: i32) -> (i32, i32, i32) {
    %c0_i32 = arith.constant 0 : i32
    %c0_i32_0 = arith.constant 0 : i32
    %c0_i32_1 = arith.constant 0 : i32
    return %arg0, %c0_i32, %c0_i32_0 : i32, i32, i32
  }
  func.func @transform_3(%arg0: i32) -> (i32, i32) {
    %c0_i32 = arith.constant 0 : i32
    %c0_i32_0 = arith.constant 0 : i32
    %c0_i32_1 = arith.constant 0 : i32
    return %c0_i32, %c0_i32_0 : i32, i32
  }
  func.func @transform_4(%arg0: i32) -> (i32, i32) {
    %c0_i32 = arith.constant 0 : i32
    %c0_i32_0 = arith.constant 0 : i32
    %c0_i32_1 = arith.constant 0 : i32
    return %c0_i32, %c0_i32_0 : i32, i32
  }
  func.func @transform_5(%arg0: i32) -> (i32, i32) {
    %c0_i32 = arith.constant 0 : i32
    %c0_i32_0 = arith.constant 0 : i32
    %c0_i32_1 = arith.constant 0 : i32
    return %c0_i32, %c0_i32_0 : i32, i32
  }
  func.func @transform_6(%arg0: i32) -> (i32, i32) {
    %c0_i32 = arith.constant 0 : i32
    %c0_i32_0 = arith.constant 0 : i32
    %c0_i32_1 = arith.constant 0 : i32
    return %c0_i32, %c0_i32_0 : i32, i32
  }
  func.func @transform_7(%arg0: i32) -> (i32, i32) {
    %c0_i32 = arith.constant 0 : i32
    %c0_i32_0 = arith.constant 0 : i32
    %c0_i32_1 = arith.constant 0 : i32
    return %c0_i32, %c0_i32_0 : i32, i32
  }
  func.func @transform_8(%arg0: i32) -> (i32, i32) {
    %c0_i32 = arith.constant 0 : i32
    %c0_i32_0 = arith.constant 0 : i32
    %c0_i32_1 = arith.constant 0 : i32
    return %c0_i32, %c0_i32_0 : i32, i32
  }
  func.func @transform_9(%arg0: i32) -> (i32, i32) {
    %c0_i32 = arith.constant 0 : i32
    %c0_i32_0 = arith.constant 0 : i32
    %c0_i32_1 = arith.constant 0 : i32
    return %c0_i32, %c0_i32_0 : i32, i32
  }
  func.func @transform_10(%arg0: i32) -> (i32, i32) {
    %c0_i32 = arith.constant 0 : i32
    %c0_i32_0 = arith.constant 0 : i32
    %c0_i32_1 = arith.constant 0 : i32
    return %c0_i32, %c0_i32_0 : i32, i32
  }
  func.func @transform_11(%arg0: i32) -> (i32, i32) {
    %c0_i32 = arith.constant 0 : i32
    %c0_i32_0 = arith.constant 0 : i32
    %c0_i32_1 = arith.constant 0 : i32
    return %c0_i32, %c0_i32_0 : i32, i32
  }
  func.func @transform_12(%arg0: i32) -> (i32, i32) {
    %c0_i32 = arith.constant 0 : i32
    %c0_i32_0 = arith.constant 0 : i32
    %c0_i32_1 = arith.constant 0 : i32
    return %c0_i32, %c0_i32_0 : i32, i32
  }
  func.func @transform_13(%arg0: i32) -> (i32, i32) {
    %c0_i32 = arith.constant 0 : i32
    %c0_i32_0 = arith.constant 0 : i32
    %c0_i32_1 = arith.constant 0 : i32
    return %c0_i32, %c0_i32_0 : i32, i32
  }
  func.func @transform_14(%arg0: i32) -> (i32, i32) {
    %c0_i32 = arith.constant 0 : i32
    %c0_i32_0 = arith.constant 0 : i32
    %c0_i32_1 = arith.constant 0 : i32
    return %c0_i32, %c0_i32_0 : i32, i32
  }
  func.func @transform_15(%arg0: i32) -> (i32, i32) {
    %c0_i32 = arith.constant 0 : i32
    %c0_i32_0 = arith.constant 0 : i32
    %c0_i32_1 = arith.constant 0 : i32
    return %c0_i32, %c0_i32_0 : i32, i32
  }
  func.func @transform_16(%arg0: i32) -> (i32, i32) {
    %c0_i32 = arith.constant 0 : i32
    %c0_i32_0 = arith.constant 0 : i32
    %c0_i32_1 = arith.constant 0 : i32
    return %c0_i32, %c0_i32_0 : i32, i32
  }
  func.func @transform_17(%arg0: i32) -> (i32, i32) {
    %c0_i32 = arith.constant 0 : i32
    %c0_i32_0 = arith.constant 0 : i32
    %c0_i32_1 = arith.constant 0 : i32
    return %c0_i32, %c0_i32_0 : i32, i32
  }
  func.func @transform_18(%arg0: i32) -> (i32, i32) {
    %c0_i32 = arith.constant 0 : i32
    %c0_i32_0 = arith.constant 0 : i32
    %c0_i32_1 = arith.constant 0 : i32
    return %c0_i32, %c0_i32_0 : i32, i32
  }
  func.func @transform_19(%arg0: i32) -> (i32, i32) {
    %c0_i32 = arith.constant 0 : i32
    %c0_i32_0 = arith.constant 0 : i32
    %c0_i32_1 = arith.constant 0 : i32
    return %c0_i32, %c0_i32_0 : i32, i32
  }
  func.func @transform_20(%arg0: i32) -> (i32, i32) {
    %c0_i32 = arith.constant 0 : i32
    %c0_i32_0 = arith.constant 0 : i32
    %c0_i32_1 = arith.constant 0 : i32
    return %c0_i32, %c0_i32_0 : i32, i32
  }
  func.func @transform_21(%arg0: i32) -> (i32, i32) {
    %c0_i32 = arith.constant 0 : i32
    %c0_i32_0 = arith.constant 0 : i32
    %c0_i32_1 = arith.constant 0 : i32
    return %c0_i32, %c0_i32_0 : i32, i32
  }
  func.func @transform_22(%arg0: i32) -> (i32, i32) {
    %c0_i32 = arith.constant 0 : i32
    %c0_i32_0 = arith.constant 0 : i32
    %c0_i32_1 = arith.constant 0 : i32
    return %c0_i32, %c0_i32_0 : i32, i32
  }
  func.func @transform_23(%arg0: i32) -> (i32, i32, i32) {
    %c0_i32 = arith.constant 0 : i32
    %c0_i32_0 = arith.constant 0 : i32
    %c0_i32_1 = arith.constant 0 : i32
    return %arg0, %c0_i32, %c0_i32_0 : i32, i32, i32
  }
}

</mosaic_0001>

<bundles_post_ra>
// kernel: tgvae_decode.5
= control target key start
LH: loop header
LB: loop body
LE: loop exit
PB: predicated region body
PF: predicated region fallthrough
CT: control target
= control target key end

     0   :  { %s1437_s0 = inlined_call_operand.vmem [shape: f32[64,256], index: 0, kind: input, shape index: {}]   ;;  %s1438_s1 = inlined_call_operand.vmem [shape: f32[1,256], index: 1, kind: input, shape index: {}]   ;;  %s1439_s2 = inlined_call_operand.vmem [shape: f32[1,256], index: 2, kind: input, shape index: {}]   ;;  %s1440_s3 = inlined_call_operand.vmem [shape: bf16[256,256], index: 3, kind: input, shape index: {}]   ;;  %s1441_s4 = inlined_call_operand.vmem [shape: f32[1,256], index: 4, kind: input, shape index: {}]   ;;  %s1442_s5 = inlined_call_operand.hbm [shape: f32[64,256], index: 5, kind: output, shape index: {}]  }
   0x1   :  { %v979_v0 = vld [vmem:[%s1437_s0] sm:$0xff]  ;;  %v984_v1 = vld [vmem:[%s1437_s0 + $0x8] sm:$0xff]  ;;  %v1001_v5 = vld [vmem:[%s1437_s0 + $0x10] sm:$0xff] }
   0x2   :  { %v989_v2 = vld [vmem:[%s1437_s0 + $0x40] sm:$0xff]  ;;  %v39_v3 = vadd.f32 %v984_v1, %v979_v0  ;;  %v996_v4 = vld [vmem:[%s1437_s0 + $0x48] sm:$0xff]  ;;  %v1006_v6 = vld [vmem:[%s1437_s0 + $0x18] sm:$0xff] }
   0x3   :  { %v51_v7 = vadd.f32 %v996_v4, %v989_v2  ;;  %v1013_v8 = vld [vmem:[%s1437_s0 + $0x50] sm:$0xff]  ;;  %v1018_v9 = vld [vmem:[%s1437_s0 + $0x58] sm:$0xff]  ;;  %v42_v10 = vadd.f32 %v1006_v6, %v1001_v5  ;;  %v1027_v12 = vld [vmem:[%s1437_s0 + $0x20] sm:$0xff] }
   0x4   :  { %40 = vadd.xlane.f32.xlu0 %v39_v3  ;;  %v54_v11 = vadd.f32 %v1018_v9, %v1013_v8  ;;  %v1032_v13 = vld [vmem:[%s1437_s0 + $0x28] sm:$0xff]  ;;  %v1037_v14 = vld [vmem:[%s1437_s0 + $0x30] sm:$0xff]  ;;  %v1042_v15 = vld [vmem:[%s1437_s0 + $0x38] sm:$0xff] }
   0x5   :  { %52 = vadd.xlane.f32.xlu1 %v51_v7  ;;  %v1047_v16 = vld [vmem:[%s1437_s0 + $0x60] sm:$0xff]  ;;  %v1052_v17 = vld [vmem:[%s1437_s0 + $0x68] sm:$0xff]  ;;  %v45_v18 = vadd.f32 %v1032_v13, %v1027_v12  ;;  %v1059_v19 = vld [vmem:[%s1437_s0 + $0x70] sm:$0xff]  ;;  %v48_v21 = vadd.f32 %v1042_v15, %v1037_v14 }
   0x6   :  { %v1064_v20 = vld [vmem:[%s1437_s0 + $0x78] sm:$0xff]  ;;  %v57_v22 = vadd.f32 %v1052_v17, %v1047_v16 }
   0x7   :  { %v60_v23 = vadd.f32 %v1064_v20, %v1059_v19 }
   0x8   :  { %43 = vadd.xlane.f32.xlu0 %v42_v10 }
   0x9   :  { %55 = vadd.xlane.f32.xlu1 %v54_v11 }
   0xc   :  { %46 = vadd.xlane.f32.xlu0 %v45_v18 }
   0xd   :  { %49 = vadd.xlane.f32.xlu1 %v48_v21 }
  0x10   :  { %58 = vadd.xlane.f32.xlu0 %v57_v22 }
  0x11   :  { %61 = vadd.xlane.f32.xlu1 %v60_v23 }
  0x12   :  { %10 = vsyncpa [#allocation3], 0  ;;  %v791_v24 = vld [vmem:[%s1440_s3 + $0x4] ss:$8 sps:$4 sm:$0xff]   ;;  %v793_v25 = vld [vmem:[%s1440_s3] ss:$8 sps:$4 sm:$0xff]  }
  0x13   :  { %v794_v26 = vld [vmem:[%s1440_s3 + $0x14] ss:$8 sps:$4 sm:$0xff]   ;;  %491 = vmatprep.subr.bf16.mxu0 %v791_v24  ;;  %756 = vmatprep.subr.bf16.mxu1 %v791_v24  ;;  %v796_v27 = vld [vmem:[%s1440_s3 + $0x10] ss:$8 sps:$4 sm:$0xff]   ;;  %v797_v28 = vld [vmem:[%s1440_s3 + $0x24] ss:$8 sps:$4 sm:$0xff]  }
  0x14   :  { %492 = vmatpush1.bf16.msra.mxu0 %v793_v25  ;;  %772 = vmatpush1.bf16.msra.mxu1 %v793_v25  ;;  %v799_v29 = vld [vmem:[%s1440_s3 + $0x20] ss:$8 sps:$4 sm:$0xff]   ;;  %v800_v30 = vld [vmem:[%s1440_s3 + $0x34] ss:$8 sps:$4 sm:$0xff]   ;;  %v802_v31 = vld [vmem:[%s1440_s3 + $0x30] ss:$8 sps:$4 sm:$0xff]  }
  0x15   :  { %493 = vmatprep.subr.bf16.mxu0 %v794_v26  ;;  %757 = vmatprep.subr.bf16.mxu1 %v794_v26  ;;  %v803_v32 = vld [vmem:[%s1440_s3 + $0x44] ss:$8 sps:$4 sm:$0xff]   ;;  %v805_v33 = vld [vmem:[%s1440_s3 + $0x40] ss:$8 sps:$4 sm:$0xff]   ;;  %v806_v34 = vld [vmem:[%s1440_s3 + $0x54] ss:$8 sps:$4 sm:$0xff]  }
  0x16   :  { %v808_v35 = vld [vmem:[%s1440_s3 + $0x50] ss:$8 sps:$4 sm:$0xff]  }
  0x18   :  { %494 = vmatpush1.bf16.msra.mxu0 %v796_v27  ;;  %773 = vmatpush1.bf16.msra.mxu1 %v796_v27 }
  0x19   :  { %495 = vmatprep.subr.bf16.mxu0 %v797_v28  ;;  %758 = vmatprep.subr.bf16.mxu1 %v797_v28  ;;  %v809_v28 = vld [vmem:[%s1440_s3 + $0x64] ss:$8 sps:$4 sm:$0xff]  }
  0x1c   :  { %496 = vmatpush1.bf16.msra.mxu0 %v799_v29  ;;  %774 = vmatpush1.bf16.msra.mxu1 %v799_v29  ;;  %v811_v29 = vld [vmem:[%s1440_s3 + $0x60] ss:$8 sps:$4 sm:$0xff]  }
  0x1d   :  { %497 = vmatprep.subr.bf16.mxu0 %v800_v30  ;;  %759 = vmatprep.subr.bf16.mxu1 %v800_v30  ;;  %v812_v30 = vld [vmem:[%s1440_s3 + $0x74] ss:$8 sps:$4 sm:$0xff]  }
  0x20   :  { %498 = vmatpush1.bf16.msra.mxu0 %v802_v31  ;;  %775 = vmatpush1.bf16.msra.mxu1 %v802_v31  ;;  %v814_v31 = vld [vmem:[%s1440_s3 + $0x70] ss:$8 sps:$4 sm:$0xff]  }
  0x21   :  { %499 = vmatprep.subr.bf16.mxu0 %v803_v32  ;;  %760 = vmatprep.subr.bf16.mxu1 %v803_v32  ;;  %v815_v32 = vld [vmem:[%s1440_s3 + $0x84] ss:$8 sps:$4 sm:$0xff]  }
  0x24   :  { %500 = vmatpush1.bf16.msra.mxu0 %v805_v33  ;;  %776 = vmatpush1.bf16.msra.mxu1 %v805_v33  ;;  %v817_v33 = vld [vmem:[%s1440_s3 + $0x80] ss:$8 sps:$4 sm:$0xff]  }
  0x25   :  { %501 = vmatprep.subr.bf16.mxu0 %v806_v34  ;;  %761 = vmatprep.subr.bf16.mxu1 %v806_v34  ;;  %v818_v34 = vld [vmem:[%s1440_s3 + $0x94] ss:$8 sps:$4 sm:$0xff]  }
  0x28   :  { %502 = vmatpush1.bf16.msra.mxu0 %v808_v35  ;;  %777 = vmatpush1.bf16.msra.mxu1 %v808_v35  ;;  %v820_v35 = vld [vmem:[%s1440_s3 + $0x90] ss:$8 sps:$4 sm:$0xff]  }
  0x29   :  { %503 = vmatprep.subr.bf16.mxu0 %v809_v28  ;;  %762 = vmatprep.subr.bf16.mxu1 %v809_v28 }
  0x2c   :  { %504 = vmatpush1.bf16.msra.mxu0 %v811_v29  ;;  %778 = vmatpush1.bf16.msra.mxu1 %v811_v29 }
  0x2d   :  { %505 = vmatprep.subr.bf16.mxu0 %v812_v30  ;;  %763 = vmatprep.subr.bf16.mxu1 %v812_v30 }
  0x30   :  { %506 = vmatpush1.bf16.msra.mxu0 %v814_v31  ;;  %779 = vmatpush1.bf16.msra.mxu1 %v814_v31 }
  0x31   :  { %507 = vmatprep.subr.bf16.mxu0 %v815_v32  ;;  %764 = vmatprep.subr.bf16.mxu1 %v815_v32 }
  0x34   :  { %508 = vmatpush1.bf16.msra.mxu0 %v817_v33  ;;  %780 = vmatpush1.bf16.msra.mxu1 %v817_v33 }
  0x35   :  { %509 = vmatprep.subr.bf16.mxu0 %v818_v34  ;;  %765 = vmatprep.subr.bf16.mxu1 %v818_v34 }
  0x38   :  { %510 = vmatpush1.bf16.msra.mxu0 %v820_v35  ;;  %781 = vmatpush1.bf16.msra.mxu1 %v820_v35 }
  0x91   :  { %v41_v36 = vpop.xlane.xlu0 %40 }
  0x92   :  { %v64_v37 = vmul.f32 0.00390625, %v41_v36  ;;  %v53_v38 = vpop.xlane.xlu1 %52  ;;  %v821_v36 = vld [vmem:[%s1440_s3 + $0xa4] ss:$8 sps:$4 sm:$0xff]  }
  0x93   :  { %v68_v39 = vmul.f32 0.00390625, %v53_v38  ;;  %511 = vmatprep.subr.bf16.mxu0 %v821_v36  ;;  %766 = vmatprep.subr.bf16.mxu1 %v821_v36  ;;  %v824_v38 = vld [vmem:[%s1440_s3 + $0xb4] ss:$8 sps:$4 sm:$0xff]  }
  0x94   :  { %v1109_v40 = vsub.f32 %v979_v0, %v64_v37  ;;  %v1112_v41 = vsub.f32 %v984_v1, %v64_v37  ;;  %v823_v37 = vld [vmem:[%s1440_s3 + $0xa0] ss:$8 sps:$4 sm:$0xff]  }
  0x95   :  { %v1115_v42 = vsub.f32 %v989_v2, %v68_v39  ;;  %v1118_v43 = vsub.f32 %v996_v4, %v68_v39  ;;  %v44_v44 = vpop.xlane.xlu0 %43  ;;  %512 = vmatpush1.bf16.msra.mxu0 %v823_v37  ;;  %782 = vmatpush1.bf16.msra.mxu1 %v823_v37  ;;  %v826_v39 = vld [vmem:[%s1440_s3 + $0xb0] ss:$8 sps:$4 sm:$0xff]  }
  0x96   :  { %v65_v45 = vmul.f32 0.00390625, %v44_v44  ;;  %v56_v46 = vpop.xlane.xlu1 %55  ;;  %v88_v47 = vmul.f32 %v1109_v40, %v1109_v40  ;;  %v89_v49 = vmul.f32 %v1112_v41, %v1112_v41  ;;  %513 = vmatprep.subr.bf16.mxu0 %v824_v38  ;;  %767 = vmatprep.subr.bf16.mxu1 %v824_v38  ;;  %v827_v44 = vld [vmem:[%s1440_s3 + $0xc4] ss:$8 sps:$4 sm:$0xff]  }
  0x97   :  { %v69_v48 = vmul.f32 0.00390625, %v56_v46  ;;  %v96_v52 = vmul.f32 %v1115_v42, %v1115_v42  ;;  %v97_v53 = vmul.f32 %v1118_v43, %v1118_v43  ;;  %v830_v46 = vld [vmem:[%s1440_s3 + $0xd4] ss:$8 sps:$4 sm:$0xff]  }
  0x98   :  { %v1125_v50 = vsub.f32 %v1001_v5, %v65_v45  ;;  %v1128_v51 = vsub.f32 %v1006_v6, %v65_v45  ;;  %v104_v57 = vadd.f32 %v89_v49, %v88_v47  ;;  %v829_v45 = vld [vmem:[%s1440_s3 + $0xc0] ss:$8 sps:$4 sm:$0xff]   ;;  %v832_v47 = vld [vmem:[%s1440_s3 + $0xd0] ss:$8 sps:$4 sm:$0xff]  }
  0x99   :  { %v1135_v54 = vsub.f32 %v1013_v8, %v69_v48  ;;  %v1138_v55 = vsub.f32 %v1018_v9, %v69_v48  ;;  %v47_v56 = vpop.xlane.xlu0 %46  ;;  %v116_v61 = vadd.f32 %v97_v53, %v96_v52  ;;  %514 = vmatpush1.bf16.msra.mxu0 %v826_v39  ;;  %783 = vmatpush1.bf16.msra.mxu1 %v826_v39  ;;  %v833_v48 = vld [vmem:[%s1440_s3 + $0xe4] ss:$8 sps:$4 sm:$0xff]   ;;  %v835_v49 = vld [vmem:[%s1440_s3 + $0xe0] ss:$8 sps:$4 sm:$0xff]   ;;  %v836_v52 = vld [vmem:[%s1440_s3 + $0xf4] ss:$8 sps:$4 sm:$0xff]  }
  0x9a   :  { %v66_v58 = vmul.f32 0.00390625, %v47_v56  ;;  %v50_v59 = vpop.xlane.xlu1 %49  ;;  %105 = vadd.xlane.f32.xlu0 %v104_v57  ;;  %v90_v62 = vmul.f32 %v1125_v50, %v1125_v50  ;;  %v91_v1 = vmul.f32 %v1128_v51, %v1128_v51  ;;  %515 = vmatprep.subr.bf16.mxu0 %v827_v44  ;;  %v838_v53 = vld [vmem:[%s1440_s3 + $0xf0] ss:$8 sps:$4 sm:$0xff]   ;;  %v194_v57 = vlaneseq }
  0x9b   :  { %v67_v60 = vmul.f32 0.00390625, %v50_v59  ;;  %v98_v2 = vmul.f32 %v1135_v54, %v1135_v54  ;;  %v99_v6 = vmul.f32 %v1138_v55, %v1138_v55  ;;  %768 = vmatprep.subr.bf16.mxu1 %v827_v44 }
  0x9c   :  { %v1143_v63 = vsub.f32 %v1027_v12, %v66_v58  ;;  %v1146_v0 = vsub.f32 %v1032_v13, %v66_v58  ;;  %v107_v8 = vadd.f32 %v91_v1, %v90_v62 }
  0x9d   :  { %v1153_v3 = vsub.f32 %v1037_v14, %v67_v60  ;;  %v1156_v4 = vsub.f32 %v1042_v15, %v67_v60  ;;  %v59_v5 = vpop.xlane.xlu0 %58  ;;  %v119_v11 = vadd.f32 %v99_v6, %v98_v2  ;;  %516 = vmatpush1.bf16.msra.mxu0 %v829_v45  ;;  %784 = vmatpush1.bf16.msra.mxu1 %v829_v45  ;;  %v195_v60 = vshrl.u32 %v194_v57, 7 }
  0x9e   :  { %v70_v7 = vmul.f32 0.00390625, %v59_v5  ;;  %v62_v9 = vpop.xlane.xlu1 %61  ;;  %117 = vadd.xlane.f32.xlu0 %v116_v61  ;;  %108 = vadd.xlane.f32.xlu1 %v107_v8  ;;  %v92_v14 = vmul.f32 %v1143_v63, %v1143_v63  ;;  %v93_v15 = vmul.f32 %v1146_v0, %v1146_v0 }
  0x9f   :  { %v71_v10 = vmul.f32 0.00390625, %v62_v9  ;;  %517 = vmatprep.subr.bf16.mxu0 %v830_v46  ;;  %769 = vmatprep.subr.bf16.mxu1 %v830_v46  ;;  %v1248_v2 = vsub.s32 0, %v195_v60 }
  0xa0   :  { %v1161_v12 = vsub.f32 %v1047_v16, %v70_v7  ;;  %v1164_v13 = vsub.f32 %v1052_v17, %v70_v7  ;;  %v94_v16 = vmul.f32 %v1153_v3, %v1153_v3  ;;  %v95_v17 = vmul.f32 %v1156_v4, %v1156_v4  ;;  %v37_v7 = vld [vmem:[%s1438_s1] sm:$0x3] }
  0xa1   :  { %v1171_v18 = vsub.f32 %v1059_v19, %v71_v10  ;;  %v1174_v21 = vsub.f32 %v1064_v20, %v71_v10  ;;  %v110_v22 = vadd.f32 %v93_v15, %v92_v14  ;;  %518 = vmatpush1.bf16.msra.mxu0 %v832_v47  ;;  %785 = vmatpush1.bf16.msra.mxu1 %v832_v47  ;;  %v1255_v10 = vsub.s32 1, %v195_v60 }
  0xa2   :  { %v100_v23 = vmul.f32 %v1161_v12, %v1161_v12  ;;  %v101_v24 = vmul.f32 %v1164_v13, %v1164_v13  ;;  %120 = vadd.xlane.f32.xlu1 %v119_v11  ;;  %v113_v19 = vadd.f32 %v95_v17, %v94_v16  ;;  %519 = vmatprep.subr.bf16.mxu0 %v833_v48 }
  0xa3   :  { %111 = vadd.xlane.f32.xlu0 %v110_v22  ;;  %v102_v20 = vmul.f32 %v1171_v18, %v1171_v18  ;;  %v103_v25 = vmul.f32 %v1174_v21, %v1174_v21  ;;  %770 = vmatprep.subr.bf16.mxu1 %v833_v48  ;;  %v1258_v14 = vrot.slane %v37_v7, %v1248_v2 }
  0xa4   :  { %v122_v26 = vadd.f32 %v101_v24, %v100_v23  ;;  %v1266_v24 = vrot.slane %v37_v7, %v1255_v10 }
  0xa5   :  { %v125_v27 = vadd.f32 %v103_v25, %v102_v20  ;;  %520 = vmatpush1.bf16.msra.mxu0 %v835_v49  ;;  %786 = vmatpush1.bf16.msra.mxu1 %v835_v49  ;;  %v1271_v20 = vmul.f32 %v1258_v14, %v1109_v40  ;;  %v1281_v39 = vmul.f32 %v1258_v14, %v1125_v50 }
  0xa6   :  { %114 = vadd.xlane.f32.xlu1 %v113_v19  ;;  %521 = vmatprep.subr.bf16.mxu0 %v836_v52  ;;  %v205_v38 = vmul.f32 %v1266_v24, %v1112_v41 }
  0xa7   :  { %123 = vadd.xlane.f32.xlu0 %v122_v26  ;;  %771 = vmatprep.subr.bf16.mxu1 %v836_v52 }
  0xa9   :  { %522 = vmatpush1.bf16.msra.mxu0 %v838_v53  ;;  %787 = vmatpush1.bf16.msra.mxu1 %v838_v53 }
  0xaa   :  { %126 = vadd.xlane.f32.xlu1 %v125_v27 }
 0x127   :  { %v106_v56 = vpop.xlane.xlu0 %105 }
 0x128   :  { %v129_v58 = vmul.f32 0.003921569, %v106_v56 }
 0x12a   :  { %839 = vrsqrt.f32 %v129_v58  ;;  %vm139_vm0 = vcmp.eq.f32.partialorder %v129_v58, inf  ;;  %v142_v25 = vand.u32 2147483648, %v129_v58  ;;  %vm141_vm1 = vcmp.eq.f32.partialorder %v129_v58, 0.0 }
 0x12b   :  { %v118_v59 = vpop.xlane.xlu0 %117  ;;  %v109_v61 = vpop.xlane.xlu1 %108 }
 0x12c   :  { %v133_v62 = vmul.f32 0.003921569, %v118_v59  ;;  %v130_v1 = vmul.f32 0.003921569, %v109_v61 }
 0x12e   :  { %841 = vrsqrt.f32 %v133_v62  ;;  %vm167_vm2 = vcmp.eq.f32.partialorder %v133_v62, inf  ;;  %v170_v32 = vand.u32 2147483648, %v133_v62  ;;  %vm146_vm3 = vcmp.eq.f32.partialorder %v130_v1, inf }
 0x12f   :  { %843 = vrsqrt.f32 %v130_v1  ;;  %v121_v5 = vpop.xlane.xlu1 %120  ;;  %v149_v34 = vand.u32 2147483648, %v130_v1  ;;  %vm169_vm4 = vcmp.eq.f32.partialorder %v133_v62, 0.0  ;;  %vm148_vm5 = vcmp.eq.f32.partialorder %v130_v1, 0.0 }
 0x130   :  { %v112_v6 = vpop.xlane.xlu0 %111  ;;  %v134_v8 = vmul.f32 0.003921569, %v121_v5 }
 0x131   :  { %v1253_v9 = vmul.f32 0.003921569, %v112_v6 }
 0x132   :  { %845 = vrsqrt.f32 %v134_v8  ;;  %vm174_vm6 = vcmp.eq.f32.partialorder %v134_v8, inf  ;;  %v177_v52 = vand.u32 2147483648, %v134_v8  ;;  %vm176_vm8 = vcmp.eq.f32.partialorder %v134_v8, 0.0 }
 0x133   :  { %847 = vrsqrt.f32 %v1253_v9  ;;  %v115_v15 = vpop.xlane.xlu1 %114  ;;  %vm153_vm7 = vcmp.eq.f32.partialorder %v1253_v9, inf  ;;  %v156_v56 = vand.u32 2147483648, %v1253_v9  ;;  %vm155_vm9 = vcmp.eq.f32.partialorder %v1253_v9, 0.0 }
 0x134   :  { %v840_v11 = vpop.eup %839  ;;  %v124_v16 = vpop.xlane.xlu0 %123  ;;  %v1261_v22 = vmul.f32 0.003921569, %v115_v15 }
 0x135   :  { %v138_v17 = vmul.f32 %v840_v11, %v129_v58  ;;  %v1263_v23 = vmul.f32 0.003921569, %v124_v16 }
 0x136   :  { %849 = vrsqrt.f32 %v1261_v22  ;;  %vm160_vm10 = vcmp.eq.f32.partialorder %v1261_v22, inf  ;;  %vm162_vm11 = vcmp.eq.f32.partialorder %v1261_v22, 0.0 }
 0x137   :  { %851 = vrsqrt.f32 %v1263_v23  ;;  %v127_v26 = vpop.xlane.xlu1 %126  ;;  %v140_v30 = vsel %vm139_vm0, %v129_v58, %v138_v17  ;;  %vm181_vm12 = vcmp.eq.f32.partialorder %v1263_v23, inf  ;;  %vm183_vm13 = vcmp.eq.f32.partialorder %v1263_v23, 0.0 }
 0x138   :  { %v842_v19 = vpop.eup %841  ;;  %v1274_v29 = vmul.f32 0.003921569, %v127_v26  ;;  %v143_v33 = vsel %vm141_vm1, %v142_v25, %v140_v30  ;;  %v207_v17 = vmul.f32 %v1266_v24, %v1128_v51 }
 0x139   :  { %v844_v27 = vpop.eup %843  ;;  %v166_v28 = vmul.f32 %v842_v19, %v133_v62  ;;  %v220_v35 = vadd.f32 1e-06, %v143_v33 }
 0x13a   :  { %v145_v31 = vmul.f32 %v844_v27, %v130_v1  ;;  %853 = vrsqrt.f32 %v1274_v29  ;;  %vm188_vm14 = vcmp.eq.f32.partialorder %v1274_v29, inf  ;;  %v191_v26 = vand.u32 2147483648, %v1274_v29 }
 0x13b   :  { %v168_v36 = vsel %vm167_vm2, %v133_v62, %v166_v28  ;;  %855 = vrcp.f32 %v220_v35  ;;  %vm190_vm15 = vcmp.eq.f32.partialorder %v1274_v29, 0.0 }
 0x13c   :  { %v147_v40 = vsel %vm146_vm3, %v130_v1, %v145_v31  ;;  %v846_v37 = vpop.eup %845  ;;  %v171_v45 = vsel %vm169_vm4, %v170_v32, %v168_v36  ;;  %v163_v1 = vand.u32 2147483648, %v1261_v22 }
 0x13d   :  { %v150_v44 = vsel %vm148_vm5, %v149_v34, %v147_v40  ;;  %v848_v46 = vpop.eup %847  ;;  %v173_v47 = vmul.f32 %v846_v37, %v134_v8  ;;  %v224_v49 = vadd.f32 1e-06, %v171_v45  ;;  %v212_v40 = vmul.f32 %v1258_v14, %v1115_v42 }
 0x13e   :  { %v221_v48 = vadd.f32 1e-06, %v150_v44  ;;  %v152_v53 = vmul.f32 %v848_v46, %v1253_v9  ;;  %v213_v37 = vmul.f32 %v1266_v24, %v1118_v43 }
 0x13f   :  { %v175_v41 = vsel %vm174_vm6, %v134_v8, %v173_v47  ;;  %v184_v8 = vand.u32 2147483648, %v1263_v23 }
 0x140   :  { %857 = vrcp.f32 %v221_v48  ;;  %v850_v50 = vpop.eup %849  ;;  %v154_v57 = vsel %vm153_vm7, %v1253_v9, %v152_v53  ;;  %v178_v58 = vsel %vm176_vm8, %v177_v52, %v175_v41  ;;  %v38_v9 = vld [vmem:[%s1439_s2] sm:$0x3] }
 0x141   :  { %859 = vrcp.f32 %v224_v49  ;;  %v852_v59 = vpop.eup %851  ;;  %v159_v60 = vmul.f32 %v850_v50, %v1261_v22  ;;  %v225_v61 = vadd.f32 1e-06, %v178_v58  ;;  %v157_v62 = vsel %vm155_vm9, %v156_v56, %v154_v57 }
 0x142   :  { %v180_v5 = vmul.f32 %v852_v59, %v1263_v23  ;;  %v222_v6 = vadd.f32 1e-06, %v157_v62  ;;  %v1307_v27 = vrot.slane %v38_v9, %v1248_v2  ;;  %v1312_v31 = vrot.slane %v38_v9, %v1255_v10 }
 0x143   :  { %v161_v7 = vsel %vm160_vm10, %v1261_v22, %v159_v60  ;;  %861 = vrcp.f32 %v225_v61  ;;  %v210_v50 = vmul.f32 %v1258_v14, %v1153_v3  ;;  %v211_v57 = vmul.f32 %v1266_v24, %v1156_v4 }
 0x144   :  { %v854_v11 = vpop.eup %853  ;;  %v182_v15 = vsel %vm181_vm12, %v1263_v23, %v180_v5  ;;  %v164_v16 = vsel %vm162_vm11, %v163_v1, %v161_v7  ;;  %863 = vrcp.f32 %v222_v6  ;;  %v216_v1 = vmul.f32 %v1258_v14, %v1161_v12 }
 0x145   :  { %v187_v22 = vmul.f32 %v854_v11, %v1274_v29  ;;  %v223_v19 = vadd.f32 1e-06, %v164_v16  ;;  %v185_v25 = vsel %vm183_vm13, %v184_v8, %v182_v15  ;;  %v856_v30 = vpop.eup %855  ;;  %v217_v3 = vmul.f32 %v1266_v24, %v1164_v13 }
 0x146   :  { %v226_v28 = vadd.f32 1e-06, %v185_v25  ;;  %v230_v51 = vmul.f32 %v856_v30, %v205_v38  ;;  %v229_v32 = vmul.f32 %v856_v30, %v1271_v20  ;;  %v215_v20 = vmul.f32 %v1266_v24, %v1138_v55 }
 0x147   :  { %v189_v23 = vsel %vm188_vm14, %v1274_v29, %v187_v22  ;;  %865 = vrcp.f32 %v223_v19  ;;  %v214_v29 = vmul.f32 %v1258_v14, %v1135_v54  ;;  %v208_v54 = vmul.f32 %v1258_v14, %v1143_v63 }
 0x148   :  { %v192_v33 = vsel %vm190_vm15, %v191_v26, %v189_v23  ;;  %867 = vrcp.f32 %v226_v28  ;;  %v264_v38 = vadd.f32 %v1312_v31, %v230_v51  ;;  %v263_v46 = vadd.f32 %v1307_v27, %v229_v32  ;;  %v319_v32 = vld [vmem:[%s1441_s4] sm:$0x3]  ;;  %s943_s4 = smov [#allocation2]  }
 0x149   :  { %v227_v35 = vadd.f32 1e-06, %v192_v33  ;;  %v218_v9 = vmul.f32 %v1258_v14, %v1171_v18  ;;  %v219_v11 = vmul.f32 %v1266_v24, %v1174_v21  ;;  %v324_v33 = vrot.slane %v319_v32, %v1248_v2  ;;  %s713_s14 = sshll.u32 %s943_s4, 4  ;;  %s714_s14 = int_to_ptr.vmem [resolvable:$true] %s713_s14 }
 0x14a   :  { %v858_v34 = vpop.eup %857  ;;  %s919_s15 = scalar_lea.vmem %s714_s14, 2048  ;;  %p924_p1 = scmp.lt.s32.totalorder %s714_s14, %s714_s14 }
 0x14b   :  { %v860_v36 = vpop.eup %859  ;;  %v233_v44 = vmul.f32 %v858_v34, %v207_v17  ;;  %v232_v45 = vmul.f32 %v858_v34, %v1281_v39  ;;  %869 = vrcp.f32 %v227_v35  ;;  %v209_v39 = vmul.f32 %v1266_v24, %v1146_v0  ;;  %p920_p0 = scmp.ne.s32.totalorder %s714_s14, %s919_s15  ;;  %p925_p2 = scmp.lt.s32.totalorder %s919_s15, %s919_s15 }
 0x14c   :  { %v242_v48 = vmul.f32 %v860_v36, %v213_v37  ;;  %v241_v43 = vmul.f32 %v860_v36, %v212_v40  ;;  %v328_v34 = vrot.slane %v319_v32, %v1255_v10 }
 0x14d   :  { %v266_v42 = vadd.f32 %v1312_v31, %v233_v44  ;;  %v265_v47 = vadd.f32 %v1307_v27, %v232_v45  ;;  %v862_v49 = vpop.eup %861  ;;  %p926_p3 = por %p925_p2, %p924_p1 }
 0x14e   :  { %v864_v52 = vpop.eup %863  ;;  %v245_v56 = vmul.f32 %v862_v49, %v215_v20  ;;  %v244_v41 = vmul.f32 %v862_v49, %v214_v29  ;;  %v272_v60 = vadd.f32 %v1312_v31, %v242_v48  ;;  %v271_v0 = vadd.f32 %v1307_v27, %v241_v43 }
 0x14f   :  { %v280_v55 = vpack.c.bf16 %v266_v42, %v264_v38  ;;  %v279_v53 = vpack.c.bf16 %v265_v47, %v263_v46  ;;  %v236_v58 = vmul.f32 %v864_v52, %v209_v39  ;;  %v235_v59 = vmul.f32 %v864_v52, %v208_v54  ;;  %p927_p4 = pnand %p926_p3, %p920_p0 }
 0x150   :  { %v274_v63 = vadd.f32 %v1312_v31, %v245_v56  ;;  %v273_v61 = vadd.f32 %v1307_v27, %v244_v41 }
 0x151   :  { %523 = vmatprep.mubr.bf16.mxu0 %v280_v55  ;;  %v866_v62 = vpop.eup %865  ;;  %v268_v15 = vadd.f32 %v1312_v31, %v236_v58  ;;  %v267_v16 = vadd.f32 %v1307_v27, %v235_v59 }
 0x152   :  { %524 = vmatmul.mubr.bf16.vlgmr.msra.gmra.mrb[0].mxu0 %v279_v53  ;;  %v868_v4 = vpop.eup %867  ;;  %v284_v5 = vpack.c.bf16 %v274_v63, %v272_v60  ;;  %v283_v6 = vpack.c.bf16 %v273_v61, %v271_v0  ;;  %v239_v7 = vmul.f32 %v866_v62, %v211_v57  ;;  %v238_v8 = vmul.f32 %v866_v62, %v210_v50 }
 0x153   :  { %v248_v17 = vmul.f32 %v868_v4, %v217_v3  ;;  %v247_v22 = vmul.f32 %v868_v4, %v216_v1 }
 0x154   :  { %543 = vmatprep.mubr.bf16.mxu1 %v284_v5  ;;  %v270_v12 = vadd.f32 %v1312_v31, %v239_v7  ;;  %v269_v13 = vadd.f32 %v1307_v27, %v238_v8 }
 0x155   :  { %v870_v19 = vpop.eup %869  ;;  %544 = vmatmul.mubr.bf16.vlgmr.msra.gmra.mrb[0].mxu1 %v283_v6  ;;  %v276_v21 = vadd.f32 %v1312_v31, %v248_v17  ;;  %v275_v24 = vadd.f32 %v1307_v27, %v247_v22 }
 0x156   :  { %v282_v25 = vpack.c.bf16 %v270_v12, %v268_v15  ;;  %v281_v26 = vpack.c.bf16 %v269_v13, %v267_v16  ;;  %v251_v28 = vmul.f32 %v870_v19, %v219_v11  ;;  %v250_v18 = vmul.f32 %v870_v19, %v218_v9 }
 0x158   :  { %533 = vmatprep.mubr.bf16.mxu0 %v282_v25  ;;  %v278_v14 = vadd.f32 %v1312_v31, %v251_v28  ;;  %v277_v30 = vadd.f32 %v1307_v27, %v250_v18 }
 0x15a   :  { %534 = vmatmul.mubr.bf16.gmra.mrb[4].mxu0 %v281_v26  ;;  %v286_v23 = vpack.c.bf16 %v278_v14, %v276_v21  ;;  %v285_v51 = vpack.c.bf16 %v277_v30, %v275_v24 }
 0x15c   :  { %553 = vmatprep.mubr.bf16.mxu1 %v286_v23 }
 0x15d   :  { %554 = vmatmul.mubr.bf16.gmra.mrb[4].mxu1 %v285_v51 }
 0x225   :  { %v525_v40 = vpop.f32.mrb[0].mxu0 }
 0x226   :  { %v526_v35 = vadd.f32 %v525_v40, %v324_v33  ;;  %v527_v31 = vpop.f32.mrb[1].mxu0 }
 0x227   :  { %v528_v36 = vadd.f32 %v527_v31, %v328_v34  ;;  %v529_v37 = vpop.f32.mrb[2].mxu0 }
 0x228   :  { %v530_v29 = vadd.f32 %v529_v37, %v324_v33  ;;  %v531_v27 = vpop.f32.mrb[3].mxu0  ;;  %v545_v45 = vpop.f32.mrb[0].mxu1 }
 0x229   :  { %v532_v44 = vadd.f32 %v531_v27, %v328_v34  ;;  %v564_v20 = vmax.f32 %v526_v35, %v528_v36  ;;  %v546_v38 = vadd.f32 %v545_v45, %v324_v33  ;;  %v547_v46 = vpop.f32.mrb[1].mxu1 }
 0x22a   :  { %v548_v42 = vadd.f32 %v547_v46, %v328_v34  ;;  %v549_v47 = vpop.f32.mrb[2].mxu1 }
 0x22b   :  { %565 = vmax.xlane.f32.xlu0 %v564_v20  ;;  %v567_v48 = vmax.f32 %v530_v29, %v532_v44  ;;  %v550_v43 = vadd.f32 %v549_v47, %v324_v33  ;;  %v551_v2 = vpop.f32.mrb[3].mxu1 }
 0x22c   :  { %v552_v49 = vadd.f32 %v551_v2, %v328_v34  ;;  %v576_v54 = vmax.f32 %v546_v38, %v548_v42 }
 0x22d   :  { %568 = vmax.xlane.f32.xlu1 %v567_v48  ;;  %v535_v10 = vpop.f32.mrb[4].mxu0 }
 0x22e   :  { %v536_v39 = vadd.f32 %v535_v10, %v324_v33  ;;  %v537_v52 = vpop.f32.mrb[5].mxu0  ;;  %v579_v56 = vmax.f32 %v550_v43, %v552_v49 }
 0x22f   :  { %v538_v55 = vadd.f32 %v537_v52, %v328_v34  ;;  %577 = vmax.xlane.f32.xlu0 %v576_v54  ;;  %v539_v53 = vpop.f32.mrb[6].mxu0 }
 0x230   :  { %v540_v41 = vadd.f32 %v539_v53, %v324_v33  ;;  %v541_v50 = vpop.f32.mrb[7].mxu0  ;;  %v555_v58 = vpop.f32.mrb[4].mxu1 }
 0x231   :  { %v542_v57 = vadd.f32 %v541_v50, %v328_v34  ;;  %580 = vmax.xlane.f32.xlu1 %v579_v56  ;;  %v570_v59 = vmax.f32 %v536_v39, %v538_v55  ;;  %v556_v60 = vadd.f32 %v555_v58, %v324_v33  ;;  %v557_v63 = vpop.f32.mrb[5].mxu1 }
 0x232   :  { %v558_v0 = vadd.f32 %v557_v63, %v328_v34  ;;  %v559_v61 = vpop.f32.mrb[6].mxu1 }
 0x233   :  { %571 = vmax.xlane.f32.xlu0 %v570_v59  ;;  %v573_v62 = vmax.f32 %v540_v41, %v542_v57  ;;  %v560_v1 = vadd.f32 %v559_v61, %v324_v33  ;;  %v561_v3 = vpop.f32.mrb[7].mxu1 }
 0x234   :  { %v562_v4 = vadd.f32 %v561_v3, %v328_v34  ;;  %v582_v5 = vmax.f32 %v556_v60, %v558_v0 }
 0x235   :  { %574 = vmax.xlane.f32.xlu1 %v573_v62 }
 0x236   :  { %v585_v6 = vmax.f32 %v560_v1, %v562_v4 }
 0x237   :  { %583 = vmax.xlane.f32.xlu0 %v582_v5 }
 0x239   :  { %586 = vmax.xlane.f32.xlu1 %v585_v6 }
 0x2b8   :  { %v566_v7 = vpop.xlane.xlu0 %565 }
 0x2b9   :  { %v1361_v8 = vsub.f32 %v526_v35, %v566_v7  ;;  %v1363_v9 = vsub.f32 %v528_v36, %v566_v7 }
 0x2ba   :  { %v569_v11 = vpop.xlane.xlu1 %568 }
 0x2bb   :  { %v604_v15 = vmul.f32 1.442695, %v1361_v8  ;;  %v606_v16 = vmul.f32 1.442695, %v1363_v9  ;;  %v1367_v12 = vsub.f32 %v530_v29, %v569_v11  ;;  %v1369_v13 = vsub.f32 %v532_v44, %v569_v11 }
 0x2bc   :  { %v578_v17 = vpop.xlane.xlu0 %577 }
 0x2bd   :  { %871 = vpow2.f32 %v604_v15  ;;  %v608_v22 = vmul.f32 1.442695, %v1367_v12  ;;  %v610_v19 = vmul.f32 1.442695, %v1369_v13  ;;  %v1373_v25 = vsub.f32 %v546_v38, %v578_v17 }
 0x2be   :  { %873 = vpow2.f32 %v606_v16  ;;  %v1375_v26 = vsub.f32 %v548_v42, %v578_v17  ;;  %v581_v28 = vpop.xlane.xlu1 %580 }
 0x2bf   :  { %875 = vpow2.f32 %v608_v22  ;;  %v620_v18 = vmul.f32 1.442695, %v1373_v25  ;;  %v1378_v21 = vsub.f32 %v550_v43, %v581_v28  ;;  %v1380_v14 = vsub.f32 %v552_v49, %v581_v28 }
 0x2c0   :  { %877 = vpow2.f32 %v610_v19  ;;  %v622_v24 = vmul.f32 1.442695, %v1375_v26  ;;  %v572_v30 = vpop.xlane.xlu0 %571 }
 0x2c1   :  { %879 = vpow2.f32 %v620_v18  ;;  %v624_v23 = vmul.f32 1.442695, %v1378_v21  ;;  %v626_v51 = vmul.f32 1.442695, %v1380_v14  ;;  %v1385_v32 = vsub.f32 %v536_v39, %v572_v30 }
 0x2c2   :  { %881 = vpow2.f32 %v622_v24  ;;  %v1387_v33 = vsub.f32 %v538_v55, %v572_v30  ;;  %v575_v34 = vpop.xlane.xlu1 %574 }
 0x2c3   :  { %883 = vpow2.f32 %v624_v23  ;;  %v612_v40 = vmul.f32 1.442695, %v1385_v32  ;;  %v1390_v35 = vsub.f32 %v540_v41, %v575_v34  ;;  %v1392_v31 = vsub.f32 %v542_v57, %v575_v34 }
 0x2c4   :  { %885 = vpow2.f32 %v626_v51  ;;  %v614_v36 = vmul.f32 1.442695, %v1387_v33  ;;  %v584_v37 = vpop.xlane.xlu0 %583 }
 0x2c5   :  { %887 = vpow2.f32 %v612_v40  ;;  %v616_v29 = vmul.f32 1.442695, %v1390_v35  ;;  %v618_v27 = vmul.f32 1.442695, %v1392_v31  ;;  %v1397_v44 = vsub.f32 %v556_v60, %v584_v37 }
 0x2c6   :  { %889 = vpow2.f32 %v614_v36  ;;  %v1399_v45 = vsub.f32 %v558_v0, %v584_v37  ;;  %v587_v20 = vpop.xlane.xlu1 %586 }
 0x2c7   :  { %v872_v38 = vpop.eup %871  ;;  %891 = vpow2.f32 %v616_v29  ;;  %v628_v46 = vmul.f32 1.442695, %v1397_v44  ;;  %v1402_v42 = vsub.f32 %v560_v1, %v587_v20  ;;  %v1404_v47 = vsub.f32 %v562_v4, %v587_v20 }
 0x2c8   :  { %v874_v48 = vpop.eup %873  ;;  %893 = vpow2.f32 %v618_v27  ;;  %v630_v43 = vmul.f32 1.442695, %v1399_v45 }
 0x2c9   :  { %v876_v2 = vpop.eup %875  ;;  %895 = vpow2.f32 %v628_v46  ;;  %v632_v49 = vmul.f32 1.442695, %v1402_v42  ;;  %v634_v10 = vmul.f32 1.442695, %v1404_v47  ;;  %v636_v54 = vadd.f32 %v874_v48, %v872_v38 }
 0x2ca   :  { %v878_v39 = vpop.eup %877  ;;  %897 = vpow2.f32 %v630_v43 }
 0x2cb   :  { %v880_v52 = vpop.eup %879  ;;  %899 = vpow2.f32 %v632_v49  ;;  %637 = vadd.xlane.f32.xlu0 %v636_v54  ;;  %v639_v55 = vadd.f32 %v878_v39, %v876_v2 }
 0x2cc   :  { %v882_v53 = vpop.eup %881  ;;  %901 = vpow2.f32 %v634_v10 }
 0x2cd   :  { %v884_v56 = vpop.eup %883  ;;  %640 = vadd.xlane.f32.xlu1 %v639_v55  ;;  %v648_v41 = vadd.f32 %v882_v53, %v880_v52 }
 0x2ce   :  { %v886_v50 = vpop.eup %885 }
 0x2cf   :  { %v888_v57 = vpop.eup %887  ;;  %649 = vadd.xlane.f32.xlu0 %v648_v41  ;;  %v651_v58 = vadd.f32 %v886_v50, %v884_v56 }
 0x2d0   :  { %v890_v59 = vpop.eup %889 }
 0x2d1   :  { %v892_v60 = vpop.eup %891  ;;  %652 = vadd.xlane.f32.xlu1 %v651_v58  ;;  %v642_v63 = vadd.f32 %v890_v59, %v888_v57 }
 0x2d2   :  { %v894_v0 = vpop.eup %893 }
 0x2d3   :  { %v896_v61 = vpop.eup %895  ;;  %643 = vadd.xlane.f32.xlu0 %v642_v63  ;;  %v645_v62 = vadd.f32 %v894_v0, %v892_v60 }
 0x2d4   :  { %v898_v1 = vpop.eup %897 }
 0x2d5   :  { %v900_v3 = vpop.eup %899  ;;  %646 = vadd.xlane.f32.xlu1 %v645_v62  ;;  %v654_v4 = vadd.f32 %v898_v1, %v896_v61 }
 0x2d6   :  { %v902_v5 = vpop.eup %901 }
 0x2d7   :  { %655 = vadd.xlane.f32.xlu0 %v654_v4  ;;  %v657_v6 = vadd.f32 %v902_v5, %v900_v3 }
 0x2d9   :  { %658 = vadd.xlane.f32.xlu1 %v657_v6 }
 0x358   :  { %v638_v7 = vpop.xlane.xlu0 %637 }
 0x359   :  { %903 = vlog2.f32 %v638_v7 }
 0x35a   :  { %v641_v11 = vpop.xlane.xlu1 %640 }
 0x35b   :  { %905 = vlog2.f32 %v641_v11 }
 0x35c   :  { %v650_v15 = vpop.xlane.xlu0 %649 }
 0x35d   :  { %907 = vlog2.f32 %v650_v15 }
 0x35e   :  { %v653_v16 = vpop.xlane.xlu1 %652 }
 0x35f   :  { %909 = vlog2.f32 %v653_v16 }
 0x360   :  { %v644_v17 = vpop.xlane.xlu0 %643 }
 0x361   :  { %911 = vlog2.f32 %v644_v17 }
 0x362   :  { %v647_v22 = vpop.xlane.xlu1 %646 }
 0x363   :  { %v904_v19 = vpop.eup %903  ;;  %913 = vlog2.f32 %v647_v22 }
 0x364   :  { %v661_v28 = vmul.f32 0.6931472, %v904_v19  ;;  %v656_v18 = vpop.xlane.xlu0 %655 }
 0x365   :  { %v906_v24 = vpop.eup %905  ;;  %915 = vlog2.f32 %v656_v18 }
 0x366   :  { %v676_v30 = vsub.f32 %v1361_v8, %v661_v28  ;;  %v677_v23 = vsub.f32 %v1363_v9, %v661_v28  ;;  %v663_v51 = vmul.f32 0.6931472, %v906_v24  ;;  %v659_v34 = vpop.xlane.xlu1 %658 }
 0x367   :  { %v908_v40 = vpop.eup %907  ;;  %917 = vlog2.f32 %v659_v34 }
 0x368   :  { %692 = vst [vmem:[#allocation2] sm:$0xff] %v676_v30  ;;  %693 = vst [vmem:[#allocation2 + $0x8] sm:$0xff] %v677_v23  ;;  %v678_v36 = vsub.f32 %v1367_v12, %v663_v51  ;;  %v679_v37 = vsub.f32 %v1369_v13, %v663_v51  ;;  %v669_v29 = vmul.f32 0.6931472, %v908_v40 }
 0x369   :  { %v910_v27 = vpop.eup %909 }
 0x36a   :  { %694 = vst [vmem:[#allocation2 + $0x10] sm:$0xff] %v678_v36  ;;  %695 = vst [vmem:[#allocation2 + $0x18] sm:$0xff] %v679_v37  ;;  %v684_v20 = vsub.f32 %v1373_v25, %v669_v29  ;;  %v685_v8 = vsub.f32 %v1375_v26, %v669_v29  ;;  %v671_v38 = vmul.f32 0.6931472, %v910_v27 }
 0x36b   :  { %v912_v9 = vpop.eup %911 }
 0x36c   :  { %700 = vst [vmem:[#allocation2 + $0x40] sm:$0xff] %v684_v20  ;;  %701 = vst [vmem:[#allocation2 + $0x48] sm:$0xff] %v685_v8  ;;  %v686_v46 = vsub.f32 %v1378_v21, %v671_v38  ;;  %v687_v48 = vsub.f32 %v1380_v14, %v671_v38  ;;  %v665_v43 = vmul.f32 0.6931472, %v912_v9 }
 0x36d   :  { %v914_v12 = vpop.eup %913 }
 0x36e   :  { %702 = vst [vmem:[#allocation2 + $0x50] sm:$0xff] %v686_v46  ;;  %703 = vst [vmem:[#allocation2 + $0x58] sm:$0xff] %v687_v48  ;;  %v680_v13 = vsub.f32 %v1385_v32, %v665_v43  ;;  %v681_v2 = vsub.f32 %v1387_v33, %v665_v43  ;;  %v667_v49 = vmul.f32 0.6931472, %v914_v12 }
 0x36f   :  { %v916_v25 = vpop.eup %915 }
 0x370   :  { %696 = vst [vmem:[#allocation2 + $0x20] sm:$0xff] %v680_v13  ;;  %697 = vst [vmem:[#allocation2 + $0x28] sm:$0xff] %v681_v2  ;;  %v682_v26 = vsub.f32 %v1390_v35, %v667_v49  ;;  %v683_v10 = vsub.f32 %v1392_v31, %v667_v49  ;;  %v673_v54 = vmul.f32 0.6931472, %v916_v25 }
 0x371   :  { %v918_v21 = vpop.eup %917 }
 0x372   :  { %698 = vst [vmem:[#allocation2 + $0x30] sm:$0xff] %v682_v26  ;;  %699 = vst [vmem:[#allocation2 + $0x38] sm:$0xff] %v683_v10  ;;  %v688_v14 = vsub.f32 %v1397_v44, %v673_v54  ;;  %v689_v32 = vsub.f32 %v1399_v45, %v673_v54  ;;  %v675_v39 = vmul.f32 0.6931472, %v918_v21 }
 0x374   :  { %704 = vst [vmem:[#allocation2 + $0x60] sm:$0xff] %v688_v14  ;;  %705 = vst [vmem:[#allocation2 + $0x68] sm:$0xff] %v689_v32  ;;  %v690_v33 = vsub.f32 %v1402_v42, %v675_v39  ;;  %v691_v52 = vsub.f32 %v1404_v47, %v675_v39 }
 0x376   :  { %706 = vst [vmem:[#allocation2 + $0x70] sm:$0xff] %v690_v33  ;;  %707 = vst [vmem:[#allocation2 + $0x78] sm:$0xff] %v691_v52 }
 0x377   :  { %930 = shalt.err (!%p927_p4)
}
 0x378   :  { %s931_s18 = scalar_lea.hbm %s1442_s5, 2048 }
 0x379   :  { %p932_p5 = scmp.ne.s32.totalorder %s1442_s5, %s931_s18  ;;  %p935_p6 = scmp.lt.u32.totalorder %s931_s18, %s1442_s5 }
 0x37b   :  { %p937_p7 = pnand %p935_p6, %p932_p5 }
 0x37d   :  { %940 = shalt.err (!%p937_p7)
}
 0x37e   :  { %s944_s23 = smov 256   ;;  %s945_s24 = smov 16  }
 0x37f   :  { %719 = dma.vmem_to_hbm [thread:$0]  %s714_s14, 2048, %s1442_s5, [#allocation3], %s944_s23, %s944_s23, %s945_s24  }
 0x380   :  { %941 = dma.done.wait [#allocation3], 2048  }
 0x381   :  { %942 = vsyncadd [#allocation3], 4294965248 }
 0x382   :  { %723 = vsyncpa [#allocation3], 1 }

// kernel: tgvae_decode.3
= control target key start
LH: loop header
LB: loop body
LE: loop exit
PB: predicated region body
PF: predicated region fallthrough
CT: control target
= control target key end

     0   :  { %s7954_s0 = inlined_call_operand.hbm [shape: f32[4,16,256], index: 0, kind: input, shape index: {}]   ;;  %s7955_s1 = inlined_call_operand.vmem [shape: f32[4,8,256], index: 1, kind: input, shape index: {}]   ;;  %s7956_s2 = inlined_call_operand.vmem [shape: f32[4,16,16], index: 2, kind: input, shape index: {}]   ;;  %s7957_s3 = inlined_call_operand.vmem [shape: f32[1,256], index: 3, kind: input, shape index: {}]   ;;  %s7958_s4 = inlined_call_operand.hbm [shape: f32[1,256], index: 4, kind: input, shape index: {}]   ;;  %s7959_s5 = inlined_call_operand.hbm [shape: bf16[256,768], index: 5, kind: input, shape index: {}]   ;;  %s7960_s6 = inlined_call_operand.vmem [shape: f32[1,768], index: 6, kind: input, shape index: {}]   ;;  %s7961_s7 = inlined_call_operand.hbm [shape: bf16[256,256], index: 7, kind: input, shape index: {}]   ;;  %s7962_s8 = inlined_call_operand.hbm [shape: f32[1,256], index: 8, kind: input, shape index: {}]   ;;  %s7963_s9 = inlined_call_operand.hbm [shape: f32[1,256], index: 9, kind: input, shape index: {}]   ;;  %s7964_s10 = inlined_call_operand.hbm [shape: f32[1,256], index: 10, kind: input, shape index: {}]   ;;  %s7965_s11 = inlined_call_operand.vmem [shape: bf16[256,256], index: 11, kind: input, shape index: {}]   ;;  %s7966_s12 = inlined_call_operand.hbm [shape: f32[1,256], index: 12, kind: input, shape index: {}]   ;;  %s7967_s13 = inlined_call_operand.hbm [shape: bf16[256,512], index: 13, kind: input, shape index: {}]   ;;  %s7968_s14 = inlined_call_operand.hbm [shape: f32[1,512], index: 14, kind: input, shape index: {}]   ;;  %s7969_s15 = inlined_call_operand.hbm [shape: bf16[256,256], index: 15, kind: input, shape index: {}]   ;;  %s7970_s16 = inlined_call_operand.hbm [shape: f32[1,256], index: 16, kind: input, shape index: {}]   ;;  %s7971_s17 = inlined_call_operand.hbm [shape: f32[1,256], index: 17, kind: input, shape index: {}]   ;;  %s7972_s18 = inlined_call_operand.hbm [shape: f32[1,256], index: 18, kind: input, shape index: {}]   ;;  %s7973_s19 = inlined_call_operand.hbm [shape: bf16[256,512], index: 19, kind: input, shape index: {}]   ;;  %s7974_s20 = inlined_call_operand.hbm [shape: f32[1,512], index: 20, kind: input, shape index: {}]   ;;  %s7975_s21 = inlined_call_operand.hbm [shape: bf16[512,256], index: 21, kind: input, shape index: {}]   ;;  %s7976_s22 = inlined_call_operand.hbm [shape: f32[1,256], index: 22, kind: input, shape index: {}]   ;;  %s7977_s23 = inlined_call_operand.vmem [shape: f32[4,16,256], index: 23, kind: output, shape index: {}]  }
   0x1   :  { %7996 = sst [smem:[#allocation45_spill]] %s7954_s0 }
   0x2   :  { %7997 = sst [smem:[#allocation46_spill]] %s7955_s1 }
   0x3   :  { %7998 = sst [smem:[#allocation47_spill]] %s7956_s2 }
   0x4   :  { %7999 = sst [smem:[#allocation48_spill]] %s7957_s3 }
   0x5   :  { %8000 = sst [smem:[#allocation49_spill]] %s7958_s4 }
   0x6   :  { %8001 = sst [smem:[#allocation50_spill]] %s7959_s5 }
   0x7   :  { %8002 = sst [smem:[#allocation51_spill]] %s7960_s6 }
   0x8   :  { %8003 = sst [smem:[#allocation52_spill]] %s7961_s7 }
   0x9   :  { %8004 = sst [smem:[#allocation53_spill]] %s7963_s9 }
   0xa   :  { %8005 = sst [smem:[#allocation54_spill]] %s7965_s11 }
   0xb   :  { %8006 = sst [smem:[#allocation55_spill]] %s7966_s12 }
   0xc   :  { %8007 = sst [smem:[#allocation56_spill]] %s7968_s14 }
   0xd   :  { %8008 = sst [smem:[#allocation57_spill]] %s7977_s23 }
   0xe   :  { %28 = vsyncpa [#allocation3], 0 }
   0xf   :  { %30 = vsyncpa [#allocation3 + $0x1], 0 }
  0x10   :  { %31 = vsyncpa [#allocation5], 0 }
  0x11   :  { %32 = vsyncpa [#allocation8], 0 }
  0x12   :  { %33 = vsyncpa [#allocation11], 0 }
  0x13   :  { %34 = vsyncpa [#allocation14], 0 }
  0x14   :  { %35 = vsyncpa [#allocation17], 0 }
  0x15   :  { %36 = vsyncpa [#allocation20], 0 }
  0x16   :  { %37 = vsyncpa [#allocation23], 0 }
  0x17   :  { %38 = vsyncpa [#allocation26], 0 }
  0x18   :  { %39 = vsyncpa [#allocation29], 0  ;;  %s7031_s4 = smov 0   ;;  %s7033_s30 = smov 0  }
  0x19   :  { %s7035_s24 = smov 0   ;;  %s7037_s25 = smov 0  }
  0x1a LB: > { %8009 = sst [smem:[#allocation40_spill]] %s6871_s4  ;;  %s6885_s5 = smov [#allocation4]   ;;  %s6883_s25 = sphi %s7037_s25, %s8066_s25   ;;  %s6879_s24 = sphi %s7035_s24, %s8065_s24   ;;  %s6875_s30 = sphi %s7033_s30, %s8062_s30   ;;  %s6871_s4 = sphi %s7031_s4, %s8064_s4  }
  0x1b   : > { %8010 = sst [smem:[#allocation41_spill]] %s6875_s30  ;;  %s590_s1 = sshll.u32 %s6885_s5, 4  ;;  %s591_s1 = int_to_ptr.vmem [resolvable:$true] %s590_s1 }
  0x1c   : > { %8011 = sst [smem:[#allocation42_spill]] %s6879_s24  ;;  %s7052_s26 = sadd.s32 4294967295, %s6883_s25  }
  0x1d   : > { %8012 = sst [smem:[#allocation43_spill]] %s7052_s26  ;;  %p4940_p0 = scmp.ge.s32.totalorder %s6883_s25, 1 }
  0x1e   : > { %p7986_p1 = scmp.eq.s32.totalorder %s7052_s26, 0  ;;  %p574_p2 = scmp.lt.s32.totalorder %s6883_s25, 5 }
  0x1f   : > { %s6886_s6 = smov [#allocation7]   ;;  %s6887_s28 = smov [#allocation10]  }
  0x20   : > { %p7057_p3 = pnand %p4940_p0, %p574_p2  ;;  %s616_s27 = sshll.u32 %s6886_s6, 4  ;;  %s7063_s27 = int_to_ptr.vmem [resolvable:$true] %s616_s27 }
  0x21   : > { %s641_s29 = sshll.u32 %s6887_s28, 4  ;;  %s8016_s5 = sld [smem:[#allocation49_spill]]  ;;  %s7071_s29 = int_to_ptr.vmem [resolvable:$true] %s641_s29 }
  0x22   : > { %s8013_s2 = scalar_select %p7057_p3, 1, 0 }
  0x23   : > { %p5523_p4 = pneg %p7057_p3 }
  0x24   : > { %8014 = sst [smem:[#allocation44_spill]] %s8013_s2 }
  0x25   : > { %p7067_p5 = pnand %p5523_p4, %p7986_p1 }
  0x27   : > { %s6307_s23 = scalar_lea.hbm %s8016_s5, 32  ;;  %p7081_p7 = pneg %p7067_p5 }
  0x28   : > { %p6308_p6 = scmp.ne.s32.totalorder %s8016_s5, %s6307_s23  ;;  %p6314_p10 = scmp.lt.u32.totalorder %s6307_s23, %s8016_s5 }
  0x2a   : > { %p6310_p8 = pnand %p7081_p7, %p6308_p6 }
  0x2c   : > { %p6311_p9 = pneg %p6310_p8 }
  0x2e   : > { %p6316_p11 = pnand %p6314_p10, %p6311_p9 }
  0x30   : > { %6319 = shalt.err (!%p6316_p11)
}
  0x31   : > { %s6320_s3 = scalar_lea.vmem %s591_s1, 32  ;;  %p6328_p2 = scmp.lt.s32.totalorder %s591_s1, %s591_s1 }
  0x32   : > { %p6321_p12 = scmp.ne.s32.totalorder %s591_s1, %s6320_s3  ;;  %p6329_p4 = scmp.lt.s32.totalorder %s6320_s3, %s6320_s3 }
  0x34   : > { %p6323_p13 = pnand %p6321_p12, %p7081_p7  ;;  %p6330_p1 = por %p6329_p4, %p6328_p2 }
  0x36   : > { %p6324_p0 = pneg %p6323_p13 }
  0x38   : > { %p6331_p3 = pnand %p6330_p1, %p6324_p0 }
  0x3a   : > { %6334 = shalt.err (!%p6331_p3)
}
  0x3b   : > { %5526 = dma.hbm_to_vmem [thread:$0]  (!%p7067_p5), %s8016_s5, 32, %s591_s1, [#allocation5]  }
  0x3c   : > { %s8018_s0 = sld [smem:[#allocation52_spill]] }
  0x42   : > { %s6335_s28 = scalar_lea.hbm %s8018_s0, 4096 }
  0x43   : > { %p6336_p6 = scmp.ne.s32.totalorder %s8018_s0, %s6335_s28  ;;  %p6342_p1 = scmp.lt.u32.totalorder %s6335_s28, %s8018_s0 }
  0x45   : > { %p6338_p8 = pnand %p6336_p6, %p7081_p7 }
  0x47   : > { %p6339_p9 = pneg %p6338_p8 }
  0x49   : > { %p6344_p3 = pnand %p6342_p1, %p6339_p9 }
  0x4b   : > { %6347 = shalt.err (!%p6344_p3)
}
  0x4c   : > { %s6348_s1 = scalar_lea.vmem %s7063_s27, 4096  ;;  %p6356_p13 = scmp.lt.s32.totalorder %s7063_s27, %s7063_s27 }
  0x4d   : > { %p6349_p10 = scmp.ne.s32.totalorder %s7063_s27, %s6348_s1  ;;  %p6357_p0 = scmp.lt.s32.totalorder %s6348_s1, %s6348_s1 }
  0x4f   : > { %p6351_p11 = pnand %p6349_p10, %p7081_p7  ;;  %p6358_p2 = por %p6357_p0, %p6356_p13 }
  0x51   : > { %p6352_p12 = pneg %p6351_p11 }
  0x53   : > { %p6359_p4 = pnand %p6358_p2, %p6352_p12 }
  0x55   : > { %6362 = shalt.err (!%p6359_p4)
}
  0x56   : > { %s7991_s4 = smov 128   ;;  %s7993_s30 = smov 8  }
  0x57   : > { %5532 = dma.hbm_to_vmem [thread:$0]  (!%p7067_p5), %s8018_s0, 4096, %s7063_s27, [#allocation8], %s7991_s4, %s7991_s4, %s7993_s30  }
  0x58   : > { %s8019_s9 = sld [smem:[#allocation53_spill]] }
  0x5e   : > { %s6363_s26 = scalar_lea.hbm %s8019_s9, 32 }
  0x5f   : > { %p6364_p6 = scmp.ne.s32.totalorder %s8019_s9, %s6363_s26  ;;  %p6370_p1 = scmp.lt.u32.totalorder %s6363_s26, %s8019_s9 }
  0x61   : > { %p6366_p8 = pnand %p6364_p6, %p7081_p7 }
  0x63   : > { %p6367_p9 = pneg %p6366_p8 }
  0x65   : > { %p6372_p3 = pnand %p6370_p1, %p6367_p9 }
  0x67   : > { %6375 = shalt.err (!%p6372_p3)
}
  0x68   : > { %s6376_s27 = scalar_lea.vmem %s7071_s29, 32  ;;  %p6384_p13 = scmp.lt.s32.totalorder %s7071_s29, %s7071_s29 }
  0x69   : > { %p6377_p10 = scmp.ne.s32.totalorder %s7071_s29, %s6376_s27  ;;  %p6385_p0 = scmp.lt.s32.totalorder %s6376_s27, %s6376_s27 }
  0x6b   : > { %p6379_p11 = pnand %p6377_p10, %p7081_p7  ;;  %p6386_p2 = por %p6385_p0, %p6384_p13 }
  0x6d   : > { %p6380_p12 = pneg %p6379_p11 }
  0x6f   : > { %p6387_p4 = pnand %p6386_p2, %p6380_p12 }
  0x71   : > { %6390 = shalt.err (!%p6387_p4)
}
  0x72   : > { %5538 = dma.hbm_to_vmem [thread:$0]  (!%p7067_p5), %s8019_s9, 32, %s7071_s29, [#allocation11]  }
  0x73   : > { %s6890_s11 = smov [#allocation13]   ;;  %s6891_s23 = smov [#allocation16]  }
  0x74   : > { %s666_s2 = sshll.u32 %s6890_s11, 4  ;;  %s690_s26 = sshll.u32 %s6891_s23, 4  ;;  %s667_s2 = int_to_ptr.vmem [resolvable:$true] %s666_s2  ;;  %s691_s26 = int_to_ptr.vmem [resolvable:$true] %s690_s26 }
  0x75   : > { %s8020_s12 = sld [smem:[#allocation55_spill]] }
  0x7b   : > { %s6391_s1 = scalar_lea.hbm %s8020_s12, 32 }
  0x7c   : > { %p6392_p6 = scmp.ne.s32.totalorder %s8020_s12, %s6391_s1  ;;  %p6398_p1 = scmp.lt.u32.totalorder %s6391_s1, %s8020_s12 }
  0x7e   : > { %p6394_p8 = pnand %p6392_p6, %p7081_p7 }
  0x80   : > { %p6395_p9 = pneg %p6394_p8 }
  0x82   : > { %p6400_p3 = pnand %p6398_p1, %p6395_p9 }
  0x84   : > { %6403 = shalt.err (!%p6400_p3)
}
  0x85   : > { %s6404_s29 = scalar_lea.vmem %s667_s2, 32  ;;  %p6412_p13 = scmp.lt.s32.totalorder %s667_s2, %s667_s2 }
  0x86   : > { %p6405_p10 = scmp.ne.s32.totalorder %s667_s2, %s6404_s29  ;;  %p6413_p0 = scmp.lt.s32.totalorder %s6404_s29, %s6404_s29 }
  0x88   : > { %p6407_p11 = pnand %p6405_p10, %p7081_p7  ;;  %p6414_p2 = por %p6413_p0, %p6412_p13 }
  0x8a   : > { %p6408_p12 = pneg %p6407_p11 }
  0x8c   : > { %p6415_p4 = pnand %p6414_p2, %p6408_p12 }
  0x8e   : > { %6418 = shalt.err (!%p6415_p4)
}
  0x8f   : > { %5544 = dma.hbm_to_vmem [thread:$0]  (!%p7067_p5), %s8020_s12, 32, %s667_s2, [#allocation14]  }
  0x90   : > { %s8021_s14 = sld [smem:[#allocation56_spill]] }
  0x96   : > { %s6419_s23 = scalar_lea.hbm %s8021_s14, 64 }
  0x97   : > { %p6420_p6 = scmp.ne.s32.totalorder %s8021_s14, %s6419_s23  ;;  %p6426_p1 = scmp.lt.u32.totalorder %s6419_s23, %s8021_s14 }
  0x99   : > { %p6422_p8 = pnand %p6420_p6, %p7081_p7 }
  0x9b   : > { %p6423_p9 = pneg %p6422_p8 }
  0x9d   : > { %p6428_p3 = pnand %p6426_p1, %p6423_p9 }
  0x9f   : > { %6431 = shalt.err (!%p6428_p3)
}
  0xa0   : > { %s6432_s5 = scalar_lea.vmem %s691_s26, 64  ;;  %p6440_p13 = scmp.lt.s32.totalorder %s691_s26, %s691_s26 }
  0xa1   : > { %p6433_p10 = scmp.ne.s32.totalorder %s691_s26, %s6432_s5  ;;  %p6441_p0 = scmp.lt.s32.totalorder %s6432_s5, %s6432_s5 }
  0xa3   : > { %p6435_p11 = pnand %p6433_p10, %p7081_p7  ;;  %p6442_p2 = por %p6441_p0, %p6440_p13 }
  0xa5   : > { %p6436_p12 = pneg %p6435_p11 }
  0xa7   : > { %p6443_p4 = pnand %p6442_p2, %p6436_p12 }
  0xa9   : > { %6446 = shalt.err (!%p6443_p4)
}
  0xaa   : > { %5550 = dma.hbm_to_vmem [thread:$0]  (!%p7067_p5), %s8021_s14, 64, %s691_s26, [#allocation17]  }
  0xab   : > { %s6892_s4 = smov [#allocation19]   ;;  %s6893_s30 = smov [#allocation22]  }
  0xac   : > { %s714_s24 = sshll.u32 %s6892_s4, 4  ;;  %s736_s11 = sshll.u32 %s6893_s30, 4  ;;  %s715_s24 = int_to_ptr.vmem [resolvable:$true] %s714_s24  ;;  %s737_s11 = int_to_ptr.vmem [resolvable:$true] %s736_s11 }
  0xad   : > { %s6447_s3 = scalar_lea.hbm %s7970_s16, 32 }
  0xae   : > { %p6448_p6 = scmp.ne.s32.totalorder %s7970_s16, %s6447_s3  ;;  %p6454_p1 = scmp.lt.u32.totalorder %s6447_s3, %s7970_s16 }
  0xb0   : > { %p6450_p8 = pnand %p6448_p6, %p7081_p7 }
  0xb2   : > { %p6451_p9 = pneg %p6450_p8 }
  0xb4   : > { %p6456_p3 = pnand %p6454_p1, %p6451_p9 }
  0xb6   : > { %6459 = shalt.err (!%p6456_p3)
}
  0xb7   : > { %s6460_s26 = scalar_lea.vmem %s715_s24, 32  ;;  %p6468_p13 = scmp.lt.s32.totalorder %s715_s24, %s715_s24 }
  0xb8   : > { %p6461_p10 = scmp.ne.s32.totalorder %s715_s24, %s6460_s26  ;;  %p6469_p0 = scmp.lt.s32.totalorder %s6460_s26, %s6460_s26 }
  0xba   : > { %p6463_p11 = pnand %p6461_p10, %p7081_p7  ;;  %p6470_p2 = por %p6469_p0, %p6468_p13 }
  0xbc   : > { %p6464_p12 = pneg %p6463_p11 }
  0xbe   : > { %p6471_p4 = pnand %p6470_p2, %p6464_p12 }
  0xc0   : > { %6474 = shalt.err (!%p6471_p4)
}
  0xc1   : > { %5556 = dma.hbm_to_vmem [thread:$0]  (!%p7067_p5), %s7970_s16, 32, %s715_s24, [#allocation20]  }
  0xc2   : > { %s6475_s28 = scalar_lea.hbm %s7972_s18, 32 }
  0xc3   : > { %p6476_p6 = scmp.ne.s32.totalorder %s7972_s18, %s6475_s28  ;;  %p6482_p1 = scmp.lt.u32.totalorder %s6475_s28, %s7972_s18 }
  0xc5   : > { %p6478_p8 = pnand %p6476_p6, %p7081_p7 }
  0xc7   : > { %p6479_p9 = pneg %p6478_p8 }
  0xc9   : > { %p6484_p3 = pnand %p6482_p1, %p6479_p9 }
  0xcb   : > { %6487 = shalt.err (!%p6484_p3)
}
  0xcc   : > { %s6488_s2 = scalar_lea.vmem %s737_s11, 32  ;;  %p6496_p13 = scmp.lt.s32.totalorder %s737_s11, %s737_s11 }
  0xcd   : > { %p6489_p10 = scmp.ne.s32.totalorder %s737_s11, %s6488_s2  ;;  %p6497_p0 = scmp.lt.s32.totalorder %s6488_s2, %s6488_s2 }
  0xcf   : > { %p6491_p11 = pnand %p6489_p10, %p7081_p7  ;;  %p6498_p2 = por %p6497_p0, %p6496_p13 }
  0xd1   : > { %p6492_p12 = pneg %p6491_p11 }
  0xd3   : > { %p6499_p4 = pnand %p6498_p2, %p6492_p12 }
  0xd5   : > { %6502 = shalt.err (!%p6499_p4)
}
  0xd6   : > { %5562 = dma.hbm_to_vmem [thread:$0]  (!%p7067_p5), %s7972_s18, 32, %s737_s11, [#allocation23]  }
  0xd7   : > { %s6894_s29 = smov [#allocation25]   ;;  %s6895_s30 = smov [#allocation6]  }
  0xd8   : > { %s760_s4 = sshll.u32 %s6894_s29, 4  ;;  %s600_s23 = sshll.u32 %s6895_s30, 4  ;;  %s761_s4 = int_to_ptr.vmem [resolvable:$true] %s760_s4  ;;  %s601_s23 = int_to_ptr.vmem [resolvable:$true] %s600_s23 }
  0xd9   : > { %s6503_s1 = scalar_lea.hbm %s7974_s20, 64 }
  0xda   : > { %p6504_p6 = scmp.ne.s32.totalorder %s7974_s20, %s6503_s1  ;;  %p6510_p1 = scmp.lt.u32.totalorder %s6503_s1, %s7974_s20 }
  0xdc   : > { %p6506_p8 = pnand %p6504_p6, %p7081_p7 }
  0xde   : > { %p6507_p9 = pneg %p6506_p8 }
  0xe0   : > { %p6512_p3 = pnand %p6510_p1, %p6507_p9 }
  0xe2   : > { %6515 = shalt.err (!%p6512_p3)
}
  0xe3   : > { %s6516_s11 = scalar_lea.vmem %s761_s4, 64  ;;  %p6524_p13 = scmp.lt.s32.totalorder %s761_s4, %s761_s4 }
  0xe4   : > { %p6517_p10 = scmp.ne.s32.totalorder %s761_s4, %s6516_s11  ;;  %p6525_p0 = scmp.lt.s32.totalorder %s6516_s11, %s6516_s11 }
  0xe6   : > { %p6519_p11 = pnand %p6517_p10, %p7081_p7  ;;  %p6526_p2 = por %p6525_p0, %p6524_p13 }
  0xe8   : > { %p6520_p12 = pneg %p6519_p11 }
  0xea   : > { %p6527_p4 = pnand %p6526_p2, %p6520_p12 }
  0xec   : > { %6530 = shalt.err (!%p6527_p4)
}
  0xed   : > { %5568 = dma.hbm_to_vmem [thread:$0]  (!%p7067_p5), %s7974_s20, 64, %s761_s4, [#allocation26]  }
  0xee   : > { %s8022_s3 = sld [smem:[#allocation50_spill]] }
  0xf4   : > { %s6531_s1 = scalar_lea.hbm %s8022_s3, 12288 }
  0xf5   : > { %p6532_p6 = scmp.ne.s32.totalorder %s8022_s3, %s6531_s1  ;;  %p6538_p1 = scmp.lt.u32.totalorder %s6531_s1, %s8022_s3 }
  0xf7   : > { %p6534_p8 = pnand %p6532_p6, %p7081_p7 }
  0xf9   : > { %p6535_p9 = pneg %p6534_p8 }
  0xfb   : > { %p6540_p3 = pnand %p6538_p1, %p6535_p9 }
  0xfd   : > { %6543 = shalt.err (!%p6540_p3)
}
  0xfe   : > { %s6544_s11 = scalar_lea.vmem %s601_s23, 12288  ;;  %p6552_p13 = scmp.lt.s32.totalorder %s601_s23, %s601_s23 }
  0xff   : > { %p6545_p10 = scmp.ne.s32.totalorder %s601_s23, %s6544_s11  ;;  %p6553_p0 = scmp.lt.s32.totalorder %s6544_s11, %s6544_s11 }
 0x101   : > { %p6547_p11 = pnand %p6545_p10, %p7081_p7  ;;  %p6554_p2 = por %p6553_p0, %p6552_p13 }
 0x103   : > { %p6548_p12 = pneg %p6547_p11 }
 0x105   : > { %p6555_p4 = pnand %p6554_p2, %p6548_p12 }
 0x107   : > { %6558 = shalt.err (!%p6555_p4)
}
 0x108   : > { %s6896_s4 = smov 384   ;;  %s6897_s26 = smov 24  }
 0x109   : > { %5529 = dma.hbm_to_vmem [thread:$0]  (!%p7067_p5), %s8022_s3, 12288, %s601_s23, [#allocation5], %s6896_s4, %s6896_s4, %s6897_s26  }
 0x10a   : > { %s6898_s28 = smov [#allocation9]   ;;  %s6899_s27 = smov [#allocation12]  }
 0x10b   : > { %s630_s1 = sshll.u32 %s6898_s28, 4  ;;  %s652_s5 = sshll.u32 %s6899_s27, 4  ;;  %s631_s1 = int_to_ptr.vmem [resolvable:$true] %s630_s1  ;;  %s653_s5 = int_to_ptr.vmem [resolvable:$true] %s652_s5 }
 0x10c   : > { %s6559_s11 = scalar_lea.hbm %s7962_s8, 32 }
 0x10d   : > { %p6560_p6 = scmp.ne.s32.totalorder %s7962_s8, %s6559_s11  ;;  %p6566_p1 = scmp.lt.u32.totalorder %s6559_s11, %s7962_s8 }
 0x10f   : > { %p6562_p8 = pnand %p6560_p6, %p7081_p7 }
 0x111   : > { %p6563_p9 = pneg %p6562_p8 }
 0x113   : > { %p6568_p3 = pnand %p6566_p1, %p6563_p9 }
 0x115   : > { %6571 = shalt.err (!%p6568_p3)
}
 0x116   : > { %s6572_s23 = scalar_lea.vmem %s631_s1, 32  ;;  %p6580_p13 = scmp.lt.s32.totalorder %s631_s1, %s631_s1 }
 0x117   : > { %p6573_p10 = scmp.ne.s32.totalorder %s631_s1, %s6572_s23  ;;  %p6581_p0 = scmp.lt.s32.totalorder %s6572_s23, %s6572_s23 }
 0x119   : > { %p6575_p11 = pnand %p6573_p10, %p7081_p7  ;;  %p6582_p2 = por %p6581_p0, %p6580_p13 }
 0x11b   : > { %p6576_p12 = pneg %p6575_p11 }
 0x11d   : > { %p6583_p4 = pnand %p6582_p2, %p6576_p12 }
 0x11f   : > { %6586 = shalt.err (!%p6583_p4)
}
 0x120   : > { %5535 = dma.hbm_to_vmem [thread:$0]  (!%p7067_p5), %s7962_s8, 32, %s631_s1, [#allocation8]  }
 0x121   : > { %s6587_s4 = scalar_lea.hbm %s7964_s10, 32 }
 0x122   : > { %p6588_p6 = scmp.ne.s32.totalorder %s7964_s10, %s6587_s4  ;;  %p6594_p1 = scmp.lt.u32.totalorder %s6587_s4, %s7964_s10 }
 0x124   : > { %p6590_p8 = pnand %p6588_p6, %p7081_p7 }
 0x126   : > { %p6591_p9 = pneg %p6590_p8 }
 0x128   : > { %p6596_p3 = pnand %p6594_p1, %p6591_p9 }
 0x12a   : > { %6599 = shalt.err (!%p6596_p3)
}
 0x12b   : > { %s6600_s27 = scalar_lea.vmem %s653_s5, 32  ;;  %p6608_p13 = scmp.lt.s32.totalorder %s653_s5, %s653_s5 }
 0x12c   : > { %p6601_p10 = scmp.ne.s32.totalorder %s653_s5, %s6600_s27  ;;  %p6609_p0 = scmp.lt.s32.totalorder %s6600_s27, %s6600_s27 }
 0x12e   : > { %p6603_p11 = pnand %p6601_p10, %p7081_p7  ;;  %p6610_p2 = por %p6609_p0, %p6608_p13 }
 0x130   : > { %p6604_p12 = pneg %p6603_p11 }
 0x132   : > { %p6611_p4 = pnand %p6610_p2, %p6604_p12 }
 0x134   : > { %6614 = shalt.err (!%p6611_p4)
}
 0x135   : > { %5541 = dma.hbm_to_vmem [thread:$0]  (!%p7067_p5), %s7964_s10, 32, %s653_s5, [#allocation11]  }
 0x136   : > { %s6900_s24 = smov [#allocation15]   ;;  %s6615_s0 = scalar_lea.hbm %s7967_s13, 8192 }
 0x137   : > { %s676_s11 = sshll.u32 %s6900_s24, 4  ;;  %p6616_p6 = scmp.ne.s32.totalorder %s7967_s13, %s6615_s0  ;;  %s677_s11 = int_to_ptr.vmem [resolvable:$true] %s676_s11 }
 0x138   : > { %p6622_p1 = scmp.lt.u32.totalorder %s6615_s0, %s7967_s13 }
 0x139   : > { %p6618_p8 = pnand %p6616_p6, %p7081_p7 }
 0x13b   : > { %p6619_p9 = pneg %p6618_p8 }
 0x13d   : > { %p6624_p3 = pnand %p6622_p1, %p6619_p9 }
 0x13f   : > { %6627 = shalt.err (!%p6624_p3)
}
 0x140   : > { %s6628_s5 = scalar_lea.vmem %s677_s11, 8192  ;;  %p6636_p13 = scmp.lt.s32.totalorder %s677_s11, %s677_s11 }
 0x141   : > { %p6629_p10 = scmp.ne.s32.totalorder %s677_s11, %s6628_s5  ;;  %p6637_p0 = scmp.lt.s32.totalorder %s6628_s5, %s6628_s5 }
 0x143   : > { %p6631_p11 = pnand %p6629_p10, %p7081_p7  ;;  %p6638_p2 = por %p6637_p0, %p6636_p13 }
 0x145   : > { %p6632_p12 = pneg %p6631_p11 }
 0x147   : > { %p6639_p4 = pnand %p6638_p2, %p6632_p12 }
 0x149   : > { %6642 = shalt.err (!%p6639_p4)
}
 0x14a   : > { %s6901_s29 = smov 256   ;;  %s6902_s30 = smov 16  }
 0x14b   : > { %5547 = dma.hbm_to_vmem [thread:$0]  (!%p7067_p5), %s7967_s13, 8192, %s677_s11, [#allocation14], %s6901_s29, %s6901_s29, %s6902_s30  }
 0x14c   : > { %s6903_s1 = smov [#allocation18]   ;;  %s6904_s24 = smov [#allocation21]  }
 0x14d   : > { %s700_s2 = sshll.u32 %s6903_s1, 4  ;;  %s725_s23 = sshll.u32 %s6904_s24, 4  ;;  %s701_s2 = int_to_ptr.vmem [resolvable:$true] %s700_s2  ;;  %s7311_s23 = int_to_ptr.vmem [resolvable:$true] %s725_s23 }
 0x14e   : > { %s6643_s12 = scalar_lea.hbm %s7969_s15, 4096 }
 0x14f   : > { %p6644_p6 = scmp.ne.s32.totalorder %s7969_s15, %s6643_s12  ;;  %p6650_p1 = scmp.lt.u32.totalorder %s6643_s12, %s7969_s15 }
 0x151   : > { %p6646_p8 = pnand %p6644_p6, %p7081_p7 }
 0x153   : > { %p6647_p9 = pneg %p6646_p8 }
 0x155   : > { %p6652_p3 = pnand %p6650_p1, %p6647_p9 }
 0x157   : > { %6655 = shalt.err (!%p6652_p3)
}
 0x158   : > { %s6656_s5 = scalar_lea.vmem %s701_s2, 4096  ;;  %p6664_p13 = scmp.lt.s32.totalorder %s701_s2, %s701_s2 }
 0x159   : > { %p6657_p10 = scmp.ne.s32.totalorder %s701_s2, %s6656_s5  ;;  %p6665_p0 = scmp.lt.s32.totalorder %s6656_s5, %s6656_s5 }
 0x15b   : > { %p6659_p11 = pnand %p6657_p10, %p7081_p7  ;;  %p6666_p2 = por %p6665_p0, %p6664_p13 }
 0x15d   : > { %p6660_p12 = pneg %p6659_p11 }
 0x15f   : > { %p6667_p4 = pnand %p6666_p2, %p6660_p12 }
 0x161   : > { %6670 = shalt.err (!%p6667_p4)
}
 0x162   : > { %s8023_s28 = smov 8   ;;  %s8024_s27 = smov 128  }
 0x163   : > { %5553 = dma.hbm_to_vmem [thread:$0]  (!%p7067_p5), %s7969_s15, 4096, %s701_s2, [#allocation17], %s8024_s27, %s8024_s27, %s8023_s28  }
 0x164   : > { %s6671_s12 = scalar_lea.hbm %s7971_s17, 32 }
 0x165   : > { %p6672_p6 = scmp.ne.s32.totalorder %s7971_s17, %s6671_s12  ;;  %p6678_p1 = scmp.lt.u32.totalorder %s6671_s12, %s7971_s17 }
 0x167   : > { %p6674_p8 = pnand %p6672_p6, %p7081_p7 }
 0x169   : > { %p6675_p9 = pneg %p6674_p8 }
 0x16b   : > { %p6680_p3 = pnand %p6678_p1, %p6675_p9 }
 0x16d   : > { %6683 = shalt.err (!%p6680_p3)
}
 0x16e   : > { %s6684_s2 = scalar_lea.vmem %s7311_s23, 32  ;;  %p6692_p13 = scmp.lt.s32.totalorder %s7311_s23, %s7311_s23 }
 0x16f   : > { %p6685_p10 = scmp.ne.s32.totalorder %s7311_s23, %s6684_s2  ;;  %p6693_p0 = scmp.lt.s32.totalorder %s6684_s2, %s6684_s2 }
 0x171   : > { %p6687_p11 = pnand %p6685_p10, %p7081_p7  ;;  %p6694_p2 = por %p6693_p0, %p6692_p13 }
 0x173   : > { %p6688_p12 = pneg %p6687_p11 }
 0x175   : > { %p6695_p4 = pnand %p6694_p2, %p6688_p12 }
 0x177   : > { %6698 = shalt.err (!%p6695_p4)
}
 0x178   : > { %5559 = dma.hbm_to_vmem [thread:$0]  (!%p7067_p5), %s7971_s17, 32, %s7311_s23, [#allocation20]  }
 0x179   : > { %s6905_s24 = smov [#allocation24]   ;;  %s6906_s0 = smov [#allocation27]  }
 0x17a   : > { %s746_s9 = sshll.u32 %s6905_s24, 4  ;;  %s770_s12 = sshll.u32 %s6906_s0, 4  ;;  %s747_s9 = int_to_ptr.vmem [resolvable:$true] %s746_s9  ;;  %s7357_s12 = int_to_ptr.vmem [resolvable:$true] %s770_s12 }
 0x17b   : > { %s6699_s26 = scalar_lea.hbm %s7973_s19, 8192 }
 0x17c   : > { %p6700_p6 = scmp.ne.s32.totalorder %s7973_s19, %s6699_s26  ;;  %p6706_p1 = scmp.lt.u32.totalorder %s6699_s26, %s7973_s19 }
 0x17e   : > { %p6702_p8 = pnand %p6700_p6, %p7081_p7 }
 0x180   : > { %p6703_p9 = pneg %p6702_p8 }
 0x182   : > { %p6708_p3 = pnand %p6706_p1, %p6703_p9 }
 0x184   : > { %6711 = shalt.err (!%p6708_p3)
}
 0x185   : > { %s6712_s1 = scalar_lea.vmem %s747_s9, 8192  ;;  %p6720_p13 = scmp.lt.s32.totalorder %s747_s9, %s747_s9 }
 0x186   : > { %p6713_p10 = scmp.ne.s32.totalorder %s747_s9, %s6712_s1  ;;  %p6721_p0 = scmp.lt.s32.totalorder %s6712_s1, %s6712_s1 }
 0x188   : > { %p6715_p11 = pnand %p6713_p10, %p7081_p7  ;;  %p6722_p2 = por %p6721_p0, %p6720_p13 }
 0x18a   : > { %p6716_p12 = pneg %p6715_p11 }
 0x18c   : > { %p6723_p4 = pnand %p6722_p2, %p6716_p12 }
 0x18e   : > { %6726 = shalt.err (!%p6723_p4)
}
 0x18f   : > { %5565 = dma.hbm_to_vmem [thread:$0]  (!%p7067_p5), %s7973_s19, 8192, %s747_s9, [#allocation23], %s6901_s29, %s6901_s29, %s6902_s30  }
 0x190   : > { %s6727_s26 = scalar_lea.hbm %s7975_s21, 8192 }
 0x191   : > { %p6728_p6 = scmp.ne.s32.totalorder %s7975_s21, %s6727_s26  ;;  %p6734_p1 = scmp.lt.u32.totalorder %s6727_s26, %s7975_s21 }
 0x193   : > { %p6730_p8 = pnand %p6728_p6, %p7081_p7 }
 0x195   : > { %p6731_p9 = pneg %p6730_p8 }
 0x197   : > { %p6736_p3 = pnand %p6734_p1, %p6731_p9 }
 0x199   : > { %6739 = shalt.err (!%p6736_p3)
}
 0x19a   : > { %s6740_s9 = scalar_lea.vmem %s7357_s12, 8192  ;;  %p6748_p13 = scmp.lt.s32.totalorder %s7357_s12, %s7357_s12 }
 0x19b   : > { %p6741_p10 = scmp.ne.s32.totalorder %s7357_s12, %s6740_s9  ;;  %p6749_p0 = scmp.lt.s32.totalorder %s6740_s9, %s6740_s9 }
 0x19d   : > { %p6743_p11 = pnand %p6741_p10, %p7081_p7  ;;  %p6750_p2 = por %p6749_p0, %p6748_p13 }
 0x19f   : > { %p6744_p12 = pneg %p6743_p11 }
 0x1a1   : > { %p6751_p4 = pnand %p6750_p2, %p6744_p12 }
 0x1a3   : > { %6754 = shalt.err (!%p6751_p4)
}
 0x1a4   : > { %5571 = dma.hbm_to_vmem [thread:$0]  (!%p7067_p5), %s7975_s21, 8192, %s7357_s12, [#allocation26], %s8024_s27, %s8024_s27, %s8023_s28  }
 0x1a5   : > { %s6907_s0 = smov [#allocation28]   ;;  %s6755_s11 = scalar_lea.hbm %s7976_s22, 32 }
 0x1a6   : > { %s784_s14 = sshll.u32 %s6907_s0, 4  ;;  %p6756_p6 = scmp.ne.s32.totalorder %s7976_s22, %s6755_s11  ;;  %s785_s14 = int_to_ptr.vmem [resolvable:$true] %s784_s14 }
 0x1a7   : > { %p6762_p1 = scmp.lt.u32.totalorder %s6755_s11, %s7976_s22 }
 0x1a8   : > { %p6758_p8 = pnand %p6756_p6, %p7081_p7 }
 0x1aa   : > { %p6759_p9 = pneg %p6758_p8 }
 0x1ac   : > { %p6764_p3 = pnand %p6762_p1, %p6759_p9 }
 0x1ae   : > { %6767 = shalt.err (!%p6764_p3)
}
 0x1af   : > { %s6768_s28 = scalar_lea.vmem %s785_s14, 32  ;;  %p6776_p13 = scmp.lt.s32.totalorder %s785_s14, %s785_s14 }
 0x1b0   : > { %p6769_p10 = scmp.ne.s32.totalorder %s785_s14, %s6768_s28  ;;  %p6777_p0 = scmp.lt.s32.totalorder %s6768_s28, %s6768_s28 }
 0x1b2   : > { %p6771_p11 = pnand %p6769_p10, %p7081_p7  ;;  %p6778_p2 = por %p6777_p0, %p6776_p13 }
 0x1b4   : > { %p6772_p12 = pneg %p6771_p11 }
 0x1b6   : > { %p6779_p4 = pnand %p6778_p2, %p6772_p12 }
 0x1b8   : > { %6782 = shalt.err (!%p6779_p4)
}
 0x1b9   : > { %s8025_s1 = sld [smem:[#allocation42_spill]]  ;;  %s8026_s24 = sld [smem:[#allocation41_spill]] }
 0x1ba   : > { %s8027_s0 = sld [smem:[#allocation40_spill]]  ;;  %s8028_s6 = sld [smem:[#allocation43_spill]] }
 0x1bb   : > { %5574 = dma.hbm_to_vmem [thread:$0]  (!%p7067_p5), %s7976_s22, 32, %s785_s14, [#allocation29]  }
 0x1bc   : > { %s7425_s4 = sadd.s32 1, %s6883_s25   ;;  %p60_p8 = scmp.eq.s32.totalorder %s6883_s25, 0 }
 0x1bd   : > { %s49_s7 = ssub.s32 %s6883_s25, %s7425_s4  ;;  %p5596_p11 = scmp.lt.s32.totalorder %s6883_s25, 4 }
 0x1be   : > { %p50_p7 = scmp.eq.s32.totalorder %s49_s7, 0  ;;  %s5377_s23 = sshll.u32 %s6883_s25, 9 }
 0x1bf   : > { %s52_s26 = sadd.s32 1, %s8025_s1  ;;  %p59_p6 = scmp.ne.s32.totalorder %s8025_s1, %s8026_s24 }
 0x1c0   : > { %p65_p9 = scmp.ne.s32.totalorder %s8026_s24, %s8027_s0  ;;  %p8029_p3 = scmp.eq.s32.totalorder %s8028_s6, 0 }
 0x1c1   : > { %s7436_s11 = scalar_select %p50_p7, %s8025_s1, %s52_s26  }
 0x1c2   : > { %p61_p1 = por %p60_p8, %p59_p6  ;;  %p7440_p10 = por %p8029_p3, %p65_p9 }
 0x1c3   : > { %s795_s5 = sand.u32 1, %s8025_s1   ;;  %s8031_s27 = sld [smem:[#allocation45_spill]] }
 0x1c4   : > { %s4959_s14 = sshll.u32 %s795_s5, 5  ;;  %p7454_p5 = pnand %p5596_p11, %p61_p1 }
 0x1c5   : > { %s799_s24 = scalar_lea.vmem [#allocation2], %s4959_s14  ;;  %s7458_s25 = scalar_lea.sflag [#allocation3], %s795_s5 }
 0x1c6   : > { %s806_s0 = sshll.u32 %s799_s24, 4  ;;  %p6785_p13 = pneg %p7454_p5  ;;  %s7452_s0 = int_to_ptr.vmem [resolvable:$true] %s806_s0 }
 0x1c9   : > { %s7450_s12 = scalar_lea.hbm %s8031_s27, %s5377_s23  ;;  %s6788_s14 = scalar_lea.hbm %s8031_s27, 2048 }
 0x1ca   : > { %s6783_s1 = scalar_lea.hbm %s7450_s12, 512  ;;  %p6789_p4 = scmp.lt.u32.totalorder %s7450_s12, %s8031_s27 }
 0x1cb   : > { %p6784_p12 = scmp.ne.s32.totalorder %s7450_s12, %s6783_s1  ;;  %p6790_p7 = scmp.lt.u32.totalorder %s6788_s14, %s6783_s1 }
 0x1cc   : > { %p6792_p8 = scmp.lt.u32.totalorder %s6783_s1, %s7450_s12 }
 0x1cd   : > { %p6786_p0 = pnand %p6785_p13, %p6784_p12  ;;  %p6791_p6 = por %p6790_p7, %p6789_p4 }
 0x1cf   : > { %p6787_p2 = pneg %p6786_p0  ;;  %p6793_p9 = por %p6792_p8, %p6791_p6 }
 0x1d1   : > { %p6794_p1 = pnand %p6793_p9, %p6787_p2 }
 0x1d3   : > { %6797 = shalt.err (!%p6794_p1)
}
 0x1d4   : > { %s6798_s5 = scalar_lea.vmem %s7452_s0, 512  ;;  %s6908_s28 = smov [#allocation2]  }
 0x1d5   : > { %p6799_p3 = scmp.ne.s32.totalorder %s7452_s0, %s6798_s5  ;;  %s6803_s24 = sshll.u32 %s6908_s28, 4  ;;  %s6804_s24 = int_to_ptr.vmem [resolvable:$false] %s6803_s24 }
 0x1d6   : > { %s6805_s7 = scalar_lea.vmem %s6804_s24, 1024  ;;  %p6806_p0 = scmp.lt.s32.totalorder %s7452_s0, %s6804_s24 }
 0x1d7   : > { %p6801_p11 = pnand %p6799_p3, %p6785_p13  ;;  %p6807_p4 = scmp.lt.s32.totalorder %s6805_s7, %s6798_s5 }
 0x1d9   : > { %p6802_p12 = pneg %p6801_p11  ;;  %p6808_p7 = por %p6807_p4, %p6806_p0 }
 0x1db   : > { %p6809_p6 = pnand %p6808_p7, %p6802_p12 }
 0x1dd   : > { %6812 = shalt.err (!%p6809_p6)
}
 0x1de   : > { %5578 = dma.hbm_to_vmem [thread:$0]  (!%p7454_p5), %s7450_s12, 512, %s7452_s0, %s7458_s25, %s6901_s29, %s6901_s29, %s6902_s30  }
 0x1df   : > { %s8033_s1 = sld [smem:[#allocation44_spill]] }
 0x1e5   : > { %p8034_p13 = scmp.ne.s32.totalorder %s8033_s1, 0 }
 0x1e6   : > { %s8035_s26 = sld [smem:[#allocation41_spill]] (!%p8034_p13) }
 0x1e7   : > { %834 = sbr.rel (%p8034_p13) target bundleno = 5497 (0x1579), region = 112 }
 0x1ec   : > { %s836_s14 = sand.u32 (!%p8034_p13), 1, %s8035_s26  }
 0x1ed   : > { %s4963_s23 = sshll.u32 (!%p8034_p13), %s836_s14, 5  ;;  %s837_s9 = scalar_lea.sflag (!%p8034_p13), [#allocation3], %s836_s14 }
 0x1ee   : > { %s7492_s5 = scalar_lea.vmem [#allocation2], %s4963_s23 }
 0x1ef   : > { %6830 = dma.done.wait (%p7440_p10), %s837_s9, 512  }
 0x1f0   : > { %6832 = vsyncadd (%p7440_p10), %s837_s9, 4294966784  ;;  %s8036_s6 = sld [smem:[#allocation43_spill]] }
 0x1f6   : > { %p8037_p2 = scmp.eq.s32.totalorder %s8036_s6, 0 }
 0x1f8   : > { %6834 = dma.done.wait (%p8037_p2), [#allocation5], 12320   ;;  %p8038_p5 = pmov %p8037_p2 }
 0x1f9   : > { %p8039_p8 = pmov %p8037_p2 }
 0x1fa   : > { %6836 = vsyncadd (%p8038_p5), [#allocation5], 4294954976 }
 0x1fb   : > { %6838 = dma.done.wait (%p8039_p8), [#allocation8], 4128   ;;  %p8040_p9 = pmov %p8037_p2 }
 0x1fc   : > { %p8041_p1 = pmov %p8037_p2 }
 0x1fd   : > { %6840 = vsyncadd (%p8040_p9), [#allocation8], 4294963168 }
 0x1fe   : > { %6842 = dma.done.wait (%p8041_p1), [#allocation11], 64   ;;  %p8042_p3 = pmov %p8041_p1 }
 0x1ff   : > { %p8043_p10 = pmov %p8041_p1 }
 0x200   : > { %6844 = vsyncadd (%p8042_p3), [#allocation11], 4294967232 }
 0x201   : > { %6846 = dma.done.wait (%p8043_p10), [#allocation14], 8224   ;;  %p8044_p11 = pmov %p8041_p1 }
 0x202   : > { %p8045_p12 = pmov %p8041_p1 }
 0x203   : > { %6848 = vsyncadd (%p8044_p11), [#allocation14], 4294959072 }
 0x204   : > { %6850 = dma.done.wait (%p8045_p12), [#allocation17], 4160   ;;  %p8046_p0 = pmov %p8041_p1 }
 0x206   : > { %6852 = vsyncadd (%p8046_p0), [#allocation17], 4294963136  ;;  %p8047_p4 = pmov %p8046_p0 }
 0x207   : > { %p8048_p7 = pmov %p8046_p0 }
 0x208   : > { %6854 = dma.done.wait (%p8047_p4), [#allocation20], 64  }
 0x209   : > { %6856 = vsyncadd (%p8048_p7), [#allocation20], 4294967232  ;;  %p8049_p6 = pmov %p8046_p0 }
 0x20a   : > { %p8050_p13 = pmov %p8046_p0 }
 0x20b   : > { %6858 = dma.done.wait (%p8049_p6), [#allocation23], 8224  }
 0x20c   : > { %6860 = vsyncadd (%p8050_p13), [#allocation23], 4294959072  ;;  %p8051_p2 = pmov %p8046_p0 }
 0x20d   : > { %p8052_p5 = pmov %p8046_p0 }
 0x20e   : > { %6862 = dma.done.wait (%p8051_p2), [#allocation26], 8256  }
 0x20f   : > { %6864 = vsyncadd (%p8052_p5), [#allocation26], 4294959040  ;;  %p8053_p8 = pmov %p8046_p0 }
 0x210   : > { %p8054_p9 = pmov %p8046_p0 }
 0x211   : > { %6866 = dma.done.wait (%p8053_p8), [#allocation29], 32  }
 0x212   : > { %6868 = vsyncadd (%p8054_p9), [#allocation29], 4294967264  ;;  %v997_v0 = vld [vmem:[%s7492_s5] sm:$0xff]  ;;  %v998_v1 = vld [vmem:[%s7492_s5 + $0x8] sm:$0xff]  ;;  %s8055_s2 = sld [smem:[#allocation48_spill]]  ;;  %vm6910_vm4 = vmmov 0  }
 0x213   : > { %v999_v2 = vld [vmem:[%s7492_s5 + $0x10] sm:$0xff]  ;;  %v1007_v3 = vadd.f32 %v998_v1, %v997_v0  ;;  %v1000_v4 = vld [vmem:[%s7492_s5 + $0x18] sm:$0xff]  ;;  %v5676_v9 = vld [vmem:[#allocation6 + $0x8] ss:$24 sps:$4 sm:$0xff]   ;;  %s8056_s25 = sld [smem:[#allocation51_spill]]  ;;  %p981_p1 = scmp.lt.s32.totalorder %s8036_s6, 3 }
 0x214   : > { %v1010_v5 = vadd.f32 %v1000_v4, %v999_v2  ;;  %v5671_v6 = vld [vmem:[#allocation6 + $0x4] ss:$24 sps:$4 sm:$0xff]   ;;  %v5673_v7 = vld [vmem:[#allocation6] ss:$24 sps:$4 sm:$0xff]   ;;  %v5677_v10 = vld [vmem:[#allocation6 + $0x34] ss:$24 sps:$4 sm:$0xff]  }
 0x215   : > { %1008 = vadd.xlane.f32.xlu0 %v1007_v3  ;;  %v5674_v8 = vld [vmem:[#allocation6 + $0xc] ss:$24 sps:$4 sm:$0xff]   ;;  %1695 = vmatprep.subr.bf16.mxu0 %v5671_v6  ;;  %v5680_v11 = vld [vmem:[#allocation6 + $0x3c] ss:$24 sps:$4 sm:$0xff]   ;;  %v5679_v12 = vld [vmem:[#allocation6 + $0x30] ss:$24 sps:$4 sm:$0xff]  }
 0x216   : > { %1738 = vmatprep.subr.bf16.mxu1 %v5674_v8  ;;  %1696 = vmatpush1.bf16.msra.mxu0 %v5673_v7  ;;  %v5682_v13 = vld [vmem:[#allocation6 + $0x38] ss:$24 sps:$4 sm:$0xff]   ;;  %v5683_v14 = vld [vmem:[#allocation6 + $0x64] ss:$24 sps:$4 sm:$0xff]   ;;  %v5688_v17 = vld [vmem:[#allocation6 + $0x68] ss:$24 sps:$4 sm:$0xff]  }
 0x217   : > { %1739 = vmatpush1.bf16.msra.mxu1 %v5676_v9  ;;  %1697 = vmatprep.subr.bf16.mxu0 %v5677_v10  ;;  %v5686_v15 = vld [vmem:[#allocation6 + $0x6c] ss:$24 sps:$4 sm:$0xff]   ;;  %v5685_v16 = vld [vmem:[#allocation6 + $0x60] ss:$24 sps:$4 sm:$0xff]   ;;  %v5692_v19 = vld [vmem:[#allocation6 + $0x9c] ss:$24 sps:$4 sm:$0xff]  }
 0x218   : > { %1740 = vmatprep.subr.bf16.mxu1 %v5680_v11  ;;  %v5689_v18 = vld [vmem:[#allocation6 + $0x94] ss:$24 sps:$4 sm:$0xff]   ;;  %v5691_v20 = vld [vmem:[#allocation6 + $0x90] ss:$24 sps:$4 sm:$0xff]   ;;  %v5695_v22 = vld [vmem:[#allocation6 + $0xc4] ss:$24 sps:$4 sm:$0xff]  }
 0x219   : > { %1011 = vadd.xlane.f32.xlu0 %v1010_v5  ;;  %v5694_v21 = vld [vmem:[#allocation6 + $0x98] ss:$24 sps:$4 sm:$0xff]   ;;  %v5698_v23 = vld [vmem:[#allocation6 + $0xcc] ss:$24 sps:$4 sm:$0xff]   ;;  %v5700_v25 = vld [vmem:[#allocation6 + $0xc8] ss:$24 sps:$4 sm:$0xff]  }
 0x21a   : > { %1698 = vmatpush1.bf16.msra.mxu0 %v5679_v12  ;;  %v5697_v24 = vld [vmem:[#allocation6 + $0xc0] ss:$24 sps:$4 sm:$0xff]   ;;  %v5701_v26 = vld [vmem:[#allocation6 + $0xf4] ss:$24 sps:$4 sm:$0xff]   ;;  %v5703_v28 = vld [vmem:[#allocation6 + $0xf0] ss:$24 sps:$4 sm:$0xff]  }
 0x21b   : > { %1741 = vmatpush1.bf16.msra.mxu1 %v5682_v13  ;;  %1699 = vmatprep.subr.bf16.mxu0 %v5683_v14  ;;  %v5704_v27 = vld [vmem:[#allocation6 + $0xfc] ss:$24 sps:$4 sm:$0xff]   ;;  %v5706_v29 = vld [vmem:[#allocation6 + $0xf8] ss:$24 sps:$4 sm:$0xff]   ;;  %v5710_v46 = vld [vmem:[#allocation6 + $0x12c] ss:$24 sps:$4 sm:$0xff]  }
 0x21c   : > { %1742 = vmatprep.subr.bf16.mxu1 %v5686_v15  ;;  %v5707_v44 = vld [vmem:[#allocation6 + $0x124] ss:$24 sps:$4 sm:$0xff]   ;;  %v5709_v45 = vld [vmem:[#allocation6 + $0x120] ss:$24 sps:$4 sm:$0xff]   ;;  %v5713_v48 = vld [vmem:[#allocation6 + $0x154] ss:$24 sps:$4 sm:$0xff]  }
 0x21d   : > { %v5712_v47 = vld [vmem:[#allocation6 + $0x128] ss:$24 sps:$4 sm:$0xff]   ;;  %v5716_v50 = vld [vmem:[#allocation6 + $0x15c] ss:$24 sps:$4 sm:$0xff]   ;;  %v5718_v51 = vld [vmem:[#allocation6 + $0x158] ss:$24 sps:$4 sm:$0xff]  }
 0x21e   : > { %1700 = vmatpush1.bf16.msra.mxu0 %v5685_v16  ;;  %v5715_v49 = vld [vmem:[#allocation6 + $0x150] ss:$24 sps:$4 sm:$0xff]   ;;  %v5719_v52 = vld [vmem:[#allocation6 + $0x184] ss:$24 sps:$4 sm:$0xff]   ;;  %v5721_v53 = vld [vmem:[#allocation6 + $0x180] ss:$24 sps:$4 sm:$0xff]  }
 0x21f   : > { %1743 = vmatpush1.bf16.msra.mxu1 %v5688_v17  ;;  %1701 = vmatprep.subr.bf16.mxu0 %v5689_v18  ;;  %v5722_v54 = vld [vmem:[#allocation6 + $0x18c] ss:$24 sps:$4 sm:$0xff]   ;;  %v5724_v55 = vld [vmem:[#allocation6 + $0x188] ss:$24 sps:$4 sm:$0xff]   ;;  %v5728_v58 = vld [vmem:[#allocation6 + $0x1bc] ss:$24 sps:$4 sm:$0xff]  }
 0x220   : > { %1744 = vmatprep.subr.bf16.mxu1 %v5692_v19  ;;  %v5725_v56 = vld [vmem:[#allocation6 + $0x1b4] ss:$24 sps:$4 sm:$0xff]   ;;  %v5727_v57 = vld [vmem:[#allocation6 + $0x1b0] ss:$24 sps:$4 sm:$0xff]   ;;  %v5731_v60 = vld [vmem:[#allocation6 + $0x1e4] ss:$24 sps:$4 sm:$0xff]  }
 0x221   : > { %v5730_v59 = vld [vmem:[#allocation6 + $0x1b8] ss:$24 sps:$4 sm:$0xff]   ;;  %v5734_v62 = vld [vmem:[#allocation6 + $0x1ec] ss:$24 sps:$4 sm:$0xff]   ;;  %v5736_v63 = vld [vmem:[#allocation6 + $0x1e8] ss:$24 sps:$4 sm:$0xff]  }
 0x222   : > { %1702 = vmatpush1.bf16.msra.mxu0 %v5691_v20  ;;  %v5733_v61 = vld [vmem:[#allocation6 + $0x1e0] ss:$24 sps:$4 sm:$0xff]   ;;  %v5746_v5 = vld [vmem:[#allocation6 + $0x24c] ss:$24 sps:$4 sm:$0xff]   ;;  %v5752_v9 = vld [vmem:[#allocation6 + $0x27c] ss:$24 sps:$4 sm:$0xff]  }
 0x223   : > { %1745 = vmatpush1.bf16.msra.mxu1 %v5694_v21  ;;  %1703 = vmatprep.subr.bf16.mxu0 %v5695_v22  ;;  %v5742_v3 = vld [vmem:[#allocation6 + $0x218] ss:$24 sps:$4 sm:$0xff]   ;;  %v5748_v7 = vld [vmem:[#allocation6 + $0x248] ss:$24 sps:$4 sm:$0xff]   ;;  %v5749_v8 = vld [vmem:[#allocation6 + $0x274] ss:$24 sps:$4 sm:$0xff]  }
 0x224   : > { %1746 = vmatprep.subr.bf16.mxu1 %v5698_v23  ;;  %v5745_v6 = vld [vmem:[#allocation6 + $0x240] ss:$24 sps:$4 sm:$0xff]   ;;  %v5751_v10 = vld [vmem:[#allocation6 + $0x270] ss:$24 sps:$4 sm:$0xff]   ;;  %v5755_v12 = vld [vmem:[#allocation6 + $0x2a4] ss:$24 sps:$4 sm:$0xff]  }
 0x225   : > { %v5754_v11 = vld [vmem:[#allocation6 + $0x278] ss:$24 sps:$4 sm:$0xff]   ;;  %v5758_v13 = vld [vmem:[#allocation6 + $0x2ac] ss:$24 sps:$4 sm:$0xff]   ;;  %v5760_v15 = vld [vmem:[#allocation6 + $0x2a8] ss:$24 sps:$4 sm:$0xff]  }
 0x226   : > { %1704 = vmatpush1.bf16.msra.mxu0 %v5697_v24  ;;  %v5757_v14 = vld [vmem:[#allocation6 + $0x2a0] ss:$24 sps:$4 sm:$0xff]   ;;  %v5761_v16 = vld [vmem:[#allocation6 + $0x2d4] ss:$24 sps:$4 sm:$0xff]   ;;  %v5763_v18 = vld [vmem:[#allocation6 + $0x2d0] ss:$24 sps:$4 sm:$0xff]  }
 0x227   : > { %1747 = vmatpush1.bf16.msra.mxu1 %v5700_v25  ;;  %1705 = vmatprep.subr.bf16.mxu0 %v5701_v26  ;;  %v5764_v17 = vld [vmem:[#allocation6 + $0x2dc] ss:$24 sps:$4 sm:$0xff]   ;;  %v5766_v19 = vld [vmem:[#allocation6 + $0x2d8] ss:$24 sps:$4 sm:$0xff]   ;;  %s8068_s6 = smov (!%p981_p1, %s8036_s6), 3  ;;  %s8057_s1 = sld [smem:[#allocation47_spill]] }
 0x228   : > { %1748 = vmatprep.subr.bf16.mxu1 %v5704_v27  ;;  %v5769_v20 = vld [vmem:[#allocation6 + $0x14] ss:$24 sps:$4 sm:$0xff]   ;;  %v1048_v27 = vlaneseq  ;;  %s5378_s28 = sshll.u32 %s8068_s6, 4  ;;  %vm1872_vm5 = vcmask 130048   ;;  %s8058_s9 = sld [smem:[#allocation54_spill]]  ;;  %vm3171_vm10 = vcmask 64512  }
 0x229   : > { %s8059_s14 = sld [smem:[#allocation46_spill]]  ;;  %vm3198_vm11 = vcmask 1043456   ;;  %s5380_s29 = sshll.u32 %s8068_s6, 5 }
 0x22a   : > { %1706 = vmatpush1.bf16.msra.mxu0 %v5703_v28 }
 0x22b   : > { %1749 = vmatpush1.bf16.msra.mxu1 %v5706_v29  ;;  %1707 = vmatprep.subr.bf16.mxu0 %v5707_v44 }
 0x22c   : > { %1750 = vmatprep.subr.bf16.mxu1 %v5710_v46 }
 0x22d   : > { %s990_s26 = scalar_lea.vmem %s8057_s1, %s5378_s28 }
 0x22e   : > { %1708 = vmatpush1.bf16.msra.mxu0 %v5709_v45  ;;  %v1005_v45 = vld [vmem:[%s8055_s2] sm:$0x3]  ;;  %s8060_s2 = sld [smem:[#allocation57_spill]] }
 0x22f   : > { %1751 = vmatpush1.bf16.msra.mxu1 %v5712_v47  ;;  %1709 = vmatprep.subr.bf16.mxu0 %v5713_v48  ;;  %s985_s23 = scalar_lea.vmem %s8059_s14, %s5378_s28 }
 0x230   : > { %1752 = vmatprep.subr.bf16.mxu1 %v5716_v50 }
 0x232   : > { %1710 = vmatpush1.bf16.msra.mxu0 %v5715_v49  ;;  %v1006_v49 = vld [vmem:[#allocation4] sm:$0x3] }
 0x233   : > { %1753 = vmatpush1.bf16.msra.mxu1 %v5718_v51  ;;  %1711 = vmatprep.subr.bf16.mxu0 %v5719_v52 }
 0x234   : > { %1754 = vmatprep.subr.bf16.mxu1 %v5722_v54  ;;  %s995_s28 = scalar_lea.vmem %s8060_s2, %s5380_s29 }
 0x236   : > { %1712 = vmatpush1.bf16.msra.mxu0 %v5721_v53 }
 0x237   : > { %1755 = vmatpush1.bf16.msra.mxu1 %v5724_v55  ;;  %1713 = vmatprep.subr.bf16.mxu0 %v5725_v56 }
 0x238   : > { %1756 = vmatprep.subr.bf16.mxu1 %v5728_v58 }
 0x23a   : > { %1714 = vmatpush1.bf16.msra.mxu0 %v5727_v57 }
 0x23b   : > { %1757 = vmatpush1.bf16.msra.mxu1 %v5730_v59  ;;  %1715 = vmatprep.subr.bf16.mxu0 %v5731_v60 }
 0x23c   : > { %1758 = vmatprep.subr.bf16.mxu1 %v5734_v62 }
 0x23e   : > { %1716 = vmatpush1.bf16.msra.mxu0 %v5733_v61 }
 0x23f   : > { %1759 = vmatpush1.bf16.msra.mxu1 %v5736_v63 }
 0x2a2   : > { %v1009_v30 = vpop.xlane.xlu0 %1008 }
 0x2a3   : > { %v1014_v31 = vmul.f32 0.00390625, %v1009_v30 }
 0x2a5   : > { %v7538_v32 = vsub.f32 %v997_v0, %v1014_v31  ;;  %v7540_v33 = vsub.f32 %v998_v1, %v1014_v31  ;;  %v5737_v0 = vld [vmem:[#allocation6 + $0x214] ss:$24 sps:$4 sm:$0xff]   ;;  %v5739_v1 = vld [vmem:[#allocation6 + $0x210] ss:$24 sps:$4 sm:$0xff]  }
 0x2a6   : > { %v1012_v34 = vpop.xlane.xlu0 %1011  ;;  %1717 = vmatprep.subr.bf16.mxu0 %v5737_v0 }
 0x2a7   : > { %v1015_v35 = vmul.f32 0.00390625, %v1012_v34  ;;  %v1020_v36 = vmul.f32 %v7538_v32, %v7538_v32  ;;  %v1021_v37 = vmul.f32 %v7540_v33, %v7540_v33  ;;  %1718 = vmatpush1.bf16.msra.mxu0 %v5739_v1  ;;  %v5767_v1 = vld [vmem:[#allocation6 + $0x10] ss:$24 sps:$4 sm:$0xff]  }
 0x2a9   : > { %v7546_v38 = vsub.f32 %v999_v2, %v1015_v35  ;;  %v7548_v39 = vsub.f32 %v1000_v4, %v1015_v35  ;;  %v1024_v40 = vadd.f32 %v1021_v37, %v1020_v36  ;;  %v5740_v2 = vld [vmem:[#allocation6 + $0x21c] ss:$24 sps:$4 sm:$0xff]   ;;  %v7554_v36 = vshrl.u32 %v1048_v27, 7  ;;  %v5809_v27 = vld [vmem:[#allocation6 + $0x2b0] ss:$24 sps:$4 sm:$0xff]  }
 0x2aa   : > { %v5743_v4 = vld [vmem:[#allocation6 + $0x244] ss:$24 sps:$4 sm:$0xff]   ;;  %1760 = vmatprep.subr.bf16.mxu1 %v5740_v2  ;;  %v5775_v2 = vld [vmem:[#allocation6 + $0x74] ss:$24 sps:$4 sm:$0xff]  }
 0x2ab   : > { %v1022_v41 = vmul.f32 %v7546_v38, %v7546_v38  ;;  %v1023_v42 = vmul.f32 %v7548_v39, %v7548_v39  ;;  %1025 = vadd.xlane.f32.xlu1 %v1024_v40  ;;  %1761 = vmatpush1.bf16.msra.mxu1 %v5742_v3  ;;  %v7560_v44 = vsub.s32 1, %v7554_v36  ;;  %v5773_v3 = vld [vmem:[#allocation6 + $0x70] ss:$24 sps:$4 sm:$0xff]  }
 0x2ac   : > { %1719 = vmatprep.subr.bf16.mxu0 %v5743_v4  ;;  %1762 = vmatprep.subr.bf16.mxu1 %v5746_v5  ;;  %v5778_v4 = vld [vmem:[#allocation6 + $0xa4] ss:$24 sps:$4 sm:$0xff]   ;;  %v5776_v5 = vld [vmem:[#allocation6 + $0xa0] ss:$24 sps:$4 sm:$0xff]  }
 0x2ad   : > { %v1027_v43 = vadd.f32 %v1023_v42, %v1022_v41  ;;  %1720 = vmatpush1.bf16.msra.mxu0 %v5745_v6  ;;  %v1055_v47 = vrot.slane %v1005_v45, %v7560_v44  ;;  %v1078_v55 = vrot.slane %v1006_v49, %v7560_v44  ;;  %v5781_v6 = vld [vmem:[#allocation6 + $0xd4] ss:$24 sps:$4 sm:$0xff]  }
 0x2ae   : > { %1721 = vmatprep.subr.bf16.mxu0 %v5749_v8  ;;  %v5784_v8 = vld [vmem:[#allocation6 + $0x104] ss:$24 sps:$4 sm:$0xff]  }
 0x2af   : > { %1028 = vadd.xlane.f32.xlu1 %v1027_v43  ;;  %1763 = vmatpush1.bf16.msra.mxu1 %v5748_v7  ;;  %v7557_v43 = vsub.s32 0, %v7554_v36  ;;  %v1059_v51 = vmul.f32 %v1055_v47, %v7540_v33  ;;  %v1061_v53 = vmul.f32 %v1055_v47, %v7548_v39  ;;  %v5770_v39 = vld [vmem:[#allocation6 + $0x40] ss:$24 sps:$4 sm:$0xff]   ;;  %v5779_v7 = vld [vmem:[#allocation6 + $0xd0] ss:$24 sps:$4 sm:$0xff]  }
 0x2b0   : > { %1764 = vmatprep.subr.bf16.mxu1 %v5752_v9  ;;  %v5782_v9 = vld [vmem:[#allocation6 + $0x100] ss:$24 sps:$4 sm:$0xff]  }
 0x2b1   : > { %1722 = vmatpush1.bf16.msra.mxu0 %v5751_v10  ;;  %v1051_v46 = vrot.slane %v1005_v45, %v7557_v43  ;;  %v1074_v57 = vrot.slane %v1006_v49, %v7557_v43  ;;  %v5787_v10 = vld [vmem:[#allocation6 + $0x134] ss:$24 sps:$4 sm:$0xff]  }
 0x2b2   : > { %1723 = vmatprep.subr.bf16.mxu0 %v5755_v12  ;;  %v5790_v12 = vld [vmem:[#allocation6 + $0x164] ss:$24 sps:$4 sm:$0xff]  }
 0x2b3   : > { %1765 = vmatpush1.bf16.msra.mxu1 %v5754_v11  ;;  %v1058_v50 = vmul.f32 %v1051_v46, %v7538_v32  ;;  %v1060_v52 = vmul.f32 %v1051_v46, %v7546_v38  ;;  %v5772_v38 = vld [vmem:[#allocation6 + $0x44] ss:$24 sps:$4 sm:$0xff]   ;;  %v5785_v11 = vld [vmem:[#allocation6 + $0x130] ss:$24 sps:$4 sm:$0xff]  }
 0x2b4   : > { %1766 = vmatprep.subr.bf16.mxu1 %v5758_v13  ;;  %v5788_v13 = vld [vmem:[#allocation6 + $0x160] ss:$24 sps:$4 sm:$0xff]  }
 0x2b5   : > { %1724 = vmatpush1.bf16.msra.mxu0 %v5757_v14  ;;  %v5793_v14 = vld [vmem:[#allocation6 + $0x194] ss:$24 sps:$4 sm:$0xff]  }
 0x2b6   : > { %1725 = vmatprep.subr.bf16.mxu0 %v5761_v16  ;;  %v5796_v16 = vld [vmem:[#allocation6 + $0x1c4] ss:$24 sps:$4 sm:$0xff]  }
 0x2b7   : > { %1767 = vmatpush1.bf16.msra.mxu1 %v5760_v15  ;;  %v5791_v15 = vld [vmem:[#allocation6 + $0x190] ss:$24 sps:$4 sm:$0xff]  }
 0x2b8   : > { %1768 = vmatprep.subr.bf16.mxu1 %v5764_v17  ;;  %v5794_v17 = vld [vmem:[#allocation6 + $0x1c0] ss:$24 sps:$4 sm:$0xff]  }
 0x2b9   : > { %1726 = vmatpush1.bf16.msra.mxu0 %v5763_v18  ;;  %v5799_v18 = vld [vmem:[#allocation6 + $0x1f4] ss:$24 sps:$4 sm:$0xff]  }
 0x2ba   : > { %1781 = vmatprep.subr.bf16.mxu0 %v5769_v20  ;;  %v5802_v20 = vld [vmem:[#allocation6 + $0x224] ss:$24 sps:$4 sm:$0xff]  }
 0x2bb   : > { %1769 = vmatpush1.bf16.msra.mxu1 %v5766_v19  ;;  %v5797_v19 = vld [vmem:[#allocation6 + $0x1f0] ss:$24 sps:$4 sm:$0xff]  }
 0x338   : > { %v1026_v21 = vpop.xlane.xlu1 %1025 }
 0x339   : > { %v1031_v22 = vmul.f32 0.003921569, %v1026_v21  ;;  %v5800_v21 = vld [vmem:[#allocation6 + $0x220] ss:$24 sps:$4 sm:$0xff]  }
 0x33b   : > { %6247 = vrsqrt.f32 %v1031_v22  ;;  %vm1035_vm0 = vcmp.eq.f32.partialorder %v1031_v22, inf  ;;  %v1038_v28 = vand.u32 2147483648, %v1031_v22  ;;  %vm1037_vm1 = vcmp.eq.f32.partialorder %v1031_v22, 0.0 }
 0x33c   : > { %v1029_v23 = vpop.xlane.xlu1 %1028 }
 0x33d   : > { %v1032_v24 = vmul.f32 0.003921569, %v1029_v23  ;;  %v5803_v23 = vld [vmem:[#allocation6 + $0x250] ss:$24 sps:$4 sm:$0xff]  }
 0x33f   : > { %6249 = vrsqrt.f32 %v1032_v24  ;;  %vm1042_vm2 = vcmp.eq.f32.partialorder %v1032_v24, inf  ;;  %v1045_v37 = vand.u32 2147483648, %v1032_v24  ;;  %vm1044_vm3 = vcmp.eq.f32.partialorder %v1032_v24, 0.0 }
 0x345   : > { %v6248_v25 = vpop.eup %6247 }
 0x346   : > { %v1034_v26 = vmul.f32 %v6248_v25, %v1031_v22  ;;  %v5806_v25 = vld [vmem:[#allocation6 + $0x280] ss:$24 sps:$4 sm:$0xff]  }
 0x348   : > { %v1036_v29 = vsel %vm1035_vm0, %v1031_v22, %v1034_v26  ;;  %v5805_v22 = vld [vmem:[#allocation6 + $0x254] ss:$24 sps:$4 sm:$0xff]  }
 0x349   : > { %v6250_v30 = vpop.eup %6249  ;;  %v1039_v31 = vsel %vm1037_vm1, %v1038_v28, %v1036_v29  ;;  %v5811_v26 = vld [vmem:[#allocation6 + $0x2b4] ss:$24 sps:$4 sm:$0xff]   ;;  %v5814_v28 = vld [vmem:[#allocation6 + $0x2e4] ss:$24 sps:$4 sm:$0xff]   ;;  %v5812_v29 = vld [vmem:[#allocation6 + $0x2e0] ss:$24 sps:$4 sm:$0xff]  }
 0x34a   : > { %v1041_v34 = vmul.f32 %v6250_v30, %v1032_v24  ;;  %v1062_v35 = vadd.f32 1e-06, %v1039_v31  ;;  %v6909_v30 = vmov 0.0   ;;  %v7582_v31 = vsub.s32 2, %v7554_v36 }
 0x34c   : > { %v1043_v40 = vsel %vm1042_vm2, %v1032_v24, %v1041_v34  ;;  %6251 = vrcp.f32 %v1062_v35  ;;  %v5808_v24 = vld [vmem:[#allocation6 + $0x284] ss:$24 sps:$4 sm:$0xff]   ;;  %v7588_v35 = vsub.s32 3, %v7554_v36 }
 0x34d   : > { %v1046_v41 = vsel %vm1044_vm3, %v1045_v37, %v1043_v40  ;;  %v1183_v34 = vld [vmem:[%s8056_s25] sm:$0x3f] }
 0x34e   : > { %v1063_v42 = vadd.f32 1e-06, %v1046_v41  ;;  %v1188_v37 = vrot.slane %v1183_v34, %v7557_v43  ;;  %v1196_v40 = vrot.slane %v1183_v34, %v7582_v31  ;;  %v1192_v45 = vrot.slane %v1183_v34, %v7560_v44 }
 0x34f   : > { %v1200_v46 = vrot.slane %v1183_v34, %v7588_v35 }
 0x350   : > { %6253 = vrcp.f32 %v1063_v42 }
 0x356   : > { %v6252_v48 = vpop.eup %6251 }
 0x357   : > { %v1066_v54 = vmul.f32 %v6252_v48, %v1059_v51  ;;  %v1065_v56 = vmul.f32 %v6252_v48, %v1058_v50 }
 0x359   : > { %v1082_v61 = vadd.f32 %v1078_v55, %v1066_v54  ;;  %v1081_v63 = vadd.f32 %v1074_v57, %v1065_v56 }
 0x35a   : > { %v6254_v58 = vpop.eup %6253 }
 0x35b   : > { %v1069_v59 = vmul.f32 %v6254_v58, %v1061_v53  ;;  %v1068_v60 = vmul.f32 %v6254_v58, %v1060_v52 }
 0x35d   : > { %v1084_v62 = vadd.f32 %v1078_v55, %v1069_v59  ;;  %v1083_v0 = vadd.f32 %v1074_v57, %v1068_v60 }
 0x35f   : > { %v1086_v32 = vpack.c.bf16 %v1084_v62, %v1082_v61  ;;  %v7573_v33 = vpack.c.bf16 %v1083_v0, %v1081_v63 }
 0x361   : > { %1727 = vmatprep.mubr.bf16.mxu0 %v1086_v32  ;;  %1770 = vmatprep.mubr.bf16.mxu1 %v1086_v32 }
 0x362   : > { %1728 = vmatmul.mubr.bf16.vlgmr.msra.gmra.mrb[0].mxu0 %v7573_v33  ;;  %1771 = vmatmul.mubr.bf16.vlgmr.msra.gmra.mrb[0].mxu1 %v7573_v33 }
 0x363   : > { %1782 = vmatpush1.bf16.msra.mxu0 %v5767_v1  ;;  %1813 = vmatprep.mubr.bf16.mxu0 %v1086_v32  ;;  %v1203_v32 = vsub.s32 4, %v7554_v36  ;;  %v1207_v1 = vsub.s32 5, %v7554_v36 }
 0x364   : > { %1783 = vmatprep.subr.bf16.mxu0 %v5772_v38 }
 0x367   : > { %1784 = vmatpush1.bf16.msra.mxu0 %v5770_v39  ;;  %v1208_v39 = vrot.slane %v1183_v34, %v1207_v1 }
 0x368   : > { %1785 = vmatprep.subr.bf16.mxu0 %v5775_v2 }
 0x36b   : > { %1786 = vmatpush1.bf16.msra.mxu0 %v5773_v3 }
 0x36c   : > { %1787 = vmatprep.subr.bf16.mxu0 %v5778_v4 }
 0x36f   : > { %1788 = vmatpush1.bf16.msra.mxu0 %v5776_v5 }
 0x370   : > { %1789 = vmatprep.subr.bf16.mxu0 %v5781_v6 }
 0x373   : > { %1790 = vmatpush1.bf16.msra.mxu0 %v5779_v7 }
 0x374   : > { %1791 = vmatprep.subr.bf16.mxu0 %v5784_v8 }
 0x377   : > { %1792 = vmatpush1.bf16.msra.mxu0 %v5782_v9 }
 0x378   : > { %1793 = vmatprep.subr.bf16.mxu0 %v5787_v10 }
 0x37b   : > { %1794 = vmatpush1.bf16.msra.mxu0 %v5785_v11  ;;  %v1003_v11 = vld [vmem:[%s990_s26] sm:$0xff] }
 0x37c   : > { %1795 = vmatprep.subr.bf16.mxu0 %v5790_v12 }
 0x37f   : > { %1796 = vmatpush1.bf16.msra.mxu0 %v5788_v13 }
 0x380   : > { %1797 = vmatprep.subr.bf16.mxu0 %v5793_v14 }
 0x383   : > { %1798 = vmatpush1.bf16.msra.mxu0 %v5791_v15  ;;  %v1004_v15 = vld [vmem:[%s990_s26 + $0x8] sm:$0xff] }
 0x384   : > { %1799 = vmatprep.subr.bf16.mxu0 %v5796_v16 }
 0x387   : > { %1800 = vmatpush1.bf16.msra.mxu0 %v5794_v17 }
 0x388   : > { %1801 = vmatprep.subr.bf16.mxu0 %v5799_v18 }
 0x38b   : > { %1802 = vmatpush1.bf16.msra.mxu0 %v5797_v19 }
 0x38c   : > { %1803 = vmatprep.subr.bf16.mxu0 %v5802_v20 }
 0x38f   : > { %1804 = vmatpush1.bf16.msra.mxu0 %v5800_v21 }
 0x390   : > { %1805 = vmatprep.subr.bf16.mxu0 %v5805_v22 }
 0x393   : > { %1806 = vmatpush1.bf16.msra.mxu0 %v5803_v23 }
 0x394   : > { %1807 = vmatprep.subr.bf16.mxu0 %v5808_v24 }
 0x397   : > { %1808 = vmatpush1.bf16.msra.mxu0 %v5806_v25 }
 0x398   : > { %1809 = vmatprep.subr.bf16.mxu0 %v5811_v26 }
 0x39b   : > { %1810 = vmatpush1.bf16.msra.mxu0 %v5809_v27 }
 0x39c   : > { %1811 = vmatprep.subr.bf16.mxu0 %v5814_v28 }
 0x39f   : > { %1812 = vmatpush1.bf16.msra.mxu0 %v5812_v29 }
 0x3a0   : > { %5397 = vmatprep.subr.bf16.mxu0 %v6909_v30 }
 0x3a2   : > { %1814 = vmatmul.mubr.bf16.vlgmr.msra.gmra.mrb[4].mxu0 %v7573_v33  ;;  %v1204_v33 = vrot.slane %v1183_v34, %v1203_v32 }
 0x3a3   : > { %5399 = vmatprep.mubr.msk.bf16.mxu0 %vm6910_vm4, %v6909_v30 }
 0x435   : > { %v1729_v41 = vpop.f32.mrb[0].mxu0  ;;  %v1772_v42 = vpop.f32.mrb[0].mxu1 }
 0x436   : > { %v1731_v47 = vpop.f32.mrb[1].mxu0  ;;  %v1774_v48 = vpop.f32.mrb[1].mxu1  ;;  %v1730_v51 = vadd.f32 %v1729_v41, %v1188_v37  ;;  %v1773_v52 = vadd.f32 %v1772_v42, %v1196_v40 }
 0x437   : > { %v1733_v49 = vpop.f32.mrb[2].mxu0  ;;  %v1776_v50 = vpop.f32.mrb[2].mxu1  ;;  %v7594_v57 = vadd.f32 %v1731_v47, %v1192_v45  ;;  %v7596_v58 = vadd.f32 %v1774_v48, %v1200_v46 }
 0x438   : > { %v1734_v53 = vadd.f32 %v1733_v49, %v1188_v37  ;;  %v1777_v54 = vadd.f32 %v1776_v50, %v1196_v40  ;;  %v1735_v55 = vpop.f32.mrb[3].mxu0  ;;  %v1778_v56 = vpop.f32.mrb[3].mxu1 }
 0x439   : > { %v7598_v59 = vadd.f32 %v1735_v55, %v1192_v45  ;;  %v7600_v60 = vadd.f32 %v1778_v56, %v1200_v46 }
 0x43a   : > { %v1824_v61 = vpack.c.bf16 %v1734_v53, %v1730_v51  ;;  %v1825_v62 = vpack.c.bf16 %v1777_v54, %v1773_v52 }
 0x43b   : > { %v1940_v63 = vpack.c.bf16 %v7598_v59, %v7594_v57  ;;  %v1941_v0 = vpack.c.bf16 %v7600_v60, %v7596_v58 }
 0x43c   : > { %5398 = vmatpush3.bf16.xpose.msra.mxu0 %v1825_v62 }
 0x43d   : > { %5403 = vmatprep.subr.bf16.mxu0 %v6909_v30 }
 0x443   : > { %5400 = vmatmul.mubr.bf16.vlgmr.msra.gmra.mrb[8].mxu0 %v1824_v61 }
 0x444   : > { %5405 = vmatprep.mubr.msk.bf16.mxu0 %vm6910_vm4, %v6909_v30 }
 0x475   : > { %v1815_v38 = vpop.f32.mrb[4].mxu0 }
 0x476   : > { %v1817_v2 = vpop.f32.mrb[5].mxu0  ;;  %v1816_v4 = vadd.f32 %v1815_v38, %v1204_v33 }
 0x477   : > { %v1819_v3 = vpop.f32.mrb[6].mxu0  ;;  %v1818_v7 = vadd.f32 %v1817_v2, %v1208_v39 }
 0x478   : > { %v1820_v5 = vadd.f32 %v1819_v3, %v1204_v33  ;;  %v1821_v6 = vpop.f32.mrb[7].mxu0 }
 0x479   : > { %v1822_v8 = vadd.f32 %v1821_v6, %v1208_v39  ;;  %v5815_v6 = vld [vmem:[#allocation7] ss:$8 sps:$4 sm:$0xff]  }
 0x47a   : > { %v1826_v9 = vpack.c.bf16 %v1820_v5, %v1816_v4 }
 0x47b   : > { %v1942_v10 = vpack.c.bf16 %v1822_v8, %v1818_v7  ;;  %v5817_v7 = vld [vmem:[#allocation7 + $0x4] ss:$8 sps:$4 sm:$0xff]   ;;  %v5820_v8 = vld [vmem:[#allocation7 + $0x14] ss:$8 sps:$4 sm:$0xff]  }
 0x47c   : > { %5404 = vmatpush3.bf16.msra.mxu0 %v1826_v9  ;;  %2261 = vmatprep.subr.bf16.mxu1 %v5817_v7  ;;  %v5818_v9 = vld [vmem:[#allocation7 + $0x10] ss:$8 sps:$4 sm:$0xff]  }
 0x47d   : > { %5409 = vmatprep.subr.bf16.mxu0 %v6909_v30  ;;  %2262 = vmatpush1.bf16.msra.mxu1 %v5815_v6  ;;  %v6304_v6 = vld [vmem:[%s7492_s5 + $0x8] sm:$0xff] }
 0x47e   : > { %2263 = vmatprep.subr.bf16.mxu1 %v5820_v8  ;;  %v6306_v8 = vld [vmem:[%s7492_s5 + $0x18] sm:$0xff] }
 0x481   : > { %2264 = vmatpush1.bf16.msra.mxu1 %v5818_v9 }
 0x516   : > { %v1861_v36 = vpop.f32.mrb[8].mxu0 }
 0x517   : > { %v1868_v12 = vmul.f32 0.088388346, %v1861_v36  ;;  %v5401_v13 = vpop.f32.mrb[9].mxu0  ;;  %v5821_v36 = vld [vmem:[#allocation7 + $0x20] ss:$8 sps:$4 sm:$0xff]  }
 0x518   : > { %v1864_v14 = vpop.f32.mrb[10].mxu0  ;;  %v5829_v13 = vld [vmem:[#allocation7 + $0x44] ss:$8 sps:$4 sm:$0xff]  }
 0x519   : > { %v1869_v16 = vmul.f32 0.088388346, %v1864_v14  ;;  %v5402_v17 = vpop.f32.mrb[11].mxu0  ;;  %v1870_v18 = vadd.f32 %v1868_v12, %v1003_v11  ;;  %v5824_v12 = vld [vmem:[#allocation7 + $0x30] ss:$8 sps:$4 sm:$0xff]  }
 0x51a   : > { %v5827_v14 = vld [vmem:[#allocation7 + $0x40] ss:$8 sps:$4 sm:$0xff]   ;;  %v5835_v17 = vld [vmem:[#allocation7 + $0x64] ss:$8 sps:$4 sm:$0xff]  }
 0x51b   : > { %v1873_v19 = vsel %vm1872_vm5, %v1870_v18, -inf  ;;  %v1871_v20 = vadd.f32 %v1869_v16, %v1004_v15  ;;  %v5830_v16 = vld [vmem:[#allocation7 + $0x50] ss:$8 sps:$4 sm:$0xff]  }
 0x51c   : > { %1874 = vmax.xlane.f32.xlu0 %v1873_v19  ;;  %v5838_v19 = vld [vmem:[#allocation7 + $0x74] ss:$8 sps:$4 sm:$0xff]  }
 0x51d   : > { %v1876_v21 = vsel %vm1872_vm5, %v1871_v20, -inf }
 0x51e   : > { %1877 = vmax.xlane.f32.xlu1 %v1876_v21  ;;  %v5841_v21 = vld [vmem:[#allocation7 + $0x84] ss:$8 sps:$4 sm:$0xff]  }
 0x5a9   : > { %v1875_v22 = vpop.xlane.xlu0 %1874 }
 0x5aa   : > { %v1879_v23 = vsub.f32 %v1870_v18, %v1875_v22  ;;  %v5833_v18 = vld [vmem:[#allocation7 + $0x60] ss:$8 sps:$4 sm:$0xff]  }
 0x5ab   : > { %v1878_v24 = vpop.xlane.xlu1 %1877  ;;  %v5839_v22 = vld [vmem:[#allocation7 + $0x80] ss:$8 sps:$4 sm:$0xff]  }
 0x5ac   : > { %v1881_v25 = vmul.f32 1.442695, %v1879_v23  ;;  %v1880_v26 = vsub.f32 %v1871_v20, %v1878_v24  ;;  %v5836_v20 = vld [vmem:[#allocation7 + $0x70] ss:$8 sps:$4 sm:$0xff]   ;;  %v5844_v23 = vld [vmem:[#allocation7 + $0x94] ss:$8 sps:$4 sm:$0xff]  }
 0x5ad   : > { %v5842_v24 = vld [vmem:[#allocation7 + $0x90] ss:$8 sps:$4 sm:$0xff]  }
 0x5ae   : > { %6255 = vpow2.f32 %v1881_v25  ;;  %v1883_v27 = vmul.f32 1.442695, %v1880_v26  ;;  %v5847_v25 = vld [vmem:[#allocation7 + $0xa4] ss:$8 sps:$4 sm:$0xff]   ;;  %v5845_v26 = vld [vmem:[#allocation7 + $0xa0] ss:$8 sps:$4 sm:$0xff]  }
 0x5b0   : > { %6257 = vpow2.f32 %v1883_v27  ;;  %v5850_v27 = vld [vmem:[#allocation7 + $0xb4] ss:$8 sps:$4 sm:$0xff]  }
 0x5b8   : > { %v6256_v28 = vpop.eup %6255 }
 0x5b9   : > { %v1885_v29 = vsel %vm1872_vm5, %v6256_v28, 0.0 }
 0x5ba   : > { %v6258_v34 = vpop.eup %6257  ;;  %1886 = vadd.xlane.f32.xlu0 %v1885_v29  ;;  %v5853_v29 = vld [vmem:[#allocation7 + $0xc4] ss:$8 sps:$4 sm:$0xff]  }
 0x5bb   : > { %v1888_v37 = vsel %vm1872_vm5, %v6258_v34, 0.0 }
 0x5bc   : > { %1889 = vadd.xlane.f32.xlu1 %v1888_v37  ;;  %v5856_v37 = vld [vmem:[#allocation7 + $0xd4] ss:$8 sps:$4 sm:$0xff]  }
 0x647   : > { %v1887_v40 = vpop.xlane.xlu0 %1886 }
 0x648   : > { %6259 = vrcp.f32 %v1887_v40  ;;  %v5854_v40 = vld [vmem:[#allocation7 + $0xd0] ss:$8 sps:$4 sm:$0xff]  }
 0x649   : > { %v1890_v41 = vpop.xlane.xlu1 %1889 }
 0x64a   : > { %6261 = vrcp.f32 %v1890_v41  ;;  %v5859_v41 = vld [vmem:[#allocation7 + $0xe4] ss:$8 sps:$4 sm:$0xff]  }
 0x652   : > { %v6260_v42 = vpop.eup %6259 }
 0x653   : > { %v1893_v46 = vmul.f32 %v6260_v42, %v6256_v28  ;;  %v5848_v28 = vld [vmem:[#allocation7 + $0xb0] ss:$8 sps:$4 sm:$0xff]   ;;  %v5857_v42 = vld [vmem:[#allocation7 + $0xe0] ss:$8 sps:$4 sm:$0xff]  }
 0x654   : > { %v6262_v45 = vpop.eup %6261 }
 0x655   : > { %v1894_v47 = vmul.f32 %v6262_v45, %v6258_v34  ;;  %v5851_v34 = vld [vmem:[#allocation7 + $0xc0] ss:$8 sps:$4 sm:$0xff]  }
 0x657   : > { %v1895_v48 = vpack.c.bf16 %v1894_v47, %v1893_v46 }
 0x659   : > { %5406 = vmatmul.mubr.msk.bf16.vlgmr.msra.gmra.mrb[12].mxu0 %vm1872_vm5, %v1895_v48 }
 0x65a   : > { %5410 = vmatpush3.bf16.xpose.msra.mxu0 %v1941_v0  ;;  %5411 = vmatprep.mubr.msk.bf16.mxu0 %vm6910_vm4, %v6909_v30 }
 0x65b   : > { %5415 = vmatprep.subr.bf16.mxu0 %v6909_v30 }
 0x661   : > { %5412 = vmatmul.mubr.bf16.vlgmr.msra.gmra.mrb[16].mxu0 %v1940_v63 }
 0x662   : > { %5416 = vmatpush3.bf16.msra.mxu0 %v1942_v10  ;;  %5417 = vmatprep.mubr.msk.bf16.mxu0 %vm6910_vm4, %v6909_v30  ;;  %v5823_v10 = vld [vmem:[#allocation7 + $0x24] ss:$8 sps:$4 sm:$0xff]  }
 0x663   : > { %2265 = vmatprep.subr.bf16.mxu1 %v5823_v10 }
 0x664   : > { %2266 = vmatpush1.bf16.msra.mxu1 %v5821_v36 }
 0x72c   : > { %v7638_v49 = vpop.f32.mrb[12].mxu0 }
 0x72d   : > { %v5407_v50 = vpop.f32.mrb[13].mxu0 }
 0x72e   : > { %v7640_v51 = vpop.f32.mrb[14].mxu0 }
 0x72f   : > { %v2055_v52 = vpack.c.bf16 %v7640_v51, %v7638_v49  ;;  %v5408_v53 = vpop.f32.mrb[15].mxu0 }
 0x734   : > { %v1977_v54 = vpop.f32.mrb[16].mxu0 }
 0x735   : > { %v1984_v55 = vmul.f32 0.088388346, %v1977_v54  ;;  %v5413_v56 = vpop.f32.mrb[17].mxu0 }
 0x736   : > { %v1980_v58 = vpop.f32.mrb[18].mxu0  ;;  %v5860_v56 = vld [vmem:[#allocation7 + $0xf0] ss:$8 sps:$4 sm:$0xff]  }
 0x737   : > { %v1985_v60 = vmul.f32 0.088388346, %v1980_v58  ;;  %v5414_v57 = vpop.f32.mrb[19].mxu0  ;;  %v1986_v59 = vadd.f32 %v1984_v55, %v1003_v11  ;;  %v5826_v11 = vld [vmem:[#allocation7 + $0x34] ss:$8 sps:$4 sm:$0xff]  }
 0x738   : > { %2267 = vmatprep.subr.bf16.mxu1 %v5826_v11  ;;  %v5862_v55 = vld [vmem:[#allocation7 + $0xf4] ss:$8 sps:$4 sm:$0xff]   ;;  %v5863_v11 = vld [vmem:[#allocation15] ss:$16 sps:$4 sm:$0xff]  }
 0x739   : > { %v1988_v61 = vsel %vm1872_vm5, %v1986_v59, -inf  ;;  %v1987_v62 = vadd.f32 %v1985_v60, %v1004_v15  ;;  %2268 = vmatpush1.bf16.msra.mxu1 %v5824_v12  ;;  %v5832_v15 = vld [vmem:[#allocation7 + $0x54] ss:$8 sps:$4 sm:$0xff]  }
 0x73a   : > { %1989 = vmax.xlane.f32.xlu0 %v1988_v61  ;;  %2269 = vmatprep.subr.bf16.mxu1 %v5829_v13  ;;  %v5865_v12 = vld [vmem:[#allocation15 + $0x4] ss:$16 sps:$4 sm:$0xff]  }
 0x73b   : > { %v1991_v63 = vsel %vm1872_vm5, %v1987_v62, -inf  ;;  %v5868_v13 = vld [vmem:[#allocation15 + $0x24] ss:$16 sps:$4 sm:$0xff]  }
 0x73c   : > { %1992 = vmax.xlane.f32.xlu1 %v1991_v63 }
 0x73d   : > { %2270 = vmatpush1.bf16.msra.mxu1 %v5827_v14  ;;  %v5869_v14 = vld [vmem:[%s8058_s9] ss:$8 sps:$4 sm:$0xff]  }
 0x73e   : > { %2271 = vmatprep.subr.bf16.mxu1 %v5832_v15  ;;  %v5871_v15 = vld [vmem:[%s8058_s9 + $0x4] ss:$8 sps:$4 sm:$0xff]  }
 0x73f   : > { %2592 = vmatprep.subr.bf16.mxu0 %v5871_v15  ;;  %v5934_v15 = vld [vmem:[#allocation15 + $0x184] ss:$16 sps:$4 sm:$0xff]  }
 0x741   : > { %2272 = vmatpush1.bf16.msra.mxu1 %v5830_v16  ;;  %v5866_v16 = vld [vmem:[#allocation15 + $0x20] ss:$16 sps:$4 sm:$0xff]  }
 0x742   : > { %2273 = vmatprep.subr.bf16.mxu1 %v5835_v17  ;;  %v5877_v17 = vld [vmem:[%s8058_s9 + $0x14] ss:$8 sps:$4 sm:$0xff]  }
 0x745   : > { %2274 = vmatpush1.bf16.msra.mxu1 %v5833_v18  ;;  %v5874_v18 = vld [vmem:[#allocation15 + $0x44] ss:$16 sps:$4 sm:$0xff]  }
 0x746   : > { %2275 = vmatprep.subr.bf16.mxu1 %v5838_v19  ;;  %v5875_v19 = vld [vmem:[%s8058_s9 + $0x10] ss:$8 sps:$4 sm:$0xff]  }
 0x749   : > { %2276 = vmatpush1.bf16.msra.mxu1 %v5836_v20  ;;  %v5883_v20 = vld [vmem:[%s8058_s9 + $0x24] ss:$8 sps:$4 sm:$0xff]  }
 0x74a   : > { %2277 = vmatprep.subr.bf16.mxu1 %v5841_v21  ;;  %v5872_v21 = vld [vmem:[#allocation15 + $0x40] ss:$16 sps:$4 sm:$0xff]  }
 0x74d   : > { %2278 = vmatpush1.bf16.msra.mxu1 %v5839_v22  ;;  %v5880_v22 = vld [vmem:[#allocation15 + $0x64] ss:$16 sps:$4 sm:$0xff]  }
 0x74e   : > { %2279 = vmatprep.subr.bf16.mxu1 %v5844_v23  ;;  %v5881_v23 = vld [vmem:[%s8058_s9 + $0x20] ss:$8 sps:$4 sm:$0xff]  }
 0x751   : > { %2280 = vmatpush1.bf16.msra.mxu1 %v5842_v24  ;;  %v5889_v24 = vld [vmem:[%s8058_s9 + $0x34] ss:$8 sps:$4 sm:$0xff]  }
 0x752   : > { %2281 = vmatprep.subr.bf16.mxu1 %v5847_v25  ;;  %v5878_v25 = vld [vmem:[#allocation15 + $0x60] ss:$16 sps:$4 sm:$0xff]  }
 0x755   : > { %2282 = vmatpush1.bf16.msra.mxu1 %v5845_v26  ;;  %v5886_v26 = vld [vmem:[#allocation15 + $0x84] ss:$16 sps:$4 sm:$0xff]  }
 0x756   : > { %2283 = vmatprep.subr.bf16.mxu1 %v5850_v27  ;;  %v5887_v27 = vld [vmem:[%s8058_s9 + $0x30] ss:$8 sps:$4 sm:$0xff]  }
 0x759   : > { %2284 = vmatpush1.bf16.msra.mxu1 %v5848_v28  ;;  %v5895_v28 = vld [vmem:[%s8058_s9 + $0x44] ss:$8 sps:$4 sm:$0xff]  }
 0x75a   : > { %2285 = vmatprep.subr.bf16.mxu1 %v5853_v29  ;;  %v5884_v29 = vld [vmem:[#allocation15 + $0x80] ss:$16 sps:$4 sm:$0xff]  }
 0x75d   : > { %2286 = vmatpush1.bf16.msra.mxu1 %v5851_v34  ;;  %v5892_v34 = vld [vmem:[#allocation15 + $0xa4] ss:$16 sps:$4 sm:$0xff]  }
 0x75e   : > { %2287 = vmatprep.subr.bf16.mxu1 %v5856_v37  ;;  %v5893_v37 = vld [vmem:[%s8058_s9 + $0x40] ss:$8 sps:$4 sm:$0xff]  }
 0x761   : > { %2288 = vmatpush1.bf16.msra.mxu1 %v5854_v40  ;;  %v5901_v40 = vld [vmem:[%s8058_s9 + $0x54] ss:$8 sps:$4 sm:$0xff]  }
 0x762   : > { %2289 = vmatprep.subr.bf16.mxu1 %v5859_v41  ;;  %v5890_v41 = vld [vmem:[#allocation15 + $0xa0] ss:$16 sps:$4 sm:$0xff]  }
 0x765   : > { %2290 = vmatpush1.bf16.msra.mxu1 %v5857_v42  ;;  %v5898_v42 = vld [vmem:[#allocation15 + $0xc4] ss:$16 sps:$4 sm:$0xff]  }
 0x766   : > { %2291 = vmatprep.subr.bf16.mxu1 %v5862_v55  ;;  %v5908_v55 = vld [vmem:[#allocation15 + $0x100] ss:$16 sps:$4 sm:$0xff]  }
 0x769   : > { %2292 = vmatpush1.bf16.msra.mxu1 %v5860_v56 }
 0x76a   : > { %3043 = vmatprep.subr.bf16.mxu1 %v5865_v12  ;;  %v5923_v12 = vld [vmem:[%s8058_s9 + $0x90] ss:$8 sps:$4 sm:$0xff]  }
 0x7c7   : > { %v1990_v0 = vpop.xlane.xlu0 %1989 }
 0x7c8   : > { %v1994_v32 = vsub.f32 %v1986_v59, %v1990_v0 }
 0x7c9   : > { %v1993_v1 = vpop.xlane.xlu1 %1992 }
 0x7ca   : > { %v1996_v33 = vmul.f32 1.442695, %v1994_v32  ;;  %v1995_v38 = vsub.f32 %v1987_v62, %v1993_v1  ;;  %v2089_v62 = vld [vmem:[#allocation9] sm:$0x3] }
 0x7cb   : > { %v2094_v63 = vrot.slane %v2089_v62, %v7557_v43  ;;  %v2098_v0 = vrot.slane %v2089_v62, %v7560_v44 }
 0x7cc   : > { %6263 = vpow2.f32 %v1996_v33  ;;  %v1998_v39 = vmul.f32 1.442695, %v1995_v38 }
 0x7ce   : > { %6265 = vpow2.f32 %v1998_v39 }
 0x7d6   : > { %v7646_v2 = vpop.eup %6263 }
 0x7d7   : > { %v2000_v3 = vsel %vm1872_vm5, %v7646_v2, 0.0 }
 0x7d8   : > { %v7650_v4 = vpop.eup %6265  ;;  %2001 = vadd.xlane.f32.xlu0 %v2000_v3 }
 0x7d9   : > { %v2003_v5 = vsel %vm1872_vm5, %v7650_v4, 0.0 }
 0x7da   : > { %2004 = vadd.xlane.f32.xlu1 %v2003_v5 }
 0x865   : > { %v2002_v45 = vpop.xlane.xlu0 %2001 }
 0x866   : > { %6267 = vrcp.f32 %v2002_v45  ;;  %v5899_v45 = vld [vmem:[%s8058_s9 + $0x50] ss:$8 sps:$4 sm:$0xff]  }
 0x867   : > { %v2005_v46 = vpop.xlane.xlu1 %2004 }
 0x868   : > { %6269 = vrcp.f32 %v2005_v46  ;;  %v5907_v46 = vld [vmem:[%s8058_s9 + $0x64] ss:$8 sps:$4 sm:$0xff]  }
 0x870   : > { %v6268_v47 = vpop.eup %6267 }
 0x871   : > { %v2008_v50 = vmul.f32 %v6268_v47, %v7646_v2  ;;  %v6303_v2 = vld [vmem:[%s7492_s5] sm:$0xff]  ;;  %v5896_v47 = vld [vmem:[#allocation15 + $0xc0] ss:$16 sps:$4 sm:$0xff]  }
 0x872   : > { %v6270_v48 = vpop.eup %6269 }
 0x873   : > { %v2009_v53 = vmul.f32 %v6270_v48, %v7650_v4  ;;  %v5904_v48 = vld [vmem:[#allocation15 + $0xe4] ss:$16 sps:$4 sm:$0xff]  }
 0x875   : > { %v2010_v54 = vpack.c.bf16 %v2009_v53, %v2008_v50  ;;  %v5905_v50 = vld [vmem:[%s8058_s9 + $0x60] ss:$8 sps:$4 sm:$0xff]  }
 0x876   : > { %v5902_v53 = vld [vmem:[#allocation15 + $0xe0] ss:$16 sps:$4 sm:$0xff]  }
 0x877   : > { %5418 = vmatmul.mubr.msk.bf16.vlgmr.msra.gmra.mrb[20].mxu0 %vm1872_vm5, %v2010_v54  ;;  %v5910_v54 = vld [vmem:[#allocation15 + $0x104] ss:$16 sps:$4 sm:$0xff]  }
 0x878   : > { %2593 = vmatpush1.bf16.msra.mxu0 %v5869_v14  ;;  %v5931_v14 = vld [vmem:[%s8058_s9 + $0xa4] ss:$8 sps:$4 sm:$0xff]  }
 0x879   : > { %2594 = vmatprep.subr.bf16.mxu0 %v5877_v17  ;;  %v5932_v17 = vld [vmem:[#allocation15 + $0x180] ss:$16 sps:$4 sm:$0xff]  }
 0x87c   : > { %2595 = vmatpush1.bf16.msra.mxu0 %v5875_v19  ;;  %v5937_v19 = vld [vmem:[%s8058_s9 + $0xb4] ss:$8 sps:$4 sm:$0xff]  }
 0x87d   : > { %2596 = vmatprep.subr.bf16.mxu0 %v5883_v20  ;;  %v5938_v20 = vld [vmem:[#allocation15 + $0x1a0] ss:$16 sps:$4 sm:$0xff]  }
 0x880   : > { %2597 = vmatpush1.bf16.msra.mxu0 %v5881_v23  ;;  %v5946_v23 = vld [vmem:[#allocation15 + $0x1c4] ss:$16 sps:$4 sm:$0xff]  }
 0x881   : > { %2598 = vmatprep.subr.bf16.mxu0 %v5889_v24  ;;  %v5941_v24 = vld [vmem:[%s8058_s9 + $0xc0] ss:$8 sps:$4 sm:$0xff]  }
 0x884   : > { %2599 = vmatpush1.bf16.msra.mxu0 %v5887_v27  ;;  %v5949_v27 = vld [vmem:[%s8058_s9 + $0xd4] ss:$8 sps:$4 sm:$0xff]  }
 0x885   : > { %2600 = vmatprep.subr.bf16.mxu0 %v5895_v28  ;;  %v5952_v28 = vld [vmem:[#allocation15 + $0x1e4] ss:$16 sps:$4 sm:$0xff]  }
 0x888   : > { %2601 = vmatpush1.bf16.msra.mxu0 %v5893_v37  ;;  %v5950_v37 = vld [vmem:[#allocation15 + $0x1e0] ss:$16 sps:$4 sm:$0xff]  }
 0x889   : > { %2602 = vmatprep.subr.bf16.mxu0 %v5901_v40  ;;  %v1001_v40 = vld [vmem:[%s985_s23] sm:$0xff] }
 0x88c   : > { %2603 = vmatpush1.bf16.msra.mxu0 %v5899_v45  ;;  %v5953_v45 = vld [vmem:[%s8058_s9 + $0xe0] ss:$8 sps:$4 sm:$0xff]  }
 0x88d   : > { %2604 = vmatprep.subr.bf16.mxu0 %v5907_v46  ;;  %v5958_v46 = vld [vmem:[%s8058_s9 + $0xf4] ss:$8 sps:$4 sm:$0xff]  }
 0x890   : > { %2605 = vmatpush1.bf16.msra.mxu0 %v5905_v50 }
 0x94a   : > { %v2048_v58 = vpop.f32.mrb[20].mxu0 }
 0x94b   : > { %v5419_v60 = vpop.f32.mrb[21].mxu0 }
 0x94c   : > { %v2051_v57 = vpop.f32.mrb[22].mxu0 }
 0x94d   : > { %v2056_v59 = vpack.c.bf16 %v2051_v57, %v2048_v58  ;;  %v5420_v61 = vpop.f32.mrb[23].mxu0 }
 0x94f   : > { %2293 = vmatprep.mubr.bf16.mxu1 %v2056_v59 }
 0x950   : > { %2294 = vmatmul.mubr.bf16.vlgmr.msra.gmra.mrb[4].mxu1 %v2055_v52  ;;  %v6305_v52 = vld [vmem:[%s7492_s5 + $0x10] sm:$0xff] }
 0x951   : > { %3044 = vmatpush1.bf16.msra.mxu1 %v5863_v11  ;;  %v5928_v11 = vld [vmem:[#allocation15 + $0x164] ss:$16 sps:$4 sm:$0xff]  }
 0x952   : > { %3045 = vmatprep.subr.bf16.mxu1 %v5868_v13  ;;  %v5926_v13 = vld [vmem:[#allocation15 + $0x160] ss:$16 sps:$4 sm:$0xff]  }
 0x955   : > { %3046 = vmatpush1.bf16.msra.mxu1 %v5866_v16  ;;  %v5929_v16 = vld [vmem:[%s8058_s9 + $0xa0] ss:$8 sps:$4 sm:$0xff]  }
 0x956   : > { %3047 = vmatprep.subr.bf16.mxu1 %v5874_v18  ;;  %v5935_v18 = vld [vmem:[%s8058_s9 + $0xb0] ss:$8 sps:$4 sm:$0xff]  }
 0x959   : > { %3048 = vmatpush1.bf16.msra.mxu1 %v5872_v21  ;;  %v5940_v21 = vld [vmem:[#allocation15 + $0x1a4] ss:$16 sps:$4 sm:$0xff]  }
 0x95a   : > { %3049 = vmatprep.subr.bf16.mxu1 %v5880_v22  ;;  %v5943_v22 = vld [vmem:[%s8058_s9 + $0xc4] ss:$8 sps:$4 sm:$0xff]  }
 0x95d   : > { %3050 = vmatpush1.bf16.msra.mxu1 %v5878_v25  ;;  %v5944_v25 = vld [vmem:[#allocation15 + $0x1c0] ss:$16 sps:$4 sm:$0xff]  }
 0x95e   : > { %3051 = vmatprep.subr.bf16.mxu1 %v5886_v26  ;;  %v1002_v26 = vld [vmem:[%s985_s23 + $0x8] sm:$0xff] }
 0x961   : > { %3052 = vmatpush1.bf16.msra.mxu1 %v5884_v29  ;;  %v7784_v29 = vpack.c.bf16 %v1002_v26, %v1002_v26 }
 0x962   : > { %3053 = vmatprep.subr.bf16.mxu1 %v5892_v34  ;;  %v5947_v34 = vld [vmem:[%s8058_s9 + $0xd0] ss:$8 sps:$4 sm:$0xff]  }
 0x963   : > { %3075 = vmatprep.mubr.bf16.mxu1 %v7784_v29 }
 0x965   : > { %3054 = vmatpush1.bf16.msra.mxu1 %v5890_v41  ;;  %v5955_v41 = vld [vmem:[%s8058_s9 + $0xe4] ss:$8 sps:$4 sm:$0xff]  }
 0x966   : > { %3055 = vmatprep.subr.bf16.mxu1 %v5898_v42  ;;  %v7793_v42 = vpack.c.bf16 %v1001_v40, %v1001_v40 }
 0x969   : > { %3056 = vmatpush1.bf16.msra.mxu1 %v5896_v47  ;;  %v5956_v47 = vld [vmem:[%s8058_s9 + $0xf0] ss:$8 sps:$4 sm:$0xff]  }
 0x96a   : > { %3057 = vmatprep.subr.bf16.mxu1 %v5904_v48 }
 0x96d   : > { %3058 = vmatpush1.bf16.msra.mxu1 %v5902_v53 }
 0x96e   : > { %3059 = vmatprep.subr.bf16.mxu1 %v5910_v54 }
 0x971   : > { %3060 = vmatpush1.bf16.msra.mxu1 %v5908_v55 }
 0xa23   : > { %v2295_v32 = vpop.f32.mrb[4].mxu1 }
 0xa24   : > { %v2296_v1 = vadd.f32 %v2295_v32, %v2094_v63  ;;  %v2297_v33 = vpop.f32.mrb[5].mxu1 }
 0xa25   : > { %v2298_v38 = vadd.f32 %v2297_v33, %v2098_v0  ;;  %v2299_v39 = vpop.f32.mrb[6].mxu1 }
 0xa26   : > { %v7663_v3 = vadd.f32 %v6303_v2, %v2296_v1  ;;  %v2300_v4 = vadd.f32 %v2299_v39, %v2094_v63  ;;  %v2301_v5 = vpop.f32.mrb[7].mxu1  ;;  %v5913_v2 = vld [vmem:[%s8058_s9 + $0x74] ss:$8 sps:$4 sm:$0xff]  }
 0xa27   : > { %v7666_v49 = vadd.f32 %v6304_v6, %v2298_v38  ;;  %v2302_v51 = vadd.f32 %v2301_v5, %v2098_v0  ;;  %v5911_v5 = vld [vmem:[%s8058_s9 + $0x70] ss:$8 sps:$4 sm:$0xff]   ;;  %2606 = vmatprep.subr.bf16.mxu0 %v5913_v2 }
 0xa28   : > { %v7669_v7 = vadd.f32 %v6305_v52, %v2300_v4  ;;  %v5916_v4 = vld [vmem:[#allocation15 + $0x124] ss:$16 sps:$4 sm:$0xff]   ;;  %v5914_v6 = vld [vmem:[#allocation15 + $0x120] ss:$16 sps:$4 sm:$0xff]   ;;  %2607 = vmatpush1.bf16.msra.mxu0 %v5911_v5 }
 0xa29   : > { %v7672_v9 = vadd.f32 %v6306_v8, %v2302_v51  ;;  %v2310_v10 = vadd.f32 %v7666_v49, %v7663_v3  ;;  %3061 = vmatprep.subr.bf16.mxu1 %v5916_v4  ;;  %v5919_v51 = vld [vmem:[%s8058_s9 + $0x84] ss:$8 sps:$4 sm:$0xff]   ;;  %v5917_v8 = vld [vmem:[%s8058_s9 + $0x80] ss:$8 sps:$4 sm:$0xff]  }
 0xa2a   : > { %3062 = vmatpush1.bf16.msra.mxu1 %v5914_v6  ;;  %v5922_v52 = vld [vmem:[#allocation15 + $0x144] ss:$16 sps:$4 sm:$0xff]   ;;  %2608 = vmatprep.subr.bf16.mxu0 %v5919_v51  ;;  %v2308_v4 = vld [vmem:[#allocation10] sm:$0x3]  ;;  %v2309_v51 = vld [vmem:[#allocation12] sm:$0x3] }
 0xa2b   : > { %2311 = vadd.xlane.f32.xlu0 %v2310_v10  ;;  %v2313_v36 = vadd.f32 %v7672_v9, %v7669_v7  ;;  %v5920_v10 = vld [vmem:[#allocation15 + $0x140] ss:$16 sps:$4 sm:$0xff]   ;;  %3063 = vmatprep.subr.bf16.mxu1 %v5922_v52  ;;  %v2352_v5 = vrot.slane %v2308_v4, %v7557_v43  ;;  %v2356_v6 = vrot.slane %v2308_v4, %v7560_v44  ;;  %v5974_v4 = vld [vmem:[#allocation15 + $0xa8] ss:$16 sps:$4 sm:$0xff]  }
 0xa2c   : > { %2609 = vmatpush1.bf16.msra.mxu0 %v5917_v8 }
 0xa2d   : > { %2314 = vadd.xlane.f32.xlu1 %v2313_v36  ;;  %v5925_v36 = vld [vmem:[%s8058_s9 + $0x94] ss:$8 sps:$4 sm:$0xff]  }
 0xa2e   : > { %3064 = vmatpush1.bf16.msra.mxu1 %v5920_v10  ;;  %2610 = vmatprep.subr.bf16.mxu0 %v5925_v36 }
 0xa2f   : > { %3065 = vmatprep.subr.bf16.mxu1 %v5928_v11 }
 0xa30   : > { %2611 = vmatpush1.bf16.msra.mxu0 %v5923_v12  ;;  %v2375_v12 = vrot.slane %v2309_v51, %v7557_v43 }
 0xa31   : > { %2612 = vmatprep.subr.bf16.mxu0 %v5931_v14 }
 0xa32   : > { %3066 = vmatpush1.bf16.msra.mxu1 %v5926_v13  ;;  %v2379_v13 = vrot.slane %v2309_v51, %v7560_v44  ;;  %v5982_v51 = vld [vmem:[#allocation15 + $0xec] ss:$16 sps:$4 sm:$0xff]  }
 0xa33   : > { %3067 = vmatprep.subr.bf16.mxu1 %v5934_v15 }
 0xa34   : > { %2613 = vmatpush1.bf16.msra.mxu0 %v5929_v16 }
 0xa35   : > { %2614 = vmatprep.subr.bf16.mxu0 %v5937_v19 }
 0xa36   : > { %3068 = vmatpush1.bf16.msra.mxu1 %v5932_v17 }
 0xa37   : > { %3069 = vmatprep.subr.bf16.mxu1 %v5940_v21 }
 0xa38   : > { %2615 = vmatpush1.bf16.msra.mxu0 %v5935_v18 }
 0xa39   : > { %2616 = vmatprep.subr.bf16.mxu0 %v5943_v22 }
 0xa3a   : > { %3070 = vmatpush1.bf16.msra.mxu1 %v5938_v20 }
 0xa3b   : > { %3071 = vmatprep.subr.bf16.mxu1 %v5946_v23 }
 0xa3c   : > { %2617 = vmatpush1.bf16.msra.mxu0 %v5941_v24 }
 0xa3d   : > { %2618 = vmatprep.subr.bf16.mxu0 %v5949_v27 }
 0xa3e   : > { %3072 = vmatpush1.bf16.msra.mxu1 %v5944_v25 }
 0xa3f   : > { %3073 = vmatprep.subr.bf16.mxu1 %v5952_v28 }
 0xa40   : > { %2619 = vmatpush1.bf16.msra.mxu0 %v5947_v34  ;;  %v2420_v34 = vld [vmem:[#allocation13] sm:$0x3] }
 0xa41   : > { %2620 = vmatprep.subr.bf16.mxu0 %v5955_v41 }
 0xa42   : > { %3074 = vmatpush1.bf16.msra.mxu1 %v5950_v37  ;;  %v2425_v37 = vrot.slane %v2420_v34, %v7557_v43 }
 0xa43   : > { %5421 = vmatprep.subr.bf16.mxu1 %v6909_v30 }
 0xa44   : > { %2621 = vmatpush1.bf16.msra.mxu0 %v5953_v45 }
 0xa45   : > { %3076 = vmatmul.mubr.bf16.vlgmr.msra.gmra.mrb[8].mxu1 %v7793_v42  ;;  %2622 = vmatprep.subr.bf16.mxu0 %v5958_v46 }
 0xa46   : > { %5423 = vmatprep.mubr.msk.bf16.mxu1 %vm6910_vm4, %v6909_v30 }
 0xa48   : > { %2623 = vmatpush1.bf16.msra.mxu0 %v5956_v47 }
 0xab8   : > { %v2312_v56 = vpop.xlane.xlu0 %2311 }
 0xab9   : > { %v2316_v58 = vmul.f32 0.00390625, %v2312_v56 }
 0xaba   : > { %v2315_v60 = vpop.xlane.xlu1 %2314 }
 0xabb   : > { %v7721_v57 = vsub.f32 %v7663_v3, %v2316_v58  ;;  %v7724_v59 = vsub.f32 %v7666_v49, %v2316_v58  ;;  %v2317_v61 = vmul.f32 0.00390625, %v2315_v60 }
 0xabd   : > { %v7727_v62 = vsub.f32 %v7669_v7, %v2317_v61  ;;  %v7730_v63 = vsub.f32 %v7672_v9, %v2317_v61  ;;  %v2322_v0 = vmul.f32 %v7721_v57, %v7721_v57  ;;  %v2323_v32 = vmul.f32 %v7724_v59, %v7724_v59 }
 0xabe   : > { %v2359_v52 = vmul.f32 %v2352_v5, %v7721_v57  ;;  %v2360_v8 = vmul.f32 %v2356_v6, %v7724_v59 }
 0xabf   : > { %v2324_v1 = vmul.f32 %v7727_v62, %v7727_v62  ;;  %v2325_v33 = vmul.f32 %v7730_v63, %v7730_v63  ;;  %v2326_v38 = vadd.f32 %v2323_v32, %v2322_v0  ;;  %v2361_v36 = vmul.f32 %v2352_v5, %v7727_v62  ;;  %v7817_v62 = vld [vmem:[#allocation16] sm:$0xf]  ;;  %v5979_v5 = vld [vmem:[#allocation15 + $0xcc] ss:$16 sps:$4 sm:$0xff]  }
 0xac0   : > { %v2362_v11 = vmul.f32 %v2356_v6, %v7730_v63  ;;  %v2706_v63 = vrot.slane %v7817_v62, %v7557_v43  ;;  %v5977_v6 = vld [vmem:[#allocation15 + $0xc8] ss:$16 sps:$4 sm:$0xff]  }
 0xac1   : > { %v2329_v39 = vadd.f32 %v2325_v33, %v2324_v1  ;;  %2327 = vadd.xlane.f32.xlu0 %v2326_v38 }
 0xac3   : > { %2330 = vadd.xlane.f32.xlu1 %v2329_v39 }
 0xb18   : > { %v3077_v23 = vpop.f32.mrb[8].mxu1 }
 0xb19   : > { %v3078_v24 = vadd.f32 %v3077_v23, %v2706_v63  ;;  %v7821_v25 = vpop.f32.mrb[9].mxu1 }
 0xb1a   : > { %v3081_v26 = vpop.f32.mrb[10].mxu1 }
 0xb1b   : > { %v3126_v27 = vpack.c.bf16 %v3078_v24, %v3078_v24  ;;  %v3082_v28 = vpop.f32.mrb[11].mxu1 }
 0xb1d   : > { %5422 = vmatpush3.bf16.xpose.msra.mxu1 %v3126_v27 }
 0xb1e   : > { %5427 = vmatprep.subr.bf16.mxu1 %v6909_v30 }
 0xb4e   : > { %v2328_v48 = vpop.xlane.xlu0 %2327 }
 0xb4f   : > { %v2332_v50 = vmul.f32 0.003921569, %v2328_v48 }
 0xb50   : > { %v2331_v53 = vpop.xlane.xlu1 %2330 }
 0xb51   : > { %v2333_v54 = vmul.f32 0.003921569, %v2331_v53  ;;  %6271 = vrsqrt.f32 %v2332_v50  ;;  %vm2336_vm6 = vcmp.eq.f32.partialorder %v2332_v50, inf  ;;  %v2339_v60 = vand.u32 2147483648, %v2332_v50 }
 0xb52   : > { %vm2338_vm7 = vcmp.eq.f32.partialorder %v2332_v50, 0.0 }
 0xb53   : > { %6273 = vrsqrt.f32 %v2333_v54  ;;  %vm2343_vm8 = vcmp.eq.f32.partialorder %v2333_v54, inf  ;;  %v2346_v32 = vand.u32 2147483648, %v2333_v54  ;;  %vm2345_vm9 = vcmp.eq.f32.partialorder %v2333_v54, 0.0 }
 0xb5b   : > { %v6272_v55 = vpop.eup %6271 }
 0xb5c   : > { %v2335_v58 = vmul.f32 %v6272_v55, %v2332_v50 }
 0xb5d   : > { %v6274_v56 = vpop.eup %6273 }
 0xb5e   : > { %v2342_v61 = vmul.f32 %v6274_v56, %v2333_v54  ;;  %v2337_v0 = vsel %vm2336_vm6, %v2332_v50, %v2335_v58  ;;  %v5959_v56 = vld [vmem:[#allocation15 + $0x8] ss:$16 sps:$4 sm:$0xff]   ;;  %v5961_v58 = vld [vmem:[#allocation15 + $0xc] ss:$16 sps:$4 sm:$0xff]  }
 0xb5f   : > { %v2340_v33 = vsel %vm2338_vm7, %v2339_v60, %v2337_v0  ;;  %v5964_v60 = vld [vmem:[#allocation15 + $0x2c] ss:$16 sps:$4 sm:$0xff]   ;;  %3084 = vmatprep.subr.bf16.mxu0 %v5961_v58  ;;  %v2714_v58 = vrot.slane %v7817_v62, %v7582_v31 }
 0xb60   : > { %v2344_v1 = vsel %vm2343_vm8, %v2333_v54, %v2342_v61  ;;  %v2363_v39 = vadd.f32 1e-06, %v2340_v33  ;;  %v5962_v61 = vld [vmem:[#allocation15 + $0x28] ss:$16 sps:$4 sm:$0xff]   ;;  %v5967_v0 = vld [vmem:[#allocation15 + $0x4c] ss:$16 sps:$4 sm:$0xff]  }
 0xb61   : > { %v2347_v38 = vsel %vm2345_vm9, %v2346_v32, %v2344_v1  ;;  %v5965_v32 = vld [vmem:[#allocation15 + $0x48] ss:$16 sps:$4 sm:$0xff]   ;;  %v5970_v1 = vld [vmem:[#allocation15 + $0x6c] ss:$16 sps:$4 sm:$0xff]  }
 0xb62   : > { %v2364_v2 = vadd.f32 1e-06, %v2347_v38  ;;  %6275 = vrcp.f32 %v2363_v39  ;;  %v5968_v33 = vld [vmem:[#allocation15 + $0x68] ss:$16 sps:$4 sm:$0xff]   ;;  %v5973_v38 = vld [vmem:[#allocation15 + $0x8c] ss:$16 sps:$4 sm:$0xff]  }
 0xb63   : > { %v5971_v39 = vld [vmem:[#allocation15 + $0x88] ss:$16 sps:$4 sm:$0xff]  }
 0xb64   : > { %6277 = vrcp.f32 %v2364_v2  ;;  %v5976_v2 = vld [vmem:[#allocation15 + $0xac] ss:$16 sps:$4 sm:$0xff]  }
 0xb6c   : > { %v6276_v10 = vpop.eup %6275 }
 0xb6d   : > { %v2367_v15 = vmul.f32 %v6276_v10, %v2360_v8  ;;  %v2366_v16 = vmul.f32 %v6276_v10, %v2359_v52  ;;  %v5980_v52 = vld [vmem:[#allocation15 + $0xe8] ss:$16 sps:$4 sm:$0xff]   ;;  %v5985_v8 = vld [vmem:[#allocation15 + $0x10c] ss:$16 sps:$4 sm:$0xff]  }
 0xb6e   : > { %v6278_v14 = vpop.eup %6277  ;;  %v5983_v10 = vld [vmem:[#allocation15 + $0x108] ss:$16 sps:$4 sm:$0xff]  }
 0xb6f   : > { %v2370_v17 = vmul.f32 %v6278_v14, %v2362_v11  ;;  %v2369_v18 = vmul.f32 %v6278_v14, %v2361_v36  ;;  %v2383_v19 = vadd.f32 %v2379_v13, %v2367_v15  ;;  %v2382_v21 = vadd.f32 %v2375_v12, %v2366_v16  ;;  %v5988_v36 = vld [vmem:[#allocation15 + $0x12c] ss:$16 sps:$4 sm:$0xff]   ;;  %v5986_v11 = vld [vmem:[#allocation15 + $0x128] ss:$16 sps:$4 sm:$0xff]  }
 0xb70   : > { %v5994_v14 = vld [vmem:[#allocation15 + $0x16c] ss:$16 sps:$4 sm:$0xff]   ;;  %v5992_v15 = vld [vmem:[#allocation15 + $0x168] ss:$16 sps:$4 sm:$0xff]  }
 0xb71   : > { %v2385_v20 = vadd.f32 %v2379_v13, %v2370_v17  ;;  %v2384_v57 = vadd.f32 %v2375_v12, %v2369_v18  ;;  %v5991_v12 = vld [vmem:[#allocation15 + $0x14c] ss:$16 sps:$4 sm:$0xff]   ;;  %v5989_v13 = vld [vmem:[#allocation15 + $0x148] ss:$16 sps:$4 sm:$0xff]  }
 0xb72   : > { %v5997_v16 = vld [vmem:[#allocation15 + $0x18c] ss:$16 sps:$4 sm:$0xff]   ;;  %v5995_v17 = vld [vmem:[#allocation15 + $0x188] ss:$16 sps:$4 sm:$0xff]  }
 0xb73   : > { %v2387_v22 = vpack.c.bf16 %v2385_v20, %v2383_v19  ;;  %v2386_v59 = vpack.c.bf16 %v2384_v57, %v2382_v21  ;;  %v6000_v18 = vld [vmem:[#allocation15 + $0x1ac] ss:$16 sps:$4 sm:$0xff]   ;;  %v5998_v19 = vld [vmem:[#allocation15 + $0x1a8] ss:$16 sps:$4 sm:$0xff]  }
 0xb74   : > { %v6003_v20 = vld [vmem:[#allocation15 + $0x1cc] ss:$16 sps:$4 sm:$0xff]   ;;  %v6001_v21 = vld [vmem:[#allocation15 + $0x1c8] ss:$16 sps:$4 sm:$0xff]  }
 0xb75   : > { %2624 = vmatprep.mubr.bf16.mxu0 %v2387_v22  ;;  %v6006_v57 = vld [vmem:[#allocation15 + $0x1ec] ss:$16 sps:$4 sm:$0xff]   ;;  %v6004_v22 = vld [vmem:[#allocation15 + $0x1e8] ss:$16 sps:$4 sm:$0xff]  }
 0xb76   : > { %2625 = vmatmul.mubr.bf16.vlgmr.msra.gmra.mrb[24].mxu0 %v2386_v59 }
 0xb77   : > { %3116 = vmatprep.mubr.bf16.mxu0 %v7784_v29  ;;  %v2429_v29 = vrot.slane %v2420_v34, %v7560_v44  ;;  %3085 = vmatpush1.bf16.msra.mxu0 %v5959_v56 }
 0xb78   : > { %3086 = vmatprep.subr.bf16.mxu0 %v5964_v60 }
 0xb7b   : > { %3087 = vmatpush1.bf16.msra.mxu0 %v5962_v61  ;;  %v2718_v61 = vrot.slane %v7817_v62, %v7588_v35 }
 0xb7c   : > { %3088 = vmatprep.subr.bf16.mxu0 %v5967_v0 }
 0xb7f   : > { %3089 = vmatpush1.bf16.msra.mxu0 %v5965_v32 }
 0xb80   : > { %3090 = vmatprep.subr.bf16.mxu0 %v5970_v1 }
 0xb83   : > { %3091 = vmatpush1.bf16.msra.mxu0 %v5968_v33 }
 0xb84   : > { %3092 = vmatprep.subr.bf16.mxu0 %v5973_v38 }
 0xb87   : > { %3093 = vmatpush1.bf16.msra.mxu0 %v5971_v39 }
 0xb88   : > { %3094 = vmatprep.subr.bf16.mxu0 %v5976_v2 }
 0xb8b   : > { %3095 = vmatpush1.bf16.msra.mxu0 %v5974_v4 }
 0xb8c   : > { %3096 = vmatprep.subr.bf16.mxu0 %v5979_v5 }
 0xb8f   : > { %3097 = vmatpush1.bf16.msra.mxu0 %v5977_v6 }
 0xb90   : > { %3098 = vmatprep.subr.bf16.mxu0 %v5982_v51  ;;  %v2710_v51 = vrot.slane %v7817_v62, %v7560_v44 }
 0xb93   : > { %3099 = vmatpush1.bf16.msra.mxu0 %v5980_v52 }
 0xb94   : > { %3100 = vmatprep.subr.bf16.mxu0 %v5985_v8 }
 0xb97   : > { %3101 = vmatpush1.bf16.msra.mxu0 %v5983_v10  ;;  %v3080_v10 = vadd.f32 %v7821_v25, %v2710_v51  ;;  %v6043_v51 = vld [vmem:[#allocation18 + $0xc0] ss:$8 sps:$4 sm:$0xff]  }
 0xb98   : > { %3102 = vmatprep.subr.bf16.mxu0 %v5988_v36 }
 0xb9b   : > { %3103 = vmatpush1.bf16.msra.mxu0 %v5986_v11 }
 0xb9c   : > { %3104 = vmatprep.subr.bf16.mxu0 %v5991_v12 }
 0xb9f   : > { %3105 = vmatpush1.bf16.msra.mxu0 %v5989_v13  ;;  %v3244_v13 = vpack.c.bf16 %v3080_v10, %v3080_v10  ;;  %v6051_v10 = vld [vmem:[#allocation18 + $0xe4] ss:$8 sps:$4 sm:$0xff]  }
 0xba0   : > { %3106 = vmatprep.subr.bf16.mxu0 %v5994_v14 }
 0xba3   : > { %3107 = vmatpush1.bf16.msra.mxu0 %v5992_v15 }
 0xba4   : > { %3108 = vmatprep.subr.bf16.mxu0 %v5997_v16 }
 0xba7   : > { %3109 = vmatpush1.bf16.msra.mxu0 %v5995_v17 }
 0xba8   : > { %3110 = vmatprep.subr.bf16.mxu0 %v6000_v18 }
 0xbab   : > { %3111 = vmatpush1.bf16.msra.mxu0 %v5998_v19 }
 0xbac   : > { %3112 = vmatprep.subr.bf16.mxu0 %v6003_v20 }
 0xbaf   : > { %3113 = vmatpush1.bf16.msra.mxu0 %v6001_v21 }
 0xbb0   : > { %3114 = vmatprep.subr.bf16.mxu0 %v6006_v57 }
 0xbb3   : > { %3115 = vmatpush1.bf16.msra.mxu0 %v6004_v22 }
 0xbb6   : > { %3117 = vmatmul.mubr.bf16.vlgmr.msra.gmra.mrb[28].mxu0 %v7793_v42 }
 0xc49   : > { %v2626_v40 = vpop.f32.mrb[24].mxu0 }
 0xc4a   : > { %v2628_v41 = vpop.f32.mrb[25].mxu0  ;;  %v2627_v46 = vadd.f32 %v2626_v40, %v2425_v37 }
 0xc4b   : > { %v2630_v45 = vpop.f32.mrb[26].mxu0  ;;  %v7826_v50 = vadd.f32 %v2628_v41, %v2429_v29 }
 0xc4c   : > { %v2631_v47 = vadd.f32 %v2630_v45, %v2425_v37  ;;  %v2632_v48 = vpop.f32.mrb[27].mxu0 }
 0xc4d   : > { %v7828_v53 = vadd.f32 %v2632_v48, %v2429_v29 }
 0xc4e   : > { %v3125_v54 = vpack.c.bf16 %v2631_v47, %v2627_v46 }
 0xc4f   : > { %v3243_v55 = vpack.c.bf16 %v7828_v53, %v7826_v50 }
 0xc50   : > { %5424 = vmatmul.mubr.bf16.vlgmr.msra.gmra.mrb[12].mxu1 %v3125_v54 }
 0xc51   : > { %5429 = vmatprep.mubr.msk.bf16.mxu1 %vm6910_vm4, %v6909_v30 }
 0xc89   : > { %v3118_v56 = vpop.f32.mrb[28].mxu0 }
 0xc8a   : > { %v3120_v60 = vpop.f32.mrb[29].mxu0  ;;  %v3119_v32 = vadd.f32 %v3118_v56, %v2714_v58  ;;  %v6022_v56 = vld [vmem:[#allocation18 + $0x50] ss:$8 sps:$4 sm:$0xff]   ;;  %v6027_v58 = vld [vmem:[#allocation18 + $0x64] ss:$8 sps:$4 sm:$0xff]  }
 0xc8b   : > { %v3122_v0 = vpop.f32.mrb[30].mxu0  ;;  %v3121_v33 = vadd.f32 %v3120_v60, %v2718_v61  ;;  %v6025_v60 = vld [vmem:[#allocation18 + $0x60] ss:$8 sps:$4 sm:$0xff]   ;;  %v6030_v61 = vld [vmem:[#allocation18 + $0x74] ss:$8 sps:$4 sm:$0xff]  }
 0xc8c   : > { %v3123_v1 = vpop.f32.mrb[31].mxu0  ;;  %v3127_v38 = vpack.c.bf16 %v3119_v32, %v3119_v32  ;;  %v6028_v0 = vld [vmem:[#allocation18 + $0x70] ss:$8 sps:$4 sm:$0xff]   ;;  %v6033_v32 = vld [vmem:[#allocation18 + $0x84] ss:$8 sps:$4 sm:$0xff]  }
 0xc8d   : > { %v3245_v39 = vpack.c.bf16 %v3121_v33, %v3121_v33  ;;  %v6031_v1 = vld [vmem:[#allocation18 + $0x80] ss:$8 sps:$4 sm:$0xff]   ;;  %v6036_v33 = vld [vmem:[#allocation18 + $0x94] ss:$8 sps:$4 sm:$0xff]  }
 0xc8e   : > { %v3200_v2 = vsel %vm3198_vm11, %v3127_v38, 0  ;;  %v6034_v38 = vld [vmem:[#allocation18 + $0x90] ss:$8 sps:$4 sm:$0xff]  }
 0xc8f   : > { %v3316_v4 = vsel %vm3198_vm11, %v3245_v39, 0  ;;  %5428 = vmatpush3.bf16.msra.mxu1 %v3200_v2  ;;  %v6039_v39 = vld [vmem:[#allocation18 + $0xa4] ss:$8 sps:$4 sm:$0xff]   ;;  %v6037_v2 = vld [vmem:[#allocation18 + $0xa0] ss:$8 sps:$4 sm:$0xff]  }
 0xc90   : > { %5433 = vmatprep.subr.bf16.mxu1 %v6909_v30 }
 0xd23   : > { %v3162_v59 = vpop.f32.mrb[12].mxu1 }
 0xd24   : > { %v3169_v63 = vmul.f32 0.088388346, %v3162_v59  ;;  %v5425_v23 = vpop.f32.mrb[13].mxu1 }
 0xd25   : > { %v3165_v24 = vpop.f32.mrb[14].mxu1 }
 0xd26   : > { %v3170_v26 = vmul.f32 0.088388346, %v3165_v24  ;;  %v5426_v27 = vpop.f32.mrb[15].mxu1  ;;  %v3172_v28 = vsel %vm3171_vm10, %v3169_v63, -inf }
 0xd27   : > { %3173 = vmax.xlane.f32.xlu0 %v3172_v28 }
 0xd28   : > { %v3175_v34 = vsel %vm3171_vm10, %v3170_v26, -inf }
 0xd29   : > { %3176 = vmax.xlane.f32.xlu1 %v3175_v34  ;;  %v6007_v34 = vld [vmem:[#allocation18] ss:$8 sps:$4 sm:$0xff]  }
 0xdb4   : > { %v3174_v37 = vpop.xlane.xlu0 %3173 }
 0xdb5   : > { %v3178_v40 = vsub.f32 %v3169_v63, %v3174_v37  ;;  %v6009_v37 = vld [vmem:[#allocation18 + $0x4] ss:$8 sps:$4 sm:$0xff]  }
 0xdb6   : > { %v3177_v29 = vpop.xlane.xlu1 %3176  ;;  %3565 = vmatprep.subr.bf16.mxu0 %v6009_v37 }
 0xdb7   : > { %v3180_v41 = vmul.f32 1.442695, %v3178_v40  ;;  %v3179_v45 = vsub.f32 %v3170_v26, %v3177_v29  ;;  %v6012_v40 = vld [vmem:[#allocation18 + $0x14] ss:$8 sps:$4 sm:$0xff]   ;;  %3566 = vmatpush1.bf16.msra.mxu0 %v6007_v34  ;;  %v6010_v29 = vld [vmem:[#allocation18 + $0x10] ss:$8 sps:$4 sm:$0xff]  }
 0xdb8   : > { %3567 = vmatprep.subr.bf16.mxu0 %v6012_v40 }
 0xdb9   : > { %6279 = vpow2.f32 %v3180_v41  ;;  %v3182_v42 = vmul.f32 1.442695, %v3179_v45  ;;  %v6015_v41 = vld [vmem:[#allocation18 + $0x24] ss:$8 sps:$4 sm:$0xff]   ;;  %v6013_v45 = vld [vmem:[#allocation18 + $0x20] ss:$8 sps:$4 sm:$0xff]  }
 0xdbb   : > { %6281 = vpow2.f32 %v3182_v42  ;;  %3568 = vmatpush1.bf16.msra.mxu0 %v6010_v29  ;;  %v6018_v42 = vld [vmem:[#allocation18 + $0x34] ss:$8 sps:$4 sm:$0xff]  }
 0xdbc   : > { %3569 = vmatprep.subr.bf16.mxu0 %v6015_v41  ;;  %v6055_v41 = vld [vmem:[#allocation24] ss:$16 sps:$4 sm:$0xff]  }
 0xdbf   : > { %3570 = vmatpush1.bf16.msra.mxu0 %v6013_v45  ;;  %v6057_v45 = vld [vmem:[#allocation24 + $0x4] ss:$16 sps:$4 sm:$0xff]  }
 0xdc0   : > { %3571 = vmatprep.subr.bf16.mxu0 %v6018_v42  ;;  %v6058_v42 = vld [vmem:[#allocation24 + $0x8] ss:$16 sps:$4 sm:$0xff]  }
 0xdc3   : > { %v6280_v46 = vpop.eup %6279 }
 0xdc4   : > { %v3184_v47 = vsel %vm3171_vm10, %v6280_v46, 0.0 }
 0xdc5   : > { %v6282_v48 = vpop.eup %6281  ;;  %3185 = vadd.xlane.f32.xlu0 %v3184_v47  ;;  %v6021_v47 = vld [vmem:[#allocation18 + $0x44] ss:$8 sps:$4 sm:$0xff]  }
 0xdc6   : > { %v3187_v54 = vsel %vm3171_vm10, %v6282_v48, 0.0 }
 0xdc7   : > { %3188 = vadd.xlane.f32.xlu1 %v3187_v54  ;;  %v6024_v54 = vld [vmem:[#allocation18 + $0x54] ss:$8 sps:$4 sm:$0xff]  }
 0xe52   : > { %v3186_v5 = vpop.xlane.xlu0 %3185 }
 0xe53   : > { %6283 = vrcp.f32 %v3186_v5  ;;  %v6040_v5 = vld [vmem:[#allocation18 + $0xb0] ss:$8 sps:$4 sm:$0xff]  }
 0xe54   : > { %v3189_v6 = vpop.xlane.xlu1 %3188 }
 0xe55   : > { %6285 = vrcp.f32 %v3189_v6  ;;  %v6045_v6 = vld [vmem:[#allocation18 + $0xc4] ss:$8 sps:$4 sm:$0xff]  }
 0xe5d   : > { %v6284_v52 = vpop.eup %6283 }
 0xe5e   : > { %v3192_v36 = vmul.f32 %v6284_v52, %v6280_v46  ;;  %v6016_v46 = vld [vmem:[#allocation18 + $0x30] ss:$8 sps:$4 sm:$0xff]   ;;  %v6048_v52 = vld [vmem:[#allocation18 + $0xd4] ss:$8 sps:$4 sm:$0xff]  }
 0xe5f   : > { %v6286_v8 = vpop.eup %6285  ;;  %3572 = vmatpush1.bf16.msra.mxu0 %v6016_v46  ;;  %v6063_v46 = vld [vmem:[#allocation24 + $0x24] ss:$16 sps:$4 sm:$0xff]  }
 0xe60   : > { %v3193_v11 = vmul.f32 %v6286_v8, %v6282_v48  ;;  %v6019_v48 = vld [vmem:[#allocation18 + $0x40] ss:$8 sps:$4 sm:$0xff]   ;;  %3573 = vmatprep.subr.bf16.mxu0 %v6021_v47  ;;  %v6046_v8 = vld [vmem:[#allocation18 + $0xd0] ss:$8 sps:$4 sm:$0xff]  }
 0xe61   : > { %v6066_v47 = vld [vmem:[#allocation24 + $0x2c] ss:$16 sps:$4 sm:$0xff]  }
 0xe62   : > { %v3194_v12 = vpack.c.bf16 %v3193_v11, %v3192_v36  ;;  %v6049_v36 = vld [vmem:[#allocation18 + $0xe0] ss:$8 sps:$4 sm:$0xff]  }
 0xe63   : > { %3574 = vmatpush1.bf16.msra.mxu0 %v6019_v48  ;;  %v6069_v48 = vld [vmem:[#allocation24 + $0x44] ss:$16 sps:$4 sm:$0xff]  }
 0xe64   : > { %5430 = vmatmul.mubr.msk.bf16.vlgmr.msra.gmra.mrb[16].mxu1 %vm3171_vm10, %v3194_v12  ;;  %3575 = vmatprep.subr.bf16.mxu0 %v6024_v54  ;;  %v6072_v54 = vld [vmem:[#allocation24 + $0x4c] ss:$16 sps:$4 sm:$0xff]  }
 0xe65   : > { %5434 = vmatpush3.bf16.xpose.msra.mxu1 %v3244_v13  ;;  %5435 = vmatprep.mubr.msk.bf16.mxu1 %vm6910_vm4, %v6909_v30 }
 0xe66   : > { %5439 = vmatprep.subr.bf16.mxu1 %v6909_v30 }
 0xe67   : > { %3576 = vmatpush1.bf16.msra.mxu0 %v6022_v56  ;;  %v6067_v56 = vld [vmem:[#allocation24 + $0x40] ss:$16 sps:$4 sm:$0xff]  }
 0xe68   : > { %3577 = vmatprep.subr.bf16.mxu0 %v6027_v58  ;;  %v6070_v58 = vld [vmem:[#allocation24 + $0x48] ss:$16 sps:$4 sm:$0xff]  }
 0xe6b   : > { %3578 = vmatpush1.bf16.msra.mxu0 %v6025_v60  ;;  %v6075_v60 = vld [vmem:[#allocation24 + $0x64] ss:$16 sps:$4 sm:$0xff]  }
 0xe6c   : > { %5436 = vmatmul.mubr.bf16.vlgmr.msra.gmra.mrb[20].mxu1 %v3243_v55  ;;  %3579 = vmatprep.subr.bf16.mxu0 %v6030_v61  ;;  %v6078_v61 = vld [vmem:[#allocation24 + $0x6c] ss:$16 sps:$4 sm:$0xff]  }
 0xe6d   : > { %5440 = vmatpush3.bf16.msra.mxu1 %v3316_v4  ;;  %5441 = vmatprep.mubr.msk.bf16.mxu1 %vm6910_vm4, %v6909_v30  ;;  %v6042_v4 = vld [vmem:[#allocation18 + $0xb4] ss:$8 sps:$4 sm:$0xff]  }
 0xe6e   : > { %4098 = vmatprep.subr.bf16.mxu1 %v6057_v45  ;;  %v6118_v45 = vld [vmem:[#allocation24 + $0x148] ss:$16 sps:$4 sm:$0xff]  }
 0xe6f   : > { %3580 = vmatpush1.bf16.msra.mxu0 %v6028_v0  ;;  %v6073_v0 = vld [vmem:[#allocation24 + $0x60] ss:$16 sps:$4 sm:$0xff]  }
 0xe70   : > { %3581 = vmatprep.subr.bf16.mxu0 %v6033_v32  ;;  %v6076_v32 = vld [vmem:[#allocation24 + $0x68] ss:$16 sps:$4 sm:$0xff]  }
 0xe73   : > { %3582 = vmatpush1.bf16.msra.mxu0 %v6031_v1  ;;  %v6081_v1 = vld [vmem:[#allocation24 + $0x84] ss:$16 sps:$4 sm:$0xff]  }
 0xe74   : > { %3583 = vmatprep.subr.bf16.mxu0 %v6036_v33  ;;  %v6084_v33 = vld [vmem:[#allocation24 + $0x8c] ss:$16 sps:$4 sm:$0xff]  }
 0xe77   : > { %3584 = vmatpush1.bf16.msra.mxu0 %v6034_v38  ;;  %v6079_v38 = vld [vmem:[#allocation24 + $0x80] ss:$16 sps:$4 sm:$0xff]  }
 0xe78   : > { %3585 = vmatprep.subr.bf16.mxu0 %v6039_v39  ;;  %v6082_v39 = vld [vmem:[#allocation24 + $0x88] ss:$16 sps:$4 sm:$0xff]  }
 0xe7b   : > { %3586 = vmatpush1.bf16.msra.mxu0 %v6037_v2  ;;  %v6087_v2 = vld [vmem:[#allocation24 + $0xa4] ss:$16 sps:$4 sm:$0xff]  }
 0xe7c   : > { %3587 = vmatprep.subr.bf16.mxu0 %v6042_v4  ;;  %v6090_v4 = vld [vmem:[#allocation24 + $0xac] ss:$16 sps:$4 sm:$0xff]  }
 0xe7f   : > { %3588 = vmatpush1.bf16.msra.mxu0 %v6040_v5  ;;  %v6085_v5 = vld [vmem:[#allocation24 + $0xa0] ss:$16 sps:$4 sm:$0xff]  }
 0xe80   : > { %3589 = vmatprep.subr.bf16.mxu0 %v6045_v6  ;;  %v6088_v6 = vld [vmem:[#allocation24 + $0xa8] ss:$16 sps:$4 sm:$0xff]  }
 0xe83   : > { %3590 = vmatpush1.bf16.msra.mxu0 %v6043_v51  ;;  %v6093_v51 = vld [vmem:[#allocation24 + $0xc4] ss:$16 sps:$4 sm:$0xff]  }
 0xe84   : > { %3591 = vmatprep.subr.bf16.mxu0 %v6048_v52  ;;  %v6096_v52 = vld [vmem:[#allocation24 + $0xcc] ss:$16 sps:$4 sm:$0xff]  }
 0xe87   : > { %3592 = vmatpush1.bf16.msra.mxu0 %v6046_v8  ;;  %v6091_v8 = vld [vmem:[#allocation24 + $0xc0] ss:$16 sps:$4 sm:$0xff]  }
 0xe88   : > { %3593 = vmatprep.subr.bf16.mxu0 %v6051_v10  ;;  %v6094_v10 = vld [vmem:[#allocation24 + $0xc8] ss:$16 sps:$4 sm:$0xff]  }
 0xe8b   : > { %3594 = vmatpush1.bf16.msra.mxu0 %v6049_v36 }
 0xf37   : > { %v7856_v62 = vpop.f32.mrb[16].mxu1 }
 0xf38   : > { %v5431_v25 = vpop.f32.mrb[17].mxu1 }
 0xf39   : > { %v7858_v14 = vpop.f32.mrb[18].mxu1 }
 0xf3a   : > { %v3359_v15 = vpack.c.bf16 %v7858_v14, %v7856_v62  ;;  %v5432_v16 = vpop.f32.mrb[19].mxu1 }
 0xf3f   : > { %v3280_v17 = vpop.f32.mrb[20].mxu1 }
 0xf40   : > { %v3287_v18 = vmul.f32 0.088388346, %v3280_v17  ;;  %v5437_v19 = vpop.f32.mrb[21].mxu1 }
 0xf41   : > { %v3283_v20 = vpop.f32.mrb[22].mxu1  ;;  %v6054_v19 = vld [vmem:[#allocation18 + $0xf4] ss:$8 sps:$4 sm:$0xff]  }
 0xf42   : > { %v3288_v21 = vmul.f32 0.088388346, %v3283_v20  ;;  %v5438_v50 = vpop.f32.mrb[23].mxu1  ;;  %v3289_v53 = vsel %vm3171_vm10, %v3287_v18, -inf  ;;  %v6052_v20 = vld [vmem:[#allocation18 + $0xf0] ss:$8 sps:$4 sm:$0xff]   ;;  %3595 = vmatprep.subr.bf16.mxu0 %v6054_v19 }
 0xf43   : > { %3290 = vmax.xlane.f32.xlu0 %v3289_v53  ;;  %3596 = vmatpush1.bf16.msra.mxu0 %v6052_v20 }
 0xf44   : > { %v3292_v30 = vsel %vm3171_vm10, %v3288_v21, -inf }
 0xf45   : > { %3293 = vmax.xlane.f32.xlu1 %v3292_v30 }
 0xfd0   : > { %v3291_v55 = vpop.xlane.xlu0 %3290 }
 0xfd1   : > { %v3295_v57 = vsub.f32 %v3287_v18, %v3291_v55 }
 0xfd2   : > { %v3294_v22 = vpop.xlane.xlu1 %3293 }
 0xfd3   : > { %v3297_v59 = vmul.f32 1.442695, %v3295_v57  ;;  %v3296_v63 = vsub.f32 %v3288_v21, %v3294_v22  ;;  %v3393_v57 = vld [vmem:[#allocation19] sm:$0x3] }
 0xfd4   : > { %v3398_v22 = vrot.slane %v3393_v57, %v7557_v43 }
 0xfd5   : > { %6287 = vpow2.f32 %v3297_v59  ;;  %v3299_v23 = vmul.f32 1.442695, %v3296_v63  ;;  %v3402_v59 = vrot.slane %v3393_v57, %v7560_v44  ;;  %v6102_v57 = vld [vmem:[#allocation24 + $0xec] ss:$16 sps:$4 sm:$0xff]  }
 0xfd7   : > { %6289 = vpow2.f32 %v3299_v23 }
 0xfdf   : > { %v7864_v24 = vpop.eup %6287 }
 0xfe0   : > { %v3301_v26 = vsel %vm3171_vm10, %v7864_v24, 0.0 }
 0xfe1   : > { %v7868_v27 = vpop.eup %6289  ;;  %3302 = vadd.xlane.f32.xlu0 %v3301_v26 }
 0xfe2   : > { %v3304_v28 = vsel %vm3171_vm10, %v7868_v27, 0.0 }
 0xfe3   : > { %3305 = vadd.xlane.f32.xlu1 %v3304_v28 }
0x106e   : > { %v3303_v11 = vpop.xlane.xlu0 %3302 }
0x106f   : > { %6291 = vrcp.f32 %v3303_v11 }
0x1070   : > { %v3306_v12 = vpop.xlane.xlu1 %3305 }
0x1071   : > { %6293 = vrcp.f32 %v3306_v12 }
0x1079   : > { %v6292_v13 = vpop.eup %6291 }
0x107a   : > { %v3309_v16 = vmul.f32 %v6292_v13, %v7864_v24 }
0x107b   : > { %v6294_v25 = vpop.eup %6293 }
0x107c   : > { %v3310_v17 = vmul.f32 %v6294_v25, %v7868_v27 }
0x107e   : > { %v3311_v18 = vpack.c.bf16 %v3310_v17, %v3309_v16 }
0x1080   : > { %5442 = vmatmul.mubr.msk.bf16.vlgmr.msra.gmra.mrb[24].mxu1 %vm3171_vm10, %v3311_v18 }
0x1081   : > { %4099 = vmatpush1.bf16.msra.mxu1 %v6055_v41  ;;  %v6115_v41 = vld [vmem:[#allocation24 + $0x140] ss:$16 sps:$4 sm:$0xff]  }
0x1082   : > { %4100 = vmatprep.subr.bf16.mxu1 %v6063_v46  ;;  %v6124_v46 = vld [vmem:[#allocation24 + $0x168] ss:$16 sps:$4 sm:$0xff]  }
0x1153   : > { %v3352_v21 = vpop.f32.mrb[24].mxu1 }
0x1154   : > { %v5443_v50 = vpop.f32.mrb[25].mxu1 }
0x1155   : > { %v3355_v53 = vpop.f32.mrb[26].mxu1 }
0x1156   : > { %v3360_v30 = vpack.c.bf16 %v3355_v53, %v3352_v21  ;;  %v5444_v55 = vpop.f32.mrb[27].mxu1 }
0x1157   : > { %v6099_v55 = vld [vmem:[#allocation24 + $0xe4] ss:$16 sps:$4 sm:$0xff]  }
0x1158   : > { %3597 = vmatprep.mubr.bf16.mxu0 %v3360_v30 }
0x1159   : > { %3598 = vmatmul.mubr.bf16.vlgmr.msra.gmra.mrb[32].mxu0 %v3359_v15 }
0x122c   : > { %v3599_v63 = vpop.f32.mrb[32].mxu0 }
0x122d   : > { %v3600_v23 = vadd.f32 %v3599_v63, %v3398_v22  ;;  %v3601_v24 = vpop.f32.mrb[33].mxu0  ;;  %v6105_v63 = vld [vmem:[#allocation24 + $0x104] ss:$16 sps:$4 sm:$0xff]  }
0x122e   : > { %v3602_v26 = vadd.f32 %v3601_v24, %v3402_v59  ;;  %v3603_v27 = vpop.f32.mrb[34].mxu0  ;;  %v6103_v24 = vld [vmem:[#allocation24 + $0x100] ss:$16 sps:$4 sm:$0xff]  }
0x122f   : > { %v7881_v28 = vadd.f32 %v3600_v23, %v7663_v3  ;;  %v3604_v34 = vadd.f32 %v3603_v27, %v3398_v22  ;;  %v3605_v37 = vpop.f32.mrb[35].mxu0  ;;  %v6097_v22 = vld [vmem:[#allocation24 + $0xe0] ss:$16 sps:$4 sm:$0xff]   ;;  %v6108_v23 = vld [vmem:[#allocation24 + $0x10c] ss:$16 sps:$4 sm:$0xff]  }
0x1230   : > { %v7884_v40 = vadd.f32 %v3602_v26, %v7666_v49  ;;  %v3606_v62 = vadd.f32 %v3605_v37, %v3402_v59  ;;  %v6060_v49 = vld [vmem:[#allocation24 + $0xc] ss:$16 sps:$4 sm:$0xff]   ;;  %v6100_v59 = vld [vmem:[#allocation24 + $0xe8] ss:$16 sps:$4 sm:$0xff]   ;;  %v6111_v27 = vld [vmem:[#allocation24 + $0x124] ss:$16 sps:$4 sm:$0xff]  }
0x1231   : > { %v7887_v14 = vadd.f32 %v3604_v34, %v7669_v7  ;;  %4141 = vmatprep.subr.bf16.mxu0 %v6060_v49  ;;  %v6061_v7 = vld [vmem:[#allocation24 + $0x20] ss:$16 sps:$4 sm:$0xff]   ;;  %v6106_v26 = vld [vmem:[#allocation24 + $0x108] ss:$16 sps:$4 sm:$0xff]   ;;  %v6114_v34 = vld [vmem:[#allocation24 + $0x12c] ss:$16 sps:$4 sm:$0xff]  }
0x1232   : > { %v7890_v15 = vadd.f32 %v3606_v62, %v7672_v9  ;;  %v3614_v29 = vadd.f32 %v7884_v40, %v7881_v28  ;;  %4142 = vmatpush1.bf16.msra.mxu0 %v6058_v42  ;;  %v6064_v9 = vld [vmem:[#allocation24 + $0x28] ss:$16 sps:$4 sm:$0xff]   ;;  %4101 = vmatpush1.bf16.msra.mxu1 %v6061_v7  ;;  %v6109_v37 = vld [vmem:[#allocation24 + $0x120] ss:$16 sps:$4 sm:$0xff]   ;;  %v6123_v49 = vld [vmem:[#allocation24 + $0x164] ss:$16 sps:$4 sm:$0xff]  }
0x1233   : > { %4143 = vmatprep.subr.bf16.mxu0 %v6066_v47  ;;  %4102 = vmatprep.subr.bf16.mxu1 %v6069_v48  ;;  %v6112_v62 = vld [vmem:[#allocation24 + $0x128] ss:$16 sps:$4 sm:$0xff]   ;;  %v6121_v42 = vld [vmem:[#allocation24 + $0x160] ss:$16 sps:$4 sm:$0xff]   ;;  %v6126_v47 = vld [vmem:[#allocation24 + $0x16c] ss:$16 sps:$4 sm:$0xff]  }
0x1234   : > { %3615 = vadd.xlane.f32.xlu0 %v3614_v29  ;;  %v3617_v3 = vadd.f32 %v7890_v15, %v7887_v14  ;;  %v6117_v29 = vld [vmem:[#allocation24 + $0x144] ss:$16 sps:$4 sm:$0xff]   ;;  %v6127_v48 = vld [vmem:[#allocation24 + $0x180] ss:$16 sps:$4 sm:$0xff]  }
0x1235   : > { %v6129_v7 = vld [vmem:[#allocation24 + $0x184] ss:$16 sps:$4 sm:$0xff]  }
0x1236   : > { %3618 = vadd.xlane.f32.xlu1 %v3617_v3  ;;  %4144 = vmatpush1.bf16.msra.mxu0 %v6064_v9  ;;  %v6120_v3 = vld [vmem:[#allocation24 + $0x14c] ss:$16 sps:$4 sm:$0xff]  }
0x1237   : > { %4145 = vmatprep.subr.bf16.mxu0 %v6072_v54  ;;  %4103 = vmatpush1.bf16.msra.mxu1 %v6067_v56  ;;  %v6132_v9 = vld [vmem:[#allocation24 + $0x18c] ss:$16 sps:$4 sm:$0xff]   ;;  %v6130_v54 = vld [vmem:[#allocation24 + $0x188] ss:$16 sps:$4 sm:$0xff]   ;;  %v6135_v56 = vld [vmem:[#allocation24 + $0x1a4] ss:$16 sps:$4 sm:$0xff]  }
0x1238   : > { %4104 = vmatprep.subr.bf16.mxu1 %v6075_v60  ;;  %v6133_v60 = vld [vmem:[#allocation24 + $0x1a0] ss:$16 sps:$4 sm:$0xff]  }
0x123a   : > { %4146 = vmatpush1.bf16.msra.mxu0 %v6070_v58  ;;  %v6138_v58 = vld [vmem:[#allocation24 + $0x1ac] ss:$16 sps:$4 sm:$0xff]  }
0x123b   : > { %4147 = vmatprep.subr.bf16.mxu0 %v6078_v61  ;;  %4105 = vmatpush1.bf16.msra.mxu1 %v6073_v0  ;;  %v6136_v61 = vld [vmem:[#allocation24 + $0x1a8] ss:$16 sps:$4 sm:$0xff]   ;;  %v6141_v0 = vld [vmem:[#allocation24 + $0x1c4] ss:$16 sps:$4 sm:$0xff]  }
0x123c   : > { %4106 = vmatprep.subr.bf16.mxu1 %v6081_v1  ;;  %v6139_v1 = vld [vmem:[#allocation24 + $0x1c0] ss:$16 sps:$4 sm:$0xff]  }
0x123e   : > { %4148 = vmatpush1.bf16.msra.mxu0 %v6076_v32  ;;  %v6144_v32 = vld [vmem:[#allocation24 + $0x1cc] ss:$16 sps:$4 sm:$0xff]  }
0x123f   : > { %4149 = vmatprep.subr.bf16.mxu0 %v6084_v33  ;;  %4107 = vmatpush1.bf16.msra.mxu1 %v6079_v38  ;;  %v6142_v33 = vld [vmem:[#allocation24 + $0x1c8] ss:$16 sps:$4 sm:$0xff]   ;;  %v6147_v38 = vld [vmem:[#allocation24 + $0x1e4] ss:$16 sps:$4 sm:$0xff]  }
0x1240   : > { %4108 = vmatprep.subr.bf16.mxu1 %v6087_v2  ;;  %v6145_v2 = vld [vmem:[#allocation24 + $0x1e0] ss:$16 sps:$4 sm:$0xff]  }
0x1242   : > { %4150 = vmatpush1.bf16.msra.mxu0 %v6082_v39  ;;  %v6150_v39 = vld [vmem:[#allocation24 + $0x1ec] ss:$16 sps:$4 sm:$0xff]  }
0x1243   : > { %4151 = vmatprep.subr.bf16.mxu0 %v6090_v4  ;;  %4109 = vmatpush1.bf16.msra.mxu1 %v6085_v5  ;;  %v6148_v4 = vld [vmem:[#allocation24 + $0x1e8] ss:$16 sps:$4 sm:$0xff]  }
0x1244   : > { %4110 = vmatprep.subr.bf16.mxu1 %v6093_v51  ;;  %v6153_v5 = vld [vmem:[#allocation27 + $0x4] ss:$8 sps:$4 sm:$0xff]  }
0x1246   : > { %4152 = vmatpush1.bf16.msra.mxu0 %v6088_v6 }
0x1247   : > { %4153 = vmatprep.subr.bf16.mxu0 %v6096_v52  ;;  %4111 = vmatpush1.bf16.msra.mxu1 %v6091_v8 }
0x1248   : > { %4112 = vmatprep.subr.bf16.mxu1 %v6099_v55 }
0x124a   : > { %4154 = vmatpush1.bf16.msra.mxu0 %v6094_v10 }
0x124b   : > { %4155 = vmatprep.subr.bf16.mxu0 %v6102_v57  ;;  %4113 = vmatpush1.bf16.msra.mxu1 %v6097_v22  ;;  %v3612_v57 = vld [vmem:[#allocation21] sm:$0x3] }
0x124c   : > { %4114 = vmatprep.subr.bf16.mxu1 %v6105_v63  ;;  %v3656_v22 = vrot.slane %v3612_v57, %v7557_v43  ;;  %v3613_v63 = vld [vmem:[#allocation22] sm:$0x3] }
0x124e   : > { %4156 = vmatpush1.bf16.msra.mxu0 %v6100_v59  ;;  %v3660_v59 = vrot.slane %v3612_v57, %v7560_v44 }
0x124f   : > { %4157 = vmatprep.subr.bf16.mxu0 %v6108_v23  ;;  %4115 = vmatpush1.bf16.msra.mxu1 %v6103_v24 }
0x1250   : > { %4116 = vmatprep.subr.bf16.mxu1 %v6111_v27 }
0x1252   : > { %4158 = vmatpush1.bf16.msra.mxu0 %v6106_v26 }
0x1253   : > { %4159 = vmatprep.subr.bf16.mxu0 %v6114_v34  ;;  %4117 = vmatpush1.bf16.msra.mxu1 %v6109_v37  ;;  %v3679_v37 = vrot.slane %v3613_v63, %v7557_v43 }
0x1254   : > { %4118 = vmatprep.subr.bf16.mxu1 %v6117_v29 }
0x1256   : > { %4160 = vmatpush1.bf16.msra.mxu0 %v6112_v62  ;;  %v3683_v62 = vrot.slane %v3613_v63, %v7560_v44 }
0x1257   : > { %4161 = vmatprep.subr.bf16.mxu0 %v6120_v3  ;;  %4119 = vmatpush1.bf16.msra.mxu1 %v6115_v41 }
0x1258   : > { %4120 = vmatprep.subr.bf16.mxu1 %v6123_v49 }
0x125a   : > { %4162 = vmatpush1.bf16.msra.mxu0 %v6118_v45 }
0x125b   : > { %4163 = vmatprep.subr.bf16.mxu0 %v6126_v47  ;;  %4121 = vmatpush1.bf16.msra.mxu1 %v6121_v42 }
0x125c   : > { %4122 = vmatprep.subr.bf16.mxu1 %v6129_v7 }
0x125e   : > { %4164 = vmatpush1.bf16.msra.mxu0 %v6124_v46 }
0x125f   : > { %4165 = vmatprep.subr.bf16.mxu0 %v6132_v9  ;;  %4123 = vmatpush1.bf16.msra.mxu1 %v6127_v48  ;;  %v6151_v9 = vld [vmem:[#allocation27] ss:$8 sps:$4 sm:$0xff]   ;;  %v6156_v48 = vld [vmem:[#allocation27 + $0x14] ss:$8 sps:$4 sm:$0xff]  }
0x1260   : > { %4124 = vmatprep.subr.bf16.mxu1 %v6135_v56  ;;  %v6162_v56 = vld [vmem:[#allocation27 + $0x34] ss:$8 sps:$4 sm:$0xff]  }
0x1262   : > { %4166 = vmatpush1.bf16.msra.mxu0 %v6130_v54  ;;  %v6157_v54 = vld [vmem:[#allocation27 + $0x20] ss:$8 sps:$4 sm:$0xff]  }
0x1263   : > { %4167 = vmatprep.subr.bf16.mxu0 %v6138_v58  ;;  %4125 = vmatpush1.bf16.msra.mxu1 %v6133_v60  ;;  %v6160_v58 = vld [vmem:[#allocation27 + $0x30] ss:$8 sps:$4 sm:$0xff]   ;;  %v6165_v60 = vld [vmem:[#allocation27 + $0x44] ss:$8 sps:$4 sm:$0xff]  }
0x1264   : > { %4126 = vmatprep.subr.bf16.mxu1 %v6141_v0  ;;  %v6168_v0 = vld [vmem:[#allocation27 + $0x54] ss:$8 sps:$4 sm:$0xff]  }
0x1266   : > { %4168 = vmatpush1.bf16.msra.mxu0 %v6136_v61  ;;  %v6163_v61 = vld [vmem:[#allocation27 + $0x40] ss:$8 sps:$4 sm:$0xff]  }
0x1267   : > { %4169 = vmatprep.subr.bf16.mxu0 %v6144_v32  ;;  %4127 = vmatpush1.bf16.msra.mxu1 %v6139_v1  ;;  %v6166_v32 = vld [vmem:[#allocation27 + $0x50] ss:$8 sps:$4 sm:$0xff]   ;;  %v6171_v1 = vld [vmem:[#allocation27 + $0x64] ss:$8 sps:$4 sm:$0xff]  }
0x1268   : > { %4128 = vmatprep.subr.bf16.mxu1 %v6147_v38  ;;  %v6174_v38 = vld [vmem:[#allocation27 + $0x74] ss:$8 sps:$4 sm:$0xff]  }
0x126a   : > { %4170 = vmatpush1.bf16.msra.mxu0 %v6142_v33  ;;  %v6169_v33 = vld [vmem:[#allocation27 + $0x60] ss:$8 sps:$4 sm:$0xff]  }
0x126b   : > { %4171 = vmatprep.subr.bf16.mxu0 %v6150_v39  ;;  %4129 = vmatpush1.bf16.msra.mxu1 %v6145_v2  ;;  %v6172_v39 = vld [vmem:[#allocation27 + $0x70] ss:$8 sps:$4 sm:$0xff]   ;;  %v6177_v2 = vld [vmem:[#allocation27 + $0x84] ss:$8 sps:$4 sm:$0xff]  }
0x126c   : > { %4592 = vmatprep.subr.bf16.mxu1 %v6153_v5  ;;  %v6180_v5 = vld [vmem:[#allocation27 + $0x94] ss:$8 sps:$4 sm:$0xff]  }
0x126e   : > { %4172 = vmatpush1.bf16.msra.mxu0 %v6148_v4  ;;  %v6175_v4 = vld [vmem:[#allocation27 + $0x80] ss:$8 sps:$4 sm:$0xff]  }
0x12c1   : > { %v3616_v36 = vpop.xlane.xlu0 %3615 }
0x12c2   : > { %v3620_v11 = vmul.f32 0.00390625, %v3616_v36 }
0x12c3   : > { %v3619_v12 = vpop.xlane.xlu1 %3618 }
0x12c4   : > { %v7897_v13 = vsub.f32 %v7881_v28, %v3620_v11  ;;  %v7900_v25 = vsub.f32 %v7884_v40, %v3620_v11  ;;  %v3621_v16 = vmul.f32 0.00390625, %v3619_v12 }
0x12c6   : > { %v7903_v17 = vsub.f32 %v7887_v14, %v3621_v16  ;;  %v7906_v18 = vsub.f32 %v7890_v15, %v3621_v16  ;;  %v3626_v19 = vmul.f32 %v7897_v13, %v7897_v13  ;;  %v3627_v20 = vmul.f32 %v7900_v25, %v7900_v25 }
0x12c7   : > { %v3663_v23 = vmul.f32 %v3656_v22, %v7897_v13  ;;  %v3664_v24 = vmul.f32 %v3660_v59, %v7900_v25 }
0x12c8   : > { %v3628_v21 = vmul.f32 %v7903_v17, %v7903_v17  ;;  %v3629_v50 = vmul.f32 %v7906_v18, %v7906_v18  ;;  %v3630_v53 = vadd.f32 %v3627_v20, %v3626_v19  ;;  %v3665_v27 = vmul.f32 %v3656_v22, %v7903_v17  ;;  %v6154_v17 = vld [vmem:[#allocation27 + $0x10] ss:$8 sps:$4 sm:$0xff]  }
0x12c9   : > { %v3666_v34 = vmul.f32 %v3660_v59, %v7906_v18  ;;  %v6159_v18 = vld [vmem:[#allocation27 + $0x24] ss:$8 sps:$4 sm:$0xff]  }
0x12ca   : > { %v3633_v30 = vadd.f32 %v3629_v50, %v3628_v21  ;;  %3631 = vadd.xlane.f32.xlu0 %v3630_v53 }
0x12cc   : > { %3634 = vadd.xlane.f32.xlu1 %v3633_v30 }
0x1357   : > { %v3632_v6 = vpop.xlane.xlu0 %3631 }
0x1358   : > { %v3636_v51 = vmul.f32 0.003921569, %v3632_v6  ;;  %v6178_v6 = vld [vmem:[#allocation27 + $0x90] ss:$8 sps:$4 sm:$0xff]  }
0x1359   : > { %v3635_v52 = vpop.xlane.xlu1 %3634 }
0x135a   : > { %v3637_v8 = vmul.f32 0.003921569, %v3635_v52  ;;  %6295 = vrsqrt.f32 %v3636_v51  ;;  %vm3640_vm12 = vcmp.eq.f32.partialorder %v3636_v51, inf  ;;  %v3643_v12 = vand.u32 2147483648, %v3636_v51  ;;  %v6181_v52 = vld [vmem:[#allocation27 + $0xa0] ss:$8 sps:$4 sm:$0xff]  }
0x135b   : > { %vm3642_vm13 = vcmp.eq.f32.partialorder %v3636_v51, 0.0 }
0x135c   : > { %6297 = vrsqrt.f32 %v3637_v8  ;;  %vm3647_vm14 = vcmp.eq.f32.partialorder %v3637_v8, inf  ;;  %v3650_v20 = vand.u32 2147483648, %v3637_v8  ;;  %vm3649_vm15 = vcmp.eq.f32.partialorder %v3637_v8, 0.0 }
0x1364   : > { %v6296_v10 = vpop.eup %6295 }
0x1365   : > { %v3639_v11 = vmul.f32 %v6296_v10, %v3636_v51  ;;  %v6184_v10 = vld [vmem:[#allocation27 + $0xb0] ss:$8 sps:$4 sm:$0xff]  }
0x1366   : > { %v6298_v36 = vpop.eup %6297 }
0x1367   : > { %v3646_v16 = vmul.f32 %v6298_v36, %v3637_v8  ;;  %v3641_v19 = vsel %vm3640_vm12, %v3636_v51, %v3639_v11  ;;  %v6183_v51 = vld [vmem:[#allocation27 + $0xa4] ss:$8 sps:$4 sm:$0xff]   ;;  %v6187_v11 = vld [vmem:[#allocation27 + $0xc0] ss:$8 sps:$4 sm:$0xff]  }
0x1368   : > { %v3644_v50 = vsel %vm3642_vm13, %v3643_v12, %v3641_v19  ;;  %v6189_v36 = vld [vmem:[#allocation27 + $0xc4] ss:$8 sps:$4 sm:$0xff]   ;;  %v6192_v12 = vld [vmem:[#allocation27 + $0xd4] ss:$8 sps:$4 sm:$0xff]  }
0x1369   : > { %v3648_v21 = vsel %vm3647_vm14, %v3637_v8, %v3646_v16  ;;  %v3667_v30 = vadd.f32 1e-06, %v3644_v50  ;;  %v6186_v8 = vld [vmem:[#allocation27 + $0xb4] ss:$8 sps:$4 sm:$0xff]   ;;  %v6190_v16 = vld [vmem:[#allocation27 + $0xd0] ss:$8 sps:$4 sm:$0xff]  }
0x136a   : > { %v3651_v53 = vsel %vm3649_vm15, %v3650_v20, %v3648_v21  ;;  %v6195_v19 = vld [vmem:[#allocation27 + $0xe4] ss:$8 sps:$4 sm:$0xff]   ;;  %v6193_v20 = vld [vmem:[#allocation27 + $0xe0] ss:$8 sps:$4 sm:$0xff]   ;;  %v6198_v21 = vld [vmem:[#allocation27 + $0xf4] ss:$8 sps:$4 sm:$0xff]  }
0x136b   : > { %v3668_v55 = vadd.f32 1e-06, %v3651_v53  ;;  %6299 = vrcp.f32 %v3667_v30  ;;  %v6196_v50 = vld [vmem:[#allocation27 + $0xf0] ss:$8 sps:$4 sm:$0xff]   ;;  %v6201_v53 = vld [vmem:[#allocation27 + $0x104] ss:$8 sps:$4 sm:$0xff]  }
0x136c   : > { %v3756_v30 = vld [vmem:[#allocation25] sm:$0xf] }
0x136d   : > { %6301 = vrcp.f32 %v3668_v55  ;;  %v3761_v55 = vrot.slane %v3756_v30, %v7557_v43  ;;  %v3769_v57 = vrot.slane %v3756_v30, %v7582_v31  ;;  %v3765_v22 = vrot.slane %v3756_v30, %v7560_v44 }
0x136e   : > { %v3773_v59 = vrot.slane %v3756_v30, %v7588_v35  ;;  %v6240_v30 = vld [vmem:[#allocation27 + $0x1d4] ss:$8 sps:$4 sm:$0xff]  }
0x1375   : > { %v6300_v26 = vpop.eup %6299 }
0x1376   : > { %v3671_v3 = vmul.f32 %v6300_v26, %v3664_v24  ;;  %v3670_v41 = vmul.f32 %v6300_v26, %v3663_v23 }
0x1377   : > { %v6302_v29 = vpop.eup %6301 }
0x1378   : > { %v3674_v45 = vmul.f32 %v6302_v29, %v3666_v34  ;;  %v3673_v42 = vmul.f32 %v6302_v29, %v3665_v27  ;;  %v3687_v49 = vadd.f32 %v3683_v62, %v3671_v3  ;;  %v3686_v47 = vadd.f32 %v3679_v37, %v3670_v41 }
0x137a   : > { %v3689_v46 = vadd.f32 %v3683_v62, %v3674_v45  ;;  %v3688_v13 = vadd.f32 %v3679_v37, %v3673_v42 }
0x137c   : > { %v3691_v7 = vpack.c.bf16 %v3689_v46, %v3687_v49  ;;  %v3690_v25 = vpack.c.bf16 %v3688_v13, %v3686_v47 }
0x137e   : > { %4130 = vmatprep.mubr.bf16.mxu1 %v3691_v7  ;;  %4173 = vmatprep.mubr.bf16.mxu0 %v3691_v7 }
0x137f   : > { %4131 = vmatmul.mubr.bf16.vlgmr.msra.gmra.mrb[28].mxu1 %v3690_v25  ;;  %4174 = vmatmul.mubr.bf16.vlgmr.msra.gmra.mrb[36].mxu0 %v3690_v25 }
0x1380   : > { %4593 = vmatpush1.bf16.msra.mxu1 %v6151_v9 }
0x1381   : > { %4594 = vmatprep.subr.bf16.mxu1 %v6156_v48 }
0x1384   : > { %4595 = vmatpush1.bf16.msra.mxu1 %v6154_v17 }
0x1385   : > { %4596 = vmatprep.subr.bf16.mxu1 %v6159_v18 }
0x1388   : > { %4597 = vmatpush1.bf16.msra.mxu1 %v6157_v54 }
0x1389   : > { %4598 = vmatprep.subr.bf16.mxu1 %v6162_v56 }
0x138c   : > { %4599 = vmatpush1.bf16.msra.mxu1 %v6160_v58 }
0x138d   : > { %4600 = vmatprep.subr.bf16.mxu1 %v6165_v60  ;;  %v6199_v60 = vld [vmem:[#allocation27 + $0x100] ss:$8 sps:$4 sm:$0xff]  }
0x1390   : > { %4601 = vmatpush1.bf16.msra.mxu1 %v6163_v61  ;;  %v6204_v61 = vld [vmem:[#allocation27 + $0x114] ss:$8 sps:$4 sm:$0xff]  }
0x1391   : > { %4602 = vmatprep.subr.bf16.mxu1 %v6168_v0  ;;  %v6202_v0 = vld [vmem:[#allocation27 + $0x110] ss:$8 sps:$4 sm:$0xff]  }
0x1394   : > { %4603 = vmatpush1.bf16.msra.mxu1 %v6166_v32  ;;  %v6207_v32 = vld [vmem:[#allocation27 + $0x124] ss:$8 sps:$4 sm:$0xff]  }
0x1395   : > { %4604 = vmatprep.subr.bf16.mxu1 %v6171_v1  ;;  %v6205_v1 = vld [vmem:[#allocation27 + $0x120] ss:$8 sps:$4 sm:$0xff]  }
0x1398   : > { %4605 = vmatpush1.bf16.msra.mxu1 %v6169_v33  ;;  %v6210_v33 = vld [vmem:[#allocation27 + $0x134] ss:$8 sps:$4 sm:$0xff]  }
0x1399   : > { %4606 = vmatprep.subr.bf16.mxu1 %v6174_v38  ;;  %v6208_v38 = vld [vmem:[#allocation27 + $0x130] ss:$8 sps:$4 sm:$0xff]  }
0x139c   : > { %4607 = vmatpush1.bf16.msra.mxu1 %v6172_v39  ;;  %v6213_v39 = vld [vmem:[#allocation27 + $0x144] ss:$8 sps:$4 sm:$0xff]  }
0x139d   : > { %4608 = vmatprep.subr.bf16.mxu1 %v6177_v2  ;;  %v6211_v2 = vld [vmem:[#allocation27 + $0x140] ss:$8 sps:$4 sm:$0xff]  }
0x13a0   : > { %4609 = vmatpush1.bf16.msra.mxu1 %v6175_v4  ;;  %v6216_v4 = vld [vmem:[#allocation27 + $0x154] ss:$8 sps:$4 sm:$0xff]  }
0x13a1   : > { %4610 = vmatprep.subr.bf16.mxu1 %v6180_v5  ;;  %v6214_v5 = vld [vmem:[#allocation27 + $0x150] ss:$8 sps:$4 sm:$0xff]  }
0x13a4   : > { %4611 = vmatpush1.bf16.msra.mxu1 %v6178_v6  ;;  %v6219_v6 = vld [vmem:[#allocation27 + $0x164] ss:$8 sps:$4 sm:$0xff]  }
0x13a5   : > { %4612 = vmatprep.subr.bf16.mxu1 %v6183_v51  ;;  %v6217_v51 = vld [vmem:[#allocation27 + $0x160] ss:$8 sps:$4 sm:$0xff]  }
0x13a8   : > { %4613 = vmatpush1.bf16.msra.mxu1 %v6181_v52  ;;  %v6222_v52 = vld [vmem:[#allocation27 + $0x174] ss:$8 sps:$4 sm:$0xff]  }
0x13a9   : > { %4614 = vmatprep.subr.bf16.mxu1 %v6186_v8  ;;  %v6220_v8 = vld [vmem:[#allocation27 + $0x170] ss:$8 sps:$4 sm:$0xff]  }
0x13ac   : > { %4615 = vmatpush1.bf16.msra.mxu1 %v6184_v10  ;;  %v6225_v10 = vld [vmem:[#allocation27 + $0x184] ss:$8 sps:$4 sm:$0xff]  }
0x13ad   : > { %4616 = vmatprep.subr.bf16.mxu1 %v6189_v36  ;;  %v6223_v36 = vld [vmem:[#allocation27 + $0x180] ss:$8 sps:$4 sm:$0xff]  }
0x13b0   : > { %4617 = vmatpush1.bf16.msra.mxu1 %v6187_v11  ;;  %v6228_v11 = vld [vmem:[#allocation27 + $0x194] ss:$8 sps:$4 sm:$0xff]  }
0x13b1   : > { %4618 = vmatprep.subr.bf16.mxu1 %v6192_v12  ;;  %v6226_v12 = vld [vmem:[#allocation27 + $0x190] ss:$8 sps:$4 sm:$0xff]  }
0x13b4   : > { %4619 = vmatpush1.bf16.msra.mxu1 %v6190_v16  ;;  %v6231_v16 = vld [vmem:[#allocation27 + $0x1a4] ss:$8 sps:$4 sm:$0xff]  }
0x13b5   : > { %4620 = vmatprep.subr.bf16.mxu1 %v6195_v19  ;;  %v6229_v19 = vld [vmem:[#allocation27 + $0x1a0] ss:$8 sps:$4 sm:$0xff]  }
0x13b8   : > { %4621 = vmatpush1.bf16.msra.mxu1 %v6193_v20  ;;  %v6234_v20 = vld [vmem:[#allocation27 + $0x1b4] ss:$8 sps:$4 sm:$0xff]  }
0x13b9   : > { %4622 = vmatprep.subr.bf16.mxu1 %v6198_v21  ;;  %v6232_v21 = vld [vmem:[#allocation27 + $0x1b0] ss:$8 sps:$4 sm:$0xff]  }
0x13bc   : > { %4623 = vmatpush1.bf16.msra.mxu1 %v6196_v50  ;;  %v6237_v50 = vld [vmem:[#allocation27 + $0x1c4] ss:$8 sps:$4 sm:$0xff]  }
0x13bd   : > { %4635 = vmatprep.subr.bf16.mxu1 %v6201_v53  ;;  %v6235_v53 = vld [vmem:[#allocation27 + $0x1c0] ss:$8 sps:$4 sm:$0xff]  }
0x1452   : > { %v4132_v63 = vpop.f32.mrb[28].mxu1  ;;  %v4175_v23 = vpop.f32.mrb[36].mxu0 }
0x1453   : > { %v4133_v24 = vadd.f32 %v4132_v63, %v3761_v55  ;;  %v4176_v26 = vadd.f32 %v4175_v23, %v3769_v57  ;;  %v4134_v27 = vpop.f32.mrb[29].mxu1  ;;  %v4177_v34 = vpop.f32.mrb[37].mxu0  ;;  %v6244_v63 = vld [vmem:[#allocation27 + $0x1f0] ss:$8 sps:$4 sm:$0xff]   ;;  %v4260_v23 = vld [vmem:[#allocation28] sm:$0x3] }
0x1454   : > { %v4135_v37 = vadd.f32 %v4134_v27, %v3765_v22  ;;  %v4178_v62 = vadd.f32 %v4177_v34, %v3773_v59  ;;  %v4136_v29 = vpop.f32.mrb[30].mxu1  ;;  %v4179_v3 = vpop.f32.mrb[38].mxu0 }
0x1455   : > { %v4137_v41 = vadd.f32 %v4136_v29, %v3761_v55  ;;  %v4180_v45 = vadd.f32 %v4179_v3, %v3769_v57  ;;  %v4138_v42 = vpop.f32.mrb[31].mxu1  ;;  %v4181_v49 = vpop.f32.mrb[39].mxu0  ;;  %v4184_v47 = vmax.f32 %v4133_v24, 0.0  ;;  %v4186_v13 = vmax.f32 %v4176_v26, 0.0  ;;  %v6238_v55 = vld [vmem:[#allocation27 + $0x1d0] ss:$8 sps:$4 sm:$0xff]  }
0x1456   : > { %v4139_v46 = vadd.f32 %v4138_v42, %v3765_v22  ;;  %v4182_v31 = vadd.f32 %v4181_v49, %v3773_v59  ;;  %v4185_v25 = vmax.f32 %v4135_v37, 0.0  ;;  %v4187_v9 = vmax.f32 %v4178_v62, 0.0  ;;  %v6243_v57 = vld [vmem:[#allocation27 + $0x1e4] ss:$8 sps:$4 sm:$0xff]   ;;  %v6241_v22 = vld [vmem:[#allocation27 + $0x1e0] ss:$8 sps:$4 sm:$0xff]  }
0x1457   : > { %v4188_v7 = vmax.f32 %v4137_v41, 0.0  ;;  %v4190_v35 = vmax.f32 %v4180_v45, 0.0  ;;  %v6246_v59 = vld [vmem:[#allocation27 + $0x1f4] ss:$8 sps:$4 sm:$0xff]   ;;  %v4265_v24 = vrot.slane %v4260_v23, %v7557_v43  ;;  %v4269_v26 = vrot.slane %v4260_v23, %v7560_v44 }
0x1458   : > { %v4189_v48 = vmax.f32 %v4139_v46, 0.0  ;;  %v4191_v17 = vmax.f32 %v4182_v31, 0.0 }
0x1459   : > { %v4192_v18 = vpack.c.bf16 %v4188_v7, %v4184_v47  ;;  %v7928_v54 = vpack.c.bf16 %v4190_v35, %v4186_v13 }
0x145a   : > { %v4193_v56 = vpack.c.bf16 %v4189_v48, %v4185_v25  ;;  %v4195_v58 = vpack.c.bf16 %v4191_v17, %v4187_v9 }
0x145c   : > { %4624 = vmatprep.mubr.bf16.mxu1 %v4193_v56 }
0x145d   : > { %4625 = vmatmul.mubr.bf16.vlgmr.msra.gmra.mrb[32].mxu1 %v4192_v18 }
0x145e   : > { %4636 = vmatpush1.bf16.msra.mxu1 %v6199_v60  ;;  %4667 = vmatprep.mubr.bf16.mxu1 %v4195_v58 }
0x145f   : > { %4637 = vmatprep.subr.bf16.mxu1 %v6204_v61 }
0x1462   : > { %4638 = vmatpush1.bf16.msra.mxu1 %v6202_v0 }
0x1463   : > { %4639 = vmatprep.subr.bf16.mxu1 %v6207_v32 }
0x1466   : > { %4640 = vmatpush1.bf16.msra.mxu1 %v6205_v1 }
0x1467   : > { %4641 = vmatprep.subr.bf16.mxu1 %v6210_v33 }
0x146a   : > { %4642 = vmatpush1.bf16.msra.mxu1 %v6208_v38 }
0x146b   : > { %4643 = vmatprep.subr.bf16.mxu1 %v6213_v39 }
0x146e   : > { %4644 = vmatpush1.bf16.msra.mxu1 %v6211_v2 }
0x146f   : > { %4645 = vmatprep.subr.bf16.mxu1 %v6216_v4 }
0x1472   : > { %4646 = vmatpush1.bf16.msra.mxu1 %v6214_v5 }
0x1473   : > { %4647 = vmatprep.subr.bf16.mxu1 %v6219_v6 }
0x1476   : > { %4648 = vmatpush1.bf16.msra.mxu1 %v6217_v51 }
0x1477   : > { %4649 = vmatprep.subr.bf16.mxu1 %v6222_v52 }
0x147a   : > { %4650 = vmatpush1.bf16.msra.mxu1 %v6220_v8 }
0x147b   : > { %4651 = vmatprep.subr.bf16.mxu1 %v6225_v10 }
0x147e   : > { %4652 = vmatpush1.bf16.msra.mxu1 %v6223_v36 }
0x147f   : > { %4653 = vmatprep.subr.bf16.mxu1 %v6228_v11 }
0x1482   : > { %4654 = vmatpush1.bf16.msra.mxu1 %v6226_v12 }
0x1483   : > { %4655 = vmatprep.subr.bf16.mxu1 %v6231_v16 }
0x1486   : > { %4656 = vmatpush1.bf16.msra.mxu1 %v6229_v19 }
0x1487   : > { %4657 = vmatprep.subr.bf16.mxu1 %v6234_v20 }
0x148a   : > { %4658 = vmatpush1.bf16.msra.mxu1 %v6232_v21 }
0x148b   : > { %4659 = vmatprep.subr.bf16.mxu1 %v6237_v50 }
0x148e   : > { %4660 = vmatpush1.bf16.msra.mxu1 %v6235_v53 }
0x148f   : > { %4661 = vmatprep.subr.bf16.mxu1 %v6240_v30 }
0x1492   : > { %4662 = vmatpush1.bf16.msra.mxu1 %v6238_v55 }
0x1493   : > { %4663 = vmatprep.subr.bf16.mxu1 %v6243_v57 }
0x1496   : > { %4664 = vmatpush1.bf16.msra.mxu1 %v6241_v22 }
0x1497   : > { %4665 = vmatprep.subr.bf16.mxu1 %v6246_v59 }
0x149a   : > { %4666 = vmatpush1.bf16.msra.mxu1 %v6244_v63 }
0x149d   : > { %4668 = vmatmul.mubr.bf16.vlgmr.msra.gmra.mrb[32].mxu1 %v7928_v54 }
0x1570   : > { %v4669_v27 = vpop.f32.mrb[32].mxu1 }
0x1571   : > { %v5445_v34 = vadd.f32 %v4669_v27, %v4265_v24  ;;  %v4671_v37 = vpop.f32.mrb[33].mxu1 }
0x1572   : > { %v5446_v62 = vadd.f32 %v4671_v37, %v4269_v26  ;;  %v4673_v29 = vpop.f32.mrb[34].mxu1 }
0x1573   : > { %v4678_v3 = vadd.f32 %v5445_v34, %v7881_v28  ;;  %v5447_v41 = vadd.f32 %v4673_v29, %v4265_v24  ;;  %v4675_v45 = vpop.f32.mrb[35].mxu1 }
0x1574   : > { %v4679_v42 = vadd.f32 %v5446_v62, %v7884_v40  ;;  %v5448_v49 = vadd.f32 %v4675_v45, %v4269_v26 }
0x1575   : > { %4682 = vst [vmem:[%s995_s28] sm:$0xff] %v4678_v3  ;;  %v4680_v43 = vadd.f32 %v5447_v41, %v7887_v14 }
0x1576   : > { %4683 = vst [vmem:[%s995_s28 + $0x8] sm:$0xff] %v4679_v42  ;;  %v4681_v44 = vadd.f32 %v5448_v49, %v7890_v15 }
0x1577   : > { %4684 = vst [vmem:[%s995_s28 + $0x10] sm:$0xff] %v4680_v43 }
0x1578   : > { %4685 = vst [vmem:[%s995_s28 + $0x18] sm:$0xff] %v4681_v44 }
0x1579 PF: > { %s8061_s6 = sld [smem:[#allocation41_spill]]  ;;  %s8062_s30 = sld [smem:[#allocation42_spill]] }
0x157a   : > { %s8063_s12 = smov %s7425_s4  ;;  %p42_p3 = scmp.ge.s32.totalorder %s7425_s4, 6  }
0x157b   : > { %s8065_s24 = smov %s7436_s11  ;;  %s8066_s25 = smov %s8063_s12 }
0x157c   :  { %44 = sbr.rel (!%p42_p3) target bundleno = 26 (0x1a), region = 226 }
0x157f   : > { %s8064_s4 = smov %s8061_s6 }
0x1583   :  { %4707 = vsyncpa [#allocation3], 1 }
0x1584   :  { %4709 = vsyncpa [#allocation3 + $0x1], 1 }
0x1585   :  { %4710 = vsyncpa [#allocation5], 1 }
0x1586   :  { %4711 = vsyncpa [#allocation8], 1 }
0x1587   :  { %4712 = vsyncpa [#allocation11], 1 }
0x1588   :  { %4713 = vsyncpa [#allocation14], 1 }
0x1589   :  { %4714 = vsyncpa [#allocation17], 1 }
0x158a   :  { %4715 = vsyncpa [#allocation20], 1 }
0x158b   :  { %4716 = vsyncpa [#allocation23], 1 }
0x158c   :  { %4717 = vsyncpa [#allocation26], 1 }
0x158d   :  { %4718 = vsyncpa [#allocation29], 1 }

// kernel: tgvae_decode.4
= control target key start
LH: loop header
LB: loop body
LE: loop exit
PB: predicated region body
PF: predicated region fallthrough
CT: control target
= control target key end

     0   :  { %s7286_s0 = inlined_call_operand.vmem [shape: f32[4,16,256], index: 0, kind: input, shape index: {}]   ;;  %s7287_s1 = inlined_call_operand.vmem [shape: f32[4,8,256], index: 1, kind: input, shape index: {}]   ;;  %s7288_s2 = inlined_call_operand.vmem [shape: f32[4,16,16], index: 2, kind: input, shape index: {}]   ;;  %s7289_s3 = inlined_call_operand.vmem [shape: f32[1,256], index: 3, kind: input, shape index: {}]   ;;  %s7290_s4 = inlined_call_operand.vmem [shape: f32[1,256], index: 4, kind: input, shape index: {}]   ;;  %s7291_s5 = inlined_call_operand.vmem [shape: bf16[256,768], index: 5, kind: input, shape index: {}]   ;;  %s7292_s6 = inlined_call_operand.vmem [shape: f32[1,768], index: 6, kind: input, shape index: {}]   ;;  %s7293_s7 = inlined_call_operand.vmem [shape: bf16[256,256], index: 7, kind: input, shape index: {}]   ;;  %s7294_s8 = inlined_call_operand.vmem [shape: f32[1,256], index: 8, kind: input, shape index: {}]   ;;  %s7295_s9 = inlined_call_operand.vmem [shape: f32[1,256], index: 9, kind: input, shape index: {}]   ;;  %s7296_s10 = inlined_call_operand.vmem [shape: f32[1,256], index: 10, kind: input, shape index: {}]   ;;  %s7297_s11 = inlined_call_operand.vmem [shape: bf16[256,256], index: 11, kind: input, shape index: {}]   ;;  %s7298_s12 = inlined_call_operand.vmem [shape: f32[1,256], index: 12, kind: input, shape index: {}]   ;;  %s7299_s13 = inlined_call_operand.vmem [shape: bf16[256,512], index: 13, kind: input, shape index: {}]   ;;  %s7300_s14 = inlined_call_operand.vmem [shape: f32[1,512], index: 14, kind: input, shape index: {}]   ;;  %s7301_s15 = inlined_call_operand.vmem [shape: bf16[256,256], index: 15, kind: input, shape index: {}]   ;;  %s7302_s16 = inlined_call_operand.vmem [shape: f32[1,256], index: 16, kind: input, shape index: {}]   ;;  %s7303_s17 = inlined_call_operand.vmem [shape: f32[1,256], index: 17, kind: input, shape index: {}]   ;;  %s7304_s18 = inlined_call_operand.vmem [shape: f32[1,256], index: 18, kind: input, shape index: {}]   ;;  %s7305_s19 = inlined_call_operand.vmem [shape: bf16[256,512], index: 19, kind: input, shape index: {}]   ;;  %s7306_s20 = inlined_call_operand.vmem [shape: f32[1,512], index: 20, kind: input, shape index: {}]   ;;  %s7307_s21 = inlined_call_operand.vmem [shape: bf16[512,256], index: 21, kind: input, shape index: {}]   ;;  %s7308_s22 = inlined_call_operand.vmem [shape: f32[1,256], index: 22, kind: input, shape index: {}]   ;;  %s7309_s23 = inlined_call_operand.vmem [shape: f32[4,16,256], index: 23, kind: output, shape index: {}]  }
   0x1   :  { %7315 = sst [smem:[#allocation2_spill]] %s7286_s0 }
   0x2   :  { %7316 = sst [smem:[#allocation3_spill]] %s7287_s1 }
   0x3   :  { %7317 = sst [smem:[#allocation4_spill]] %s7288_s2 }
   0x4   :  { %7318 = sst [smem:[#allocation5_spill]] %s7289_s3 }
   0x5   :  { %7319 = sst [smem:[#allocation6_spill]] %s7290_s4  ;;  %s5775_s4 = smov 0  }
   0x6   :  { %7320 = sst [smem:[#allocation7_spill]] %s7291_s5 }
   0x7   :  { %7321 = sst [smem:[#allocation8_spill]] %s7292_s6 }
   0x8   :  { %7322 = sst [smem:[#allocation9_spill]] %s7293_s7 }
   0x9   :  { %7323 = sst [smem:[#allocation10_spill]] %s7294_s8 }
   0xa LB: > { %s4520_s30 = sadd.s32 4294967295, %s5651_s4   ;;  %p4524_p0 = scmp.ge.s32.totalorder %s5651_s4, 1  ;;  %s5651_s4 = sphi %s5775_s4, %s33_s4  }
   0xb   : > { %p657_p1 = scmp.lt.s32.totalorder %s5651_s4, 5 }
   0xd   : > { %p658_p2 = pnand %p4524_p0, %p657_p1 }
   0xe   : > { %p731_p3 = scmp.lt.s32.totalorder (!%p658_p2), %s4520_s30, 3  ;;  %s7324_s1 = sld [smem:[#allocation2_spill]] (!%p658_p2)  ;;  %vm5654_vm4 = vmmov (!%p658_p2), 0   ;;  %vm1627_vm5 = vcmask (!%p658_p2), 130048   ;;  %vm2926_vm10 = vcmask (!%p658_p2), 64512   ;;  %vm2953_vm11 = vcmask (!%p658_p2), 1043456  }
   0xf   : > { %661 = sbr.rel (%p658_p2) target bundleno = 4992 (0x1380), region = 112  ;;  %s7325_s27 = sld [smem:[#allocation7_spill]] (!%p658_p2) }
  0x10   : > { %s7326_s5 = sld [smem:[#allocation5_spill]] (!%p658_p2)  ;;  %s7327_s6 = sld [smem:[#allocation6_spill]] (!%p658_p2) }
  0x11   : > { %s7328_s2 = sld [smem:[#allocation8_spill]] (!%p658_p2)  ;;  %s7329_s29 = sld [smem:[#allocation4_spill]] (!%p658_p2) }
  0x12   : > { %s7330_s25 = sld [smem:[#allocation9_spill]] (!%p658_p2)  ;;  %s7331_s8 = sld [smem:[#allocation10_spill]] (!%p658_p2) }
  0x15   : > { %v5009_v6 = vld [vmem:[%s7325_s27 + $0x4] ss:$24 sps:$4 sm:$0xff] (!%p658_p2)   ;;  %v5011_v7 = vld [vmem:[%s7325_s27] ss:$24 sps:$4 sm:$0xff] (!%p658_p2)   ;;  %v5015_v10 = vld [vmem:[%s7325_s27 + $0x34] ss:$24 sps:$4 sm:$0xff] (!%p658_p2)  }
  0x16   : > { %s7336_s30 = smov (!%p731_p3, %s4520_s30), 3  ;;  %v5012_v8 = vld [vmem:[%s7325_s27 + $0xc] ss:$24 sps:$4 sm:$0xff]   ;;  %v5014_v9 = vld [vmem:[%s7325_s27 + $0x8] ss:$24 sps:$4 sm:$0xff]   ;;  %1450 = vmatprep.subr.bf16.mxu0 %v5009_v6 }
  0x17   : > { %s7312_s24 = sshll.u32 %s7336_s30, 5  ;;  %1493 = vmatprep.subr.bf16.mxu1 %v5012_v8  ;;  %v5018_v11 = vld [vmem:[%s7325_s27 + $0x3c] ss:$24 sps:$4 sm:$0xff]   ;;  %1451 = vmatpush1.bf16.msra.mxu0 %v5011_v7  ;;  %v5017_v12 = vld [vmem:[%s7325_s27 + $0x30] ss:$24 sps:$4 sm:$0xff]   ;;  %s7334_s0 = sshll.u32 %s7336_s30, 5 }
  0x18   : > { %s5791_s26 = scalar_lea.vmem %s7324_s1, %s7312_s24  ;;  %1494 = vmatpush1.bf16.msra.mxu1 %v5014_v9  ;;  %v5020_v13 = vld [vmem:[%s7325_s27 + $0x38] ss:$24 sps:$4 sm:$0xff]   ;;  %1452 = vmatprep.subr.bf16.mxu0 %v5015_v10  ;;  %v5021_v14 = vld [vmem:[%s7325_s27 + $0x64] ss:$24 sps:$4 sm:$0xff]   ;;  %v5026_v17 = vld [vmem:[%s7325_s27 + $0x68] ss:$24 sps:$4 sm:$0xff]  }
  0x19   : > { %v752_v0 = vld [vmem:[%s5791_s26] sm:$0xff]  ;;  %v753_v1 = vld [vmem:[%s5791_s26 + $0x8] sm:$0xff]  ;;  %v754_v2 = vld [vmem:[%s5791_s26 + $0x10] sm:$0xff]  ;;  %1495 = vmatprep.subr.bf16.mxu1 %v5018_v11 }
  0x1a   : > { %v762_v3 = vadd.f32 %v753_v1, %v752_v0  ;;  %v755_v4 = vld [vmem:[%s5791_s26 + $0x18] sm:$0xff]  ;;  %v5024_v15 = vld [vmem:[%s7325_s27 + $0x6c] ss:$24 sps:$4 sm:$0xff]   ;;  %v5029_v20 = vld [vmem:[%s7325_s27 + $0x90] ss:$24 sps:$4 sm:$0xff]  }
  0x1b   : > { %v765_v5 = vadd.f32 %v755_v4, %v754_v2  ;;  %v5023_v16 = vld [vmem:[%s7325_s27 + $0x60] ss:$24 sps:$4 sm:$0xff]   ;;  %1453 = vmatpush1.bf16.msra.mxu0 %v5017_v12  ;;  %v5027_v18 = vld [vmem:[%s7325_s27 + $0x94] ss:$24 sps:$4 sm:$0xff]   ;;  %v5033_v22 = vld [vmem:[%s7325_s27 + $0xc4] ss:$24 sps:$4 sm:$0xff]  }
  0x1c   : > { %763 = vadd.xlane.f32.xlu0 %v762_v3  ;;  %1496 = vmatpush1.bf16.msra.mxu1 %v5020_v13  ;;  %v5030_v19 = vld [vmem:[%s7325_s27 + $0x9c] ss:$24 sps:$4 sm:$0xff]   ;;  %v5032_v21 = vld [vmem:[%s7325_s27 + $0x98] ss:$24 sps:$4 sm:$0xff]   ;;  %v5036_v23 = vld [vmem:[%s7325_s27 + $0xcc] ss:$24 sps:$4 sm:$0xff]  }
  0x1d   : > { %1454 = vmatprep.subr.bf16.mxu0 %v5021_v14  ;;  %1497 = vmatprep.subr.bf16.mxu1 %v5024_v15  ;;  %v5035_v24 = vld [vmem:[%s7325_s27 + $0xc0] ss:$24 sps:$4 sm:$0xff]   ;;  %v5039_v26 = vld [vmem:[%s7325_s27 + $0xf4] ss:$24 sps:$4 sm:$0xff]   ;;  %v5041_v28 = vld [vmem:[%s7325_s27 + $0xf0] ss:$24 sps:$4 sm:$0xff]  }
  0x1e   : > { %v5038_v25 = vld [vmem:[%s7325_s27 + $0xc8] ss:$24 sps:$4 sm:$0xff]   ;;  %v5042_v27 = vld [vmem:[%s7325_s27 + $0xfc] ss:$24 sps:$4 sm:$0xff]   ;;  %v5044_v29 = vld [vmem:[%s7325_s27 + $0xf8] ss:$24 sps:$4 sm:$0xff]  }
  0x1f   : > { %1455 = vmatpush1.bf16.msra.mxu0 %v5023_v16  ;;  %v5045_v44 = vld [vmem:[%s7325_s27 + $0x124] ss:$24 sps:$4 sm:$0xff]   ;;  %v5047_v45 = vld [vmem:[%s7325_s27 + $0x120] ss:$24 sps:$4 sm:$0xff]   ;;  %v5051_v48 = vld [vmem:[%s7325_s27 + $0x154] ss:$24 sps:$4 sm:$0xff]  }
  0x20   : > { %766 = vadd.xlane.f32.xlu0 %v765_v5  ;;  %1498 = vmatpush1.bf16.msra.mxu1 %v5026_v17  ;;  %v5048_v46 = vld [vmem:[%s7325_s27 + $0x12c] ss:$24 sps:$4 sm:$0xff]   ;;  %v5050_v47 = vld [vmem:[%s7325_s27 + $0x128] ss:$24 sps:$4 sm:$0xff]   ;;  %v5054_v50 = vld [vmem:[%s7325_s27 + $0x15c] ss:$24 sps:$4 sm:$0xff]  }
  0x21   : > { %1456 = vmatprep.subr.bf16.mxu0 %v5027_v18  ;;  %1499 = vmatprep.subr.bf16.mxu1 %v5030_v19  ;;  %v5053_v49 = vld [vmem:[%s7325_s27 + $0x150] ss:$24 sps:$4 sm:$0xff]   ;;  %v5057_v52 = vld [vmem:[%s7325_s27 + $0x184] ss:$24 sps:$4 sm:$0xff]   ;;  %v5059_v53 = vld [vmem:[%s7325_s27 + $0x180] ss:$24 sps:$4 sm:$0xff]  }
  0x22   : > { %v5056_v51 = vld [vmem:[%s7325_s27 + $0x158] ss:$24 sps:$4 sm:$0xff]   ;;  %v5060_v54 = vld [vmem:[%s7325_s27 + $0x18c] ss:$24 sps:$4 sm:$0xff]   ;;  %v5062_v55 = vld [vmem:[%s7325_s27 + $0x188] ss:$24 sps:$4 sm:$0xff]  }
  0x23   : > { %1457 = vmatpush1.bf16.msra.mxu0 %v5029_v20  ;;  %v5063_v56 = vld [vmem:[%s7325_s27 + $0x1b4] ss:$24 sps:$4 sm:$0xff]   ;;  %v5065_v57 = vld [vmem:[%s7325_s27 + $0x1b0] ss:$24 sps:$4 sm:$0xff]   ;;  %v5069_v60 = vld [vmem:[%s7325_s27 + $0x1e4] ss:$24 sps:$4 sm:$0xff]  }
  0x24   : > { %1500 = vmatpush1.bf16.msra.mxu1 %v5032_v21  ;;  %1458 = vmatprep.subr.bf16.mxu0 %v5033_v22  ;;  %v5066_v58 = vld [vmem:[%s7325_s27 + $0x1bc] ss:$24 sps:$4 sm:$0xff]   ;;  %v5068_v59 = vld [vmem:[%s7325_s27 + $0x1b8] ss:$24 sps:$4 sm:$0xff]   ;;  %v5072_v62 = vld [vmem:[%s7325_s27 + $0x1ec] ss:$24 sps:$4 sm:$0xff]  }
  0x25   : > { %1501 = vmatprep.subr.bf16.mxu1 %v5036_v23  ;;  %v5071_v61 = vld [vmem:[%s7325_s27 + $0x1e0] ss:$24 sps:$4 sm:$0xff]   ;;  %v5084_v5 = vld [vmem:[%s7325_s27 + $0x24c] ss:$24 sps:$4 sm:$0xff]   ;;  %v5090_v9 = vld [vmem:[%s7325_s27 + $0x27c] ss:$24 sps:$4 sm:$0xff]  }
  0x26   : > { %v5074_v63 = vld [vmem:[%s7325_s27 + $0x1e8] ss:$24 sps:$4 sm:$0xff]   ;;  %v5080_v3 = vld [vmem:[%s7325_s27 + $0x218] ss:$24 sps:$4 sm:$0xff]   ;;  %v5087_v8 = vld [vmem:[%s7325_s27 + $0x274] ss:$24 sps:$4 sm:$0xff]  }
  0x27   : > { %1459 = vmatpush1.bf16.msra.mxu0 %v5035_v24  ;;  %v5083_v6 = vld [vmem:[%s7325_s27 + $0x240] ss:$24 sps:$4 sm:$0xff]   ;;  %v5089_v10 = vld [vmem:[%s7325_s27 + $0x270] ss:$24 sps:$4 sm:$0xff]   ;;  %v5093_v12 = vld [vmem:[%s7325_s27 + $0x2a4] ss:$24 sps:$4 sm:$0xff]  }
  0x28   : > { %1502 = vmatpush1.bf16.msra.mxu1 %v5038_v25  ;;  %1460 = vmatprep.subr.bf16.mxu0 %v5039_v26  ;;  %v5086_v7 = vld [vmem:[%s7325_s27 + $0x248] ss:$24 sps:$4 sm:$0xff]   ;;  %v5092_v11 = vld [vmem:[%s7325_s27 + $0x278] ss:$24 sps:$4 sm:$0xff]   ;;  %v5096_v13 = vld [vmem:[%s7325_s27 + $0x2ac] ss:$24 sps:$4 sm:$0xff]  }
  0x29   : > { %1503 = vmatprep.subr.bf16.mxu1 %v5042_v27  ;;  %v5095_v14 = vld [vmem:[%s7325_s27 + $0x2a0] ss:$24 sps:$4 sm:$0xff]   ;;  %v5099_v16 = vld [vmem:[%s7325_s27 + $0x2d4] ss:$24 sps:$4 sm:$0xff]   ;;  %v5101_v18 = vld [vmem:[%s7325_s27 + $0x2d0] ss:$24 sps:$4 sm:$0xff]   ;;  %v803_v27 = vlaneseq }
  0x2a   : > { %v5098_v15 = vld [vmem:[%s7325_s27 + $0x2a8] ss:$24 sps:$4 sm:$0xff]   ;;  %v5102_v17 = vld [vmem:[%s7325_s27 + $0x2dc] ss:$24 sps:$4 sm:$0xff]   ;;  %v5104_v19 = vld [vmem:[%s7325_s27 + $0x2d8] ss:$24 sps:$4 sm:$0xff]  }
  0x2b   : > { %1461 = vmatpush1.bf16.msra.mxu0 %v5041_v28  ;;  %v5107_v20 = vld [vmem:[%s7325_s27 + $0x14] ss:$24 sps:$4 sm:$0xff]  }
  0x2c   : > { %1504 = vmatpush1.bf16.msra.mxu1 %v5044_v29  ;;  %1462 = vmatprep.subr.bf16.mxu0 %v5045_v44 }
  0x2d   : > { %1505 = vmatprep.subr.bf16.mxu1 %v5048_v46 }
  0x2f   : > { %1463 = vmatpush1.bf16.msra.mxu0 %v5047_v45  ;;  %v760_v45 = vld [vmem:[%s7326_s5] sm:$0x3]  ;;  %s7332_s5 = sshll.u32 %s7336_s30, 4 }
  0x30   : > { %1506 = vmatpush1.bf16.msra.mxu1 %v5050_v47  ;;  %1464 = vmatprep.subr.bf16.mxu0 %v5051_v48 }
  0x31   : > { %1507 = vmatprep.subr.bf16.mxu1 %v5054_v50 }
  0x33   : > { %1465 = vmatpush1.bf16.msra.mxu0 %v5053_v49  ;;  %v761_v49 = vld [vmem:[%s7327_s6] sm:$0x3]  ;;  %s7313_s6 = sshll.u32 %s7336_s30, 4 }
  0x34   : > { %1508 = vmatpush1.bf16.msra.mxu1 %v5056_v51  ;;  %1466 = vmatprep.subr.bf16.mxu0 %v5057_v52  ;;  %s745_s3 = scalar_lea.vmem %s7329_s29, %s7313_s6 }
  0x35   : > { %1509 = vmatprep.subr.bf16.mxu1 %v5060_v54 }
  0x37   : > { %1467 = vmatpush1.bf16.msra.mxu0 %v5059_v53 }
  0x38   : > { %1510 = vmatpush1.bf16.msra.mxu1 %v5062_v55  ;;  %1468 = vmatprep.subr.bf16.mxu0 %v5063_v56 }
  0x39   : > { %1511 = vmatprep.subr.bf16.mxu1 %v5066_v58 }
  0x3b   : > { %1469 = vmatpush1.bf16.msra.mxu0 %v5065_v57 }
  0x3c   : > { %1512 = vmatpush1.bf16.msra.mxu1 %v5068_v59  ;;  %1470 = vmatprep.subr.bf16.mxu0 %v5069_v60 }
  0x3d   : > { %1513 = vmatprep.subr.bf16.mxu1 %v5072_v62 }
  0x3f   : > { %1471 = vmatpush1.bf16.msra.mxu0 %v5071_v61 }
  0x40   : > { %1514 = vmatpush1.bf16.msra.mxu1 %v5074_v63 }
  0xa9   : > { %v764_v30 = vpop.xlane.xlu0 %763 }
  0xaa   : > { %v769_v31 = vmul.f32 0.00390625, %v764_v30 }
  0xac   : > { %v5869_v32 = vsub.f32 %v752_v0, %v769_v31  ;;  %v5871_v33 = vsub.f32 %v753_v1, %v769_v31  ;;  %v5075_v0 = vld [vmem:[%s7325_s27 + $0x214] ss:$24 sps:$4 sm:$0xff]   ;;  %v5077_v1 = vld [vmem:[%s7325_s27 + $0x210] ss:$24 sps:$4 sm:$0xff]  }
  0xad   : > { %v767_v34 = vpop.xlane.xlu0 %766  ;;  %1472 = vmatprep.subr.bf16.mxu0 %v5075_v0 }
  0xae   : > { %v770_v35 = vmul.f32 0.00390625, %v767_v34  ;;  %v775_v36 = vmul.f32 %v5869_v32, %v5869_v32  ;;  %v776_v37 = vmul.f32 %v5871_v33, %v5871_v33  ;;  %1473 = vmatpush1.bf16.msra.mxu0 %v5077_v1  ;;  %v5108_v1 = vld [vmem:[%s7325_s27 + $0x40] ss:$24 sps:$4 sm:$0xff]  }
  0xb0   : > { %v5877_v38 = vsub.f32 %v754_v2, %v770_v35  ;;  %v5879_v39 = vsub.f32 %v755_v4, %v770_v35  ;;  %v779_v40 = vadd.f32 %v776_v37, %v775_v36  ;;  %v5078_v2 = vld [vmem:[%s7325_s27 + $0x21c] ss:$24 sps:$4 sm:$0xff]   ;;  %v6008_v36 = vshrl.u32 %v803_v27, 7  ;;  %v5147_v27 = vld [vmem:[%s7325_s27 + $0x2b0] ss:$24 sps:$4 sm:$0xff]  }
  0xb1   : > { %v5081_v4 = vld [vmem:[%s7325_s27 + $0x244] ss:$24 sps:$4 sm:$0xff]   ;;  %1515 = vmatprep.subr.bf16.mxu1 %v5078_v2  ;;  %v5113_v2 = vld [vmem:[%s7325_s27 + $0x74] ss:$24 sps:$4 sm:$0xff]  }
  0xb2   : > { %v777_v41 = vmul.f32 %v5877_v38, %v5877_v38  ;;  %v778_v42 = vmul.f32 %v5879_v39, %v5879_v39  ;;  %780 = vadd.xlane.f32.xlu1 %v779_v40  ;;  %1516 = vmatpush1.bf16.msra.mxu1 %v5080_v3  ;;  %v6014_v44 = vsub.s32 1, %v6008_v36  ;;  %v5111_v3 = vld [vmem:[%s7325_s27 + $0x70] ss:$24 sps:$4 sm:$0xff]  }
  0xb3   : > { %1474 = vmatprep.subr.bf16.mxu0 %v5081_v4  ;;  %1517 = vmatprep.subr.bf16.mxu1 %v5084_v5  ;;  %v5116_v4 = vld [vmem:[%s7325_s27 + $0xa4] ss:$24 sps:$4 sm:$0xff]   ;;  %v5114_v5 = vld [vmem:[%s7325_s27 + $0xa0] ss:$24 sps:$4 sm:$0xff]  }
  0xb4   : > { %v782_v43 = vadd.f32 %v778_v42, %v777_v41  ;;  %1475 = vmatpush1.bf16.msra.mxu0 %v5083_v6  ;;  %v810_v47 = vrot.slane %v760_v45, %v6014_v44  ;;  %v833_v55 = vrot.slane %v761_v49, %v6014_v44  ;;  %v5119_v6 = vld [vmem:[%s7325_s27 + $0xd4] ss:$24 sps:$4 sm:$0xff]  }
  0xb5   : > { %1476 = vmatprep.subr.bf16.mxu0 %v5087_v8  ;;  %v5122_v8 = vld [vmem:[%s7325_s27 + $0x104] ss:$24 sps:$4 sm:$0xff]  }
  0xb6   : > { %783 = vadd.xlane.f32.xlu1 %v782_v43  ;;  %1518 = vmatpush1.bf16.msra.mxu1 %v5086_v7  ;;  %v6011_v43 = vsub.s32 0, %v6008_v36  ;;  %v814_v51 = vmul.f32 %v810_v47, %v5871_v33  ;;  %v816_v53 = vmul.f32 %v810_v47, %v5879_v39  ;;  %v5105_v33 = vld [vmem:[%s7325_s27 + $0x10] ss:$24 sps:$4 sm:$0xff]   ;;  %v5110_v39 = vld [vmem:[%s7325_s27 + $0x44] ss:$24 sps:$4 sm:$0xff]  }
  0xb7   : > { %1519 = vmatprep.subr.bf16.mxu1 %v5090_v9  ;;  %v5117_v7 = vld [vmem:[%s7325_s27 + $0xd0] ss:$24 sps:$4 sm:$0xff]   ;;  %v5120_v9 = vld [vmem:[%s7325_s27 + $0x100] ss:$24 sps:$4 sm:$0xff]  }
  0xb8   : > { %1477 = vmatpush1.bf16.msra.mxu0 %v5089_v10  ;;  %v806_v46 = vrot.slane %v760_v45, %v6011_v43  ;;  %v829_v57 = vrot.slane %v761_v49, %v6011_v43  ;;  %v5125_v10 = vld [vmem:[%s7325_s27 + $0x134] ss:$24 sps:$4 sm:$0xff]  }
  0xb9   : > { %1478 = vmatprep.subr.bf16.mxu0 %v5093_v12  ;;  %v5128_v12 = vld [vmem:[%s7325_s27 + $0x164] ss:$24 sps:$4 sm:$0xff]  }
  0xba   : > { %1520 = vmatpush1.bf16.msra.mxu1 %v5092_v11  ;;  %v813_v50 = vmul.f32 %v806_v46, %v5869_v32  ;;  %v815_v52 = vmul.f32 %v806_v46, %v5877_v38  ;;  %v5123_v11 = vld [vmem:[%s7325_s27 + $0x130] ss:$24 sps:$4 sm:$0xff]  }
  0xbb   : > { %1521 = vmatprep.subr.bf16.mxu1 %v5096_v13  ;;  %v5126_v13 = vld [vmem:[%s7325_s27 + $0x160] ss:$24 sps:$4 sm:$0xff]  }
  0xbc   : > { %1479 = vmatpush1.bf16.msra.mxu0 %v5095_v14  ;;  %v5131_v14 = vld [vmem:[%s7325_s27 + $0x194] ss:$24 sps:$4 sm:$0xff]  }
  0xbd   : > { %1480 = vmatprep.subr.bf16.mxu0 %v5099_v16  ;;  %v5134_v16 = vld [vmem:[%s7325_s27 + $0x1c4] ss:$24 sps:$4 sm:$0xff]  }
  0xbe   : > { %1522 = vmatpush1.bf16.msra.mxu1 %v5098_v15  ;;  %v5129_v15 = vld [vmem:[%s7325_s27 + $0x190] ss:$24 sps:$4 sm:$0xff]  }
  0xbf   : > { %1523 = vmatprep.subr.bf16.mxu1 %v5102_v17  ;;  %v5132_v17 = vld [vmem:[%s7325_s27 + $0x1c0] ss:$24 sps:$4 sm:$0xff]  }
  0xc0   : > { %1481 = vmatpush1.bf16.msra.mxu0 %v5101_v18  ;;  %v5137_v18 = vld [vmem:[%s7325_s27 + $0x1f4] ss:$24 sps:$4 sm:$0xff]  }
  0xc1   : > { %1536 = vmatprep.subr.bf16.mxu0 %v5107_v20  ;;  %v5140_v20 = vld [vmem:[%s7325_s27 + $0x224] ss:$24 sps:$4 sm:$0xff]  }
  0xc2   : > { %1524 = vmatpush1.bf16.msra.mxu1 %v5104_v19  ;;  %v5135_v19 = vld [vmem:[%s7325_s27 + $0x1f0] ss:$24 sps:$4 sm:$0xff]  }
 0x13f   : > { %v781_v21 = vpop.xlane.xlu1 %780 }
 0x140   : > { %v786_v22 = vmul.f32 0.003921569, %v781_v21  ;;  %v5138_v21 = vld [vmem:[%s7325_s27 + $0x220] ss:$24 sps:$4 sm:$0xff]  }
 0x142   : > { %5585 = vrsqrt.f32 %v786_v22  ;;  %vm790_vm0 = vcmp.eq.f32.partialorder %v786_v22, inf  ;;  %v793_v28 = vand.u32 2147483648, %v786_v22  ;;  %vm792_vm1 = vcmp.eq.f32.partialorder %v786_v22, 0.0 }
 0x143   : > { %v784_v23 = vpop.xlane.xlu1 %783 }
 0x144   : > { %v787_v24 = vmul.f32 0.003921569, %v784_v23  ;;  %v5141_v23 = vld [vmem:[%s7325_s27 + $0x250] ss:$24 sps:$4 sm:$0xff]  }
 0x146   : > { %5587 = vrsqrt.f32 %v787_v24  ;;  %vm797_vm2 = vcmp.eq.f32.partialorder %v787_v24, inf  ;;  %v800_v37 = vand.u32 2147483648, %v787_v24  ;;  %vm799_vm3 = vcmp.eq.f32.partialorder %v787_v24, 0.0 }
 0x14c   : > { %v5586_v25 = vpop.eup %5585 }
 0x14d   : > { %v789_v26 = vmul.f32 %v5586_v25, %v786_v22  ;;  %v5144_v25 = vld [vmem:[%s7325_s27 + $0x280] ss:$24 sps:$4 sm:$0xff]  }
 0x14f   : > { %v791_v29 = vsel %vm790_vm0, %v786_v22, %v789_v26  ;;  %v5143_v22 = vld [vmem:[%s7325_s27 + $0x254] ss:$24 sps:$4 sm:$0xff]  }
 0x150   : > { %v5588_v30 = vpop.eup %5587  ;;  %v794_v31 = vsel %vm792_vm1, %v793_v28, %v791_v29  ;;  %v5149_v26 = vld [vmem:[%s7325_s27 + $0x2b4] ss:$24 sps:$4 sm:$0xff]   ;;  %v5152_v28 = vld [vmem:[%s7325_s27 + $0x2e4] ss:$24 sps:$4 sm:$0xff]   ;;  %v5150_v29 = vld [vmem:[%s7325_s27 + $0x2e0] ss:$24 sps:$4 sm:$0xff]  }
 0x151   : > { %v796_v34 = vmul.f32 %v5588_v30, %v787_v24  ;;  %v817_v35 = vadd.f32 1e-06, %v794_v31  ;;  %v5653_v30 = vmov 0.0   ;;  %v6132_v31 = vsub.s32 2, %v6008_v36 }
 0x153   : > { %v798_v40 = vsel %vm797_vm2, %v787_v24, %v796_v34  ;;  %5589 = vrcp.f32 %v817_v35  ;;  %v5146_v24 = vld [vmem:[%s7325_s27 + $0x284] ss:$24 sps:$4 sm:$0xff]   ;;  %v6138_v35 = vsub.s32 3, %v6008_v36 }
 0x154   : > { %v801_v41 = vsel %vm799_vm3, %v800_v37, %v798_v40  ;;  %v938_v34 = vld [vmem:[%s7328_s2] sm:$0x3f]  ;;  %s7333_s2 = sld [smem:[#allocation3_spill]] }
 0x155   : > { %v818_v42 = vadd.f32 1e-06, %v801_v41  ;;  %v943_v37 = vrot.slane %v938_v34, %v6011_v43  ;;  %v951_v40 = vrot.slane %v938_v34, %v6132_v31  ;;  %v947_v45 = vrot.slane %v938_v34, %v6014_v44 }
 0x156   : > { %v955_v46 = vrot.slane %v938_v34, %v6138_v35 }
 0x157   : > { %5591 = vrcp.f32 %v818_v42 }
 0x15d   : > { %v5590_v48 = vpop.eup %5589 }
 0x15e   : > { %v821_v54 = vmul.f32 %v5590_v48, %v814_v51  ;;  %v820_v56 = vmul.f32 %v5590_v48, %v813_v50 }
 0x160   : > { %v837_v61 = vadd.f32 %v833_v55, %v821_v54  ;;  %v836_v63 = vadd.f32 %v829_v57, %v820_v56 }
 0x161   : > { %v5592_v58 = vpop.eup %5591 }
 0x162   : > { %v824_v59 = vmul.f32 %v5592_v58, %v816_v53  ;;  %v823_v60 = vmul.f32 %v5592_v58, %v815_v52 }
 0x164   : > { %v839_v62 = vadd.f32 %v833_v55, %v824_v59  ;;  %v838_v0 = vadd.f32 %v829_v57, %v823_v60 }
 0x166   : > { %v841_v32 = vpack.c.bf16 %v839_v62, %v837_v61  ;;  %v6033_v38 = vpack.c.bf16 %v838_v0, %v836_v63 }
 0x168   : > { %1482 = vmatprep.mubr.bf16.mxu0 %v841_v32  ;;  %1525 = vmatprep.mubr.bf16.mxu1 %v841_v32 }
 0x169   : > { %1483 = vmatmul.mubr.bf16.vlgmr.msra.gmra.mrb[0].mxu0 %v6033_v38  ;;  %1526 = vmatmul.mubr.bf16.vlgmr.msra.gmra.mrb[0].mxu1 %v6033_v38 }
 0x16a   : > { %1537 = vmatpush1.bf16.msra.mxu0 %v5105_v33  ;;  %1568 = vmatprep.mubr.bf16.mxu0 %v841_v32  ;;  %v958_v32 = vsub.s32 4, %v6008_v36  ;;  %v962_v33 = vsub.s32 5, %v6008_v36 }
 0x16b   : > { %1538 = vmatprep.subr.bf16.mxu0 %v5110_v39 }
 0x16e   : > { %1539 = vmatpush1.bf16.msra.mxu0 %v5108_v1  ;;  %v963_v1 = vrot.slane %v938_v34, %v962_v33 }
 0x16f   : > { %1540 = vmatprep.subr.bf16.mxu0 %v5113_v2 }
 0x172   : > { %1541 = vmatpush1.bf16.msra.mxu0 %v5111_v3 }
 0x173   : > { %1542 = vmatprep.subr.bf16.mxu0 %v5116_v4 }
 0x176   : > { %1543 = vmatpush1.bf16.msra.mxu0 %v5114_v5 }
 0x177   : > { %1544 = vmatprep.subr.bf16.mxu0 %v5119_v6 }
 0x17a   : > { %1545 = vmatpush1.bf16.msra.mxu0 %v5117_v7 }
 0x17b   : > { %1546 = vmatprep.subr.bf16.mxu0 %v5122_v8 }
 0x17e   : > { %1547 = vmatpush1.bf16.msra.mxu0 %v5120_v9 }
 0x17f   : > { %1548 = vmatprep.subr.bf16.mxu0 %v5125_v10 }
 0x182   : > { %1549 = vmatpush1.bf16.msra.mxu0 %v5123_v11  ;;  %v758_v11 = vld [vmem:[%s745_s3] sm:$0xff] }
 0x183   : > { %1550 = vmatprep.subr.bf16.mxu0 %v5128_v12 }
 0x186   : > { %1551 = vmatpush1.bf16.msra.mxu0 %v5126_v13 }
 0x187   : > { %1552 = vmatprep.subr.bf16.mxu0 %v5131_v14 }
 0x18a   : > { %1553 = vmatpush1.bf16.msra.mxu0 %v5129_v15  ;;  %v759_v15 = vld [vmem:[%s745_s3 + $0x8] sm:$0xff] }
 0x18b   : > { %1554 = vmatprep.subr.bf16.mxu0 %v5134_v16 }
 0x18e   : > { %1555 = vmatpush1.bf16.msra.mxu0 %v5132_v17 }
 0x18f   : > { %1556 = vmatprep.subr.bf16.mxu0 %v5137_v18 }
 0x192   : > { %1557 = vmatpush1.bf16.msra.mxu0 %v5135_v19 }
 0x193   : > { %1558 = vmatprep.subr.bf16.mxu0 %v5140_v20 }
 0x196   : > { %1559 = vmatpush1.bf16.msra.mxu0 %v5138_v21 }
 0x197   : > { %1560 = vmatprep.subr.bf16.mxu0 %v5143_v22 }
 0x19a   : > { %1561 = vmatpush1.bf16.msra.mxu0 %v5141_v23 }
 0x19b   : > { %1562 = vmatprep.subr.bf16.mxu0 %v5146_v24 }
 0x19e   : > { %1563 = vmatpush1.bf16.msra.mxu0 %v5144_v25 }
 0x19f   : > { %1564 = vmatprep.subr.bf16.mxu0 %v5149_v26 }
 0x1a2   : > { %1565 = vmatpush1.bf16.msra.mxu0 %v5147_v27 }
 0x1a3   : > { %1566 = vmatprep.subr.bf16.mxu0 %v5152_v28 }
 0x1a6   : > { %1567 = vmatpush1.bf16.msra.mxu0 %v5150_v29 }
 0x1a7   : > { %4943 = vmatprep.subr.bf16.mxu0 %v5653_v30 }
 0x1a9   : > { %1569 = vmatmul.mubr.bf16.vlgmr.msra.gmra.mrb[4].mxu0 %v6033_v38  ;;  %v959_v38 = vrot.slane %v938_v34, %v958_v32 }
 0x1aa   : > { %4945 = vmatprep.mubr.msk.bf16.mxu0 %vm5654_vm4, %v5653_v30 }
 0x23c   : > { %v1484_v41 = vpop.f32.mrb[0].mxu0  ;;  %v1527_v42 = vpop.f32.mrb[0].mxu1 }
 0x23d   : > { %v1486_v47 = vpop.f32.mrb[1].mxu0  ;;  %v1529_v48 = vpop.f32.mrb[1].mxu1  ;;  %v1485_v51 = vadd.f32 %v1484_v41, %v943_v37  ;;  %v1528_v52 = vadd.f32 %v1527_v42, %v951_v40 }
 0x23e   : > { %v1488_v49 = vpop.f32.mrb[2].mxu0  ;;  %v1531_v50 = vpop.f32.mrb[2].mxu1  ;;  %v6144_v57 = vadd.f32 %v1486_v47, %v947_v45  ;;  %v6146_v58 = vadd.f32 %v1529_v48, %v955_v46 }
 0x23f   : > { %v1489_v53 = vadd.f32 %v1488_v49, %v943_v37  ;;  %v1532_v54 = vadd.f32 %v1531_v50, %v951_v40  ;;  %v1490_v55 = vpop.f32.mrb[3].mxu0  ;;  %v1533_v56 = vpop.f32.mrb[3].mxu1 }
 0x240   : > { %v6148_v59 = vadd.f32 %v1490_v55, %v947_v45  ;;  %v6150_v60 = vadd.f32 %v1533_v56, %v955_v46 }
 0x241   : > { %v1579_v61 = vpack.c.bf16 %v1489_v53, %v1485_v51  ;;  %v1580_v62 = vpack.c.bf16 %v1532_v54, %v1528_v52 }
 0x242   : > { %v1695_v63 = vpack.c.bf16 %v6148_v59, %v6144_v57  ;;  %v1696_v0 = vpack.c.bf16 %v6150_v60, %v6146_v58 }
 0x243   : > { %4944 = vmatpush3.bf16.xpose.msra.mxu0 %v1580_v62 }
 0x244   : > { %4949 = vmatprep.subr.bf16.mxu0 %v5653_v30 }
 0x24a   : > { %4946 = vmatmul.mubr.bf16.vlgmr.msra.gmra.mrb[8].mxu0 %v1579_v61 }
 0x24b   : > { %4951 = vmatprep.mubr.msk.bf16.mxu0 %vm5654_vm4, %v5653_v30 }
 0x27c   : > { %v1570_v39 = vpop.f32.mrb[4].mxu0 }
 0x27d   : > { %v1572_v2 = vpop.f32.mrb[5].mxu0  ;;  %v1571_v4 = vadd.f32 %v1570_v39, %v959_v38 }
 0x27e   : > { %v1574_v3 = vpop.f32.mrb[6].mxu0  ;;  %v1573_v7 = vadd.f32 %v1572_v2, %v963_v1 }
 0x27f   : > { %v1575_v5 = vadd.f32 %v1574_v3, %v959_v38  ;;  %v1576_v6 = vpop.f32.mrb[7].mxu0 }
 0x280   : > { %v1577_v8 = vadd.f32 %v1576_v6, %v963_v1  ;;  %v5153_v6 = vld [vmem:[%s7330_s25] ss:$8 sps:$4 sm:$0xff]  }
 0x281   : > { %v1581_v9 = vpack.c.bf16 %v1575_v5, %v1571_v4 }
 0x282   : > { %v1697_v10 = vpack.c.bf16 %v1577_v8, %v1573_v7  ;;  %v5155_v7 = vld [vmem:[%s7330_s25 + $0x4] ss:$8 sps:$4 sm:$0xff]   ;;  %v5158_v8 = vld [vmem:[%s7330_s25 + $0x14] ss:$8 sps:$4 sm:$0xff]  }
 0x283   : > { %4950 = vmatpush3.bf16.msra.mxu0 %v1581_v9  ;;  %2016 = vmatprep.subr.bf16.mxu1 %v5155_v7  ;;  %v5156_v9 = vld [vmem:[%s7330_s25 + $0x10] ss:$8 sps:$4 sm:$0xff]  }
 0x284   : > { %4955 = vmatprep.subr.bf16.mxu0 %v5653_v30  ;;  %2017 = vmatpush1.bf16.msra.mxu1 %v5153_v6  ;;  %v5643_v6 = vld [vmem:[%s5791_s26 + $0x10] sm:$0xff] }
 0x285   : > { %2018 = vmatprep.subr.bf16.mxu1 %v5158_v8  ;;  %v5644_v8 = vld [vmem:[%s5791_s26 + $0x18] sm:$0xff] }
 0x288   : > { %2019 = vmatpush1.bf16.msra.mxu1 %v5156_v9 }
 0x31d   : > { %v1616_v36 = vpop.f32.mrb[8].mxu0 }
 0x31e   : > { %v1623_v12 = vmul.f32 0.088388346, %v1616_v36  ;;  %v4947_v13 = vpop.f32.mrb[9].mxu0  ;;  %v5159_v36 = vld [vmem:[%s7330_s25 + $0x20] ss:$8 sps:$4 sm:$0xff]  }
 0x31f   : > { %v1619_v14 = vpop.f32.mrb[10].mxu0  ;;  %v5167_v13 = vld [vmem:[%s7330_s25 + $0x44] ss:$8 sps:$4 sm:$0xff]  }
 0x320   : > { %v1624_v16 = vmul.f32 0.088388346, %v1619_v14  ;;  %v4948_v17 = vpop.f32.mrb[11].mxu0  ;;  %v1625_v18 = vadd.f32 %v1623_v12, %v758_v11  ;;  %v5162_v12 = vld [vmem:[%s7330_s25 + $0x30] ss:$8 sps:$4 sm:$0xff]  }
 0x321   : > { %v5165_v14 = vld [vmem:[%s7330_s25 + $0x40] ss:$8 sps:$4 sm:$0xff]   ;;  %v5173_v17 = vld [vmem:[%s7330_s25 + $0x64] ss:$8 sps:$4 sm:$0xff]  }
 0x322   : > { %v1628_v19 = vsel %vm1627_vm5, %v1625_v18, -inf  ;;  %v1626_v20 = vadd.f32 %v1624_v16, %v759_v15  ;;  %v5168_v16 = vld [vmem:[%s7330_s25 + $0x50] ss:$8 sps:$4 sm:$0xff]  }
 0x323   : > { %1629 = vmax.xlane.f32.xlu0 %v1628_v19  ;;  %v5176_v19 = vld [vmem:[%s7330_s25 + $0x74] ss:$8 sps:$4 sm:$0xff]  }
 0x324   : > { %v1631_v21 = vsel %vm1627_vm5, %v1626_v20, -inf }
 0x325   : > { %1632 = vmax.xlane.f32.xlu1 %v1631_v21  ;;  %v5179_v21 = vld [vmem:[%s7330_s25 + $0x84] ss:$8 sps:$4 sm:$0xff]  }
 0x3b0   : > { %v1630_v22 = vpop.xlane.xlu0 %1629 }
 0x3b1   : > { %v1634_v23 = vsub.f32 %v1625_v18, %v1630_v22  ;;  %v5171_v18 = vld [vmem:[%s7330_s25 + $0x60] ss:$8 sps:$4 sm:$0xff]  }
 0x3b2   : > { %v1633_v24 = vpop.xlane.xlu1 %1632  ;;  %v5177_v22 = vld [vmem:[%s7330_s25 + $0x80] ss:$8 sps:$4 sm:$0xff]  }
 0x3b3   : > { %v1636_v25 = vmul.f32 1.442695, %v1634_v23  ;;  %v1635_v26 = vsub.f32 %v1626_v20, %v1633_v24  ;;  %v5174_v20 = vld [vmem:[%s7330_s25 + $0x70] ss:$8 sps:$4 sm:$0xff]   ;;  %v5182_v23 = vld [vmem:[%s7330_s25 + $0x94] ss:$8 sps:$4 sm:$0xff]  }
 0x3b4   : > { %v5180_v24 = vld [vmem:[%s7330_s25 + $0x90] ss:$8 sps:$4 sm:$0xff]  }
 0x3b5   : > { %5593 = vpow2.f32 %v1636_v25  ;;  %v1638_v27 = vmul.f32 1.442695, %v1635_v26  ;;  %v5185_v25 = vld [vmem:[%s7330_s25 + $0xa4] ss:$8 sps:$4 sm:$0xff]   ;;  %v5183_v26 = vld [vmem:[%s7330_s25 + $0xa0] ss:$8 sps:$4 sm:$0xff]  }
 0x3b7   : > { %5595 = vpow2.f32 %v1638_v27  ;;  %v5188_v27 = vld [vmem:[%s7330_s25 + $0xb4] ss:$8 sps:$4 sm:$0xff]  }
 0x3bf   : > { %v5594_v28 = vpop.eup %5593 }
 0x3c0   : > { %v1640_v29 = vsel %vm1627_vm5, %v5594_v28, 0.0 }
 0x3c1   : > { %v5596_v34 = vpop.eup %5595  ;;  %1641 = vadd.xlane.f32.xlu0 %v1640_v29  ;;  %v5191_v29 = vld [vmem:[%s7330_s25 + $0xc4] ss:$8 sps:$4 sm:$0xff]  }
 0x3c2   : > { %v1643_v37 = vsel %vm1627_vm5, %v5596_v34, 0.0 }
 0x3c3   : > { %1644 = vadd.xlane.f32.xlu1 %v1643_v37  ;;  %v5194_v37 = vld [vmem:[%s7330_s25 + $0xd4] ss:$8 sps:$4 sm:$0xff]  }
 0x44e   : > { %v1642_v40 = vpop.xlane.xlu0 %1641 }
 0x44f   : > { %5597 = vrcp.f32 %v1642_v40  ;;  %v5192_v40 = vld [vmem:[%s7330_s25 + $0xd0] ss:$8 sps:$4 sm:$0xff]  }
 0x450   : > { %v1645_v41 = vpop.xlane.xlu1 %1644 }
 0x451   : > { %5599 = vrcp.f32 %v1645_v41  ;;  %v5197_v41 = vld [vmem:[%s7330_s25 + $0xe4] ss:$8 sps:$4 sm:$0xff]  }
 0x459   : > { %v5598_v42 = vpop.eup %5597 }
 0x45a   : > { %v1648_v46 = vmul.f32 %v5598_v42, %v5594_v28  ;;  %v5186_v28 = vld [vmem:[%s7330_s25 + $0xb0] ss:$8 sps:$4 sm:$0xff]   ;;  %v5195_v42 = vld [vmem:[%s7330_s25 + $0xe0] ss:$8 sps:$4 sm:$0xff]  }
 0x45b   : > { %v5600_v45 = vpop.eup %5599 }
 0x45c   : > { %v1649_v47 = vmul.f32 %v5600_v45, %v5596_v34  ;;  %v5189_v34 = vld [vmem:[%s7330_s25 + $0xc0] ss:$8 sps:$4 sm:$0xff]  }
 0x45e   : > { %v1650_v48 = vpack.c.bf16 %v1649_v47, %v1648_v46 }
 0x460   : > { %4952 = vmatmul.mubr.msk.bf16.vlgmr.msra.gmra.mrb[12].mxu0 %vm1627_vm5, %v1650_v48 }
 0x461   : > { %4956 = vmatpush3.bf16.xpose.msra.mxu0 %v1696_v0  ;;  %4957 = vmatprep.mubr.msk.bf16.mxu0 %vm5654_vm4, %v5653_v30 }
 0x462   : > { %4961 = vmatprep.subr.bf16.mxu0 %v5653_v30 }
 0x468   : > { %4958 = vmatmul.mubr.bf16.vlgmr.msra.gmra.mrb[16].mxu0 %v1695_v63 }
 0x469   : > { %4962 = vmatpush3.bf16.msra.mxu0 %v1697_v10  ;;  %4963 = vmatprep.mubr.msk.bf16.mxu0 %vm5654_vm4, %v5653_v30  ;;  %v5161_v10 = vld [vmem:[%s7330_s25 + $0x24] ss:$8 sps:$4 sm:$0xff]  }
 0x46a   : > { %2020 = vmatprep.subr.bf16.mxu1 %v5161_v10 }
 0x46b   : > { %2021 = vmatpush1.bf16.msra.mxu1 %v5159_v36 }
 0x533   : > { %v6181_v49 = vpop.f32.mrb[12].mxu0 }
 0x534   : > { %v4953_v50 = vpop.f32.mrb[13].mxu0 }
 0x535   : > { %v6183_v51 = vpop.f32.mrb[14].mxu0 }
 0x536   : > { %v1810_v52 = vpack.c.bf16 %v6183_v51, %v6181_v49  ;;  %v4954_v53 = vpop.f32.mrb[15].mxu0 }
 0x53b   : > { %v1732_v54 = vpop.f32.mrb[16].mxu0 }
 0x53c   : > { %v1739_v55 = vmul.f32 0.088388346, %v1732_v54  ;;  %v4959_v56 = vpop.f32.mrb[17].mxu0 }
 0x53d   : > { %v1735_v58 = vpop.f32.mrb[18].mxu0  ;;  %v5198_v56 = vld [vmem:[%s7330_s25 + $0xf0] ss:$8 sps:$4 sm:$0xff]  }
 0x53e   : > { %v1740_v60 = vmul.f32 0.088388346, %v1735_v58  ;;  %v4960_v57 = vpop.f32.mrb[19].mxu0  ;;  %v1741_v59 = vadd.f32 %v1739_v55, %v758_v11  ;;  %v5164_v11 = vld [vmem:[%s7330_s25 + $0x34] ss:$8 sps:$4 sm:$0xff]  }
 0x53f   : > { %2022 = vmatprep.subr.bf16.mxu1 %v5164_v11  ;;  %v5200_v55 = vld [vmem:[%s7330_s25 + $0xf4] ss:$8 sps:$4 sm:$0xff]   ;;  %v5201_v11 = vld [vmem:[%s7299_s13] ss:$16 sps:$4 sm:$0xff]  }
 0x540   : > { %v1743_v61 = vsel %vm1627_vm5, %v1741_v59, -inf  ;;  %v1742_v62 = vadd.f32 %v1740_v60, %v759_v15  ;;  %2023 = vmatpush1.bf16.msra.mxu1 %v5162_v12  ;;  %v5170_v15 = vld [vmem:[%s7330_s25 + $0x54] ss:$8 sps:$4 sm:$0xff]   ;;  %s740_s25 = scalar_lea.vmem %s7333_s2, %s7332_s5  ;;  %s750_s2 = scalar_lea.vmem %s7309_s23, %s7334_s0 }
 0x541   : > { %1744 = vmax.xlane.f32.xlu0 %v1743_v61  ;;  %2024 = vmatprep.subr.bf16.mxu1 %v5167_v13  ;;  %v5203_v12 = vld [vmem:[%s7299_s13 + $0x4] ss:$16 sps:$4 sm:$0xff]  }
 0x542   : > { %v1746_v63 = vsel %vm1627_vm5, %v1742_v62, -inf  ;;  %v5206_v13 = vld [vmem:[%s7299_s13 + $0x24] ss:$16 sps:$4 sm:$0xff]  }
 0x543   : > { %1747 = vmax.xlane.f32.xlu1 %v1746_v63 }
 0x544   : > { %2025 = vmatpush1.bf16.msra.mxu1 %v5165_v14  ;;  %v5207_v14 = vld [vmem:[%s7297_s11] ss:$8 sps:$4 sm:$0xff]  }
 0x545   : > { %2026 = vmatprep.subr.bf16.mxu1 %v5170_v15  ;;  %v5209_v15 = vld [vmem:[%s7297_s11 + $0x4] ss:$8 sps:$4 sm:$0xff]  }
 0x546   : > { %2347 = vmatprep.subr.bf16.mxu0 %v5209_v15  ;;  %v5272_v15 = vld [vmem:[%s7299_s13 + $0x184] ss:$16 sps:$4 sm:$0xff]  }
 0x548   : > { %2027 = vmatpush1.bf16.msra.mxu1 %v5168_v16  ;;  %v5204_v16 = vld [vmem:[%s7299_s13 + $0x20] ss:$16 sps:$4 sm:$0xff]  }
 0x549   : > { %2028 = vmatprep.subr.bf16.mxu1 %v5173_v17  ;;  %v5215_v17 = vld [vmem:[%s7297_s11 + $0x14] ss:$8 sps:$4 sm:$0xff]  }
 0x54c   : > { %2029 = vmatpush1.bf16.msra.mxu1 %v5171_v18  ;;  %v5212_v18 = vld [vmem:[%s7299_s13 + $0x44] ss:$16 sps:$4 sm:$0xff]  }
 0x54d   : > { %2030 = vmatprep.subr.bf16.mxu1 %v5176_v19  ;;  %v5213_v19 = vld [vmem:[%s7297_s11 + $0x10] ss:$8 sps:$4 sm:$0xff]  }
 0x550   : > { %2031 = vmatpush1.bf16.msra.mxu1 %v5174_v20  ;;  %v5221_v20 = vld [vmem:[%s7297_s11 + $0x24] ss:$8 sps:$4 sm:$0xff]  }
 0x551   : > { %2032 = vmatprep.subr.bf16.mxu1 %v5179_v21  ;;  %v5210_v21 = vld [vmem:[%s7299_s13 + $0x40] ss:$16 sps:$4 sm:$0xff]  }
 0x554   : > { %2033 = vmatpush1.bf16.msra.mxu1 %v5177_v22  ;;  %v5218_v22 = vld [vmem:[%s7299_s13 + $0x64] ss:$16 sps:$4 sm:$0xff]  }
 0x555   : > { %2034 = vmatprep.subr.bf16.mxu1 %v5182_v23  ;;  %v5219_v23 = vld [vmem:[%s7297_s11 + $0x20] ss:$8 sps:$4 sm:$0xff]  }
 0x558   : > { %2035 = vmatpush1.bf16.msra.mxu1 %v5180_v24  ;;  %v5227_v24 = vld [vmem:[%s7297_s11 + $0x34] ss:$8 sps:$4 sm:$0xff]  }
 0x559   : > { %2036 = vmatprep.subr.bf16.mxu1 %v5185_v25  ;;  %v5216_v25 = vld [vmem:[%s7299_s13 + $0x60] ss:$16 sps:$4 sm:$0xff]  }
 0x55c   : > { %2037 = vmatpush1.bf16.msra.mxu1 %v5183_v26  ;;  %v5224_v26 = vld [vmem:[%s7299_s13 + $0x84] ss:$16 sps:$4 sm:$0xff]  }
 0x55d   : > { %2038 = vmatprep.subr.bf16.mxu1 %v5188_v27  ;;  %v5225_v27 = vld [vmem:[%s7297_s11 + $0x30] ss:$8 sps:$4 sm:$0xff]  }
 0x560   : > { %2039 = vmatpush1.bf16.msra.mxu1 %v5186_v28  ;;  %v5233_v28 = vld [vmem:[%s7297_s11 + $0x44] ss:$8 sps:$4 sm:$0xff]  }
 0x561   : > { %2040 = vmatprep.subr.bf16.mxu1 %v5191_v29  ;;  %v5222_v29 = vld [vmem:[%s7299_s13 + $0x80] ss:$16 sps:$4 sm:$0xff]  }
 0x564   : > { %2041 = vmatpush1.bf16.msra.mxu1 %v5189_v34  ;;  %v5230_v34 = vld [vmem:[%s7299_s13 + $0xa4] ss:$16 sps:$4 sm:$0xff]  }
 0x565   : > { %2042 = vmatprep.subr.bf16.mxu1 %v5194_v37  ;;  %v5231_v37 = vld [vmem:[%s7297_s11 + $0x40] ss:$8 sps:$4 sm:$0xff]  }
 0x568   : > { %2043 = vmatpush1.bf16.msra.mxu1 %v5192_v40  ;;  %v5239_v40 = vld [vmem:[%s7297_s11 + $0x54] ss:$8 sps:$4 sm:$0xff]  }
 0x569   : > { %2044 = vmatprep.subr.bf16.mxu1 %v5197_v41  ;;  %v5228_v41 = vld [vmem:[%s7299_s13 + $0xa0] ss:$16 sps:$4 sm:$0xff]  }
 0x56c   : > { %2045 = vmatpush1.bf16.msra.mxu1 %v5195_v42  ;;  %v5236_v42 = vld [vmem:[%s7299_s13 + $0xc4] ss:$16 sps:$4 sm:$0xff]  }
 0x56d   : > { %2046 = vmatprep.subr.bf16.mxu1 %v5200_v55  ;;  %v5246_v55 = vld [vmem:[%s7299_s13 + $0x100] ss:$16 sps:$4 sm:$0xff]  }
 0x570   : > { %2047 = vmatpush1.bf16.msra.mxu1 %v5198_v56 }
 0x571   : > { %2798 = vmatprep.subr.bf16.mxu1 %v5203_v12  ;;  %v5261_v12 = vld [vmem:[%s7297_s11 + $0x90] ss:$8 sps:$4 sm:$0xff]  }
 0x5ce   : > { %v1745_v0 = vpop.xlane.xlu0 %1744 }
 0x5cf   : > { %v1749_v32 = vsub.f32 %v1741_v59, %v1745_v0 }
 0x5d0   : > { %v1748_v33 = vpop.xlane.xlu1 %1747 }
 0x5d1   : > { %v1751_v38 = vmul.f32 1.442695, %v1749_v32  ;;  %v1750_v39 = vsub.f32 %v1742_v62, %v1748_v33  ;;  %v1844_v62 = vld [vmem:[%s7331_s8] sm:$0x3] }
 0x5d2   : > { %v1849_v63 = vrot.slane %v1844_v62, %v6011_v43  ;;  %v1853_v0 = vrot.slane %v1844_v62, %v6014_v44 }
 0x5d3   : > { %5601 = vpow2.f32 %v1751_v38  ;;  %v1753_v1 = vmul.f32 1.442695, %v1750_v39 }
 0x5d5   : > { %5603 = vpow2.f32 %v1753_v1 }
 0x5dd   : > { %v6189_v2 = vpop.eup %5601 }
 0x5de   : > { %v1755_v3 = vsel %vm1627_vm5, %v6189_v2, 0.0 }
 0x5df   : > { %v6193_v4 = vpop.eup %5603  ;;  %1756 = vadd.xlane.f32.xlu0 %v1755_v3 }
 0x5e0   : > { %v1758_v5 = vsel %vm1627_vm5, %v6193_v4, 0.0 }
 0x5e1   : > { %1759 = vadd.xlane.f32.xlu1 %v1758_v5 }
 0x66c   : > { %v1757_v45 = vpop.xlane.xlu0 %1756 }
 0x66d   : > { %5605 = vrcp.f32 %v1757_v45  ;;  %v5237_v45 = vld [vmem:[%s7297_s11 + $0x50] ss:$8 sps:$4 sm:$0xff]  }
 0x66e   : > { %v1760_v46 = vpop.xlane.xlu1 %1759 }
 0x66f   : > { %5607 = vrcp.f32 %v1760_v46  ;;  %v5245_v46 = vld [vmem:[%s7297_s11 + $0x64] ss:$8 sps:$4 sm:$0xff]  }
 0x677   : > { %v5606_v47 = vpop.eup %5605 }
 0x678   : > { %v1763_v50 = vmul.f32 %v5606_v47, %v6189_v2  ;;  %v5641_v2 = vld [vmem:[%s5791_s26] sm:$0xff] }
 0x679   : > { %v5608_v48 = vpop.eup %5607  ;;  %v5234_v47 = vld [vmem:[%s7299_s13 + $0xc0] ss:$16 sps:$4 sm:$0xff]  }
 0x67a   : > { %v1764_v53 = vmul.f32 %v5608_v48, %v6193_v4  ;;  %v5242_v48 = vld [vmem:[%s7299_s13 + $0xe4] ss:$16 sps:$4 sm:$0xff]  }
 0x67c   : > { %v1765_v54 = vpack.c.bf16 %v1764_v53, %v1763_v50  ;;  %v5243_v50 = vld [vmem:[%s7297_s11 + $0x60] ss:$8 sps:$4 sm:$0xff]  }
 0x67d   : > { %v5240_v53 = vld [vmem:[%s7299_s13 + $0xe0] ss:$16 sps:$4 sm:$0xff]  }
 0x67e   : > { %4964 = vmatmul.mubr.msk.bf16.vlgmr.msra.gmra.mrb[20].mxu0 %vm1627_vm5, %v1765_v54  ;;  %v5248_v54 = vld [vmem:[%s7299_s13 + $0x104] ss:$16 sps:$4 sm:$0xff]  }
 0x67f   : > { %2348 = vmatpush1.bf16.msra.mxu0 %v5207_v14  ;;  %v5269_v14 = vld [vmem:[%s7297_s11 + $0xa4] ss:$8 sps:$4 sm:$0xff]  }
 0x680   : > { %2349 = vmatprep.subr.bf16.mxu0 %v5215_v17  ;;  %v5270_v17 = vld [vmem:[%s7299_s13 + $0x180] ss:$16 sps:$4 sm:$0xff]  }
 0x683   : > { %2350 = vmatpush1.bf16.msra.mxu0 %v5213_v19  ;;  %v5275_v19 = vld [vmem:[%s7297_s11 + $0xb4] ss:$8 sps:$4 sm:$0xff]  }
 0x684   : > { %2351 = vmatprep.subr.bf16.mxu0 %v5221_v20  ;;  %v5276_v20 = vld [vmem:[%s7299_s13 + $0x1a0] ss:$16 sps:$4 sm:$0xff]  }
 0x687   : > { %2352 = vmatpush1.bf16.msra.mxu0 %v5219_v23  ;;  %v5284_v23 = vld [vmem:[%s7299_s13 + $0x1c4] ss:$16 sps:$4 sm:$0xff]  }
 0x688   : > { %2353 = vmatprep.subr.bf16.mxu0 %v5227_v24  ;;  %v5279_v24 = vld [vmem:[%s7297_s11 + $0xc0] ss:$8 sps:$4 sm:$0xff]  }
 0x68b   : > { %2354 = vmatpush1.bf16.msra.mxu0 %v5225_v27  ;;  %v5287_v27 = vld [vmem:[%s7297_s11 + $0xd4] ss:$8 sps:$4 sm:$0xff]  }
 0x68c   : > { %2355 = vmatprep.subr.bf16.mxu0 %v5233_v28  ;;  %v5290_v28 = vld [vmem:[%s7299_s13 + $0x1e4] ss:$16 sps:$4 sm:$0xff]  }
 0x68f   : > { %2356 = vmatpush1.bf16.msra.mxu0 %v5231_v37  ;;  %v5288_v37 = vld [vmem:[%s7299_s13 + $0x1e0] ss:$16 sps:$4 sm:$0xff]  }
 0x690   : > { %2357 = vmatprep.subr.bf16.mxu0 %v5239_v40  ;;  %v756_v40 = vld [vmem:[%s740_s25] sm:$0xff] }
 0x693   : > { %2358 = vmatpush1.bf16.msra.mxu0 %v5237_v45  ;;  %v5291_v45 = vld [vmem:[%s7297_s11 + $0xe0] ss:$8 sps:$4 sm:$0xff]  }
 0x694   : > { %2359 = vmatprep.subr.bf16.mxu0 %v5245_v46  ;;  %v5296_v46 = vld [vmem:[%s7297_s11 + $0xf4] ss:$8 sps:$4 sm:$0xff]  }
 0x697   : > { %2360 = vmatpush1.bf16.msra.mxu0 %v5243_v50 }
 0x751   : > { %v1803_v58 = vpop.f32.mrb[20].mxu0 }
 0x752   : > { %v4965_v60 = vpop.f32.mrb[21].mxu0 }
 0x753   : > { %v1806_v57 = vpop.f32.mrb[22].mxu0 }
 0x754   : > { %v1811_v59 = vpack.c.bf16 %v1806_v57, %v1803_v58  ;;  %v4966_v61 = vpop.f32.mrb[23].mxu0 }
 0x756   : > { %2048 = vmatprep.mubr.bf16.mxu1 %v1811_v59 }
 0x757   : > { %2049 = vmatmul.mubr.bf16.vlgmr.msra.gmra.mrb[4].mxu1 %v1810_v52  ;;  %v5642_v52 = vld [vmem:[%s5791_s26 + $0x8] sm:$0xff] }
 0x758   : > { %2799 = vmatpush1.bf16.msra.mxu1 %v5201_v11  ;;  %v5266_v11 = vld [vmem:[%s7299_s13 + $0x164] ss:$16 sps:$4 sm:$0xff]  }
 0x759   : > { %2800 = vmatprep.subr.bf16.mxu1 %v5206_v13  ;;  %v5264_v13 = vld [vmem:[%s7299_s13 + $0x160] ss:$16 sps:$4 sm:$0xff]  }
 0x75c   : > { %2801 = vmatpush1.bf16.msra.mxu1 %v5204_v16  ;;  %v5267_v16 = vld [vmem:[%s7297_s11 + $0xa0] ss:$8 sps:$4 sm:$0xff]  }
 0x75d   : > { %2802 = vmatprep.subr.bf16.mxu1 %v5212_v18  ;;  %v5273_v18 = vld [vmem:[%s7297_s11 + $0xb0] ss:$8 sps:$4 sm:$0xff]  }
 0x760   : > { %2803 = vmatpush1.bf16.msra.mxu1 %v5210_v21  ;;  %v5278_v21 = vld [vmem:[%s7299_s13 + $0x1a4] ss:$16 sps:$4 sm:$0xff]  }
 0x761   : > { %2804 = vmatprep.subr.bf16.mxu1 %v5218_v22  ;;  %v5281_v22 = vld [vmem:[%s7297_s11 + $0xc4] ss:$8 sps:$4 sm:$0xff]  }
 0x764   : > { %2805 = vmatpush1.bf16.msra.mxu1 %v5216_v25  ;;  %v5282_v25 = vld [vmem:[%s7299_s13 + $0x1c0] ss:$16 sps:$4 sm:$0xff]  }
 0x765   : > { %2806 = vmatprep.subr.bf16.mxu1 %v5224_v26  ;;  %v757_v26 = vld [vmem:[%s740_s25 + $0x8] sm:$0xff] }
 0x768   : > { %2807 = vmatpush1.bf16.msra.mxu1 %v5222_v29  ;;  %v6519_v29 = vpack.c.bf16 %v757_v26, %v757_v26 }
 0x769   : > { %2808 = vmatprep.subr.bf16.mxu1 %v5230_v34  ;;  %v5285_v34 = vld [vmem:[%s7297_s11 + $0xd0] ss:$8 sps:$4 sm:$0xff]  }
 0x76a   : > { %2830 = vmatprep.mubr.bf16.mxu1 %v6519_v29 }
 0x76c   : > { %2809 = vmatpush1.bf16.msra.mxu1 %v5228_v41  ;;  %v5293_v41 = vld [vmem:[%s7297_s11 + $0xe4] ss:$8 sps:$4 sm:$0xff]  }
 0x76d   : > { %2810 = vmatprep.subr.bf16.mxu1 %v5236_v42  ;;  %v6531_v42 = vpack.c.bf16 %v756_v40, %v756_v40 }
 0x770   : > { %2811 = vmatpush1.bf16.msra.mxu1 %v5234_v47  ;;  %v5294_v47 = vld [vmem:[%s7297_s11 + $0xf0] ss:$8 sps:$4 sm:$0xff]  }
 0x771   : > { %2812 = vmatprep.subr.bf16.mxu1 %v5242_v48 }
 0x774   : > { %2813 = vmatpush1.bf16.msra.mxu1 %v5240_v53 }
 0x775   : > { %2814 = vmatprep.subr.bf16.mxu1 %v5248_v54 }
 0x778   : > { %2815 = vmatpush1.bf16.msra.mxu1 %v5246_v55 }
 0x82a   : > { %v2050_v32 = vpop.f32.mrb[4].mxu1 }
 0x82b   : > { %v2051_v33 = vadd.f32 %v2050_v32, %v1849_v63  ;;  %v2052_v38 = vpop.f32.mrb[5].mxu1 }
 0x82c   : > { %v2053_v39 = vadd.f32 %v2052_v38, %v1853_v0  ;;  %v2054_v1 = vpop.f32.mrb[6].mxu1 }
 0x82d   : > { %v6305_v3 = vadd.f32 %v5641_v2, %v2051_v33  ;;  %v2055_v49 = vadd.f32 %v2054_v1, %v1849_v63  ;;  %v2056_v51 = vpop.f32.mrb[7].mxu1  ;;  %v5251_v2 = vld [vmem:[%s7297_s11 + $0x74] ss:$8 sps:$4 sm:$0xff]  }
 0x82e   : > { %v6308_v4 = vadd.f32 %v5642_v52, %v2053_v39  ;;  %v2057_v5 = vadd.f32 %v2056_v51, %v1853_v0  ;;  %v5249_v51 = vld [vmem:[%s7297_s11 + $0x70] ss:$8 sps:$4 sm:$0xff]   ;;  %2361 = vmatprep.subr.bf16.mxu0 %v5251_v2 }
 0x82f   : > { %v6311_v7 = vadd.f32 %v5643_v6, %v2055_v49  ;;  %v5254_v49 = vld [vmem:[%s7299_s13 + $0x124] ss:$16 sps:$4 sm:$0xff]   ;;  %v5252_v52 = vld [vmem:[%s7299_s13 + $0x120] ss:$16 sps:$4 sm:$0xff]   ;;  %2362 = vmatpush1.bf16.msra.mxu0 %v5249_v51 }
 0x830   : > { %v6314_v9 = vadd.f32 %v5644_v8, %v2057_v5  ;;  %v2065_v10 = vadd.f32 %v6308_v4, %v6305_v3  ;;  %2816 = vmatprep.subr.bf16.mxu1 %v5254_v49  ;;  %v5257_v5 = vld [vmem:[%s7297_s11 + $0x84] ss:$8 sps:$4 sm:$0xff]   ;;  %v5255_v8 = vld [vmem:[%s7297_s11 + $0x80] ss:$8 sps:$4 sm:$0xff]  }
 0x831   : > { %2817 = vmatpush1.bf16.msra.mxu1 %v5252_v52  ;;  %v5260_v6 = vld [vmem:[%s7299_s13 + $0x144] ss:$16 sps:$4 sm:$0xff]   ;;  %2363 = vmatprep.subr.bf16.mxu0 %v5257_v5  ;;  %v2063_v49 = vld [vmem:[%s7295_s9] sm:$0x3] }
 0x832   : > { %2066 = vadd.xlane.f32.xlu0 %v2065_v10  ;;  %v2068_v36 = vadd.f32 %v6314_v9, %v6311_v7  ;;  %v5258_v10 = vld [vmem:[%s7299_s13 + $0x140] ss:$16 sps:$4 sm:$0xff]   ;;  %2818 = vmatprep.subr.bf16.mxu1 %v5260_v6  ;;  %v2107_v51 = vrot.slane %v2063_v49, %v6011_v43  ;;  %v2111_v52 = vrot.slane %v2063_v49, %v6014_v44  ;;  %v5312_v49 = vld [vmem:[%s7299_s13 + $0xa8] ss:$16 sps:$4 sm:$0xff]  }
 0x833   : > { %2364 = vmatpush1.bf16.msra.mxu0 %v5255_v8  ;;  %v2064_v5 = vld [vmem:[%s7296_s10] sm:$0x3] }
 0x834   : > { %2069 = vadd.xlane.f32.xlu1 %v2068_v36  ;;  %v5263_v36 = vld [vmem:[%s7297_s11 + $0x94] ss:$8 sps:$4 sm:$0xff]  }
 0x835   : > { %2819 = vmatpush1.bf16.msra.mxu1 %v5258_v10  ;;  %2365 = vmatprep.subr.bf16.mxu0 %v5263_v36 }
 0x836   : > { %2820 = vmatprep.subr.bf16.mxu1 %v5266_v11 }
 0x837   : > { %2366 = vmatpush1.bf16.msra.mxu0 %v5261_v12  ;;  %v2130_v12 = vrot.slane %v2064_v5, %v6011_v43 }
 0x838   : > { %2367 = vmatprep.subr.bf16.mxu0 %v5269_v14 }
 0x839   : > { %2821 = vmatpush1.bf16.msra.mxu1 %v5264_v13  ;;  %v2134_v13 = vrot.slane %v2064_v5, %v6014_v44  ;;  %v5320_v5 = vld [vmem:[%s7299_s13 + $0xec] ss:$16 sps:$4 sm:$0xff]  }
 0x83a   : > { %2822 = vmatprep.subr.bf16.mxu1 %v5272_v15 }
 0x83b   : > { %2368 = vmatpush1.bf16.msra.mxu0 %v5267_v16 }
 0x83c   : > { %2369 = vmatprep.subr.bf16.mxu0 %v5275_v19 }
 0x83d   : > { %2823 = vmatpush1.bf16.msra.mxu1 %v5270_v17 }
 0x83e   : > { %2824 = vmatprep.subr.bf16.mxu1 %v5278_v21 }
 0x83f   : > { %2370 = vmatpush1.bf16.msra.mxu0 %v5273_v18 }
 0x840   : > { %2371 = vmatprep.subr.bf16.mxu0 %v5281_v22 }
 0x841   : > { %2825 = vmatpush1.bf16.msra.mxu1 %v5276_v20 }
 0x842   : > { %2826 = vmatprep.subr.bf16.mxu1 %v5284_v23 }
 0x843   : > { %2372 = vmatpush1.bf16.msra.mxu0 %v5279_v24 }
 0x844   : > { %2373 = vmatprep.subr.bf16.mxu0 %v5287_v27 }
 0x845   : > { %2827 = vmatpush1.bf16.msra.mxu1 %v5282_v25 }
 0x846   : > { %2828 = vmatprep.subr.bf16.mxu1 %v5290_v28 }
 0x847   : > { %2374 = vmatpush1.bf16.msra.mxu0 %v5285_v34 }
 0x848   : > { %2375 = vmatprep.subr.bf16.mxu0 %v5293_v41 }
 0x849   : > { %2829 = vmatpush1.bf16.msra.mxu1 %v5288_v37 }
 0x84a   : > { %4967 = vmatprep.subr.bf16.mxu1 %v5653_v30 }
 0x84b   : > { %2376 = vmatpush1.bf16.msra.mxu0 %v5291_v45 }
 0x84c   : > { %2831 = vmatmul.mubr.bf16.vlgmr.msra.gmra.mrb[8].mxu1 %v6531_v42  ;;  %2377 = vmatprep.subr.bf16.mxu0 %v5296_v46 }
 0x84d   : > { %4969 = vmatprep.mubr.msk.bf16.mxu1 %vm5654_vm4, %v5653_v30 }
 0x84f   : > { %2378 = vmatpush1.bf16.msra.mxu0 %v5294_v47 }
 0x8bf   : > { %v2067_v56 = vpop.xlane.xlu0 %2066 }
 0x8c0   : > { %v2071_v58 = vmul.f32 0.00390625, %v2067_v56 }
 0x8c1   : > { %v2070_v60 = vpop.xlane.xlu1 %2069 }
 0x8c2   : > { %v6417_v57 = vsub.f32 %v6305_v3, %v2071_v58  ;;  %v6420_v59 = vsub.f32 %v6308_v4, %v2071_v58  ;;  %v2072_v61 = vmul.f32 0.00390625, %v2070_v60 }
 0x8c4   : > { %v6423_v62 = vsub.f32 %v6311_v7, %v2072_v61  ;;  %v6426_v63 = vsub.f32 %v6314_v9, %v2072_v61  ;;  %v2077_v0 = vmul.f32 %v6417_v57, %v6417_v57  ;;  %v2078_v32 = vmul.f32 %v6420_v59, %v6420_v59 }
 0x8c5   : > { %v2114_v6 = vmul.f32 %v2107_v51, %v6417_v57  ;;  %v2115_v8 = vmul.f32 %v2111_v52, %v6420_v59 }
 0x8c6   : > { %v2079_v33 = vmul.f32 %v6423_v62, %v6423_v62  ;;  %v2080_v38 = vmul.f32 %v6426_v63, %v6426_v63  ;;  %v2081_v39 = vadd.f32 %v2078_v32, %v2077_v0  ;;  %v2116_v36 = vmul.f32 %v2107_v51, %v6423_v62  ;;  %v6564_v62 = vld [vmem:[%s7300_s14] sm:$0xf]  ;;  %v5317_v51 = vld [vmem:[%s7299_s13 + $0xcc] ss:$16 sps:$4 sm:$0xff]  }
 0x8c7   : > { %v2117_v11 = vmul.f32 %v2111_v52, %v6426_v63  ;;  %v2461_v63 = vrot.slane %v6564_v62, %v6011_v43  ;;  %v5315_v52 = vld [vmem:[%s7299_s13 + $0xc8] ss:$16 sps:$4 sm:$0xff]  }
 0x8c8   : > { %v2084_v1 = vadd.f32 %v2080_v38, %v2079_v33  ;;  %2082 = vadd.xlane.f32.xlu0 %v2081_v39 }
 0x8ca   : > { %2085 = vadd.xlane.f32.xlu1 %v2084_v1 }
 0x91f   : > { %v2832_v23 = vpop.f32.mrb[8].mxu1 }
 0x920   : > { %v2833_v24 = vadd.f32 %v2832_v23, %v2461_v63  ;;  %v6568_v25 = vpop.f32.mrb[9].mxu1 }
 0x921   : > { %v2836_v26 = vpop.f32.mrb[10].mxu1 }
 0x922   : > { %v2881_v27 = vpack.c.bf16 %v2833_v24, %v2833_v24  ;;  %v2837_v28 = vpop.f32.mrb[11].mxu1 }
 0x924   : > { %4968 = vmatpush3.bf16.xpose.msra.mxu1 %v2881_v27 }
 0x925   : > { %4973 = vmatprep.subr.bf16.mxu1 %v5653_v30 }
 0x955   : > { %v2083_v48 = vpop.xlane.xlu0 %2082 }
 0x956   : > { %v2087_v50 = vmul.f32 0.003921569, %v2083_v48 }
 0x957   : > { %v2086_v53 = vpop.xlane.xlu1 %2085 }
 0x958   : > { %v2088_v54 = vmul.f32 0.003921569, %v2086_v53  ;;  %5609 = vrsqrt.f32 %v2087_v50  ;;  %vm2091_vm6 = vcmp.eq.f32.partialorder %v2087_v50, inf  ;;  %v2094_v60 = vand.u32 2147483648, %v2087_v50 }
 0x959   : > { %vm2093_vm7 = vcmp.eq.f32.partialorder %v2087_v50, 0.0 }
 0x95a   : > { %5611 = vrsqrt.f32 %v2088_v54  ;;  %vm2098_vm8 = vcmp.eq.f32.partialorder %v2088_v54, inf  ;;  %v2101_v32 = vand.u32 2147483648, %v2088_v54  ;;  %vm2100_vm9 = vcmp.eq.f32.partialorder %v2088_v54, 0.0 }
 0x962   : > { %v5610_v55 = vpop.eup %5609 }
 0x963   : > { %v2090_v58 = vmul.f32 %v5610_v55, %v2087_v50 }
 0x964   : > { %v5612_v56 = vpop.eup %5611 }
 0x965   : > { %v2097_v61 = vmul.f32 %v5612_v56, %v2088_v54  ;;  %v2092_v0 = vsel %vm2091_vm6, %v2087_v50, %v2090_v58  ;;  %v5297_v56 = vld [vmem:[%s7299_s13 + $0x8] ss:$16 sps:$4 sm:$0xff]   ;;  %v5299_v58 = vld [vmem:[%s7299_s13 + $0xc] ss:$16 sps:$4 sm:$0xff]  }
 0x966   : > { %v2095_v38 = vsel %vm2093_vm7, %v2094_v60, %v2092_v0  ;;  %v5302_v60 = vld [vmem:[%s7299_s13 + $0x2c] ss:$16 sps:$4 sm:$0xff]   ;;  %2839 = vmatprep.subr.bf16.mxu0 %v5299_v58  ;;  %v2469_v58 = vrot.slane %v6564_v62, %v6132_v31 }
 0x967   : > { %v2099_v33 = vsel %vm2098_vm8, %v2088_v54, %v2097_v61  ;;  %v2118_v1 = vadd.f32 1e-06, %v2095_v38  ;;  %v5300_v61 = vld [vmem:[%s7299_s13 + $0x28] ss:$16 sps:$4 sm:$0xff]   ;;  %v5305_v0 = vld [vmem:[%s7299_s13 + $0x4c] ss:$16 sps:$4 sm:$0xff]  }
 0x968   : > { %v2102_v39 = vsel %vm2100_vm9, %v2101_v32, %v2099_v33  ;;  %v5303_v32 = vld [vmem:[%s7299_s13 + $0x48] ss:$16 sps:$4 sm:$0xff]   ;;  %v5308_v33 = vld [vmem:[%s7299_s13 + $0x6c] ss:$16 sps:$4 sm:$0xff]  }
 0x969   : > { %v2119_v2 = vadd.f32 1e-06, %v2102_v39  ;;  %5613 = vrcp.f32 %v2118_v1  ;;  %v5306_v38 = vld [vmem:[%s7299_s13 + $0x68] ss:$16 sps:$4 sm:$0xff]   ;;  %v5311_v39 = vld [vmem:[%s7299_s13 + $0x8c] ss:$16 sps:$4 sm:$0xff]  }
 0x96a   : > { %v5309_v1 = vld [vmem:[%s7299_s13 + $0x88] ss:$16 sps:$4 sm:$0xff]  }
 0x96b   : > { %5615 = vrcp.f32 %v2119_v2  ;;  %v5314_v2 = vld [vmem:[%s7299_s13 + $0xac] ss:$16 sps:$4 sm:$0xff]  }
 0x973   : > { %v5614_v10 = vpop.eup %5613 }
 0x974   : > { %v2122_v15 = vmul.f32 %v5614_v10, %v2115_v8  ;;  %v2121_v16 = vmul.f32 %v5614_v10, %v2114_v6  ;;  %v5318_v6 = vld [vmem:[%s7299_s13 + $0xe8] ss:$16 sps:$4 sm:$0xff]   ;;  %v5323_v8 = vld [vmem:[%s7299_s13 + $0x10c] ss:$16 sps:$4 sm:$0xff]  }
 0x975   : > { %v5616_v14 = vpop.eup %5615  ;;  %v5321_v10 = vld [vmem:[%s7299_s13 + $0x108] ss:$16 sps:$4 sm:$0xff]  }
 0x976   : > { %v2125_v17 = vmul.f32 %v5616_v14, %v2117_v11  ;;  %v2124_v18 = vmul.f32 %v5616_v14, %v2116_v36  ;;  %v2138_v19 = vadd.f32 %v2134_v13, %v2122_v15  ;;  %v2137_v21 = vadd.f32 %v2130_v12, %v2121_v16  ;;  %v5326_v36 = vld [vmem:[%s7299_s13 + $0x12c] ss:$16 sps:$4 sm:$0xff]   ;;  %v5324_v11 = vld [vmem:[%s7299_s13 + $0x128] ss:$16 sps:$4 sm:$0xff]  }
 0x977   : > { %v5332_v14 = vld [vmem:[%s7299_s13 + $0x16c] ss:$16 sps:$4 sm:$0xff]   ;;  %v5330_v15 = vld [vmem:[%s7299_s13 + $0x168] ss:$16 sps:$4 sm:$0xff]  }
 0x978   : > { %v2140_v20 = vadd.f32 %v2134_v13, %v2125_v17  ;;  %v2139_v57 = vadd.f32 %v2130_v12, %v2124_v18  ;;  %v5329_v12 = vld [vmem:[%s7299_s13 + $0x14c] ss:$16 sps:$4 sm:$0xff]   ;;  %v5327_v13 = vld [vmem:[%s7299_s13 + $0x148] ss:$16 sps:$4 sm:$0xff]  }
 0x979   : > { %v5335_v16 = vld [vmem:[%s7299_s13 + $0x18c] ss:$16 sps:$4 sm:$0xff]   ;;  %v5333_v17 = vld [vmem:[%s7299_s13 + $0x188] ss:$16 sps:$4 sm:$0xff]  }
 0x97a   : > { %v2142_v22 = vpack.c.bf16 %v2140_v20, %v2138_v19  ;;  %v2141_v59 = vpack.c.bf16 %v2139_v57, %v2137_v21  ;;  %v5338_v18 = vld [vmem:[%s7299_s13 + $0x1ac] ss:$16 sps:$4 sm:$0xff]   ;;  %v5336_v19 = vld [vmem:[%s7299_s13 + $0x1a8] ss:$16 sps:$4 sm:$0xff]  }
 0x97b   : > { %v5341_v20 = vld [vmem:[%s7299_s13 + $0x1cc] ss:$16 sps:$4 sm:$0xff]   ;;  %v5339_v21 = vld [vmem:[%s7299_s13 + $0x1c8] ss:$16 sps:$4 sm:$0xff]  }
 0x97c   : > { %2379 = vmatprep.mubr.bf16.mxu0 %v2142_v22  ;;  %v5344_v57 = vld [vmem:[%s7299_s13 + $0x1ec] ss:$16 sps:$4 sm:$0xff]   ;;  %v5342_v22 = vld [vmem:[%s7299_s13 + $0x1e8] ss:$16 sps:$4 sm:$0xff]  }
 0x97d   : > { %2380 = vmatmul.mubr.bf16.vlgmr.msra.gmra.mrb[24].mxu0 %v2141_v59 }
 0x97e   : > { %2871 = vmatprep.mubr.bf16.mxu0 %v6519_v29  ;;  %v2175_v29 = vld [vmem:[%s7298_s12] sm:$0x3]  ;;  %2840 = vmatpush1.bf16.msra.mxu0 %v5297_v56 }
 0x97f   : > { %v2180_v34 = vrot.slane %v2175_v29, %v6011_v43  ;;  %v2184_v40 = vrot.slane %v2175_v29, %v6014_v44  ;;  %2841 = vmatprep.subr.bf16.mxu0 %v5302_v60 }
 0x982   : > { %2842 = vmatpush1.bf16.msra.mxu0 %v5300_v61  ;;  %v2473_v61 = vrot.slane %v6564_v62, %v6138_v35 }
 0x983   : > { %2843 = vmatprep.subr.bf16.mxu0 %v5305_v0 }
 0x986   : > { %2844 = vmatpush1.bf16.msra.mxu0 %v5303_v32 }
 0x987   : > { %2845 = vmatprep.subr.bf16.mxu0 %v5308_v33 }
 0x98a   : > { %2846 = vmatpush1.bf16.msra.mxu0 %v5306_v38 }
 0x98b   : > { %2847 = vmatprep.subr.bf16.mxu0 %v5311_v39 }
 0x98e   : > { %2848 = vmatpush1.bf16.msra.mxu0 %v5309_v1 }
 0x98f   : > { %2849 = vmatprep.subr.bf16.mxu0 %v5314_v2 }
 0x992   : > { %2850 = vmatpush1.bf16.msra.mxu0 %v5312_v49 }
 0x993   : > { %2851 = vmatprep.subr.bf16.mxu0 %v5317_v51 }
 0x996   : > { %2852 = vmatpush1.bf16.msra.mxu0 %v5315_v52 }
 0x997   : > { %2853 = vmatprep.subr.bf16.mxu0 %v5320_v5  ;;  %v2465_v5 = vrot.slane %v6564_v62, %v6014_v44 }
 0x99a   : > { %2854 = vmatpush1.bf16.msra.mxu0 %v5318_v6 }
 0x99b   : > { %2855 = vmatprep.subr.bf16.mxu0 %v5323_v8 }
 0x99e   : > { %2856 = vmatpush1.bf16.msra.mxu0 %v5321_v10  ;;  %v2835_v10 = vadd.f32 %v6568_v25, %v2465_v5  ;;  %v5381_v5 = vld [vmem:[%s7301_s15 + $0xc0] ss:$8 sps:$4 sm:$0xff]  }
 0x99f   : > { %2857 = vmatprep.subr.bf16.mxu0 %v5326_v36 }
 0x9a2   : > { %2858 = vmatpush1.bf16.msra.mxu0 %v5324_v11 }
 0x9a3   : > { %2859 = vmatprep.subr.bf16.mxu0 %v5329_v12 }
 0x9a6   : > { %2860 = vmatpush1.bf16.msra.mxu0 %v5327_v13  ;;  %v2999_v13 = vpack.c.bf16 %v2835_v10, %v2835_v10  ;;  %v5389_v10 = vld [vmem:[%s7301_s15 + $0xe4] ss:$8 sps:$4 sm:$0xff]  }
 0x9a7   : > { %2861 = vmatprep.subr.bf16.mxu0 %v5332_v14 }
 0x9aa   : > { %2862 = vmatpush1.bf16.msra.mxu0 %v5330_v15 }
 0x9ab   : > { %2863 = vmatprep.subr.bf16.mxu0 %v5335_v16 }
 0x9ae   : > { %2864 = vmatpush1.bf16.msra.mxu0 %v5333_v17 }
 0x9af   : > { %2865 = vmatprep.subr.bf16.mxu0 %v5338_v18 }
 0x9b2   : > { %2866 = vmatpush1.bf16.msra.mxu0 %v5336_v19 }
 0x9b3   : > { %2867 = vmatprep.subr.bf16.mxu0 %v5341_v20 }
 0x9b6   : > { %2868 = vmatpush1.bf16.msra.mxu0 %v5339_v21 }
 0x9b7   : > { %2869 = vmatprep.subr.bf16.mxu0 %v5344_v57 }
 0x9ba   : > { %2870 = vmatpush1.bf16.msra.mxu0 %v5342_v22 }
 0x9bd   : > { %2872 = vmatmul.mubr.bf16.vlgmr.msra.gmra.mrb[28].mxu0 %v6531_v42 }
 0xa50   : > { %v2381_v37 = vpop.f32.mrb[24].mxu0 }
 0xa51   : > { %v2383_v41 = vpop.f32.mrb[25].mxu0  ;;  %v2382_v46 = vadd.f32 %v2381_v37, %v2180_v34 }
 0xa52   : > { %v2385_v45 = vpop.f32.mrb[26].mxu0  ;;  %v6576_v50 = vadd.f32 %v2383_v41, %v2184_v40 }
 0xa53   : > { %v2386_v47 = vadd.f32 %v2385_v45, %v2180_v34  ;;  %v2387_v48 = vpop.f32.mrb[27].mxu0 }
 0xa54   : > { %v6578_v53 = vadd.f32 %v2387_v48, %v2184_v40 }
 0xa55   : > { %v2880_v54 = vpack.c.bf16 %v2386_v47, %v2382_v46 }
 0xa56   : > { %v2998_v55 = vpack.c.bf16 %v6578_v53, %v6576_v50 }
 0xa57   : > { %4970 = vmatmul.mubr.bf16.vlgmr.msra.gmra.mrb[12].mxu1 %v2880_v54 }
 0xa58   : > { %4975 = vmatprep.mubr.msk.bf16.mxu1 %vm5654_vm4, %v5653_v30 }
 0xa90   : > { %v2873_v56 = vpop.f32.mrb[28].mxu0 }
 0xa91   : > { %v2875_v60 = vpop.f32.mrb[29].mxu0  ;;  %v2874_v32 = vadd.f32 %v2873_v56, %v2469_v58  ;;  %v5360_v56 = vld [vmem:[%s7301_s15 + $0x50] ss:$8 sps:$4 sm:$0xff]   ;;  %v5365_v58 = vld [vmem:[%s7301_s15 + $0x64] ss:$8 sps:$4 sm:$0xff]  }
 0xa92   : > { %v2877_v0 = vpop.f32.mrb[30].mxu0  ;;  %v2876_v38 = vadd.f32 %v2875_v60, %v2473_v61  ;;  %v5363_v60 = vld [vmem:[%s7301_s15 + $0x60] ss:$8 sps:$4 sm:$0xff]   ;;  %v5368_v61 = vld [vmem:[%s7301_s15 + $0x74] ss:$8 sps:$4 sm:$0xff]  }
 0xa93   : > { %v2878_v33 = vpop.f32.mrb[31].mxu0  ;;  %v2882_v39 = vpack.c.bf16 %v2874_v32, %v2874_v32  ;;  %v5366_v0 = vld [vmem:[%s7301_s15 + $0x70] ss:$8 sps:$4 sm:$0xff]   ;;  %v5371_v32 = vld [vmem:[%s7301_s15 + $0x84] ss:$8 sps:$4 sm:$0xff]  }
 0xa94   : > { %v3000_v1 = vpack.c.bf16 %v2876_v38, %v2876_v38  ;;  %v5369_v33 = vld [vmem:[%s7301_s15 + $0x80] ss:$8 sps:$4 sm:$0xff]   ;;  %v5374_v38 = vld [vmem:[%s7301_s15 + $0x94] ss:$8 sps:$4 sm:$0xff]  }
 0xa95   : > { %v2955_v2 = vsel %vm2953_vm11, %v2882_v39, 0  ;;  %v5372_v39 = vld [vmem:[%s7301_s15 + $0x90] ss:$8 sps:$4 sm:$0xff]  }
 0xa96   : > { %v3071_v49 = vsel %vm2953_vm11, %v3000_v1, 0  ;;  %4974 = vmatpush3.bf16.msra.mxu1 %v2955_v2  ;;  %v5377_v1 = vld [vmem:[%s7301_s15 + $0xa4] ss:$8 sps:$4 sm:$0xff]   ;;  %v5375_v2 = vld [vmem:[%s7301_s15 + $0xa0] ss:$8 sps:$4 sm:$0xff]  }
 0xa97   : > { %4979 = vmatprep.subr.bf16.mxu1 %v5653_v30 }
 0xb2a   : > { %v2917_v59 = vpop.f32.mrb[12].mxu1 }
 0xb2b   : > { %v2924_v63 = vmul.f32 0.088388346, %v2917_v59  ;;  %v4971_v23 = vpop.f32.mrb[13].mxu1 }
 0xb2c   : > { %v2920_v24 = vpop.f32.mrb[14].mxu1 }
 0xb2d   : > { %v2925_v26 = vmul.f32 0.088388346, %v2920_v24  ;;  %v4972_v27 = vpop.f32.mrb[15].mxu1  ;;  %v2927_v28 = vsel %vm2926_vm10, %v2924_v63, -inf }
 0xb2e   : > { %2928 = vmax.xlane.f32.xlu0 %v2927_v28 }
 0xb2f   : > { %v2930_v29 = vsel %vm2926_vm10, %v2925_v26, -inf }
 0xb30   : > { %2931 = vmax.xlane.f32.xlu1 %v2930_v29  ;;  %v5345_v29 = vld [vmem:[%s7301_s15] ss:$8 sps:$4 sm:$0xff]  }
 0xbbb   : > { %v2929_v34 = vpop.xlane.xlu0 %2928 }
 0xbbc   : > { %v2933_v37 = vsub.f32 %v2924_v63, %v2929_v34  ;;  %v5347_v34 = vld [vmem:[%s7301_s15 + $0x4] ss:$8 sps:$4 sm:$0xff]  }
 0xbbd   : > { %v2932_v40 = vpop.xlane.xlu1 %2931  ;;  %3320 = vmatprep.subr.bf16.mxu0 %v5347_v34 }
 0xbbe   : > { %v2935_v41 = vmul.f32 1.442695, %v2933_v37  ;;  %v2934_v45 = vsub.f32 %v2925_v26, %v2932_v40  ;;  %v5350_v37 = vld [vmem:[%s7301_s15 + $0x14] ss:$8 sps:$4 sm:$0xff]   ;;  %3321 = vmatpush1.bf16.msra.mxu0 %v5345_v29  ;;  %v5348_v40 = vld [vmem:[%s7301_s15 + $0x10] ss:$8 sps:$4 sm:$0xff]  }
 0xbbf   : > { %3322 = vmatprep.subr.bf16.mxu0 %v5350_v37 }
 0xbc0   : > { %5617 = vpow2.f32 %v2935_v41  ;;  %v2937_v42 = vmul.f32 1.442695, %v2934_v45  ;;  %v5353_v41 = vld [vmem:[%s7301_s15 + $0x24] ss:$8 sps:$4 sm:$0xff]   ;;  %v5351_v45 = vld [vmem:[%s7301_s15 + $0x20] ss:$8 sps:$4 sm:$0xff]  }
 0xbc2   : > { %5619 = vpow2.f32 %v2937_v42  ;;  %3323 = vmatpush1.bf16.msra.mxu0 %v5348_v40  ;;  %v5356_v42 = vld [vmem:[%s7301_s15 + $0x34] ss:$8 sps:$4 sm:$0xff]  }
 0xbc3   : > { %3324 = vmatprep.subr.bf16.mxu0 %v5353_v41  ;;  %v5398_v41 = vld [vmem:[%s7305_s19 + $0xc] ss:$16 sps:$4 sm:$0xff]  }
 0xbc6   : > { %3325 = vmatpush1.bf16.msra.mxu0 %v5351_v45  ;;  %v5401_v45 = vld [vmem:[%s7305_s19 + $0x24] ss:$16 sps:$4 sm:$0xff]  }
 0xbc7   : > { %3326 = vmatprep.subr.bf16.mxu0 %v5356_v42  ;;  %v5404_v42 = vld [vmem:[%s7305_s19 + $0x2c] ss:$16 sps:$4 sm:$0xff]  }
 0xbca   : > { %v5618_v46 = vpop.eup %5617 }
 0xbcb   : > { %v2939_v47 = vsel %vm2926_vm10, %v5618_v46, 0.0 }
 0xbcc   : > { %v5620_v48 = vpop.eup %5619  ;;  %2940 = vadd.xlane.f32.xlu0 %v2939_v47  ;;  %v5359_v47 = vld [vmem:[%s7301_s15 + $0x44] ss:$8 sps:$4 sm:$0xff]  }
 0xbcd   : > { %v2942_v54 = vsel %vm2926_vm10, %v5620_v48, 0.0 }
 0xbce   : > { %2943 = vadd.xlane.f32.xlu1 %v2942_v54  ;;  %v5362_v54 = vld [vmem:[%s7301_s15 + $0x54] ss:$8 sps:$4 sm:$0xff]  }
 0xc59   : > { %v2941_v51 = vpop.xlane.xlu0 %2940 }
 0xc5a   : > { %5621 = vrcp.f32 %v2941_v51  ;;  %v5378_v51 = vld [vmem:[%s7301_s15 + $0xb0] ss:$8 sps:$4 sm:$0xff]  }
 0xc5b   : > { %v2944_v52 = vpop.xlane.xlu1 %2943 }
 0xc5c   : > { %5623 = vrcp.f32 %v2944_v52  ;;  %v5383_v52 = vld [vmem:[%s7301_s15 + $0xc4] ss:$8 sps:$4 sm:$0xff]  }
 0xc64   : > { %v5622_v6 = vpop.eup %5621 }
 0xc65   : > { %v2947_v36 = vmul.f32 %v5622_v6, %v5618_v46  ;;  %v5354_v46 = vld [vmem:[%s7301_s15 + $0x30] ss:$8 sps:$4 sm:$0xff]   ;;  %v5386_v6 = vld [vmem:[%s7301_s15 + $0xd4] ss:$8 sps:$4 sm:$0xff]  }
 0xc66   : > { %v5624_v8 = vpop.eup %5623  ;;  %3327 = vmatpush1.bf16.msra.mxu0 %v5354_v46  ;;  %v5399_v46 = vld [vmem:[%s7305_s19 + $0x20] ss:$16 sps:$4 sm:$0xff]  }
 0xc67   : > { %v2948_v11 = vmul.f32 %v5624_v8, %v5620_v48  ;;  %v5357_v48 = vld [vmem:[%s7301_s15 + $0x40] ss:$8 sps:$4 sm:$0xff]   ;;  %3328 = vmatprep.subr.bf16.mxu0 %v5359_v47  ;;  %v5384_v8 = vld [vmem:[%s7301_s15 + $0xd0] ss:$8 sps:$4 sm:$0xff]  }
 0xc68   : > { %v5402_v47 = vld [vmem:[%s7305_s19 + $0x28] ss:$16 sps:$4 sm:$0xff]  }
 0xc69   : > { %v2949_v12 = vpack.c.bf16 %v2948_v11, %v2947_v36  ;;  %v5387_v36 = vld [vmem:[%s7301_s15 + $0xe0] ss:$8 sps:$4 sm:$0xff]  }
 0xc6a   : > { %3329 = vmatpush1.bf16.msra.mxu0 %v5357_v48  ;;  %v5407_v48 = vld [vmem:[%s7305_s19 + $0x44] ss:$16 sps:$4 sm:$0xff]  }
 0xc6b   : > { %4976 = vmatmul.mubr.msk.bf16.vlgmr.msra.gmra.mrb[16].mxu1 %vm2926_vm10, %v2949_v12  ;;  %3330 = vmatprep.subr.bf16.mxu0 %v5362_v54  ;;  %v5410_v54 = vld [vmem:[%s7305_s19 + $0x4c] ss:$16 sps:$4 sm:$0xff]  }
 0xc6c   : > { %4980 = vmatpush3.bf16.xpose.msra.mxu1 %v2999_v13  ;;  %4981 = vmatprep.mubr.msk.bf16.mxu1 %vm5654_vm4, %v5653_v30 }
 0xc6d   : > { %4985 = vmatprep.subr.bf16.mxu1 %v5653_v30 }
 0xc6e   : > { %3331 = vmatpush1.bf16.msra.mxu0 %v5360_v56  ;;  %v5405_v56 = vld [vmem:[%s7305_s19 + $0x40] ss:$16 sps:$4 sm:$0xff]  }
 0xc6f   : > { %3332 = vmatprep.subr.bf16.mxu0 %v5365_v58  ;;  %v5408_v58 = vld [vmem:[%s7305_s19 + $0x48] ss:$16 sps:$4 sm:$0xff]  }
 0xc72   : > { %3333 = vmatpush1.bf16.msra.mxu0 %v5363_v60  ;;  %v5413_v60 = vld [vmem:[%s7305_s19 + $0x64] ss:$16 sps:$4 sm:$0xff]  }
 0xc73   : > { %4982 = vmatmul.mubr.bf16.vlgmr.msra.gmra.mrb[20].mxu1 %v2998_v55  ;;  %3334 = vmatprep.subr.bf16.mxu0 %v5368_v61  ;;  %v5416_v61 = vld [vmem:[%s7305_s19 + $0x6c] ss:$16 sps:$4 sm:$0xff]  }
 0xc74   : > { %4986 = vmatpush3.bf16.msra.mxu1 %v3071_v49  ;;  %4987 = vmatprep.mubr.msk.bf16.mxu1 %vm5654_vm4, %v5653_v30  ;;  %v5380_v49 = vld [vmem:[%s7301_s15 + $0xb4] ss:$8 sps:$4 sm:$0xff]  }
 0xc76   : > { %3335 = vmatpush1.bf16.msra.mxu0 %v5366_v0  ;;  %v5411_v0 = vld [vmem:[%s7305_s19 + $0x60] ss:$16 sps:$4 sm:$0xff]  }
 0xc77   : > { %3336 = vmatprep.subr.bf16.mxu0 %v5371_v32  ;;  %v5414_v32 = vld [vmem:[%s7305_s19 + $0x68] ss:$16 sps:$4 sm:$0xff]  }
 0xc7a   : > { %3337 = vmatpush1.bf16.msra.mxu0 %v5369_v33  ;;  %v5419_v33 = vld [vmem:[%s7305_s19 + $0x84] ss:$16 sps:$4 sm:$0xff]  }
 0xc7b   : > { %3338 = vmatprep.subr.bf16.mxu0 %v5374_v38  ;;  %v5422_v38 = vld [vmem:[%s7305_s19 + $0x8c] ss:$16 sps:$4 sm:$0xff]  }
 0xc7e   : > { %3339 = vmatpush1.bf16.msra.mxu0 %v5372_v39  ;;  %v5417_v39 = vld [vmem:[%s7305_s19 + $0x80] ss:$16 sps:$4 sm:$0xff]  }
 0xc7f   : > { %3340 = vmatprep.subr.bf16.mxu0 %v5377_v1  ;;  %v5420_v1 = vld [vmem:[%s7305_s19 + $0x88] ss:$16 sps:$4 sm:$0xff]  }
 0xc82   : > { %3341 = vmatpush1.bf16.msra.mxu0 %v5375_v2  ;;  %v5425_v2 = vld [vmem:[%s7305_s19 + $0xa4] ss:$16 sps:$4 sm:$0xff]  }
 0xc83   : > { %3342 = vmatprep.subr.bf16.mxu0 %v5380_v49  ;;  %v5428_v49 = vld [vmem:[%s7305_s19 + $0xac] ss:$16 sps:$4 sm:$0xff]  }
 0xc86   : > { %3343 = vmatpush1.bf16.msra.mxu0 %v5378_v51  ;;  %v5423_v51 = vld [vmem:[%s7305_s19 + $0xa0] ss:$16 sps:$4 sm:$0xff]  }
 0xc87   : > { %3344 = vmatprep.subr.bf16.mxu0 %v5383_v52  ;;  %v5426_v52 = vld [vmem:[%s7305_s19 + $0xa8] ss:$16 sps:$4 sm:$0xff]  }
 0xc8a   : > { %3345 = vmatpush1.bf16.msra.mxu0 %v5381_v5  ;;  %v5431_v5 = vld [vmem:[%s7305_s19 + $0xc4] ss:$16 sps:$4 sm:$0xff]  }
 0xc8b   : > { %3346 = vmatprep.subr.bf16.mxu0 %v5386_v6  ;;  %v5434_v6 = vld [vmem:[%s7305_s19 + $0xcc] ss:$16 sps:$4 sm:$0xff]  }
 0xc8e   : > { %3347 = vmatpush1.bf16.msra.mxu0 %v5384_v8  ;;  %v5429_v8 = vld [vmem:[%s7305_s19 + $0xc0] ss:$16 sps:$4 sm:$0xff]  }
 0xc8f   : > { %3348 = vmatprep.subr.bf16.mxu0 %v5389_v10  ;;  %v5432_v10 = vld [vmem:[%s7305_s19 + $0xc8] ss:$16 sps:$4 sm:$0xff]  }
 0xc92   : > { %3349 = vmatpush1.bf16.msra.mxu0 %v5387_v36 }
 0xd3e   : > { %v6702_v62 = vpop.f32.mrb[16].mxu1 }
 0xd3f   : > { %v4977_v25 = vpop.f32.mrb[17].mxu1 }
 0xd40   : > { %v6704_v14 = vpop.f32.mrb[18].mxu1 }
 0xd41   : > { %v3114_v15 = vpack.c.bf16 %v6704_v14, %v6702_v62  ;;  %v4978_v16 = vpop.f32.mrb[19].mxu1 }
 0xd46   : > { %v3035_v17 = vpop.f32.mrb[20].mxu1 }
 0xd47   : > { %v3042_v18 = vmul.f32 0.088388346, %v3035_v17  ;;  %v4983_v19 = vpop.f32.mrb[21].mxu1 }
 0xd48   : > { %v3038_v20 = vpop.f32.mrb[22].mxu1  ;;  %v5392_v19 = vld [vmem:[%s7301_s15 + $0xf4] ss:$8 sps:$4 sm:$0xff]  }
 0xd49   : > { %v3043_v21 = vmul.f32 0.088388346, %v3038_v20  ;;  %v4984_v50 = vpop.f32.mrb[23].mxu1  ;;  %v3044_v53 = vsel %vm2926_vm10, %v3042_v18, -inf  ;;  %v5390_v20 = vld [vmem:[%s7301_s15 + $0xf0] ss:$8 sps:$4 sm:$0xff]   ;;  %3350 = vmatprep.subr.bf16.mxu0 %v5392_v19 }
 0xd4a   : > { %3045 = vmax.xlane.f32.xlu0 %v3044_v53  ;;  %3351 = vmatpush1.bf16.msra.mxu0 %v5390_v20 }
 0xd4b   : > { %v3047_v30 = vsel %vm2926_vm10, %v3043_v21, -inf  ;;  %3896 = vmatprep.subr.bf16.mxu0 %v5398_v41  ;;  %v5461_v41 = vld [vmem:[%s7305_s19 + $0x164] ss:$16 sps:$4 sm:$0xff]  }
 0xd4c   : > { %3048 = vmax.xlane.f32.xlu1 %v3047_v30 }
 0xdd7   : > { %v3046_v55 = vpop.xlane.xlu0 %3045 }
 0xdd8   : > { %v3050_v57 = vsub.f32 %v3042_v18, %v3046_v55 }
 0xdd9   : > { %v3049_v22 = vpop.xlane.xlu1 %3048 }
 0xdda   : > { %v3052_v59 = vmul.f32 1.442695, %v3050_v57  ;;  %v3051_v63 = vsub.f32 %v3043_v21, %v3049_v22  ;;  %v3148_v57 = vld [vmem:[%s7302_s16] sm:$0x3] }
 0xddb   : > { %v3153_v22 = vrot.slane %v3148_v57, %v6011_v43 }
 0xddc   : > { %5625 = vpow2.f32 %v3052_v59  ;;  %v3054_v23 = vmul.f32 1.442695, %v3051_v63  ;;  %v3157_v59 = vrot.slane %v3148_v57, %v6014_v44  ;;  %v5440_v57 = vld [vmem:[%s7305_s19 + $0xec] ss:$16 sps:$4 sm:$0xff]  }
 0xdde   : > { %5627 = vpow2.f32 %v3054_v23 }
 0xde6   : > { %v6710_v24 = vpop.eup %5625 }
 0xde7   : > { %v3056_v26 = vsel %vm2926_vm10, %v6710_v24, 0.0 }
 0xde8   : > { %v6714_v27 = vpop.eup %5627  ;;  %3057 = vadd.xlane.f32.xlu0 %v3056_v26 }
 0xde9   : > { %v3059_v28 = vsel %vm2926_vm10, %v6714_v27, 0.0 }
 0xdea   : > { %3060 = vadd.xlane.f32.xlu1 %v3059_v28 }
 0xe75   : > { %v3058_v11 = vpop.xlane.xlu0 %3057 }
 0xe76   : > { %5629 = vrcp.f32 %v3058_v11 }
 0xe77   : > { %v3061_v12 = vpop.xlane.xlu1 %3060 }
 0xe78   : > { %5631 = vrcp.f32 %v3061_v12 }
 0xe80   : > { %v5630_v13 = vpop.eup %5629 }
 0xe81   : > { %v3064_v16 = vmul.f32 %v5630_v13, %v6710_v24 }
 0xe82   : > { %v5632_v25 = vpop.eup %5631 }
 0xe83   : > { %v3065_v17 = vmul.f32 %v5632_v25, %v6714_v27 }
 0xe85   : > { %v3066_v18 = vpack.c.bf16 %v3065_v17, %v3064_v16 }
 0xe87   : > { %4988 = vmatmul.mubr.msk.bf16.vlgmr.msra.gmra.mrb[24].mxu1 %vm2926_vm10, %v3066_v18 }
 0xf5a   : > { %v3107_v21 = vpop.f32.mrb[24].mxu1 }
 0xf5b   : > { %v4989_v50 = vpop.f32.mrb[25].mxu1 }
 0xf5c   : > { %v3110_v53 = vpop.f32.mrb[26].mxu1 }
 0xf5d   : > { %v3115_v30 = vpack.c.bf16 %v3110_v53, %v3107_v21  ;;  %v4990_v55 = vpop.f32.mrb[27].mxu1 }
 0xf5e   : > { %v5437_v55 = vld [vmem:[%s7305_s19 + $0xe4] ss:$16 sps:$4 sm:$0xff]  }
 0xf5f   : > { %3352 = vmatprep.mubr.bf16.mxu0 %v3115_v30 }
 0xf60   : > { %3353 = vmatmul.mubr.bf16.vlgmr.msra.gmra.mrb[32].mxu0 %v3114_v15 }
0x1033   : > { %v3354_v63 = vpop.f32.mrb[32].mxu0 }
0x1034   : > { %v3355_v23 = vadd.f32 %v3354_v63, %v3153_v22  ;;  %v3356_v24 = vpop.f32.mrb[33].mxu0  ;;  %v5443_v63 = vld [vmem:[%s7305_s19 + $0x104] ss:$16 sps:$4 sm:$0xff]  }
0x1035   : > { %v3357_v26 = vadd.f32 %v3356_v24, %v3157_v59  ;;  %v3358_v27 = vpop.f32.mrb[34].mxu0  ;;  %v5441_v24 = vld [vmem:[%s7305_s19 + $0x100] ss:$16 sps:$4 sm:$0xff]  }
0x1036   : > { %v6826_v28 = vadd.f32 %v3355_v23, %v6305_v3  ;;  %v3359_v29 = vadd.f32 %v3358_v27, %v3153_v22  ;;  %v3360_v34 = vpop.f32.mrb[35].mxu0  ;;  %v5435_v22 = vld [vmem:[%s7305_s19 + $0xe0] ss:$16 sps:$4 sm:$0xff]   ;;  %v5446_v23 = vld [vmem:[%s7305_s19 + $0x10c] ss:$16 sps:$4 sm:$0xff]  }
0x1037   : > { %v6829_v62 = vadd.f32 %v3357_v26, %v6308_v4  ;;  %v3361_v14 = vadd.f32 %v3360_v34, %v3157_v59  ;;  %v5393_v4 = vld [vmem:[%s7305_s19] ss:$16 sps:$4 sm:$0xff]   ;;  %v5438_v59 = vld [vmem:[%s7305_s19 + $0xe8] ss:$16 sps:$4 sm:$0xff]   ;;  %v5449_v27 = vld [vmem:[%s7305_s19 + $0x124] ss:$16 sps:$4 sm:$0xff]  }
0x1038   : > { %v6832_v15 = vadd.f32 %v3359_v29, %v6311_v7  ;;  %v5395_v7 = vld [vmem:[%s7305_s19 + $0x4] ss:$16 sps:$4 sm:$0xff]   ;;  %v5444_v26 = vld [vmem:[%s7305_s19 + $0x108] ss:$16 sps:$4 sm:$0xff]   ;;  %v5452_v29 = vld [vmem:[%s7305_s19 + $0x12c] ss:$16 sps:$4 sm:$0xff]  }
0x1039   : > { %v6835_v37 = vadd.f32 %v3361_v14, %v6314_v9  ;;  %v3369_v40 = vadd.f32 %v6829_v62, %v6826_v28  ;;  %v5396_v9 = vld [vmem:[%s7305_s19 + $0x8] ss:$16 sps:$4 sm:$0xff]   ;;  %3853 = vmatprep.subr.bf16.mxu1 %v5395_v7  ;;  %v5447_v34 = vld [vmem:[%s7305_s19 + $0x120] ss:$16 sps:$4 sm:$0xff]  }
0x103a   : > { %3854 = vmatpush1.bf16.msra.mxu1 %v5393_v4  ;;  %3897 = vmatpush1.bf16.msra.mxu0 %v5396_v9  ;;  %v5450_v14 = vld [vmem:[%s7305_s19 + $0x128] ss:$16 sps:$4 sm:$0xff]   ;;  %v5453_v4 = vld [vmem:[%s7305_s19 + $0x140] ss:$16 sps:$4 sm:$0xff]  }
0x103b   : > { %3370 = vadd.xlane.f32.xlu0 %v3369_v40  ;;  %v3372_v3 = vadd.f32 %v6835_v37, %v6832_v15  ;;  %3855 = vmatprep.subr.bf16.mxu1 %v5401_v45  ;;  %v5455_v40 = vld [vmem:[%s7305_s19 + $0x144] ss:$16 sps:$4 sm:$0xff]   ;;  %v5456_v7 = vld [vmem:[%s7305_s19 + $0x148] ss:$16 sps:$4 sm:$0xff]   ;;  %v5459_v9 = vld [vmem:[%s7305_s19 + $0x160] ss:$16 sps:$4 sm:$0xff]  }
0x103c   : > { %3898 = vmatprep.subr.bf16.mxu0 %v5404_v42  ;;  %v5462_v45 = vld [vmem:[%s7305_s19 + $0x168] ss:$16 sps:$4 sm:$0xff]   ;;  %v5464_v42 = vld [vmem:[%s7305_s19 + $0x16c] ss:$16 sps:$4 sm:$0xff]  }
0x103d   : > { %3373 = vadd.xlane.f32.xlu1 %v3372_v3  ;;  %v5458_v3 = vld [vmem:[%s7305_s19 + $0x14c] ss:$16 sps:$4 sm:$0xff]  }
0x103e   : > { %3856 = vmatpush1.bf16.msra.mxu1 %v5399_v46  ;;  %3899 = vmatpush1.bf16.msra.mxu0 %v5402_v47  ;;  %v5467_v46 = vld [vmem:[%s7305_s19 + $0x184] ss:$16 sps:$4 sm:$0xff]   ;;  %v5470_v47 = vld [vmem:[%s7305_s19 + $0x18c] ss:$16 sps:$4 sm:$0xff]  }
0x103f   : > { %3857 = vmatprep.subr.bf16.mxu1 %v5407_v48  ;;  %3900 = vmatprep.subr.bf16.mxu0 %v5410_v54  ;;  %v5465_v48 = vld [vmem:[%s7305_s19 + $0x180] ss:$16 sps:$4 sm:$0xff]   ;;  %v5468_v54 = vld [vmem:[%s7305_s19 + $0x188] ss:$16 sps:$4 sm:$0xff]  }
0x1042   : > { %3858 = vmatpush1.bf16.msra.mxu1 %v5405_v56  ;;  %3901 = vmatpush1.bf16.msra.mxu0 %v5408_v58  ;;  %v5473_v56 = vld [vmem:[%s7305_s19 + $0x1a4] ss:$16 sps:$4 sm:$0xff]   ;;  %v5476_v58 = vld [vmem:[%s7305_s19 + $0x1ac] ss:$16 sps:$4 sm:$0xff]  }
0x1043   : > { %3859 = vmatprep.subr.bf16.mxu1 %v5413_v60  ;;  %3902 = vmatprep.subr.bf16.mxu0 %v5416_v61  ;;  %v5471_v60 = vld [vmem:[%s7305_s19 + $0x1a0] ss:$16 sps:$4 sm:$0xff]   ;;  %v5474_v61 = vld [vmem:[%s7305_s19 + $0x1a8] ss:$16 sps:$4 sm:$0xff]  }
0x1046   : > { %3860 = vmatpush1.bf16.msra.mxu1 %v5411_v0  ;;  %3903 = vmatpush1.bf16.msra.mxu0 %v5414_v32  ;;  %v5479_v0 = vld [vmem:[%s7305_s19 + $0x1c4] ss:$16 sps:$4 sm:$0xff]   ;;  %v5482_v32 = vld [vmem:[%s7305_s19 + $0x1cc] ss:$16 sps:$4 sm:$0xff]  }
0x1047   : > { %3861 = vmatprep.subr.bf16.mxu1 %v5419_v33  ;;  %3904 = vmatprep.subr.bf16.mxu0 %v5422_v38  ;;  %v5477_v33 = vld [vmem:[%s7305_s19 + $0x1c0] ss:$16 sps:$4 sm:$0xff]   ;;  %v5480_v38 = vld [vmem:[%s7305_s19 + $0x1c8] ss:$16 sps:$4 sm:$0xff]  }
0x104a   : > { %3862 = vmatpush1.bf16.msra.mxu1 %v5417_v39  ;;  %3905 = vmatpush1.bf16.msra.mxu0 %v5420_v1  ;;  %v5485_v39 = vld [vmem:[%s7305_s19 + $0x1e4] ss:$16 sps:$4 sm:$0xff]   ;;  %v5488_v1 = vld [vmem:[%s7305_s19 + $0x1ec] ss:$16 sps:$4 sm:$0xff]  }
0x104b   : > { %3863 = vmatprep.subr.bf16.mxu1 %v5425_v2  ;;  %3906 = vmatprep.subr.bf16.mxu0 %v5428_v49  ;;  %v5483_v2 = vld [vmem:[%s7305_s19 + $0x1e0] ss:$16 sps:$4 sm:$0xff]   ;;  %v5486_v49 = vld [vmem:[%s7305_s19 + $0x1e8] ss:$16 sps:$4 sm:$0xff]  }
0x104e   : > { %3864 = vmatpush1.bf16.msra.mxu1 %v5423_v51  ;;  %3907 = vmatpush1.bf16.msra.mxu0 %v5426_v52  ;;  %v5491_v51 = vld [vmem:[%s7307_s21 + $0x4] ss:$8 sps:$4 sm:$0xff]  }
0x104f   : > { %3865 = vmatprep.subr.bf16.mxu1 %v5431_v5  ;;  %3908 = vmatprep.subr.bf16.mxu0 %v5434_v6 }
0x1052   : > { %3866 = vmatpush1.bf16.msra.mxu1 %v5429_v8  ;;  %3909 = vmatpush1.bf16.msra.mxu0 %v5432_v10 }
0x1053   : > { %3867 = vmatprep.subr.bf16.mxu1 %v5437_v55  ;;  %3910 = vmatprep.subr.bf16.mxu0 %v5440_v57  ;;  %v3367_v57 = vld [vmem:[%s7303_s17] sm:$0x3] }
0x1056   : > { %3868 = vmatpush1.bf16.msra.mxu1 %v5435_v22  ;;  %3911 = vmatpush1.bf16.msra.mxu0 %v5438_v59  ;;  %v3411_v22 = vrot.slane %v3367_v57, %v6011_v43  ;;  %v3415_v59 = vrot.slane %v3367_v57, %v6014_v44 }
0x1057   : > { %3869 = vmatprep.subr.bf16.mxu1 %v5443_v63  ;;  %3912 = vmatprep.subr.bf16.mxu0 %v5446_v23  ;;  %v3368_v63 = vld [vmem:[%s7304_s18] sm:$0x3] }
0x105a   : > { %3870 = vmatpush1.bf16.msra.mxu1 %v5441_v24  ;;  %3913 = vmatpush1.bf16.msra.mxu0 %v5444_v26 }
0x105b   : > { %3871 = vmatprep.subr.bf16.mxu1 %v5449_v27  ;;  %3914 = vmatprep.subr.bf16.mxu0 %v5452_v29 }
0x105e   : > { %3872 = vmatpush1.bf16.msra.mxu1 %v5447_v34  ;;  %3915 = vmatpush1.bf16.msra.mxu0 %v5450_v14  ;;  %v3434_v34 = vrot.slane %v3368_v63, %v6011_v43  ;;  %v3438_v14 = vrot.slane %v3368_v63, %v6014_v44 }
0x105f   : > { %3873 = vmatprep.subr.bf16.mxu1 %v5455_v40  ;;  %3916 = vmatprep.subr.bf16.mxu0 %v5458_v3 }
0x1062   : > { %3874 = vmatpush1.bf16.msra.mxu1 %v5453_v4  ;;  %3917 = vmatpush1.bf16.msra.mxu0 %v5456_v7 }
0x1063   : > { %3875 = vmatprep.subr.bf16.mxu1 %v5461_v41  ;;  %3918 = vmatprep.subr.bf16.mxu0 %v5464_v42 }
0x1066   : > { %3876 = vmatpush1.bf16.msra.mxu1 %v5459_v9  ;;  %3919 = vmatpush1.bf16.msra.mxu0 %v5462_v45 }
0x1067   : > { %3877 = vmatprep.subr.bf16.mxu1 %v5467_v46  ;;  %3920 = vmatprep.subr.bf16.mxu0 %v5470_v47  ;;  %v5492_v47 = vld [vmem:[%s7307_s21 + $0x10] ss:$8 sps:$4 sm:$0xff]  }
0x106a   : > { %3878 = vmatpush1.bf16.msra.mxu1 %v5465_v48  ;;  %3921 = vmatpush1.bf16.msra.mxu0 %v5468_v54  ;;  %v5497_v48 = vld [vmem:[%s7307_s21 + $0x24] ss:$8 sps:$4 sm:$0xff]   ;;  %v5495_v54 = vld [vmem:[%s7307_s21 + $0x20] ss:$8 sps:$4 sm:$0xff]  }
0x106b   : > { %3879 = vmatprep.subr.bf16.mxu1 %v5473_v56  ;;  %3922 = vmatprep.subr.bf16.mxu0 %v5476_v58  ;;  %v5500_v56 = vld [vmem:[%s7307_s21 + $0x34] ss:$8 sps:$4 sm:$0xff]   ;;  %v5498_v58 = vld [vmem:[%s7307_s21 + $0x30] ss:$8 sps:$4 sm:$0xff]  }
0x106e   : > { %3880 = vmatpush1.bf16.msra.mxu1 %v5471_v60  ;;  %3923 = vmatpush1.bf16.msra.mxu0 %v5474_v61  ;;  %v5503_v60 = vld [vmem:[%s7307_s21 + $0x44] ss:$8 sps:$4 sm:$0xff]   ;;  %v5501_v61 = vld [vmem:[%s7307_s21 + $0x40] ss:$8 sps:$4 sm:$0xff]  }
0x106f   : > { %3881 = vmatprep.subr.bf16.mxu1 %v5479_v0  ;;  %3924 = vmatprep.subr.bf16.mxu0 %v5482_v32  ;;  %v5506_v0 = vld [vmem:[%s7307_s21 + $0x54] ss:$8 sps:$4 sm:$0xff]   ;;  %v5504_v32 = vld [vmem:[%s7307_s21 + $0x50] ss:$8 sps:$4 sm:$0xff]  }
0x1072   : > { %3882 = vmatpush1.bf16.msra.mxu1 %v5477_v33  ;;  %3925 = vmatpush1.bf16.msra.mxu0 %v5480_v38  ;;  %v5509_v33 = vld [vmem:[%s7307_s21 + $0x64] ss:$8 sps:$4 sm:$0xff]   ;;  %v5507_v38 = vld [vmem:[%s7307_s21 + $0x60] ss:$8 sps:$4 sm:$0xff]  }
0x1073   : > { %3883 = vmatprep.subr.bf16.mxu1 %v5485_v39  ;;  %3926 = vmatprep.subr.bf16.mxu0 %v5488_v1  ;;  %v5512_v39 = vld [vmem:[%s7307_s21 + $0x74] ss:$8 sps:$4 sm:$0xff]   ;;  %v5510_v1 = vld [vmem:[%s7307_s21 + $0x70] ss:$8 sps:$4 sm:$0xff]  }
0x1076   : > { %3884 = vmatpush1.bf16.msra.mxu1 %v5483_v2  ;;  %3927 = vmatpush1.bf16.msra.mxu0 %v5486_v49  ;;  %v5515_v2 = vld [vmem:[%s7307_s21 + $0x84] ss:$8 sps:$4 sm:$0xff]   ;;  %v5513_v49 = vld [vmem:[%s7307_s21 + $0x80] ss:$8 sps:$4 sm:$0xff]  }
0x1077   : > { %4347 = vmatprep.subr.bf16.mxu1 %v5491_v51  ;;  %v5518_v51 = vld [vmem:[%s7307_s21 + $0x94] ss:$8 sps:$4 sm:$0xff]  }
0x10c8   : > { %v3371_v36 = vpop.xlane.xlu0 %3370 }
0x10c9   : > { %v3375_v11 = vmul.f32 0.00390625, %v3371_v36 }
0x10ca   : > { %v3374_v12 = vpop.xlane.xlu1 %3373 }
0x10cb   : > { %v6926_v13 = vsub.f32 %v6826_v28, %v3375_v11  ;;  %v6929_v25 = vsub.f32 %v6829_v62, %v3375_v11  ;;  %v3376_v16 = vmul.f32 0.00390625, %v3374_v12 }
0x10cd   : > { %v6932_v17 = vsub.f32 %v6832_v15, %v3376_v16  ;;  %v6935_v18 = vsub.f32 %v6835_v37, %v3376_v16  ;;  %v3381_v19 = vmul.f32 %v6926_v13, %v6926_v13  ;;  %v3382_v20 = vmul.f32 %v6929_v25, %v6929_v25 }
0x10ce   : > { %v3418_v23 = vmul.f32 %v3411_v22, %v6926_v13  ;;  %v3419_v24 = vmul.f32 %v3415_v59, %v6929_v25 }
0x10cf   : > { %v3383_v21 = vmul.f32 %v6932_v17, %v6932_v17  ;;  %v3384_v50 = vmul.f32 %v6935_v18, %v6935_v18  ;;  %v3385_v53 = vadd.f32 %v3382_v20, %v3381_v19  ;;  %v3420_v27 = vmul.f32 %v3411_v22, %v6932_v17  ;;  %v5489_v17 = vld [vmem:[%s7307_s21] ss:$8 sps:$4 sm:$0xff]  }
0x10d0   : > { %v3421_v29 = vmul.f32 %v3415_v59, %v6935_v18  ;;  %v5494_v18 = vld [vmem:[%s7307_s21 + $0x14] ss:$8 sps:$4 sm:$0xff]  }
0x10d1   : > { %v3388_v30 = vadd.f32 %v3384_v50, %v3383_v21  ;;  %3386 = vadd.xlane.f32.xlu0 %v3385_v53 }
0x10d3   : > { %3389 = vadd.xlane.f32.xlu1 %v3388_v30 }
0x115e   : > { %v3387_v52 = vpop.xlane.xlu0 %3386 }
0x115f   : > { %v3391_v5 = vmul.f32 0.003921569, %v3387_v52  ;;  %v5516_v52 = vld [vmem:[%s7307_s21 + $0x90] ss:$8 sps:$4 sm:$0xff]  }
0x1160   : > { %v3390_v6 = vpop.xlane.xlu1 %3389 }
0x1161   : > { %v3392_v8 = vmul.f32 0.003921569, %v3390_v6  ;;  %5633 = vrsqrt.f32 %v3391_v5  ;;  %vm3395_vm12 = vcmp.eq.f32.partialorder %v3391_v5, inf  ;;  %v3398_v12 = vand.u32 2147483648, %v3391_v5  ;;  %v5519_v6 = vld [vmem:[%s7307_s21 + $0xa0] ss:$8 sps:$4 sm:$0xff]  }
0x1162   : > { %vm3397_vm13 = vcmp.eq.f32.partialorder %v3391_v5, 0.0 }
0x1163   : > { %5635 = vrsqrt.f32 %v3392_v8  ;;  %vm3402_vm14 = vcmp.eq.f32.partialorder %v3392_v8, inf  ;;  %v3405_v20 = vand.u32 2147483648, %v3392_v8  ;;  %vm3404_vm15 = vcmp.eq.f32.partialorder %v3392_v8, 0.0 }
0x116b   : > { %v5634_v10 = vpop.eup %5633 }
0x116c   : > { %v3394_v11 = vmul.f32 %v5634_v10, %v3391_v5  ;;  %v5522_v10 = vld [vmem:[%s7307_s21 + $0xb0] ss:$8 sps:$4 sm:$0xff]  }
0x116d   : > { %v5636_v36 = vpop.eup %5635 }
0x116e   : > { %v3401_v16 = vmul.f32 %v5636_v36, %v3392_v8  ;;  %v3396_v19 = vsel %vm3395_vm12, %v3391_v5, %v3394_v11  ;;  %v5521_v5 = vld [vmem:[%s7307_s21 + $0xa4] ss:$8 sps:$4 sm:$0xff]   ;;  %v5525_v11 = vld [vmem:[%s7307_s21 + $0xc0] ss:$8 sps:$4 sm:$0xff]  }
0x116f   : > { %v3399_v50 = vsel %vm3397_vm13, %v3398_v12, %v3396_v19  ;;  %v5527_v36 = vld [vmem:[%s7307_s21 + $0xc4] ss:$8 sps:$4 sm:$0xff]   ;;  %v5530_v12 = vld [vmem:[%s7307_s21 + $0xd4] ss:$8 sps:$4 sm:$0xff]  }
0x1170   : > { %v3403_v21 = vsel %vm3402_vm14, %v3392_v8, %v3401_v16  ;;  %v3422_v30 = vadd.f32 1e-06, %v3399_v50  ;;  %v5524_v8 = vld [vmem:[%s7307_s21 + $0xb4] ss:$8 sps:$4 sm:$0xff]   ;;  %v5528_v16 = vld [vmem:[%s7307_s21 + $0xd0] ss:$8 sps:$4 sm:$0xff]  }
0x1171   : > { %v3406_v53 = vsel %vm3404_vm15, %v3405_v20, %v3403_v21  ;;  %v5533_v19 = vld [vmem:[%s7307_s21 + $0xe4] ss:$8 sps:$4 sm:$0xff]   ;;  %v5531_v20 = vld [vmem:[%s7307_s21 + $0xe0] ss:$8 sps:$4 sm:$0xff]   ;;  %v5536_v21 = vld [vmem:[%s7307_s21 + $0xf4] ss:$8 sps:$4 sm:$0xff]  }
0x1172   : > { %v3423_v55 = vadd.f32 1e-06, %v3406_v53  ;;  %5637 = vrcp.f32 %v3422_v30  ;;  %v5534_v50 = vld [vmem:[%s7307_s21 + $0xf0] ss:$8 sps:$4 sm:$0xff]   ;;  %v5539_v53 = vld [vmem:[%s7307_s21 + $0x104] ss:$8 sps:$4 sm:$0xff]  }
0x1173   : > { %v3511_v30 = vld [vmem:[%s7306_s20] sm:$0xf] }
0x1174   : > { %5639 = vrcp.f32 %v3423_v55  ;;  %v3516_v55 = vrot.slane %v3511_v30, %v6011_v43  ;;  %v3524_v57 = vrot.slane %v3511_v30, %v6132_v31  ;;  %v3520_v22 = vrot.slane %v3511_v30, %v6014_v44 }
0x1175   : > { %v3528_v59 = vrot.slane %v3511_v30, %v6138_v35  ;;  %v5578_v30 = vld [vmem:[%s7307_s21 + $0x1d4] ss:$8 sps:$4 sm:$0xff]  }
0x117c   : > { %v5638_v26 = vpop.eup %5637 }
0x117d   : > { %v3426_v3 = vmul.f32 %v5638_v26, %v3419_v24  ;;  %v3425_v4 = vmul.f32 %v5638_v26, %v3418_v23 }
0x117e   : > { %v5640_v40 = vpop.eup %5639 }
0x117f   : > { %v3429_v7 = vmul.f32 %v5640_v40, %v3421_v29  ;;  %v3428_v9 = vmul.f32 %v5640_v40, %v3420_v27  ;;  %v3442_v41 = vadd.f32 %v3438_v14, %v3426_v3  ;;  %v3441_v42 = vadd.f32 %v3434_v34, %v3425_v4 }
0x1181   : > { %v3444_v45 = vadd.f32 %v3438_v14, %v3429_v7  ;;  %v3443_v13 = vadd.f32 %v3434_v34, %v3428_v9 }
0x1183   : > { %v3446_v46 = vpack.c.bf16 %v3444_v45, %v3442_v41  ;;  %v3445_v25 = vpack.c.bf16 %v3443_v13, %v3441_v42 }
0x1185   : > { %3885 = vmatprep.mubr.bf16.mxu1 %v3446_v46  ;;  %3928 = vmatprep.mubr.bf16.mxu0 %v3446_v46 }
0x1186   : > { %3886 = vmatmul.mubr.bf16.vlgmr.msra.gmra.mrb[28].mxu1 %v3445_v25  ;;  %3929 = vmatmul.mubr.bf16.vlgmr.msra.gmra.mrb[36].mxu0 %v3445_v25 }
0x1187   : > { %4348 = vmatpush1.bf16.msra.mxu1 %v5489_v17 }
0x1188   : > { %4349 = vmatprep.subr.bf16.mxu1 %v5494_v18 }
0x118b   : > { %4350 = vmatpush1.bf16.msra.mxu1 %v5492_v47 }
0x118c   : > { %4351 = vmatprep.subr.bf16.mxu1 %v5497_v48 }
0x118f   : > { %4352 = vmatpush1.bf16.msra.mxu1 %v5495_v54 }
0x1190   : > { %4353 = vmatprep.subr.bf16.mxu1 %v5500_v56 }
0x1193   : > { %4354 = vmatpush1.bf16.msra.mxu1 %v5498_v58 }
0x1194   : > { %4355 = vmatprep.subr.bf16.mxu1 %v5503_v60  ;;  %v5537_v60 = vld [vmem:[%s7307_s21 + $0x100] ss:$8 sps:$4 sm:$0xff]  }
0x1197   : > { %4356 = vmatpush1.bf16.msra.mxu1 %v5501_v61  ;;  %v5542_v61 = vld [vmem:[%s7307_s21 + $0x114] ss:$8 sps:$4 sm:$0xff]  }
0x1198   : > { %4357 = vmatprep.subr.bf16.mxu1 %v5506_v0  ;;  %v5540_v0 = vld [vmem:[%s7307_s21 + $0x110] ss:$8 sps:$4 sm:$0xff]  }
0x119b   : > { %4358 = vmatpush1.bf16.msra.mxu1 %v5504_v32  ;;  %v5545_v32 = vld [vmem:[%s7307_s21 + $0x124] ss:$8 sps:$4 sm:$0xff]  }
0x119c   : > { %4359 = vmatprep.subr.bf16.mxu1 %v5509_v33  ;;  %v5543_v33 = vld [vmem:[%s7307_s21 + $0x120] ss:$8 sps:$4 sm:$0xff]  }
0x119f   : > { %4360 = vmatpush1.bf16.msra.mxu1 %v5507_v38  ;;  %v5548_v38 = vld [vmem:[%s7307_s21 + $0x134] ss:$8 sps:$4 sm:$0xff]  }
0x11a0   : > { %4361 = vmatprep.subr.bf16.mxu1 %v5512_v39  ;;  %v5546_v39 = vld [vmem:[%s7307_s21 + $0x130] ss:$8 sps:$4 sm:$0xff]  }
0x11a3   : > { %4362 = vmatpush1.bf16.msra.mxu1 %v5510_v1  ;;  %v5551_v1 = vld [vmem:[%s7307_s21 + $0x144] ss:$8 sps:$4 sm:$0xff]  }
0x11a4   : > { %4363 = vmatprep.subr.bf16.mxu1 %v5515_v2  ;;  %v5549_v2 = vld [vmem:[%s7307_s21 + $0x140] ss:$8 sps:$4 sm:$0xff]  }
0x11a7   : > { %4364 = vmatpush1.bf16.msra.mxu1 %v5513_v49  ;;  %v5554_v49 = vld [vmem:[%s7307_s21 + $0x154] ss:$8 sps:$4 sm:$0xff]  }
0x11a8   : > { %4365 = vmatprep.subr.bf16.mxu1 %v5518_v51  ;;  %v5552_v51 = vld [vmem:[%s7307_s21 + $0x150] ss:$8 sps:$4 sm:$0xff]  }
0x11ab   : > { %4366 = vmatpush1.bf16.msra.mxu1 %v5516_v52  ;;  %v5557_v52 = vld [vmem:[%s7307_s21 + $0x164] ss:$8 sps:$4 sm:$0xff]  }
0x11ac   : > { %4367 = vmatprep.subr.bf16.mxu1 %v5521_v5  ;;  %v5555_v5 = vld [vmem:[%s7307_s21 + $0x160] ss:$8 sps:$4 sm:$0xff]  }
0x11af   : > { %4368 = vmatpush1.bf16.msra.mxu1 %v5519_v6  ;;  %v5560_v6 = vld [vmem:[%s7307_s21 + $0x174] ss:$8 sps:$4 sm:$0xff]  }
0x11b0   : > { %4369 = vmatprep.subr.bf16.mxu1 %v5524_v8  ;;  %v5558_v8 = vld [vmem:[%s7307_s21 + $0x170] ss:$8 sps:$4 sm:$0xff]  }
0x11b3   : > { %4370 = vmatpush1.bf16.msra.mxu1 %v5522_v10  ;;  %v5563_v10 = vld [vmem:[%s7307_s21 + $0x184] ss:$8 sps:$4 sm:$0xff]  }
0x11b4   : > { %4371 = vmatprep.subr.bf16.mxu1 %v5527_v36  ;;  %v5561_v36 = vld [vmem:[%s7307_s21 + $0x180] ss:$8 sps:$4 sm:$0xff]  }
0x11b7   : > { %4372 = vmatpush1.bf16.msra.mxu1 %v5525_v11  ;;  %v5566_v11 = vld [vmem:[%s7307_s21 + $0x194] ss:$8 sps:$4 sm:$0xff]  }
0x11b8   : > { %4373 = vmatprep.subr.bf16.mxu1 %v5530_v12  ;;  %v5564_v12 = vld [vmem:[%s7307_s21 + $0x190] ss:$8 sps:$4 sm:$0xff]  }
0x11bb   : > { %4374 = vmatpush1.bf16.msra.mxu1 %v5528_v16  ;;  %v5569_v16 = vld [vmem:[%s7307_s21 + $0x1a4] ss:$8 sps:$4 sm:$0xff]  }
0x11bc   : > { %4375 = vmatprep.subr.bf16.mxu1 %v5533_v19  ;;  %v5567_v19 = vld [vmem:[%s7307_s21 + $0x1a0] ss:$8 sps:$4 sm:$0xff]  }
0x11bf   : > { %4376 = vmatpush1.bf16.msra.mxu1 %v5531_v20  ;;  %v5572_v20 = vld [vmem:[%s7307_s21 + $0x1b4] ss:$8 sps:$4 sm:$0xff]  }
0x11c0   : > { %4377 = vmatprep.subr.bf16.mxu1 %v5536_v21  ;;  %v5570_v21 = vld [vmem:[%s7307_s21 + $0x1b0] ss:$8 sps:$4 sm:$0xff]  }
0x11c3   : > { %4378 = vmatpush1.bf16.msra.mxu1 %v5534_v50  ;;  %v5575_v50 = vld [vmem:[%s7307_s21 + $0x1c4] ss:$8 sps:$4 sm:$0xff]  }
0x11c4   : > { %4390 = vmatprep.subr.bf16.mxu1 %v5539_v53  ;;  %v5573_v53 = vld [vmem:[%s7307_s21 + $0x1c0] ss:$8 sps:$4 sm:$0xff]  }
0x1259   : > { %v3887_v63 = vpop.f32.mrb[28].mxu1  ;;  %v3930_v23 = vpop.f32.mrb[36].mxu0 }
0x125a   : > { %v3888_v24 = vadd.f32 %v3887_v63, %v3516_v55  ;;  %v3931_v26 = vadd.f32 %v3930_v23, %v3524_v57  ;;  %v3889_v27 = vpop.f32.mrb[29].mxu1  ;;  %v3932_v29 = vpop.f32.mrb[37].mxu0  ;;  %v5582_v63 = vld [vmem:[%s7307_s21 + $0x1f0] ss:$8 sps:$4 sm:$0xff]   ;;  %v4015_v23 = vld [vmem:[%s7308_s22] sm:$0x3] }
0x125b   : > { %v3890_v34 = vadd.f32 %v3889_v27, %v3520_v22  ;;  %v3933_v14 = vadd.f32 %v3932_v29, %v3528_v59  ;;  %v3891_v40 = vpop.f32.mrb[30].mxu1  ;;  %v3934_v3 = vpop.f32.mrb[38].mxu0 }
0x125c   : > { %v3892_v4 = vadd.f32 %v3891_v40, %v3516_v55  ;;  %v3935_v7 = vadd.f32 %v3934_v3, %v3524_v57  ;;  %v3893_v9 = vpop.f32.mrb[31].mxu1  ;;  %v3936_v41 = vpop.f32.mrb[39].mxu0  ;;  %v3939_v42 = vmax.f32 %v3888_v24, 0.0  ;;  %v3941_v13 = vmax.f32 %v3931_v26, 0.0  ;;  %v5576_v55 = vld [vmem:[%s7307_s21 + $0x1d0] ss:$8 sps:$4 sm:$0xff]  }
0x125d   : > { %v3894_v45 = vadd.f32 %v3893_v9, %v3520_v22  ;;  %v3937_v31 = vadd.f32 %v3936_v41, %v3528_v59  ;;  %v3940_v25 = vmax.f32 %v3890_v34, 0.0  ;;  %v3942_v17 = vmax.f32 %v3933_v14, 0.0  ;;  %v5581_v57 = vld [vmem:[%s7307_s21 + $0x1e4] ss:$8 sps:$4 sm:$0xff]   ;;  %v5579_v22 = vld [vmem:[%s7307_s21 + $0x1e0] ss:$8 sps:$4 sm:$0xff]  }
0x125e   : > { %v3943_v46 = vmax.f32 %v3892_v4, 0.0  ;;  %v3945_v35 = vmax.f32 %v3935_v7, 0.0  ;;  %v5584_v59 = vld [vmem:[%s7307_s21 + $0x1f4] ss:$8 sps:$4 sm:$0xff]   ;;  %v4020_v24 = vrot.slane %v4015_v23, %v6011_v43  ;;  %v4024_v26 = vrot.slane %v4015_v23, %v6014_v44 }
0x125f   : > { %v3944_v18 = vmax.f32 %v3894_v45, 0.0  ;;  %v3946_v47 = vmax.f32 %v3937_v31, 0.0 }
0x1260   : > { %v3947_v48 = vpack.c.bf16 %v3943_v46, %v3939_v42  ;;  %v7173_v54 = vpack.c.bf16 %v3945_v35, %v3941_v13 }
0x1261   : > { %v3948_v56 = vpack.c.bf16 %v3944_v18, %v3940_v25  ;;  %v3950_v58 = vpack.c.bf16 %v3946_v47, %v3942_v17 }
0x1263   : > { %4379 = vmatprep.mubr.bf16.mxu1 %v3948_v56 }
0x1264   : > { %4380 = vmatmul.mubr.bf16.vlgmr.msra.gmra.mrb[32].mxu1 %v3947_v48 }
0x1265   : > { %4391 = vmatpush1.bf16.msra.mxu1 %v5537_v60  ;;  %4422 = vmatprep.mubr.bf16.mxu1 %v3950_v58 }
0x1266   : > { %4392 = vmatprep.subr.bf16.mxu1 %v5542_v61 }
0x1269   : > { %4393 = vmatpush1.bf16.msra.mxu1 %v5540_v0 }
0x126a   : > { %4394 = vmatprep.subr.bf16.mxu1 %v5545_v32 }
0x126d   : > { %4395 = vmatpush1.bf16.msra.mxu1 %v5543_v33 }
0x126e   : > { %4396 = vmatprep.subr.bf16.mxu1 %v5548_v38 }
0x1271   : > { %4397 = vmatpush1.bf16.msra.mxu1 %v5546_v39 }
0x1272   : > { %4398 = vmatprep.subr.bf16.mxu1 %v5551_v1 }
0x1275   : > { %4399 = vmatpush1.bf16.msra.mxu1 %v5549_v2 }
0x1276   : > { %4400 = vmatprep.subr.bf16.mxu1 %v5554_v49 }
0x1279   : > { %4401 = vmatpush1.bf16.msra.mxu1 %v5552_v51 }
0x127a   : > { %4402 = vmatprep.subr.bf16.mxu1 %v5557_v52 }
0x127d   : > { %4403 = vmatpush1.bf16.msra.mxu1 %v5555_v5 }
0x127e   : > { %4404 = vmatprep.subr.bf16.mxu1 %v5560_v6 }
0x1281   : > { %4405 = vmatpush1.bf16.msra.mxu1 %v5558_v8 }
0x1282   : > { %4406 = vmatprep.subr.bf16.mxu1 %v5563_v10 }
0x1285   : > { %4407 = vmatpush1.bf16.msra.mxu1 %v5561_v36 }
0x1286   : > { %4408 = vmatprep.subr.bf16.mxu1 %v5566_v11 }
0x1289   : > { %4409 = vmatpush1.bf16.msra.mxu1 %v5564_v12 }
0x128a   : > { %4410 = vmatprep.subr.bf16.mxu1 %v5569_v16 }
0x128d   : > { %4411 = vmatpush1.bf16.msra.mxu1 %v5567_v19 }
0x128e   : > { %4412 = vmatprep.subr.bf16.mxu1 %v5572_v20 }
0x1291   : > { %4413 = vmatpush1.bf16.msra.mxu1 %v5570_v21 }
0x1292   : > { %4414 = vmatprep.subr.bf16.mxu1 %v5575_v50 }
0x1295   : > { %4415 = vmatpush1.bf16.msra.mxu1 %v5573_v53 }
0x1296   : > { %4416 = vmatprep.subr.bf16.mxu1 %v5578_v30 }
0x1299   : > { %4417 = vmatpush1.bf16.msra.mxu1 %v5576_v55 }
0x129a   : > { %4418 = vmatprep.subr.bf16.mxu1 %v5581_v57 }
0x129d   : > { %4419 = vmatpush1.bf16.msra.mxu1 %v5579_v22 }
0x129e   : > { %4420 = vmatprep.subr.bf16.mxu1 %v5584_v59 }
0x12a1   : > { %4421 = vmatpush1.bf16.msra.mxu1 %v5582_v63 }
0x12a4   : > { %4423 = vmatmul.mubr.bf16.vlgmr.msra.gmra.mrb[32].mxu1 %v7173_v54 }
0x1377   : > { %v4424_v27 = vpop.f32.mrb[32].mxu1 }
0x1378   : > { %v4991_v29 = vadd.f32 %v4424_v27, %v4020_v24  ;;  %v4426_v34 = vpop.f32.mrb[33].mxu1 }
0x1379   : > { %v4992_v14 = vadd.f32 %v4426_v34, %v4024_v26  ;;  %v4428_v40 = vpop.f32.mrb[34].mxu1 }
0x137a   : > { %v4433_v3 = vadd.f32 %v4991_v29, %v6826_v28  ;;  %v4993_v4 = vadd.f32 %v4428_v40, %v4020_v24  ;;  %v4430_v7 = vpop.f32.mrb[35].mxu1 }
0x137b   : > { %v4434_v9 = vadd.f32 %v4992_v14, %v6829_v62  ;;  %v4994_v41 = vadd.f32 %v4430_v7, %v4024_v26 }
0x137c   : > { %4437 = vst [vmem:[%s750_s2] sm:$0xff] %v4433_v3  ;;  %v4435_v43 = vadd.f32 %v4993_v4, %v6832_v15 }
0x137d   : > { %4438 = vst [vmem:[%s750_s2 + $0x8] sm:$0xff] %v4434_v9  ;;  %v4436_v44 = vadd.f32 %v4994_v41, %v6835_v37 }
0x137e   : > { %4439 = vst [vmem:[%s750_s2 + $0x10] sm:$0xff] %v4435_v43 }
0x137f   : > { %4440 = vst [vmem:[%s750_s2 + $0x18] sm:$0xff] %v4436_v44 }
0x1380 PF: > { %s33_s4 = sadd.s32 1, %s5651_s4  }
0x1381   : > { %p30_p4 = scmp.ge.s32.totalorder %s33_s4, 6  }
0x1383   :  { %32 = sbr.rel (!%p30_p4) target bundleno = 10 (0xa), region = 148 }

</bundles_post_ra>
